<compile_context>
chip_gen: v7x
topology: tpu7x:2x2x1
jax: 0.10.0
libtpu: 0.0.40
codegen_flags: <defaults>
</compile_context>

<pallas_src>
import numpy as np
import jax
import jax.numpy as jnp
from jax.experimental import pallas as pl
from jax.experimental.pallas import tpu as pltpu

CLASSES = ["other", "face", "notface"]
ANCHOR_OUTPUTS = 1 + 4 + len(CLASSES)                  # 8
ANCHOR_SCALES = 8                                      # len(MyModel.AnchorScales)
ANCHOR_TOTAL_OUTPUTS = ANCHOR_OUTPUTS * ANCHOR_SCALES  # 64
_CIN_PAD = 8                                           # conv1 Cin padded 3 -> 8 (zeros)

# sigmoid on out_idx 0 and 5..7 of every ANCHOR_OUTPUTS-sized group of the 64
# head channels (== outputs_all[:, :, :1] and outputs_all[:, :, 5:]).
# Kept as a plain numpy array and passed to the kernel as an INPUT.
_HEAD_MASK_NP = np.tile(
    np.array([1, 0, 0, 0, 0, 1, 1, 1], np.float32), ANCHOR_SCALES)[None, :]  # (1, 64)


# --------------------------- in-kernel conv helpers -------------------------

def _conv_s2_folded(xwin, wg_ref):
    """Phase-folded stride-2 3x3 conv: 4 MXU matmuls, f32 accumulation.

    xwin(a, b) -> (M, 4*Cin) bf16 unit-stride window; wg_ref: (4, 4*Cin, Cout) bf16.
    """
    acc = None
    for a in (0, 1):
        for b in (0, 1):
            part = jnp.dot(xwin(a, b), wg_ref[2 * a + b],
                           preferred_element_type=jnp.float32)
            acc = part if acc is None else acc + part
    return acc


def _conv_s1(win, w_ref):
    """Stride-1 3x3 conv: 9 MXU matmuls, f32 accumulation.

    win(kh, kw) -> (M, Cin) bf16; w_ref: (3, 3, Cin, Cout) bf16.
    """
    acc = None
    for kh in range(3):
        for kw in range(3):
            part = jnp.dot(win(kh, kw), w_ref[kh, kw],
                           preferred_element_type=jnp.float32)
            acc = part if acc is None else acc + part
    return acc


# ------------------------------ Pallas kernels ------------------------------

def _conv_s2_relu_kernel(xf_ref, wg_ref, o_ref):
    """One phase-folded stride-2 3x3 conv (pad=1, no bias) + ReLU, one image.

    xf_ref: (1, ho+1, wo+1, 4*cin) bf16 -- channel block p*2+q holds
            xpad[2i+p, 2j+q, :], so each tap-group (a, b) is a unit-stride window.
    wg_ref: (4, 4*cin, cout) bf16 tap-group weights (constant index_map).
    o_ref:  (1, ho, wo, cout) bf16
    """
    _, hp, wp, ck = xf_ref.shape
    ho, wo = hp - 1, wp - 1
    cout = wg_ref.shape[-1]
    m = ho * wo

    def xwin(a, b):
        return xf_ref[0, a:a + ho, b:b + wo, :].reshape(m, ck)

    acc = jnp.maximum(_conv_s2_folded(xwin, wg_ref), 0.0)          # (m, cout) f32
    o_ref[0] = acc.reshape(ho, wo, cout).astype(o_ref.dtype)


def _tail_head_kernel(x2f_ref, w3_ref, w4_ref, w5_ref, w6_ref, mask_ref,
                      o_ref, scr):
    """Fused conv3(s2)+ReLU -> conv4+ReLU -> conv5+ReLU -> conv6 + head sigmoid.

    x2f_ref: (1, h+1, w+1, 128) bf16 phase-folded conv3 input (h = H/8, w = W/8)
    w3_ref:  (4, 128, 32) bf16 tap-group weights
    w4_ref, w5_ref: (3, 3, 32, 32) bf16;  w6_ref: (3, 3, 32, 64) bf16
    mask_ref: (1, 64) f32 -- 1 where the head output gets a sigmoid
    o_ref:   (1, h*w, 64) f32 flattened head output
    scr:     VMEM (h+2, w+2, 32) bf16 -- zero-bordered holder for x3/x4/x5
    """
    _, hp, wp, ck = x2f_ref.shape
    h, w = hp - 1, wp - 1
    m = h * w
    c = scr.shape[-1]

    def xwin(a, b):
        return x2f_ref[0, a:a + h, b:b + w, :].reshape(m, ck)

    def swin(kh, kw):
        return scr[kh:kh + h, kw:kw + w, :].reshape(m, c)

    # Zero only the 1-pixel border; the interior is fully overwritten below.
    # Must run every grid step (each core owns a private scratch under
    # "parallel" semantics and scratch contents are otherwise undefined).
    scr[0:1, :, :] = jnp.zeros((1, w + 2, c), scr.dtype)
    scr[h + 1:h + 2, :, :] = jnp.zeros((1, w + 2, c), scr.dtype)
    scr[:, 0:1, :] = jnp.zeros((h + 2, 1, c), scr.dtype)
    scr[:, w + 1:w + 2, :] = jnp.zeros((h + 2, 1, c), scr.dtype)

    # conv3 (stride-2, phase-folded) + ReLU -> bf16 scratch interior
    x3 = jnp.maximum(_conv_s2_folded(xwin, w3_ref), 0.0)           # (m, 32) f32
    scr[1:h + 1, 1:w + 1, :] = x3.astype(scr.dtype).reshape(h, w, c)
    # conv4 + ReLU
    x4 = jnp.maximum(_conv_s1(swin, w4_ref), 0.0)
    scr[1:h + 1, 1:w + 1, :] = x4.astype(scr.dtype).reshape(h, w, c)
    # conv5 + ReLU
    x5 = jnp.maximum(_conv_s1(swin, w5_ref), 0.0)
    scr[1:h + 1, 1:w + 1, :] = x5.astype(scr.dtype).reshape(h, w, c)
    # conv6 head + selective sigmoid (mask is a VMEM-resident input, not a
    # captured constant)
    x6 = _conv_s1(swin, w6_ref)                                    # (m, 64) f32
    o_ref[0] = jnp.where(mask_ref[...] > 0.5, jax.nn.sigmoid(x6), x6)


# --------------------------------- JAX glue ---------------------------------

def _fold_s2_input(x):
    """(N, H, W, C) bf16 with H, W even -> (N, H//2+1, W//2+1, 4*C) bf16.

    Channel block p*2+q holds xpad[2i+p, 2j+q, :] (xpad = zero pad 1 per side),
    so a stride-2 3x3 conv becomes 4 unit-stride tap-group matmuls.
    """
    xp = jnp.pad(x, ((0, 0), (1, 1), (1, 1), (0, 0)))
    phases = [xp[:, p::2, q::2, :] for p in (0, 1) for q in (0, 1)]
    return jnp.concatenate(phases, axis=-1)


def _fold_weight_s2(w_oihw, cin_pad=None):
    """(Cout, Cin, 3, 3) f32 -> (4, 4*cin_pad, Cout) bf16 tap-group weights.

    Group 2a+b holds taps (kh, kw) = (2a+p, 2b+q); phase rows whose tap falls
    outside the 3x3 kernel are zero (they multiply unused folded channels).
    """
    cout, cin, _, _ = w_oihw.shape
    cinp = cin if cin_pad is None else cin_pad
    w_hwio = jnp.transpose(w_oihw, (2, 3, 1, 0))                    # (3, 3, cin, cout)
    groups = []
    for a in (0, 1):
        for b in (0, 1):
            blocks = []
            for p in (0, 1):
                for q in (0, 1):
                    kh, kw = 2 * a + p, 2 * b + q
                    blk = (w_hwio[kh, kw] if (kh <= 2 and kw <= 2)
                           else jnp.zeros((cin, cout), w_hwio.dtype))
                    blocks.append(jnp.pad(blk, ((0, cinp - cin), (0, 0))))
            groups.append(jnp.concatenate(blocks, axis=0))          # (4*cinp, cout)
    return jnp.stack(groups, axis=0).astype(jnp.bfloat16)


def _prep_weight_s1(w_oihw):
    """(Cout, Cin, 3, 3) f32 -> (3, 3, Cin, Cout) bf16."""
    return jnp.transpose(w_oihw, (2, 3, 1, 0)).astype(jnp.bfloat16)


def _conv_s2_relu(xf, wg):
    """Phase-folded stride-2 3x3 conv + ReLU.  xf: (N, ho+1, wo+1, 4*cin) bf16."""
    n, hp, wp, ck = xf.shape
    ho, wo = hp - 1, wp - 1
    cout = wg.shape[-1]
    return pl.pallas_call(
        _conv_s2_relu_kernel,
        out_shape=jax.ShapeDtypeStruct((n, ho, wo, cout), jnp.bfloat16),
        grid=(n,),
        in_specs=[
            pl.BlockSpec((1, hp, wp, ck), lambda i: (i, 0, 0, 0)),
            pl.BlockSpec((4, ck, cout), lambda i: (0, 0, 0)),
        ],
        out_specs=pl.BlockSpec((1, ho, wo, cout), lambda i: (i, 0, 0, 0)),
        compiler_params=pltpu.CompilerParams(dimension_semantics=("parallel",)),
        cost_estimate=pl.CostEstimate(
            flops=int(8 * n * ho * wo * ck * cout),
            transcendentals=0,
            bytes_accessed=int(xf.size * 2 + wg.size * 2 + n * ho * wo * cout * 2)),
    )(xf, wg)


def _tail_head(x2f, w3g, w4, w5, w6, mask):
    """Fused conv3..conv6 (+ReLUs, +head sigmoid). x2f: (N, h+1, w+1, 128) bf16.
    Returns (N, h*w, 64) f32."""
    n, hp, wp, ck = x2f.shape
    h, w = hp - 1, wp - 1
    cout = w6.shape[-1]
    flops = 2 * h * w * (4 * ck * 32 + 9 * 32 * 32 + 9 * 32 * 32 + 9 * 32 * cout)
    return pl.pallas_call(
        _tail_head_kernel,
        out_shape=jax.ShapeDtypeStruct((n, h * w, cout), jnp.float32),
        grid=(n,),
        in_specs=[
            pl.BlockSpec((1, hp, wp, ck), lambda i: (i, 0, 0, 0)),
            pl.BlockSpec((4, ck, 32), lambda i: (0, 0, 0)),
            pl.BlockSpec((3, 3, 32, 32), lambda i: (0, 0, 0, 0)),
            pl.BlockSpec((3, 3, 32, 32), lambda i: (0, 0, 0, 0)),
            pl.BlockSpec((3, 3, 32, cout), lambda i: (0, 0, 0, 0)),
            pl.BlockSpec((1, cout), lambda i: (0, 0)),
        ],
        out_specs=pl.BlockSpec((1, h * w, cout), lambda i: (i, 0, 0)),
        scratch_shapes=[pltpu.VMEM((h + 2, w + 2, 32), jnp.bfloat16)],
        compiler_params=pltpu.CompilerParams(dimension_semantics=("parallel",)),
        cost_estimate=pl.CostEstimate(
            flops=int(n * flops),
            transcendentals=int(n * h * w * cout),
            bytes_accessed=int(x2f.size * 2 + mask.size * 4 + n * h * w * cout * 4
                               + (w3g.size + w4.size + w5.size + w6.size) * 2)),
    )(x2f, w3g, w4, w5, w6, mask)


def init_params(key):
    """Deterministic synthetic weights in the PyTorch layout (Cout, Cin, 3, 3), f32."""
    shapes = [
        (32, 3, 3, 3), (32, 32, 3, 3), (32, 32, 3, 3),
        (32, 32, 3, 3), (32, 32, 3, 3), (ANCHOR_TOTAL_OUTPUTS, 32, 3, 3),
    ]
    params = []
    for i, s in enumerate(shapes):
        k = jax.random.fold_in(key, i)
        fan_in = s[1] * s[2] * s[3]
        params.append(jax.random.normal(k, s, jnp.float32) * (1.0 / fan_in) ** 0.5)
    return params


@jax.jit
def my_model_forward(x_nchw, params):
    """MyModel.forward.  x_nchw: (N, 3, H, W) f32 with H % 8 == 0, W % 64 == 0.
    Returns (N, (H//8)*(W//8)*AnchorScales, AnchorOutputs) f32."""
    n, c, h, w = x_nchw.shape
    assert c == 3 and h % 8 == 0 and w % 64 == 0, (
        "need H % 8 == 0 and W % 64 == 0 so every /2, /4, /8 map stays sublane-aligned")
    # TODO(synk): pad the /2,/4,/8 feature maps to support arbitrary H, W.
    w1, w2, w3, w4, w5, w6 = params
    x = jnp.transpose(x_nchw, (0, 2, 3, 1)).astype(jnp.bfloat16)       # NCHW -> NHWC
    x = jnp.pad(x, ((0, 0), (0, 0), (0, 0), (0, _CIN_PAD - 3)))        # Cin 3 -> 8 (zeros)
    x1 = _conv_s2_relu(_fold_s2_input(x), _fold_weight_s2(w1, _CIN_PAD))   # (N, H/2, W/2, 32)
    x2 = _conv_s2_relu(_fold_s2_input(x1), _fold_weight_s2(w2))            # (N, H/4, W/4, 32)
    # TODO(synk): fuse conv2 as well (needs in-kernel stride-2 re-phasing of x1)
    # and add an H row-band grid axis for pipelining / megacore at batch < 2.
    out = _tail_head(_fold_s2_input(x2), _fold_weight_s2(w3),
                     _prep_weight_s1(w4), _prep_weight_s1(w5), _prep_weight_s1(w6),
                     jnp.asarray(_HEAD_MASK_NP))                        # (N, H/8*W/8, 64)
    # NHWC flatten == permute(0,2,3,1).reshape(N, -1, AnchorOutputs) in PyTorch
    return out.reshape(n, -1, ANCHOR_OUTPUTS)


@jax.jit
def reference_forward(x_nchw, params):
    """Pure-JAX (lax.conv) reference with the same bf16 rounding points as the kernels."""
    def conv(x, w_oihw, stride):
        w = jnp.transpose(w_oihw, (2, 3, 1, 0)).astype(jnp.bfloat16)   # HWIO
        return jax.lax.conv_general_dilated(
            x, w, window_strides=(stride, stride), padding=((1, 1), (1, 1)),
            dimension_numbers=("NHWC", "HWIO", "NHWC"),
            preferred_element_type=jnp.float32)

    w1, w2, w3, w4, w5, w6 = params
    h = jnp.transpose(x_nchw, (0, 2, 3, 1)).astype(jnp.bfloat16)
    for wgt, s in zip((w1, w2, w3, w4, w5), (2, 2, 2, 1, 1)):
        h = jnp.maximum(conv(h, wgt, s), 0.0).astype(jnp.bfloat16)
    h = conv(h, w6, 1)                                                 # (N, H/8, W/8, 64) f32
    n = h.shape[0]
    out = h.reshape(n, -1, ANCHOR_OUTPUTS)
    mask = jnp.asarray(_HEAD_MASK_NP[0, :ANCHOR_OUTPUTS]) > 0.5        # (8,)
    return jnp.where(mask, jax.nn.sigmoid(out), out)


if __name__ == "__main__":
    key = jax.random.PRNGKey(0)
    # Small input consistent with the module (real IMAGE_SIZE is (256, 192);
    # a scaled-down 48 x 64 image keeps every /2, /4, /8 map sublane-aligned).
    x = jax.random.normal(jax.random.fold_in(key, 100), (2, 3, 48, 64), jnp.float32)
    params = init_params(jax.random.fold_in(key, 200))

    out = jax.block_until_ready(my_model_forward(x, params))
    ref = jax.block_until_ready(reference_forward(x, params))

    assert out.shape == (2, (48 // 8) * (64 // 8) * ANCHOR_SCALES, ANCHOR_OUTPUTS), out.shape
    assert bool(jnp.all(jnp.isfinite(out)))
    max_err = float(jnp.max(jnp.abs(out - ref)))
    assert max_err < 3e-2, f"mismatch vs reference: {max_err}"
    print("KERNEL_OK")
</pallas_src>

<mosaic_0001>
module attributes {stable_mosaic.version = 11 : i64} {
  func.func @_conv_s2_relu_kernel(%arg0: i32, %arg1: memref<1x25x33x32xbf16, #tpu.memory_space<vmem>>, %arg2: memref<4x32x32xbf16, #tpu.memory_space<vmem>>, %arg3: memref<1x24x32x32xbf16, #tpu.memory_space<vmem>>) attributes {dimension_semantics = [#tpu.dimension_semantics<parallel>], iteration_bounds = array<i64: 2>, scalar_prefetch = 0 : i64, scratch_operands = 0 : i64, tpu.core_type = #tpu.core_type<tc>, window_params = [{transform_indices = @transform_0, window_bounds = array<i64: 1, 25, 33, 32>}, {pipeline_mode = #tpu.pipeline_mode<synchronous>, transform_indices = @transform_1, window_bounds = array<i64: 4, 32, 32>}, {transform_indices = @transform_2, window_bounds = array<i64: 1, 24, 32, 32>}]} {
    %c0 = arith.constant 0 : index
    %c0_0 = arith.constant 0 : index
    %c0_1 = arith.constant 0 : index
    %c0_2 = arith.constant 0 : index
    %0 = vector.load %arg1[%c0, %c0_0, %c0_1, %c0_2] : memref<1x25x33x32xbf16, #tpu.memory_space<vmem>>, vector<1x24x32x32xbf16>
    %1 = vector.shape_cast %0 : vector<1x24x32x32xbf16> to vector<24x32x32xbf16>
    %2 = vector.shape_cast %1 : vector<24x32x32xbf16> to vector<768x32xbf16>
    %c0_3 = arith.constant 0 : index
    %c0_4 = arith.constant 0 : index
    %c0_5 = arith.constant 0 : index
    %3 = vector.load %arg2[%c0_3, %c0_4, %c0_5] : memref<4x32x32xbf16, #tpu.memory_space<vmem>>, vector<1x32x32xbf16>
    %4 = vector.shape_cast %3 : vector<1x32x32xbf16> to vector<32x32xbf16>
    %cst = arith.constant dense<0.000000e+00> : vector<768x32xf32>
    %5 = tpu.matmul %2, %4, %cst {dimension_numbers = #tpu.dot_dimension_numbers<[1], [0], [0], [1], [0, 0, 1, 1], [], []>} : vector<768x32xbf16>, vector<32x32xbf16>, vector<768x32xf32> -> vector<768x32xf32>
    %c0_6 = arith.constant 0 : index
    %c0_7 = arith.constant 0 : index
    %c1 = arith.constant 1 : index
    %c0_8 = arith.constant 0 : index
    %6 = vector.load %arg1[%c0_6, %c0_7, %c1, %c0_8] : memref<1x25x33x32xbf16, #tpu.memory_space<vmem>>, vector<1x24x32x32xbf16>
    %7 = vector.shape_cast %6 : vector<1x24x32x32xbf16> to vector<24x32x32xbf16>
    %8 = vector.shape_cast %7 : vector<24x32x32xbf16> to vector<768x32xbf16>
    %c1_9 = arith.constant 1 : index
    %c0_10 = arith.constant 0 : index
    %c0_11 = arith.constant 0 : index
    %9 = vector.load %arg2[%c1_9, %c0_10, %c0_11] : memref<4x32x32xbf16, #tpu.memory_space<vmem>>, vector<1x32x32xbf16>
    %10 = vector.shape_cast %9 : vector<1x32x32xbf16> to vector<32x32xbf16>
    %cst_12 = arith.constant dense<0.000000e+00> : vector<768x32xf32>
    %11 = tpu.matmul %8, %10, %cst_12 {dimension_numbers = #tpu.dot_dimension_numbers<[1], [0], [0], [1], [0, 0, 1, 1], [], []>} : vector<768x32xbf16>, vector<32x32xbf16>, vector<768x32xf32> -> vector<768x32xf32>
    %12 = arith.addf %5, %11 : vector<768x32xf32>
    %c0_13 = arith.constant 0 : index
    %c1_14 = arith.constant 1 : index
    %c0_15 = arith.constant 0 : index
    %c0_16 = arith.constant 0 : index
    %13 = vector.load %arg1[%c0_13, %c1_14, %c0_15, %c0_16] : memref<1x25x33x32xbf16, #tpu.memory_space<vmem>>, vector<1x24x32x32xbf16>
    %14 = vector.shape_cast %13 : vector<1x24x32x32xbf16> to vector<24x32x32xbf16>
    %15 = vector.shape_cast %14 : vector<24x32x32xbf16> to vector<768x32xbf16>
    %c2 = arith.constant 2 : index
    %c0_17 = arith.constant 0 : index
    %c0_18 = arith.constant 0 : index
    %16 = vector.load %arg2[%c2, %c0_17, %c0_18] : memref<4x32x32xbf16, #tpu.memory_space<vmem>>, vector<1x32x32xbf16>
    %17 = vector.shape_cast %16 : vector<1x32x32xbf16> to vector<32x32xbf16>
    %cst_19 = arith.constant dense<0.000000e+00> : vector<768x32xf32>
    %18 = tpu.matmul %15, %17, %cst_19 {dimension_numbers = #tpu.dot_dimension_numbers<[1], [0], [0], [1], [0, 0, 1, 1], [], []>} : vector<768x32xbf16>, vector<32x32xbf16>, vector<768x32xf32> -> vector<768x32xf32>
    %19 = arith.addf %12, %18 : vector<768x32xf32>
    %c0_20 = arith.constant 0 : index
    %c1_21 = arith.constant 1 : index
    %c1_22 = arith.constant 1 : index
    %c0_23 = arith.constant 0 : index
    %20 = vector.load %arg1[%c0_20, %c1_21, %c1_22, %c0_23] : memref<1x25x33x32xbf16, #tpu.memory_space<vmem>>, vector<1x24x32x32xbf16>
    %21 = vector.shape_cast %20 : vector<1x24x32x32xbf16> to vector<24x32x32xbf16>
    %22 = vector.shape_cast %21 : vector<24x32x32xbf16> to vector<768x32xbf16>
    %c3 = arith.constant 3 : index
    %c0_24 = arith.constant 0 : index
    %c0_25 = arith.constant 0 : index
    %23 = vector.load %arg2[%c3, %c0_24, %c0_25] : memref<4x32x32xbf16, #tpu.memory_space<vmem>>, vector<1x32x32xbf16>
    %24 = vector.shape_cast %23 : vector<1x32x32xbf16> to vector<32x32xbf16>
    %cst_26 = arith.constant dense<0.000000e+00> : vector<768x32xf32>
    %25 = tpu.matmul %22, %24, %cst_26 {dimension_numbers = #tpu.dot_dimension_numbers<[1], [0], [0], [1], [0, 0, 1, 1], [], []>} : vector<768x32xbf16>, vector<32x32xbf16>, vector<768x32xf32> -> vector<768x32xf32>
    %26 = arith.addf %19, %25 : vector<768x32xf32>
    %cst_27 = arith.constant 0.000000e+00 : f32
    %27 = vector.broadcast %cst_27 : f32 to vector<768x32xf32>
    %28 = arith.maximumf %26, %27 : vector<768x32xf32>
    %29 = vector.shape_cast %28 : vector<768x32xf32> to vector<24x32x32xf32>
    %30 = arith.truncf %29 : vector<24x32x32xf32> to vector<24x32x32xbf16>
    %c0_28 = arith.constant 0 : index
    %c0_29 = arith.constant 0 : index
    %c0_30 = arith.constant 0 : index
    %c0_31 = arith.constant 0 : index
    %31 = vector.load %arg3[%c0_28, %c0_29, %c0_30, %c0_31] : memref<1x24x32x32xbf16, #tpu.memory_space<vmem>>, vector<1x24x32x32xbf16>
    %32 = vector.shape_cast %31 : vector<1x24x32x32xbf16> to vector<24x32x32xbf16>
    %33 = vector.shape_cast %30 : vector<24x32x32xbf16> to vector<1x24x32x32xbf16>
    tpu.vector_store %arg3[%c0_28, %c0_29, %c0_30, %c0_31], %33 {strides = array<i32>} : memref<1x24x32x32xbf16, #tpu.memory_space<vmem>>, vector<1x24x32x32xbf16>,
    return
  }
  func.func @transform_0(%arg0: i32) -> (i32, i32, i32, i32) {
    %c0_i32 = arith.constant 0 : i32
    %c0_i32_0 = arith.constant 0 : i32
    %c0_i32_1 = arith.constant 0 : i32
    %c0_i32_2 = arith.constant 0 : i32
    return %arg0, %c0_i32, %c0_i32_0, %c0_i32_1 : i32, i32, i32, i32
  }
  func.func @transform_1(%arg0: i32) -> (i32, i32, i32) {
    %c0_i32 = arith.constant 0 : i32
    %c0_i32_0 = arith.constant 0 : i32
    %c0_i32_1 = arith.constant 0 : i32
    %c0_i32_2 = arith.constant 0 : i32
    return %c0_i32, %c0_i32_0, %c0_i32_1 : i32, i32, i32
  }
  func.func @transform_2(%arg0: i32) -> (i32, i32, i32, i32) {
    %c0_i32 = arith.constant 0 : i32
    %c0_i32_0 = arith.constant 0 : i32
    %c0_i32_1 = arith.constant 0 : i32
    %c0_i32_2 = arith.constant 0 : i32
    return %arg0, %c0_i32, %c0_i32_0, %c0_i32_1 : i32, i32, i32, i32
  }
}

module attributes {stable_mosaic.version = 11 : i64} {
  func.func @_conv_s2_relu_kernel(%arg0: i32, %arg1: memref<1x13x17x128xbf16, #tpu.memory_space<vmem>>, %arg2: memref<4x128x32xbf16, #tpu.memory_space<vmem>>, %arg3: memref<1x12x16x32xbf16, #tpu.memory_space<vmem>>) attributes {dimension_semantics = [#tpu.dimension_semantics<parallel>], iteration_bounds = array<i64: 2>, scalar_prefetch = 0 : i64, scratch_operands = 0 : i64, tpu.core_type = #tpu.core_type<tc>, window_params = [{transform_indices = @transform_0, window_bounds = array<i64: 1, 13, 17, 128>}, {pipeline_mode = #tpu.pipeline_mode<synchronous>, transform_indices = @transform_1, window_bounds = array<i64: 4, 128, 32>}, {transform_indices = @transform_2, window_bounds = array<i64: 1, 12, 16, 32>}]} {
    %c0 = arith.constant 0 : index
    %c0_0 = arith.constant 0 : index
    %c0_1 = arith.constant 0 : index
    %c0_2 = arith.constant 0 : index
    %0 = vector.load %arg1[%c0, %c0_0, %c0_1, %c0_2] : memref<1x13x17x128xbf16, #tpu.memory_space<vmem>>, vector<1x12x16x128xbf16>
    %1 = vector.shape_cast %0 : vector<1x12x16x128xbf16> to vector<12x16x128xbf16>
    %2 = vector.shape_cast %1 : vector<12x16x128xbf16> to vector<192x128xbf16>
    %c0_3 = arith.constant 0 : index
    %c0_4 = arith.constant 0 : index
    %c0_5 = arith.constant 0 : index
    %3 = vector.load %arg2[%c0_3, %c0_4, %c0_5] : memref<4x128x32xbf16, #tpu.memory_space<vmem>>, vector<1x128x32xbf16>
    %4 = vector.shape_cast %3 : vector<1x128x32xbf16> to vector<128x32xbf16>
    %cst = arith.constant dense<0.000000e+00> : vector<192x32xf32>
    %5 = tpu.matmul %2, %4, %cst {dimension_numbers = #tpu.dot_dimension_numbers<[1], [0], [0], [1], [0, 0, 1, 1], [], []>} : vector<192x128xbf16>, vector<128x32xbf16>, vector<192x32xf32> -> vector<192x32xf32>
    %c0_6 = arith.constant 0 : index
    %c0_7 = arith.constant 0 : index
    %c1 = arith.constant 1 : index
    %c0_8 = arith.constant 0 : index
    %6 = vector.load %arg1[%c0_6, %c0_7, %c1, %c0_8] : memref<1x13x17x128xbf16, #tpu.memory_space<vmem>>, vector<1x12x16x128xbf16>
    %7 = vector.shape_cast %6 : vector<1x12x16x128xbf16> to vector<12x16x128xbf16>
    %8 = vector.shape_cast %7 : vector<12x16x128xbf16> to vector<192x128xbf16>
    %c1_9 = arith.constant 1 : index
    %c0_10 = arith.constant 0 : index
    %c0_11 = arith.constant 0 : index
    %9 = vector.load %arg2[%c1_9, %c0_10, %c0_11] : memref<4x128x32xbf16, #tpu.memory_space<vmem>>, vector<1x128x32xbf16>
    %10 = vector.shape_cast %9 : vector<1x128x32xbf16> to vector<128x32xbf16>
    %cst_12 = arith.constant dense<0.000000e+00> : vector<192x32xf32>
    %11 = tpu.matmul %8, %10, %cst_12 {dimension_numbers = #tpu.dot_dimension_numbers<[1], [0], [0], [1], [0, 0, 1, 1], [], []>} : vector<192x128xbf16>, vector<128x32xbf16>, vector<192x32xf32> -> vector<192x32xf32>
    %12 = arith.addf %5, %11 : vector<192x32xf32>
    %c0_13 = arith.constant 0 : index
    %c1_14 = arith.constant 1 : index
    %c0_15 = arith.constant 0 : index
    %c0_16 = arith.constant 0 : index
    %13 = vector.load %arg1[%c0_13, %c1_14, %c0_15, %c0_16] : memref<1x13x17x128xbf16, #tpu.memory_space<vmem>>, vector<1x12x16x128xbf16>
    %14 = vector.shape_cast %13 : vector<1x12x16x128xbf16> to vector<12x16x128xbf16>
    %15 = vector.shape_cast %14 : vector<12x16x128xbf16> to vector<192x128xbf16>
    %c2 = arith.constant 2 : index
    %c0_17 = arith.constant 0 : index
    %c0_18 = arith.constant 0 : index
    %16 = vector.load %arg2[%c2, %c0_17, %c0_18] : memref<4x128x32xbf16, #tpu.memory_space<vmem>>, vector<1x128x32xbf16>
    %17 = vector.shape_cast %16 : vector<1x128x32xbf16> to vector<128x32xbf16>
    %cst_19 = arith.constant dense<0.000000e+00> : vector<192x32xf32>
    %18 = tpu.matmul %15, %17, %cst_19 {dimension_numbers = #tpu.dot_dimension_numbers<[1], [0], [0], [1], [0, 0, 1, 1], [], []>} : vector<192x128xbf16>, vector<128x32xbf16>, vector<192x32xf32> -> vector<192x32xf32>
    %19 = arith.addf %12, %18 : vector<192x32xf32>
    %c0_20 = arith.constant 0 : index
    %c1_21 = arith.constant 1 : index
    %c1_22 = arith.constant 1 : index
    %c0_23 = arith.constant 0 : index
    %20 = vector.load %arg1[%c0_20, %c1_21, %c1_22, %c0_23] : memref<1x13x17x128xbf16, #tpu.memory_space<vmem>>, vector<1x12x16x128xbf16>
    %21 = vector.shape_cast %20 : vector<1x12x16x128xbf16> to vector<12x16x128xbf16>
    %22 = vector.shape_cast %21 : vector<12x16x128xbf16> to vector<192x128xbf16>
    %c3 = arith.constant 3 : index
    %c0_24 = arith.constant 0 : index
    %c0_25 = arith.constant 0 : index
    %23 = vector.load %arg2[%c3, %c0_24, %c0_25] : memref<4x128x32xbf16, #tpu.memory_space<vmem>>, vector<1x128x32xbf16>
    %24 = vector.shape_cast %23 : vector<1x128x32xbf16> to vector<128x32xbf16>
    %cst_26 = arith.constant dense<0.000000e+00> : vector<192x32xf32>
    %25 = tpu.matmul %22, %24, %cst_26 {dimension_numbers = #tpu.dot_dimension_numbers<[1], [0], [0], [1], [0, 0, 1, 1], [], []>} : vector<192x128xbf16>, vector<128x32xbf16>, vector<192x32xf32> -> vector<192x32xf32>
    %26 = arith.addf %19, %25 : vector<192x32xf32>
    %cst_27 = arith.constant 0.000000e+00 : f32
    %27 = vector.broadcast %cst_27 : f32 to vector<192x32xf32>
    %28 = arith.maximumf %26, %27 : vector<192x32xf32>
    %29 = vector.shape_cast %28 : vector<192x32xf32> to vector<12x16x32xf32>
    %30 = arith.truncf %29 : vector<12x16x32xf32> to vector<12x16x32xbf16>
    %c0_28 = arith.constant 0 : index
    %c0_29 = arith.constant 0 : index
    %c0_30 = arith.constant 0 : index
    %c0_31 = arith.constant 0 : index
    %31 = vector.load %arg3[%c0_28, %c0_29, %c0_30, %c0_31] : memref<1x12x16x32xbf16, #tpu.memory_space<vmem>>, vector<1x12x16x32xbf16>
    %32 = vector.shape_cast %31 : vector<1x12x16x32xbf16> to vector<12x16x32xbf16>
    %33 = vector.shape_cast %30 : vector<12x16x32xbf16> to vector<1x12x16x32xbf16>
    tpu.vector_store %arg3[%c0_28, %c0_29, %c0_30, %c0_31], %33 {strides = array<i32>} : memref<1x12x16x32xbf16, #tpu.memory_space<vmem>>, vector<1x12x16x32xbf16>,
    return
  }
  func.func @transform_0(%arg0: i32) -> (i32, i32, i32, i32) {
    %c0_i32 = arith.constant 0 : i32
    %c0_i32_0 = arith.constant 0 : i32
    %c0_i32_1 = arith.constant 0 : i32
    %c0_i32_2 = arith.constant 0 : i32
    return %arg0, %c0_i32, %c0_i32_0, %c0_i32_1 : i32, i32, i32, i32
  }
  func.func @transform_1(%arg0: i32) -> (i32, i32, i32) {
    %c0_i32 = arith.constant 0 : i32
    %c0_i32_0 = arith.constant 0 : i32
    %c0_i32_1 = arith.constant 0 : i32
    %c0_i32_2 = arith.constant 0 : i32
    return %c0_i32, %c0_i32_0, %c0_i32_1 : i32, i32, i32
  }
  func.func @transform_2(%arg0: i32) -> (i32, i32, i32, i32) {
    %c0_i32 = arith.constant 0 : i32
    %c0_i32_0 = arith.constant 0 : i32
    %c0_i32_1 = arith.constant 0 : i32
    %c0_i32_2 = arith.constant 0 : i32
    return %arg0, %c0_i32, %c0_i32_0, %c0_i32_1 : i32, i32, i32, i32
  }
}

module attributes {stable_mosaic.version = 11 : i64} {
  func.func @_tail_head_kernel(%arg0: i32, %arg1: memref<1x7x9x128xbf16, #tpu.memory_space<vmem>>, %arg2: memref<4x128x32xbf16, #tpu.memory_space<vmem>>, %arg3: memref<3x3x32x32xbf16, #tpu.memory_space<vmem>>, %arg4: memref<3x3x32x32xbf16, #tpu.memory_space<vmem>>, %arg5: memref<3x3x32x64xbf16, #tpu.memory_space<vmem>>, %arg6: memref<1x64xf32, #tpu.memory_space<vmem>>, %arg7: memref<1x48x64xf32, #tpu.memory_space<vmem>>, %arg8: memref<8x10x32xbf16, #tpu.memory_space<vmem>>) attributes {dimension_semantics = [#tpu.dimension_semantics<parallel>], iteration_bounds = array<i64: 2>, scalar_prefetch = 0 : i64, scratch_operands = 1 : i64, tpu.core_type = #tpu.core_type<tc>, window_params = [{transform_indices = @transform_0, window_bounds = array<i64: 1, 7, 9, 128>}, {pipeline_mode = #tpu.pipeline_mode<synchronous>, transform_indices = @transform_1, window_bounds = array<i64: 4, 128, 32>}, {pipeline_mode = #tpu.pipeline_mode<synchronous>, transform_indices = @transform_2, window_bounds = array<i64: 3, 3, 32, 32>}, {pipeline_mode = #tpu.pipeline_mode<synchronous>, transform_indices = @transform_3, window_bounds = array<i64: 3, 3, 32, 32>}, {pipeline_mode = #tpu.pipeline_mode<synchronous>, transform_indices = @transform_4, window_bounds = array<i64: 3, 3, 32, 64>}, {pipeline_mode = #tpu.pipeline_mode<synchronous>, transform_indices = @transform_5, window_bounds = array<i64: 1, 64>}, {transform_indices = @transform_6, window_bounds = array<i64: 1, 48, 64>}]} {
    %cst = arith.constant 0.000000e+00 : bf16
    %0 = vector.broadcast %cst : bf16 to vector<1x10x32xbf16>
    %c0 = arith.constant 0 : index
    %c0_0 = arith.constant 0 : index
    %c0_1 = arith.constant 0 : index
    %1 = vector.load %arg8[%c0, %c0_0, %c0_1] : memref<8x10x32xbf16, #tpu.memory_space<vmem>>, vector<1x10x32xbf16>
    tpu.vector_store %arg8[%c0, %c0_0, %c0_1], %0 {strides = array<i32>} : memref<8x10x32xbf16, #tpu.memory_space<vmem>>, vector<1x10x32xbf16>,
    %cst_2 = arith.constant 0.000000e+00 : bf16
    %2 = vector.broadcast %cst_2 : bf16 to vector<1x10x32xbf16>
    %c7 = arith.constant 7 : index
    %c0_3 = arith.constant 0 : index
    %c0_4 = arith.constant 0 : index
    %3 = vector.load %arg8[%c7, %c0_3, %c0_4] : memref<8x10x32xbf16, #tpu.memory_space<vmem>>, vector<1x10x32xbf16>
    tpu.vector_store %arg8[%c7, %c0_3, %c0_4], %2 {strides = array<i32>} : memref<8x10x32xbf16, #tpu.memory_space<vmem>>, vector<1x10x32xbf16>,
    %cst_5 = arith.constant 0.000000e+00 : bf16
    %4 = vector.broadcast %cst_5 : bf16 to vector<8x1x32xbf16>
    %c0_6 = arith.constant 0 : index
    %c0_7 = arith.constant 0 : index
    %c0_8 = arith.constant 0 : index
    %5 = vector.load %arg8[%c0_6, %c0_7, %c0_8] : memref<8x10x32xbf16, #tpu.memory_space<vmem>>, vector<8x1x32xbf16>
    tpu.vector_store %arg8[%c0_6, %c0_7, %c0_8], %4 {strides = array<i32>} : memref<8x10x32xbf16, #tpu.memory_space<vmem>>, vector<8x1x32xbf16>,
    %cst_9 = arith.constant 0.000000e+00 : bf16
    %6 = vector.broadcast %cst_9 : bf16 to vector<8x1x32xbf16>
    %c0_10 = arith.constant 0 : index
    %c9 = arith.constant 9 : index
    %c0_11 = arith.constant 0 : index
    %7 = vector.load %arg8[%c0_10, %c9, %c0_11] : memref<8x10x32xbf16, #tpu.memory_space<vmem>>, vector<8x1x32xbf16>
    tpu.vector_store %arg8[%c0_10, %c9, %c0_11], %6 {strides = array<i32>} : memref<8x10x32xbf16, #tpu.memory_space<vmem>>, vector<8x1x32xbf16>,
    %c0_12 = arith.constant 0 : index
    %c0_13 = arith.constant 0 : index
    %c0_14 = arith.constant 0 : index
    %c0_15 = arith.constant 0 : index
    %8 = vector.load %arg1[%c0_12, %c0_13, %c0_14, %c0_15] : memref<1x7x9x128xbf16, #tpu.memory_space<vmem>>, vector<1x6x8x128xbf16>
    %9 = vector.shape_cast %8 : vector<1x6x8x128xbf16> to vector<6x8x128xbf16>
    %10 = vector.shape_cast %9 : vector<6x8x128xbf16> to vector<48x128xbf16>
    %c0_16 = arith.constant 0 : index
    %c0_17 = arith.constant 0 : index
    %c0_18 = arith.constant 0 : index
    %11 = vector.load %arg2[%c0_16, %c0_17, %c0_18] : memref<4x128x32xbf16, #tpu.memory_space<vmem>>, vector<1x128x32xbf16>
    %12 = vector.shape_cast %11 : vector<1x128x32xbf16> to vector<128x32xbf16>
    %cst_19 = arith.constant dense<0.000000e+00> : vector<48x32xf32>
    %13 = tpu.matmul %10, %12, %cst_19 {dimension_numbers = #tpu.dot_dimension_numbers<[1], [0], [0], [1], [0, 0, 1, 1], [], []>} : vector<48x128xbf16>, vector<128x32xbf16>, vector<48x32xf32> -> vector<48x32xf32>
    %c0_20 = arith.constant 0 : index
    %c0_21 = arith.constant 0 : index
    %c1 = arith.constant 1 : index
    %c0_22 = arith.constant 0 : index
    %14 = vector.load %arg1[%c0_20, %c0_21, %c1, %c0_22] : memref<1x7x9x128xbf16, #tpu.memory_space<vmem>>, vector<1x6x8x128xbf16>
    %15 = vector.shape_cast %14 : vector<1x6x8x128xbf16> to vector<6x8x128xbf16>
    %16 = vector.shape_cast %15 : vector<6x8x128xbf16> to vector<48x128xbf16>
    %c1_23 = arith.constant 1 : index
    %c0_24 = arith.constant 0 : index
    %c0_25 = arith.constant 0 : index
    %17 = vector.load %arg2[%c1_23, %c0_24, %c0_25] : memref<4x128x32xbf16, #tpu.memory_space<vmem>>, vector<1x128x32xbf16>
    %18 = vector.shape_cast %17 : vector<1x128x32xbf16> to vector<128x32xbf16>
    %cst_26 = arith.constant dense<0.000000e+00> : vector<48x32xf32>
    %19 = tpu.matmul %16, %18, %cst_26 {dimension_numbers = #tpu.dot_dimension_numbers<[1], [0], [0], [1], [0, 0, 1, 1], [], []>} : vector<48x128xbf16>, vector<128x32xbf16>, vector<48x32xf32> -> vector<48x32xf32>
    %20 = arith.addf %13, %19 : vector<48x32xf32>
    %c0_27 = arith.constant 0 : index
    %c1_28 = arith.constant 1 : index
    %c0_29 = arith.constant 0 : index
    %c0_30 = arith.constant 0 : index
    %21 = vector.load %arg1[%c0_27, %c1_28, %c0_29, %c0_30] : memref<1x7x9x128xbf16, #tpu.memory_space<vmem>>, vector<1x6x8x128xbf16>
    %22 = vector.shape_cast %21 : vector<1x6x8x128xbf16> to vector<6x8x128xbf16>
    %23 = vector.shape_cast %22 : vector<6x8x128xbf16> to vector<48x128xbf16>
    %c2 = arith.constant 2 : index
    %c0_31 = arith.constant 0 : index
    %c0_32 = arith.constant 0 : index
    %24 = vector.load %arg2[%c2, %c0_31, %c0_32] : memref<4x128x32xbf16, #tpu.memory_space<vmem>>, vector<1x128x32xbf16>
    %25 = vector.shape_cast %24 : vector<1x128x32xbf16> to vector<128x32xbf16>
    %cst_33 = arith.constant dense<0.000000e+00> : vector<48x32xf32>
    %26 = tpu.matmul %23, %25, %cst_33 {dimension_numbers = #tpu.dot_dimension_numbers<[1], [0], [0], [1], [0, 0, 1, 1], [], []>} : vector<48x128xbf16>, vector<128x32xbf16>, vector<48x32xf32> -> vector<48x32xf32>
    %27 = arith.addf %20, %26 : vector<48x32xf32>
    %c0_34 = arith.constant 0 : index
    %c1_35 = arith.constant 1 : index
    %c1_36 = arith.constant 1 : index
    %c0_37 = arith.constant 0 : index
    %28 = vector.load %arg1[%c0_34, %c1_35, %c1_36, %c0_37] : memref<1x7x9x128xbf16, #tpu.memory_space<vmem>>, vector<1x6x8x128xbf16>
    %29 = vector.shape_cast %28 : vector<1x6x8x128xbf16> to vector<6x8x128xbf16>
    %30 = vector.shape_cast %29 : vector<6x8x128xbf16> to vector<48x128xbf16>
    %c3 = arith.constant 3 : index
    %c0_38 = arith.constant 0 : index
    %c0_39 = arith.constant 0 : index
    %31 = vector.load %arg2[%c3, %c0_38, %c0_39] : memref<4x128x32xbf16, #tpu.memory_space<vmem>>, vector<1x128x32xbf16>
    %32 = vector.shape_cast %31 : vector<1x128x32xbf16> to vector<128x32xbf16>
    %cst_40 = arith.constant dense<0.000000e+00> : vector<48x32xf32>
    %33 = tpu.matmul %30, %32, %cst_40 {dimension_numbers = #tpu.dot_dimension_numbers<[1], [0], [0], [1], [0, 0, 1, 1], [], []>} : vector<48x128xbf16>, vector<128x32xbf16>, vector<48x32xf32> -> vector<48x32xf32>
    %34 = arith.addf %27, %33 : vector<48x32xf32>
    %cst_41 = arith.constant 0.000000e+00 : f32
    %35 = vector.broadcast %cst_41 : f32 to vector<48x32xf32>
    %36 = arith.maximumf %34, %35 : vector<48x32xf32>
    %37 = arith.truncf %36 : vector<48x32xf32> to vector<48x32xbf16>
    %38 = vector.shape_cast %37 : vector<48x32xbf16> to vector<6x8x32xbf16>
    %c1_42 = arith.constant 1 : index
    %c1_43 = arith.constant 1 : index
    %c0_44 = arith.constant 0 : index
    %39 = vector.load %arg8[%c1_42, %c1_43, %c0_44] : memref<8x10x32xbf16, #tpu.memory_space<vmem>>, vector<6x8x32xbf16>
    tpu.vector_store %arg8[%c1_42, %c1_43, %c0_44], %38 {strides = array<i32>} : memref<8x10x32xbf16, #tpu.memory_space<vmem>>, vector<6x8x32xbf16>,
    %c0_45 = arith.constant 0 : index
    %c0_46 = arith.constant 0 : index
    %c0_47 = arith.constant 0 : index
    %40 = vector.load %arg8[%c0_45, %c0_46, %c0_47] : memref<8x10x32xbf16, #tpu.memory_space<vmem>>, vector<6x8x32xbf16>
    %41 = vector.shape_cast %40 : vector<6x8x32xbf16> to vector<48x32xbf16>
    %c0_48 = arith.constant 0 : index
    %c0_49 = arith.constant 0 : index
    %c0_50 = arith.constant 0 : index
    %c0_51 = arith.constant 0 : index
    %42 = vector.load %arg3[%c0_48, %c0_49, %c0_50, %c0_51] : memref<3x3x32x32xbf16, #tpu.memory_space<vmem>>, vector<1x1x32x32xbf16>
    %43 = vector.shape_cast %42 : vector<1x1x32x32xbf16> to vector<32x32xbf16>
    %cst_52 = arith.constant dense<0.000000e+00> : vector<48x32xf32>
    %44 = tpu.matmul %41, %43, %cst_52 {dimension_numbers = #tpu.dot_dimension_numbers<[1], [0], [0], [1], [0, 0, 1, 1], [], []>} : vector<48x32xbf16>, vector<32x32xbf16>, vector<48x32xf32> -> vector<48x32xf32>
    %c0_53 = arith.constant 0 : index
    %c1_54 = arith.constant 1 : index
    %c0_55 = arith.constant 0 : index
    %45 = vector.load %arg8[%c0_53, %c1_54, %c0_55] : memref<8x10x32xbf16, #tpu.memory_space<vmem>>, vector<6x8x32xbf16>
    %46 = vector.shape_cast %45 : vector<6x8x32xbf16> to vector<48x32xbf16>
    %c0_56 = arith.constant 0 : index
    %c1_57 = arith.constant 1 : index
    %c0_58 = arith.constant 0 : index
    %c0_59 = arith.constant 0 : index
    %47 = vector.load %arg3[%c0_56, %c1_57, %c0_58, %c0_59] : memref<3x3x32x32xbf16, #tpu.memory_space<vmem>>, vector<1x1x32x32xbf16>
    %48 = vector.shape_cast %47 : vector<1x1x32x32xbf16> to vector<32x32xbf16>
    %cst_60 = arith.constant dense<0.000000e+00> : vector<48x32xf32>
    %49 = tpu.matmul %46, %48, %cst_60 {dimension_numbers = #tpu.dot_dimension_numbers<[1], [0], [0], [1], [0, 0, 1, 1], [], []>} : vector<48x32xbf16>, vector<32x32xbf16>, vector<48x32xf32> -> vector<48x32xf32>
    %50 = arith.addf %44, %49 : vector<48x32xf32>
    %c0_61 = arith.constant 0 : index
    %c2_62 = arith.constant 2 : index
    %c0_63 = arith.constant 0 : index
    %51 = vector.load %arg8[%c0_61, %c2_62, %c0_63] : memref<8x10x32xbf16, #tpu.memory_space<vmem>>, vector<6x8x32xbf16>
    %52 = vector.shape_cast %51 : vector<6x8x32xbf16> to vector<48x32xbf16>
    %c0_64 = arith.constant 0 : index
    %c2_65 = arith.constant 2 : index
    %c0_66 = arith.constant 0 : index
    %c0_67 = arith.constant 0 : index
    %53 = vector.load %arg3[%c0_64, %c2_65, %c0_66, %c0_67] : memref<3x3x32x32xbf16, #tpu.memory_space<vmem>>, vector<1x1x32x32xbf16>
    %54 = vector.shape_cast %53 : vector<1x1x32x32xbf16> to vector<32x32xbf16>
    %cst_68 = arith.constant dense<0.000000e+00> : vector<48x32xf32>
    %55 = tpu.matmul %52, %54, %cst_68 {dimension_numbers = #tpu.dot_dimension_numbers<[1], [0], [0], [1], [0, 0, 1, 1], [], []>} : vector<48x32xbf16>, vector<32x32xbf16>, vector<48x32xf32> -> vector<48x32xf32>
    %56 = arith.addf %50, %55 : vector<48x32xf32>
    %c1_69 = arith.constant 1 : index
    %c0_70 = arith.constant 0 : index
    %c0_71 = arith.constant 0 : index
    %57 = vector.load %arg8[%c1_69, %c0_70, %c0_71] : memref<8x10x32xbf16, #tpu.memory_space<vmem>>, vector<6x8x32xbf16>
    %58 = vector.shape_cast %57 : vector<6x8x32xbf16> to vector<48x32xbf16>
    %c1_72 = arith.constant 1 : index
    %c0_73 = arith.constant 0 : index
    %c0_74 = arith.constant 0 : index
    %c0_75 = arith.constant 0 : index
    %59 = vector.load %arg3[%c1_72, %c0_73, %c0_74, %c0_75] : memref<3x3x32x32xbf16, #tpu.memory_space<vmem>>, vector<1x1x32x32xbf16>
    %60 = vector.shape_cast %59 : vector<1x1x32x32xbf16> to vector<32x32xbf16>
    %cst_76 = arith.constant dense<0.000000e+00> : vector<48x32xf32>
    %61 = tpu.matmul %58, %60, %cst_76 {dimension_numbers = #tpu.dot_dimension_numbers<[1], [0], [0], [1], [0, 0, 1, 1], [], []>} : vector<48x32xbf16>, vector<32x32xbf16>, vector<48x32xf32> -> vector<48x32xf32>
    %62 = arith.addf %56, %61 : vector<48x32xf32>
    %c1_77 = arith.constant 1 : index
    %c1_78 = arith.constant 1 : index
    %c0_79 = arith.constant 0 : index
    %63 = vector.load %arg8[%c1_77, %c1_78, %c0_79] : memref<8x10x32xbf16, #tpu.memory_space<vmem>>, vector<6x8x32xbf16>
    %64 = vector.shape_cast %63 : vector<6x8x32xbf16> to vector<48x32xbf16>
    %c1_80 = arith.constant 1 : index
    %c1_81 = arith.constant 1 : index
    %c0_82 = arith.constant 0 : index
    %c0_83 = arith.constant 0 : index
    %65 = vector.load %arg3[%c1_80, %c1_81, %c0_82, %c0_83] : memref<3x3x32x32xbf16, #tpu.memory_space<vmem>>, vector<1x1x32x32xbf16>
    %66 = vector.shape_cast %65 : vector<1x1x32x32xbf16> to vector<32x32xbf16>
    %cst_84 = arith.constant dense<0.000000e+00> : vector<48x32xf32>
    %67 = tpu.matmul %64, %66, %cst_84 {dimension_numbers = #tpu.dot_dimension_numbers<[1], [0], [0], [1], [0, 0, 1, 1], [], []>} : vector<48x32xbf16>, vector<32x32xbf16>, vector<48x32xf32> -> vector<48x32xf32>
    %68 = arith.addf %62, %67 : vector<48x32xf32>
    %c1_85 = arith.constant 1 : index
    %c2_86 = arith.constant 2 : index
    %c0_87 = arith.constant 0 : index
    %69 = vector.load %arg8[%c1_85, %c2_86, %c0_87] : memref<8x10x32xbf16, #tpu.memory_space<vmem>>, vector<6x8x32xbf16>
    %70 = vector.shape_cast %69 : vector<6x8x32xbf16> to vector<48x32xbf16>
    %c1_88 = arith.constant 1 : index
    %c2_89 = arith.constant 2 : index
    %c0_90 = arith.constant 0 : index
    %c0_91 = arith.constant 0 : index
    %71 = vector.load %arg3[%c1_88, %c2_89, %c0_90, %c0_91] : memref<3x3x32x32xbf16, #tpu.memory_space<vmem>>, vector<1x1x32x32xbf16>
    %72 = vector.shape_cast %71 : vector<1x1x32x32xbf16> to vector<32x32xbf16>
    %cst_92 = arith.constant dense<0.000000e+00> : vector<48x32xf32>
    %73 = tpu.matmul %70, %72, %cst_92 {dimension_numbers = #tpu.dot_dimension_numbers<[1], [0], [0], [1], [0, 0, 1, 1], [], []>} : vector<48x32xbf16>, vector<32x32xbf16>, vector<48x32xf32> -> vector<48x32xf32>
    %74 = arith.addf %68, %73 : vector<48x32xf32>
    %c2_93 = arith.constant 2 : index
    %c0_94 = arith.constant 0 : index
    %c0_95 = arith.constant 0 : index
    %75 = vector.load %arg8[%c2_93, %c0_94, %c0_95] : memref<8x10x32xbf16, #tpu.memory_space<vmem>>, vector<6x8x32xbf16>
    %76 = vector.shape_cast %75 : vector<6x8x32xbf16> to vector<48x32xbf16>
    %c2_96 = arith.constant 2 : index
    %c0_97 = arith.constant 0 : index
    %c0_98 = arith.constant 0 : index
    %c0_99 = arith.constant 0 : index
    %77 = vector.load %arg3[%c2_96, %c0_97, %c0_98, %c0_99] : memref<3x3x32x32xbf16, #tpu.memory_space<vmem>>, vector<1x1x32x32xbf16>
    %78 = vector.shape_cast %77 : vector<1x1x32x32xbf16> to vector<32x32xbf16>
    %cst_100 = arith.constant dense<0.000000e+00> : vector<48x32xf32>
    %79 = tpu.matmul %76, %78, %cst_100 {dimension_numbers = #tpu.dot_dimension_numbers<[1], [0], [0], [1], [0, 0, 1, 1], [], []>} : vector<48x32xbf16>, vector<32x32xbf16>, vector<48x32xf32> -> vector<48x32xf32>
    %80 = arith.addf %74, %79 : vector<48x32xf32>
    %c2_101 = arith.constant 2 : index
    %c1_102 = arith.constant 1 : index
    %c0_103 = arith.constant 0 : index
    %81 = vector.load %arg8[%c2_101, %c1_102, %c0_103] : memref<8x10x32xbf16, #tpu.memory_space<vmem>>, vector<6x8x32xbf16>
    %82 = vector.shape_cast %81 : vector<6x8x32xbf16> to vector<48x32xbf16>
    %c2_104 = arith.constant 2 : index
    %c1_105 = arith.constant 1 : index
    %c0_106 = arith.constant 0 : index
    %c0_107 = arith.constant 0 : index
    %83 = vector.load %arg3[%c2_104, %c1_105, %c0_106, %c0_107] : memref<3x3x32x32xbf16, #tpu.memory_space<vmem>>, vector<1x1x32x32xbf16>
    %84 = vector.shape_cast %83 : vector<1x1x32x32xbf16> to vector<32x32xbf16>
    %cst_108 = arith.constant dense<0.000000e+00> : vector<48x32xf32>
    %85 = tpu.matmul %82, %84, %cst_108 {dimension_numbers = #tpu.dot_dimension_numbers<[1], [0], [0], [1], [0, 0, 1, 1], [], []>} : vector<48x32xbf16>, vector<32x32xbf16>, vector<48x32xf32> -> vector<48x32xf32>
    %86 = arith.addf %80, %85 : vector<48x32xf32>
    %c2_109 = arith.constant 2 : index
    %c2_110 = arith.constant 2 : index
    %c0_111 = arith.constant 0 : index
    %87 = vector.load %arg8[%c2_109, %c2_110, %c0_111] : memref<8x10x32xbf16, #tpu.memory_space<vmem>>, vector<6x8x32xbf16>
    %88 = vector.shape_cast %87 : vector<6x8x32xbf16> to vector<48x32xbf16>
    %c2_112 = arith.constant 2 : index
    %c2_113 = arith.constant 2 : index
    %c0_114 = arith.constant 0 : index
    %c0_115 = arith.constant 0 : index
    %89 = vector.load %arg3[%c2_112, %c2_113, %c0_114, %c0_115] : memref<3x3x32x32xbf16, #tpu.memory_space<vmem>>, vector<1x1x32x32xbf16>
    %90 = vector.shape_cast %89 : vector<1x1x32x32xbf16> to vector<32x32xbf16>
    %cst_116 = arith.constant dense<0.000000e+00> : vector<48x32xf32>
    %91 = tpu.matmul %88, %90, %cst_116 {dimension_numbers = #tpu.dot_dimension_numbers<[1], [0], [0], [1], [0, 0, 1, 1], [], []>} : vector<48x32xbf16>, vector<32x32xbf16>, vector<48x32xf32> -> vector<48x32xf32>
    %92 = arith.addf %86, %91 : vector<48x32xf32>
    %cst_117 = arith.constant 0.000000e+00 : f32
    %93 = vector.broadcast %cst_117 : f32 to vector<48x32xf32>
    %94 = arith.maximumf %92, %93 : vector<48x32xf32>
    %95 = arith.truncf %94 : vector<48x32xf32> to vector<48x32xbf16>
    %96 = vector.shape_cast %95 : vector<48x32xbf16> to vector<6x8x32xbf16>
    %c1_118 = arith.constant 1 : index
    %c1_119 = arith.constant 1 : index
    %c0_120 = arith.constant 0 : index
    %97 = vector.load %arg8[%c1_118, %c1_119, %c0_120] : memref<8x10x32xbf16, #tpu.memory_space<vmem>>, vector<6x8x32xbf16>
    tpu.vector_store %arg8[%c1_118, %c1_119, %c0_120], %96 {strides = array<i32>} : memref<8x10x32xbf16, #tpu.memory_space<vmem>>, vector<6x8x32xbf16>,
    %c0_121 = arith.constant 0 : index
    %c0_122 = arith.constant 0 : index
    %c0_123 = arith.constant 0 : index
    %98 = vector.load %arg8[%c0_121, %c0_122, %c0_123] : memref<8x10x32xbf16, #tpu.memory_space<vmem>>, vector<6x8x32xbf16>
    %99 = vector.shape_cast %98 : vector<6x8x32xbf16> to vector<48x32xbf16>
    %c0_124 = arith.constant 0 : index
    %c0_125 = arith.constant 0 : index
    %c0_126 = arith.constant 0 : index
    %c0_127 = arith.constant 0 : index
    %100 = vector.load %arg4[%c0_124, %c0_125, %c0_126, %c0_127] : memref<3x3x32x32xbf16, #tpu.memory_space<vmem>>, vector<1x1x32x32xbf16>
    %101 = vector.shape_cast %100 : vector<1x1x32x32xbf16> to vector<32x32xbf16>
    %cst_128 = arith.constant dense<0.000000e+00> : vector<48x32xf32>
    %102 = tpu.matmul %99, %101, %cst_128 {dimension_numbers = #tpu.dot_dimension_numbers<[1], [0], [0], [1], [0, 0, 1, 1], [], []>} : vector<48x32xbf16>, vector<32x32xbf16>, vector<48x32xf32> -> vector<48x32xf32>
    %c0_129 = arith.constant 0 : index
    %c1_130 = arith.constant 1 : index
    %c0_131 = arith.constant 0 : index
    %103 = vector.load %arg8[%c0_129, %c1_130, %c0_131] : memref<8x10x32xbf16, #tpu.memory_space<vmem>>, vector<6x8x32xbf16>
    %104 = vector.shape_cast %103 : vector<6x8x32xbf16> to vector<48x32xbf16>
    %c0_132 = arith.constant 0 : index
    %c1_133 = arith.constant 1 : index
    %c0_134 = arith.constant 0 : index
    %c0_135 = arith.constant 0 : index
    %105 = vector.load %arg4[%c0_132, %c1_133, %c0_134, %c0_135] : memref<3x3x32x32xbf16, #tpu.memory_space<vmem>>, vector<1x1x32x32xbf16>
    %106 = vector.shape_cast %105 : vector<1x1x32x32xbf16> to vector<32x32xbf16>
    %cst_136 = arith.constant dense<0.000000e+00> : vector<48x32xf32>
    %107 = tpu.matmul %104, %106, %cst_136 {dimension_numbers = #tpu.dot_dimension_numbers<[1], [0], [0], [1], [0, 0, 1, 1], [], []>} : vector<48x32xbf16>, vector<32x32xbf16>, vector<48x32xf32> -> vector<48x32xf32>
    %108 = arith.addf %102, %107 : vector<48x32xf32>
    %c0_137 = arith.constant 0 : index
    %c2_138 = arith.constant 2 : index
    %c0_139 = arith.constant 0 : index
    %109 = vector.load %arg8[%c0_137, %c2_138, %c0_139] : memref<8x10x32xbf16, #tpu.memory_space<vmem>>, vector<6x8x32xbf16>
    %110 = vector.shape_cast %109 : vector<6x8x32xbf16> to vector<48x32xbf16>
    %c0_140 = arith.constant 0 : index
    %c2_141 = arith.constant 2 : index
    %c0_142 = arith.constant 0 : index
    %c0_143 = arith.constant 0 : index
    %111 = vector.load %arg4[%c0_140, %c2_141, %c0_142, %c0_143] : memref<3x3x32x32xbf16, #tpu.memory_space<vmem>>, vector<1x1x32x32xbf16>
    %112 = vector.shape_cast %111 : vector<1x1x32x32xbf16> to vector<32x32xbf16>
    %cst_144 = arith.constant dense<0.000000e+00> : vector<48x32xf32>
    %113 = tpu.matmul %110, %112, %cst_144 {dimension_numbers = #tpu.dot_dimension_numbers<[1], [0], [0], [1], [0, 0, 1, 1], [], []>} : vector<48x32xbf16>, vector<32x32xbf16>, vector<48x32xf32> -> vector<48x32xf32>
    %114 = arith.addf %108, %113 : vector<48x32xf32>
    %c1_145 = arith.constant 1 : index
    %c0_146 = arith.constant 0 : index
    %c0_147 = arith.constant 0 : index
    %115 = vector.load %arg8[%c1_145, %c0_146, %c0_147] : memref<8x10x32xbf16, #tpu.memory_space<vmem>>, vector<6x8x32xbf16>
    %116 = vector.shape_cast %115 : vector<6x8x32xbf16> to vector<48x32xbf16>
    %c1_148 = arith.constant 1 : index
    %c0_149 = arith.constant 0 : index
    %c0_150 = arith.constant 0 : index
    %c0_151 = arith.constant 0 : index
    %117 = vector.load %arg4[%c1_148, %c0_149, %c0_150, %c0_151] : memref<3x3x32x32xbf16, #tpu.memory_space<vmem>>, vector<1x1x32x32xbf16>
    %118 = vector.shape_cast %117 : vector<1x1x32x32xbf16> to vector<32x32xbf16>
    %cst_152 = arith.constant dense<0.000000e+00> : vector<48x32xf32>
    %119 = tpu.matmul %116, %118, %cst_152 {dimension_numbers = #tpu.dot_dimension_numbers<[1], [0], [0], [1], [0, 0, 1, 1], [], []>} : vector<48x32xbf16>, vector<32x32xbf16>, vector<48x32xf32> -> vector<48x32xf32>
    %120 = arith.addf %114, %119 : vector<48x32xf32>
    %c1_153 = arith.constant 1 : index
    %c1_154 = arith.constant 1 : index
    %c0_155 = arith.constant 0 : index
    %121 = vector.load %arg8[%c1_153, %c1_154, %c0_155] : memref<8x10x32xbf16, #tpu.memory_space<vmem>>, vector<6x8x32xbf16>
    %122 = vector.shape_cast %121 : vector<6x8x32xbf16> to vector<48x32xbf16>
    %c1_156 = arith.constant 1 : index
    %c1_157 = arith.constant 1 : index
    %c0_158 = arith.constant 0 : index
    %c0_159 = arith.constant 0 : index
    %123 = vector.load %arg4[%c1_156, %c1_157, %c0_158, %c0_159] : memref<3x3x32x32xbf16, #tpu.memory_space<vmem>>, vector<1x1x32x32xbf16>
    %124 = vector.shape_cast %123 : vector<1x1x32x32xbf16> to vector<32x32xbf16>
    %cst_160 = arith.constant dense<0.000000e+00> : vector<48x32xf32>
    %125 = tpu.matmul %122, %124, %cst_160 {dimension_numbers = #tpu.dot_dimension_numbers<[1], [0], [0], [1], [0, 0, 1, 1], [], []>} : vector<48x32xbf16>, vector<32x32xbf16>, vector<48x32xf32> -> vector<48x32xf32>
    %126 = arith.addf %120, %125 : vector<48x32xf32>
    %c1_161 = arith.constant 1 : index
    %c2_162 = arith.constant 2 : index
    %c0_163 = arith.constant 0 : index
    %127 = vector.load %arg8[%c1_161, %c2_162, %c0_163] : memref<8x10x32xbf16, #tpu.memory_space<vmem>>, vector<6x8x32xbf16>
    %128 = vector.shape_cast %127 : vector<6x8x32xbf16> to vector<48x32xbf16>
    %c1_164 = arith.constant 1 : index
    %c2_165 = arith.constant 2 : index
    %c0_166 = arith.constant 0 : index
    %c0_167 = arith.constant 0 : index
    %129 = vector.load %arg4[%c1_164, %c2_165, %c0_166, %c0_167] : memref<3x3x32x32xbf16, #tpu.memory_space<vmem>>, vector<1x1x32x32xbf16>
    %130 = vector.shape_cast %129 : vector<1x1x32x32xbf16> to vector<32x32xbf16>
    %cst_168 = arith.constant dense<0.000000e+00> : vector<48x32xf32>
    %131 = tpu.matmul %128, %130, %cst_168 {dimension_numbers = #tpu.dot_dimension_numbers<[1], [0], [0], [1], [0, 0, 1, 1], [], []>} : vector<48x32xbf16>, vector<32x32xbf16>, vector<48x32xf32> -> vector<48x32xf32>
    %132 = arith.addf %126, %131 : vector<48x32xf32>
    %c2_169 = arith.constant 2 : index
    %c0_170 = arith.constant 0 : index
    %c0_171 = arith.constant 0 : index
    %133 = vector.load %arg8[%c2_169, %c0_170, %c0_171] : memref<8x10x32xbf16, #tpu.memory_space<vmem>>, vector<6x8x32xbf16>
    %134 = vector.shape_cast %133 : vector<6x8x32xbf16> to vector<48x32xbf16>
    %c2_172 = arith.constant 2 : index
    %c0_173 = arith.constant 0 : index
    %c0_174 = arith.constant 0 : index
    %c0_175 = arith.constant 0 : index
    %135 = vector.load %arg4[%c2_172, %c0_173, %c0_174, %c0_175] : memref<3x3x32x32xbf16, #tpu.memory_space<vmem>>, vector<1x1x32x32xbf16>
    %136 = vector.shape_cast %135 : vector<1x1x32x32xbf16> to vector<32x32xbf16>
    %cst_176 = arith.constant dense<0.000000e+00> : vector<48x32xf32>
    %137 = tpu.matmul %134, %136, %cst_176 {dimension_numbers = #tpu.dot_dimension_numbers<[1], [0], [0], [1], [0, 0, 1, 1], [], []>} : vector<48x32xbf16>, vector<32x32xbf16>, vector<48x32xf32> -> vector<48x32xf32>
    %138 = arith.addf %132, %137 : vector<48x32xf32>
    %c2_177 = arith.constant 2 : index
    %c1_178 = arith.constant 1 : index
    %c0_179 = arith.constant 0 : index
    %139 = vector.load %arg8[%c2_177, %c1_178, %c0_179] : memref<8x10x32xbf16, #tpu.memory_space<vmem>>, vector<6x8x32xbf16>
    %140 = vector.shape_cast %139 : vector<6x8x32xbf16> to vector<48x32xbf16>
    %c2_180 = arith.constant 2 : index
    %c1_181 = arith.constant 1 : index
    %c0_182 = arith.constant 0 : index
    %c0_183 = arith.constant 0 : index
    %141 = vector.load %arg4[%c2_180, %c1_181, %c0_182, %c0_183] : memref<3x3x32x32xbf16, #tpu.memory_space<vmem>>, vector<1x1x32x32xbf16>
    %142 = vector.shape_cast %141 : vector<1x1x32x32xbf16> to vector<32x32xbf16>
    %cst_184 = arith.constant dense<0.000000e+00> : vector<48x32xf32>
    %143 = tpu.matmul %140, %142, %cst_184 {dimension_numbers = #tpu.dot_dimension_numbers<[1], [0], [0], [1], [0, 0, 1, 1], [], []>} : vector<48x32xbf16>, vector<32x32xbf16>, vector<48x32xf32> -> vector<48x32xf32>
    %144 = arith.addf %138, %143 : vector<48x32xf32>
    %c2_185 = arith.constant 2 : index
    %c2_186 = arith.constant 2 : index
    %c0_187 = arith.constant 0 : index
    %145 = vector.load %arg8[%c2_185, %c2_186, %c0_187] : memref<8x10x32xbf16, #tpu.memory_space<vmem>>, vector<6x8x32xbf16>
    %146 = vector.shape_cast %145 : vector<6x8x32xbf16> to vector<48x32xbf16>
    %c2_188 = arith.constant 2 : index
    %c2_189 = arith.constant 2 : index
    %c0_190 = arith.constant 0 : index
    %c0_191 = arith.constant 0 : index
    %147 = vector.load %arg4[%c2_188, %c2_189, %c0_190, %c0_191] : memref<3x3x32x32xbf16, #tpu.memory_space<vmem>>, vector<1x1x32x32xbf16>
    %148 = vector.shape_cast %147 : vector<1x1x32x32xbf16> to vector<32x32xbf16>
    %cst_192 = arith.constant dense<0.000000e+00> : vector<48x32xf32>
    %149 = tpu.matmul %146, %148, %cst_192 {dimension_numbers = #tpu.dot_dimension_numbers<[1], [0], [0], [1], [0, 0, 1, 1], [], []>} : vector<48x32xbf16>, vector<32x32xbf16>, vector<48x32xf32> -> vector<48x32xf32>
    %150 = arith.addf %144, %149 : vector<48x32xf32>
    %cst_193 = arith.constant 0.000000e+00 : f32
    %151 = vector.broadcast %cst_193 : f32 to vector<48x32xf32>
    %152 = arith.maximumf %150, %151 : vector<48x32xf32>
    %153 = arith.truncf %152 : vector<48x32xf32> to vector<48x32xbf16>
    %154 = vector.shape_cast %153 : vector<48x32xbf16> to vector<6x8x32xbf16>
    %c1_194 = arith.constant 1 : index
    %c1_195 = arith.constant 1 : index
    %c0_196 = arith.constant 0 : index
    %155 = vector.load %arg8[%c1_194, %c1_195, %c0_196] : memref<8x10x32xbf16, #tpu.memory_space<vmem>>, vector<6x8x32xbf16>
    tpu.vector_store %arg8[%c1_194, %c1_195, %c0_196], %154 {strides = array<i32>} : memref<8x10x32xbf16, #tpu.memory_space<vmem>>, vector<6x8x32xbf16>,
    %c0_197 = arith.constant 0 : index
    %c0_198 = arith.constant 0 : index
    %c0_199 = arith.constant 0 : index
    %156 = vector.load %arg8[%c0_197, %c0_198, %c0_199] : memref<8x10x32xbf16, #tpu.memory_space<vmem>>, vector<6x8x32xbf16>
    %157 = vector.shape_cast %156 : vector<6x8x32xbf16> to vector<48x32xbf16>
    %c0_200 = arith.constant 0 : index
    %c0_201 = arith.constant 0 : index
    %c0_202 = arith.constant 0 : index
    %c0_203 = arith.constant 0 : index
    %158 = vector.load %arg5[%c0_200, %c0_201, %c0_202, %c0_203] : memref<3x3x32x64xbf16, #tpu.memory_space<vmem>>, vector<1x1x32x64xbf16>
    %159 = vector.shape_cast %158 : vector<1x1x32x64xbf16> to vector<32x64xbf16>
    %cst_204 = arith.constant dense<0.000000e+00> : vector<48x64xf32>
    %160 = tpu.matmul %157, %159, %cst_204 {dimension_numbers = #tpu.dot_dimension_numbers<[1], [0], [0], [1], [0, 0, 1, 1], [], []>} : vector<48x32xbf16>, vector<32x64xbf16>, vector<48x64xf32> -> vector<48x64xf32>
    %c0_205 = arith.constant 0 : index
    %c1_206 = arith.constant 1 : index
    %c0_207 = arith.constant 0 : index
    %161 = vector.load %arg8[%c0_205, %c1_206, %c0_207] : memref<8x10x32xbf16, #tpu.memory_space<vmem>>, vector<6x8x32xbf16>
    %162 = vector.shape_cast %161 : vector<6x8x32xbf16> to vector<48x32xbf16>
    %c0_208 = arith.constant 0 : index
    %c1_209 = arith.constant 1 : index
    %c0_210 = arith.constant 0 : index
    %c0_211 = arith.constant 0 : index
    %163 = vector.load %arg5[%c0_208, %c1_209, %c0_210, %c0_211] : memref<3x3x32x64xbf16, #tpu.memory_space<vmem>>, vector<1x1x32x64xbf16>
    %164 = vector.shape_cast %163 : vector<1x1x32x64xbf16> to vector<32x64xbf16>
    %cst_212 = arith.constant dense<0.000000e+00> : vector<48x64xf32>
    %165 = tpu.matmul %162, %164, %cst_212 {dimension_numbers = #tpu.dot_dimension_numbers<[1], [0], [0], [1], [0, 0, 1, 1], [], []>} : vector<48x32xbf16>, vector<32x64xbf16>, vector<48x64xf32> -> vector<48x64xf32>
    %166 = arith.addf %160, %165 : vector<48x64xf32>
    %c0_213 = arith.constant 0 : index
    %c2_214 = arith.constant 2 : index
    %c0_215 = arith.constant 0 : index
    %167 = vector.load %arg8[%c0_213, %c2_214, %c0_215] : memref<8x10x32xbf16, #tpu.memory_space<vmem>>, vector<6x8x32xbf16>
    %168 = vector.shape_cast %167 : vector<6x8x32xbf16> to vector<48x32xbf16>
    %c0_216 = arith.constant 0 : index
    %c2_217 = arith.constant 2 : index
    %c0_218 = arith.constant 0 : index
    %c0_219 = arith.constant 0 : index
    %169 = vector.load %arg5[%c0_216, %c2_217, %c0_218, %c0_219] : memref<3x3x32x64xbf16, #tpu.memory_space<vmem>>, vector<1x1x32x64xbf16>
    %170 = vector.shape_cast %169 : vector<1x1x32x64xbf16> to vector<32x64xbf16>
    %cst_220 = arith.constant dense<0.000000e+00> : vector<48x64xf32>
    %171 = tpu.matmul %168, %170, %cst_220 {dimension_numbers = #tpu.dot_dimension_numbers<[1], [0], [0], [1], [0, 0, 1, 1], [], []>} : vector<48x32xbf16>, vector<32x64xbf16>, vector<48x64xf32> -> vector<48x64xf32>
    %172 = arith.addf %166, %171 : vector<48x64xf32>
    %c1_221 = arith.constant 1 : index
    %c0_222 = arith.constant 0 : index
    %c0_223 = arith.constant 0 : index
    %173 = vector.load %arg8[%c1_221, %c0_222, %c0_223] : memref<8x10x32xbf16, #tpu.memory_space<vmem>>, vector<6x8x32xbf16>
    %174 = vector.shape_cast %173 : vector<6x8x32xbf16> to vector<48x32xbf16>
    %c1_224 = arith.constant 1 : index
    %c0_225 = arith.constant 0 : index
    %c0_226 = arith.constant 0 : index
    %c0_227 = arith.constant 0 : index
    %175 = vector.load %arg5[%c1_224, %c0_225, %c0_226, %c0_227] : memref<3x3x32x64xbf16, #tpu.memory_space<vmem>>, vector<1x1x32x64xbf16>
    %176 = vector.shape_cast %175 : vector<1x1x32x64xbf16> to vector<32x64xbf16>
    %cst_228 = arith.constant dense<0.000000e+00> : vector<48x64xf32>
    %177 = tpu.matmul %174, %176, %cst_228 {dimension_numbers = #tpu.dot_dimension_numbers<[1], [0], [0], [1], [0, 0, 1, 1], [], []>} : vector<48x32xbf16>, vector<32x64xbf16>, vector<48x64xf32> -> vector<48x64xf32>
    %178 = arith.addf %172, %177 : vector<48x64xf32>
    %c1_229 = arith.constant 1 : index
    %c1_230 = arith.constant 1 : index
    %c0_231 = arith.constant 0 : index
    %179 = vector.load %arg8[%c1_229, %c1_230, %c0_231] : memref<8x10x32xbf16, #tpu.memory_space<vmem>>, vector<6x8x32xbf16>
    %180 = vector.shape_cast %179 : vector<6x8x32xbf16> to vector<48x32xbf16>
    %c1_232 = arith.constant 1 : index
    %c1_233 = arith.constant 1 : index
    %c0_234 = arith.constant 0 : index
    %c0_235 = arith.constant 0 : index
    %181 = vector.load %arg5[%c1_232, %c1_233, %c0_234, %c0_235] : memref<3x3x32x64xbf16, #tpu.memory_space<vmem>>, vector<1x1x32x64xbf16>
    %182 = vector.shape_cast %181 : vector<1x1x32x64xbf16> to vector<32x64xbf16>
    %cst_236 = arith.constant dense<0.000000e+00> : vector<48x64xf32>
    %183 = tpu.matmul %180, %182, %cst_236 {dimension_numbers = #tpu.dot_dimension_numbers<[1], [0], [0], [1], [0, 0, 1, 1], [], []>} : vector<48x32xbf16>, vector<32x64xbf16>, vector<48x64xf32> -> vector<48x64xf32>
    %184 = arith.addf %178, %183 : vector<48x64xf32>
    %c1_237 = arith.constant 1 : index
    %c2_238 = arith.constant 2 : index
    %c0_239 = arith.constant 0 : index
    %185 = vector.load %arg8[%c1_237, %c2_238, %c0_239] : memref<8x10x32xbf16, #tpu.memory_space<vmem>>, vector<6x8x32xbf16>
    %186 = vector.shape_cast %185 : vector<6x8x32xbf16> to vector<48x32xbf16>
    %c1_240 = arith.constant 1 : index
    %c2_241 = arith.constant 2 : index
    %c0_242 = arith.constant 0 : index
    %c0_243 = arith.constant 0 : index
    %187 = vector.load %arg5[%c1_240, %c2_241, %c0_242, %c0_243] : memref<3x3x32x64xbf16, #tpu.memory_space<vmem>>, vector<1x1x32x64xbf16>
    %188 = vector.shape_cast %187 : vector<1x1x32x64xbf16> to vector<32x64xbf16>
    %cst_244 = arith.constant dense<0.000000e+00> : vector<48x64xf32>
    %189 = tpu.matmul %186, %188, %cst_244 {dimension_numbers = #tpu.dot_dimension_numbers<[1], [0], [0], [1], [0, 0, 1, 1], [], []>} : vector<48x32xbf16>, vector<32x64xbf16>, vector<48x64xf32> -> vector<48x64xf32>
    %190 = arith.addf %184, %189 : vector<48x64xf32>
    %c2_245 = arith.constant 2 : index
    %c0_246 = arith.constant 0 : index
    %c0_247 = arith.constant 0 : index
    %191 = vector.load %arg8[%c2_245, %c0_246, %c0_247] : memref<8x10x32xbf16, #tpu.memory_space<vmem>>, vector<6x8x32xbf16>
    %192 = vector.shape_cast %191 : vector<6x8x32xbf16> to vector<48x32xbf16>
    %c2_248 = arith.constant 2 : index
    %c0_249 = arith.constant 0 : index
    %c0_250 = arith.constant 0 : index
    %c0_251 = arith.constant 0 : index
    %193 = vector.load %arg5[%c2_248, %c0_249, %c0_250, %c0_251] : memref<3x3x32x64xbf16, #tpu.memory_space<vmem>>, vector<1x1x32x64xbf16>
    %194 = vector.shape_cast %193 : vector<1x1x32x64xbf16> to vector<32x64xbf16>
    %cst_252 = arith.constant dense<0.000000e+00> : vector<48x64xf32>
    %195 = tpu.matmul %192, %194, %cst_252 {dimension_numbers = #tpu.dot_dimension_numbers<[1], [0], [0], [1], [0, 0, 1, 1], [], []>} : vector<48x32xbf16>, vector<32x64xbf16>, vector<48x64xf32> -> vector<48x64xf32>
    %196 = arith.addf %190, %195 : vector<48x64xf32>
    %c2_253 = arith.constant 2 : index
    %c1_254 = arith.constant 1 : index
    %c0_255 = arith.constant 0 : index
    %197 = vector.load %arg8[%c2_253, %c1_254, %c0_255] : memref<8x10x32xbf16, #tpu.memory_space<vmem>>, vector<6x8x32xbf16>
    %198 = vector.shape_cast %197 : vector<6x8x32xbf16> to vector<48x32xbf16>
    %c2_256 = arith.constant 2 : index
    %c1_257 = arith.constant 1 : index
    %c0_258 = arith.constant 0 : index
    %c0_259 = arith.constant 0 : index
    %199 = vector.load %arg5[%c2_256, %c1_257, %c0_258, %c0_259] : memref<3x3x32x64xbf16, #tpu.memory_space<vmem>>, vector<1x1x32x64xbf16>
    %200 = vector.shape_cast %199 : vector<1x1x32x64xbf16> to vector<32x64xbf16>
    %cst_260 = arith.constant dense<0.000000e+00> : vector<48x64xf32>
    %201 = tpu.matmul %198, %200, %cst_260 {dimension_numbers = #tpu.dot_dimension_numbers<[1], [0], [0], [1], [0, 0, 1, 1], [], []>} : vector<48x32xbf16>, vector<32x64xbf16>, vector<48x64xf32> -> vector<48x64xf32>
    %202 = arith.addf %196, %201 : vector<48x64xf32>
    %c2_261 = arith.constant 2 : index
    %c2_262 = arith.constant 2 : index
    %c0_263 = arith.constant 0 : index
    %203 = vector.load %arg8[%c2_261, %c2_262, %c0_263] : memref<8x10x32xbf16, #tpu.memory_space<vmem>>, vector<6x8x32xbf16>
    %204 = vector.shape_cast %203 : vector<6x8x32xbf16> to vector<48x32xbf16>
    %c2_264 = arith.constant 2 : index
    %c2_265 = arith.constant 2 : index
    %c0_266 = arith.constant 0 : index
    %c0_267 = arith.constant 0 : index
    %205 = vector.load %arg5[%c2_264, %c2_265, %c0_266, %c0_267] : memref<3x3x32x64xbf16, #tpu.memory_space<vmem>>, vector<1x1x32x64xbf16>
    %206 = vector.shape_cast %205 : vector<1x1x32x64xbf16> to vector<32x64xbf16>
    %cst_268 = arith.constant dense<0.000000e+00> : vector<48x64xf32>
    %207 = tpu.matmul %204, %206, %cst_268 {dimension_numbers = #tpu.dot_dimension_numbers<[1], [0], [0], [1], [0, 0, 1, 1], [], []>} : vector<48x32xbf16>, vector<32x64xbf16>, vector<48x64xf32> -> vector<48x64xf32>
    %208 = arith.addf %202, %207 : vector<48x64xf32>
    %c0_269 = arith.constant 0 : index
    %c0_270 = arith.constant 0 : index
    %209 = vector.load %arg6[%c0_269, %c0_270] : memref<1x64xf32, #tpu.memory_space<vmem>>, vector<1x64xf32>
    %cst_271 = arith.constant 5.000000e-01 : f32
    %210 = vector.broadcast %cst_271 : f32 to vector<1x64xf32>
    %211 = arith.cmpf ogt, %209, %210 : vector<1x64xf32>
    %212 = arith.negf %208 : vector<48x64xf32>
    %213 = math.exp %212 : vector<48x64xf32>
    %cst_272 = arith.constant 1.000000e+00 : f32
    %214 = vector.broadcast %cst_272 : f32 to vector<48x64xf32>
    %215 = arith.addf %214, %213 : vector<48x64xf32>
    %216 = arith.divf %214, %215 : vector<48x64xf32>
    %217 = vector.shape_cast %211 : vector<1x64xi1> to vector<1x64xi1>
    %218 = vector.broadcast %217 : vector<1x64xi1> to vector<48x64xi1>
    %219 = arith.select %218, %216, %208 : vector<48x64xi1>, vector<48x64xf32>
    %c0_273 = arith.constant 0 : index
    %c0_274 = arith.constant 0 : index
    %c0_275 = arith.constant 0 : index
    %220 = vector.load %arg7[%c0_273, %c0_274, %c0_275] : memref<1x48x64xf32, #tpu.memory_space<vmem>>, vector<1x48x64xf32>
    %221 = vector.shape_cast %220 : vector<1x48x64xf32> to vector<48x64xf32>
    %222 = vector.shape_cast %219 : vector<48x64xf32> to vector<1x48x64xf32>
    tpu.vector_store %arg7[%c0_273, %c0_274, %c0_275], %222 {strides = array<i32>} : memref<1x48x64xf32, #tpu.memory_space<vmem>>, vector<1x48x64xf32>,
    return
  }
  func.func @transform_0(%arg0: i32) -> (i32, i32, i32, i32) {
    %c0_i32 = arith.constant 0 : i32
    %c0_i32_0 = arith.constant 0 : i32
    %c0_i32_1 = arith.constant 0 : i32
    %c0_i32_2 = arith.constant 0 : i32
    return %arg0, %c0_i32, %c0_i32_0, %c0_i32_1 : i32, i32, i32, i32
  }
  func.func @transform_1(%arg0: i32) -> (i32, i32, i32) {
    %c0_i32 = arith.constant 0 : i32
    %c0_i32_0 = arith.constant 0 : i32
    %c0_i32_1 = arith.constant 0 : i32
    %c0_i32_2 = arith.constant 0 : i32
    return %c0_i32, %c0_i32_0, %c0_i32_1 : i32, i32, i32
  }
  func.func @transform_2(%arg0: i32) -> (i32, i32, i32, i32) {
    %c0_i32 = arith.constant 0 : i32
    %c0_i32_0 = arith.constant 0 : i32
    %c0_i32_1 = arith.constant 0 : i32
    %c0_i32_2 = arith.constant 0 : i32
    %c0_i32_3 = arith.constant 0 : i32
    return %c0_i32, %c0_i32_0, %c0_i32_1, %c0_i32_2 : i32, i32, i32, i32
  }
  func.func @transform_3(%arg0: i32) -> (i32, i32, i32, i32) {
    %c0_i32 = arith.constant 0 : i32
    %c0_i32_0 = arith.constant 0 : i32
    %c0_i32_1 = arith.constant 0 : i32
    %c0_i32_2 = arith.constant 0 : i32
    %c0_i32_3 = arith.constant 0 : i32
    return %c0_i32, %c0_i32_0, %c0_i32_1, %c0_i32_2 : i32, i32, i32, i32
  }
  func.func @transform_4(%arg0: i32) -> (i32, i32, i32, i32) {
    %c0_i32 = arith.constant 0 : i32
    %c0_i32_0 = arith.constant 0 : i32
    %c0_i32_1 = arith.constant 0 : i32
    %c0_i32_2 = arith.constant 0 : i32
    %c0_i32_3 = arith.constant 0 : i32
    return %c0_i32, %c0_i32_0, %c0_i32_1, %c0_i32_2 : i32, i32, i32, i32
  }
  func.func @transform_5(%arg0: i32) -> (i32, i32) {
    %c0_i32 = arith.constant 0 : i32
    %c0_i32_0 = arith.constant 0 : i32
    %c0_i32_1 = arith.constant 0 : i32
    return %c0_i32, %c0_i32_0 : i32, i32
  }
  func.func @transform_6(%arg0: i32) -> (i32, i32, i32) {
    %c0_i32 = arith.constant 0 : i32
    %c0_i32_0 = arith.constant 0 : i32
    %c0_i32_1 = arith.constant 0 : i32
    return %arg0, %c0_i32, %c0_i32_0 : i32, i32, i32
  }
}

</mosaic_0001>

<bundles_post_ra>
// kernel: my_model_forward.3
= control target key start
LH: loop header
LB: loop body
LE: loop exit
PB: predicated region body
PF: predicated region fallthrough
CT: control target
= control target key end

     0   :  { %s8441_s9 = smov 0   ;;  %s9663_s0 = inlined_call_operand.vmem [shape: bf16[2,25,33,32], index: 0, kind: input, shape index: {}]   ;;  %s9664_s1 = inlined_call_operand.vmem [shape: bf16[4,32,32], index: 1, kind: input, shape index: {}]   ;;  %s9665_s2 = inlined_call_operand.vmem [shape: bf16[2,24,32,32], index: 2, kind: output, shape index: {}]  }
   0x1 LB: > { %s6501_s10 = sadd.s32 4294967295, %s8424_s9   ;;  %p6505_p0 = scmp.ge.s32.totalorder %s8424_s9, 1  ;;  %s8424_s9 = sphi %s8441_s9, %s12_s9  }
   0x2   : > { %p112_p1 = scmp.lt.s32.totalorder %s8424_s9, 3 }
   0x4   : > { %p113_p2 = pnand %p6505_p0, %p112_p1 }
   0x5   : > { %v8220_v0 = vld [vmem:[%s9664_s1 + $0x20] sm:$0xff] (!%p113_p2)   ;;  %p134_p3 = scmp.lt.s32.totalorder (!%p113_p2), %s6501_s10, 1  ;;  %v8221_v1 = vld [vmem:[%s9664_s1 + $0x28] sm:$0xff] (!%p113_p2)   ;;  %v8223_v2 = vld [vmem:[%s9664_s1 + $0x10] sm:$0xff] (!%p113_p2)   ;;  %vm269_vm0 = vsmask.f32 (!%p113_p2), 3328 }
   0x6   : > { %116 = sbr.rel (%p113_p2) target bundleno = 643 (0x283), region = 28  ;;  %7722 = vmatprep.subr.bf16.mxu0 (!%p113_p2), %v8220_v0  ;;  %v8225_v3 = vld [vmem:[%s9664_s1 + $0x18] sm:$0xff] (!%p113_p2)   ;;  %7522 = vmatprep.subr.bf16.mxu1 (!%p113_p2), %v8223_v2  ;;  %vm270_vm1 = vsmask.f32 (!%p113_p2), 7440  ;;  %v8467_v4 = vld [vmem:[%s9664_s1] sm:$0xff] (!%p113_p2)   ;;  %vm1489_vm2 = vcmask (!%p113_p2), 261120  }
   0x7   : > { %7723 = vmatpush3.bf16.msra.mxu0 (!%p113_p2), %v8220_v0  ;;  %7523 = vmatpush3.bf16.msra.mxu1 (!%p113_p2), %v8223_v2  ;;  %v8230_v5 = vld [vmem:[%s9664_s1 + $0x30] sm:$0xff] (!%p113_p2)   ;;  %vm8503_vm3 = vmor (!%p113_p2), %vm269_vm0, %vm270_vm1  ;;  %vm6349_vm4 = vcmask (!%p113_p2), 257024  }
   0x8   : > { %7724 = vmatprep.subr.bf16.mxu0 (!%p113_p2), %v8221_v1  ;;  %7524 = vmatprep.subr.bf16.mxu1 (!%p113_p2), %v8225_v3 }
   0xb   : > { %7725 = vmatpush3.bf16.msra.mxu0 (!%p113_p2), %v8221_v1  ;;  %7525 = vmatpush3.bf16.msra.mxu1 (!%p113_p2), %v8225_v3 }
   0xc   : > { %7822 = vmatprep.subr.bf16.mxu0 (!%p113_p2), %v8230_v5  ;;  %7622 = vmatprep.subr.bf16.mxu1 (!%p113_p2), %v8467_v4 }
   0xd   : > { %s9669_s10 = smov (!%p134_p3, %s6501_s10), 1 }
   0xe   : > { %s8210_s19 = smul.u32 500, %s9669_s10 }
   0xf   : > { %s8211_s3 = smul.u32 384, %s9669_s10 }
  0x10   : > { %s8472_s24 = scalar_lea.vmem %s9663_s0, %s8210_s19 }
  0x11   : > { %v8222_v6 = vld [vmem:[%s8472_s24 + $0x14] sm:$0xff]   ;;  %v8224_v7 = vld [vmem:[%s8472_s24 + $0x1c] sm:$0xff]   ;;  %v8226_v8 = vld [vmem:[%s8472_s24 + $0x28] sm:$0xff]   ;;  %s9466_s6 = scalar_lea.vmem %s9665_s2, %s8211_s3 }
  0x12   : > { %7726 = vmatprep.mubr.msk.bf16.mxu0 %vm1489_vm2, %v8222_v6  ;;  %v145_v9 = vld [vmem:[%s8472_s24] sm:$0xf]  ;;  %v146_v10 = vld [vmem:[%s8472_s24 + $0x4] sm:$0xf]  ;;  %v8485_v11 = vld [vmem:[%s8472_s24 + $0x8] sm:$0xf] }
  0x13   : > { %7727 = vmatmul.mubr.msk.bf16.vlgmr.msra.gmra.mrb[0].mxu0 %vm1489_vm2, %v8224_v7  ;;  %v8490_v12 = vld [vmem:[%s8472_s24 + $0xc] sm:$0xf]  ;;  %v273_v13 = vshrl.u32 %v145_v9, 16  ;;  %v276_v14 = vshll.u32 %v145_v9, 16  ;;  %v282_v15 = vshll.u32 %v146_v10, 16  ;;  %v286_v16 = vshrl.u32 %v146_v10, 16 }
  0x14   : > { %7730 = vmatprep.mubr.msk.bf16.mxu0 %vm1489_vm2, %v8226_v8  ;;  %7823 = vmatpush3.bf16.msra.mxu0 %v8230_v5  ;;  %v292_v17 = vshll.u32 %v8485_v11, 16  ;;  %v296_v18 = vshrl.u32 %v8485_v11, 16  ;;  %v6611_v19 = vcombine.low %v8485_v11, %v8490_v12  ;;  %v8229_v24 = vld [vmem:[%s8472_s24 + $0x30] sm:$0xff]   ;;  %v302_v28 = vshll.u32 %v8490_v12, 16  ;;  %v8231_v33 = vld [vmem:[%s8472_s24 + $0x3c] sm:$0xff]   ;;  %v8232_v1 = vld [vmem:[%s8472_s24 + $0x44] sm:$0xff]  }
  0x15   : > { %v275_v20 = vrot.slane %v273_v13, 4  ;;  %v278_v21 = vrot.slane %v276_v14, 5  ;;  %v284_v22 = vrot.slane %v282_v15, 5  ;;  %v288_v23 = vrot.slane %v286_v16, 4  ;;  %v245_v27 = vld [vmem:[%s8472_s24 + $0x10] sm:$0x1] }
  0x16   : > { %v294_v25 = vrot.slane %v292_v17, 5  ;;  %v298_v26 = vrot.slane %v296_v18, 4  ;;  %v306_v29 = vshrl.u32 %v8490_v12, 16  ;;  %v312_v32 = vshll.u32 %v245_v27, 16  ;;  %v149_v38 = vld [vmem:[%s8472_s24 + $0x14] sm:$0xf] }
  0x17   : > { %v279_v30 = vor.u32 %v278_v21, %v275_v20  ;;  %v289_v31 = vor.u32 %v288_v23, %v284_v22  ;;  %v304_v36 = vrot.slane %v302_v28, 5  ;;  %v150_v39 = vld [vmem:[%s8472_s24 + $0x18] sm:$0xf]  ;;  %v151_v43 = vld [vmem:[%s8472_s24 + $0x1c] sm:$0xf]  ;;  %v317_v44 = vshrl.u32 %v149_v38, 16 }
  0x18   : > { %v299_v35 = vor.u32 %v298_v26, %v294_v25  ;;  %v308_v37 = vrot.slane %v306_v29, 4  ;;  %v314_v42 = vrot.slane %v312_v32, 5  ;;  %v320_v47 = vshll.u32 %v149_v38, 16  ;;  %v152_v53 = vld [vmem:[%s8472_s24 + $0x20] sm:$0xf]  ;;  %v8233_v5 = vld [vmem:[%s8472_s24 + $0x50] sm:$0xff]  }
  0x19   : > { %v280_v40 = vrot.slane %v279_v30, 4  ;;  %v290_v41 = vrot.slane %v289_v31, 4  ;;  %v326_v48 = vshll.u32 %v150_v39, 16  ;;  %v319_v51 = vrot.slane %v317_v44, 4  ;;  %v246_v58 = vld [vmem:[%s8472_s24 + $0x24] sm:$0x1] }
  0x1a   : > { %v300_v45 = vrot.slane %v299_v35, 4  ;;  %v309_v46 = vor.u32 %v308_v37, %v304_v36  ;;  %v330_v52 = vshrl.u32 %v150_v39, 16  ;;  %v322_v57 = vrot.slane %v320_v47, 5  ;;  %v153_v6 = vld [vmem:[%s8472_s24 + $0x28] sm:$0xf] }
  0x1b   : > { %7731 = vmatmul.mubr.msk.bf16.gmra.mrb[4].mxu0 %vm1489_vm2, %v8229_v24  ;;  %v285_v49 = vsel %vm8503_vm3, %v280_v40, %v284_v22  ;;  %v295_v50 = vsel %vm8503_vm3, %v290_v41, %v294_v25  ;;  %v328_v59 = vrot.slane %v326_v48, 5  ;;  %v336_v61 = vshll.u32 %v151_v43, 16  ;;  %v154_v13 = vld [vmem:[%s8472_s24 + $0x2c] sm:$0xf]  ;;  %v155_v21 = vld [vmem:[%s8472_s24 + $0x30] sm:$0xf] }
  0x1c   : > { %7734 = vmatprep.mubr.msk.bf16.mxu0 %vm1489_vm2, %v8231_v33  ;;  %v6512_v54 = vcombine.low %v285_v49, %v295_v50  ;;  %v305_v55 = vsel %vm8503_vm3, %v300_v45, %v304_v36  ;;  %v310_v56 = vrot.slane %v309_v46, 4  ;;  %v332_v60 = vrot.slane %v330_v52, 4  ;;  %v156_v28 = vld [vmem:[%s8472_s24 + $0x34] sm:$0xf]  ;;  %v247_v37 = vld [vmem:[%s8472_s24 + $0x38] sm:$0x1] }
  0x1d   : > { %v340_v62 = vshrl.u32 %v151_v43, 16  ;;  %v323_v0 = vor.u32 %v322_v57, %v319_v51  ;;  %v346_v2 = vshll.u32 %v152_v53, 16  ;;  %v350_v3 = vshrl.u32 %v152_v53, 16  ;;  %v158_v43 = vld [vmem:[%s8472_s24 + $0x40] sm:$0xf]  ;;  %v8234_v46 = vld [vmem:[%s8472_s24 + $0x58] sm:$0xff]  }
  0x1e   : > { %7526 = vmatprep.mubr.msk.bf16.mxu1 %vm1489_vm2, %v6512_v54  ;;  %v315_v63 = vsel %vm8503_vm3, %v310_v56, %v314_v42  ;;  %v333_v8 = vor.u32 %v332_v60, %v328_v59  ;;  %v338_v9 = vrot.slane %v336_v61, 5  ;;  %v356_v17 = vshll.u32 %v246_v58, 16  ;;  %v157_v42 = vld [vmem:[%s8472_s24 + $0x3c] sm:$0xf]  ;;  %v8235_v53 = vld [vmem:[%s8472_s24 + $0x64] sm:$0xff]  }
  0x1f   : > { %v6513_v7 = vcombine.low %v305_v55, %v315_v63  ;;  %v342_v10 = vrot.slane %v340_v62, 4  ;;  %v324_v14 = vrot.slane %v323_v0, 4  ;;  %v348_v15 = vrot.slane %v346_v2, 5  ;;  %v159_v60 = vld [vmem:[%s8472_s24 + $0x44] sm:$0xf] }
  0x20   : > { %v352_v16 = vrot.slane %v350_v3, 4  ;;  %v334_v18 = vrot.slane %v333_v8, 4  ;;  %v361_v22 = vshrl.u32 %v153_v6, 16  ;;  %v364_v23 = vshll.u32 %v153_v6, 16  ;;  %v160_v8 = vld [vmem:[%s8472_s24 + $0x48] sm:$0xf] }
  0x21   : > { %7527 = vmatmul.mubr.msk.bf16.vlgmr.msra.gmra.mrb[0].mxu1 %vm1489_vm2, %v6513_v7  ;;  %v343_v20 = vor.u32 %v342_v10, %v338_v9  ;;  %v329_v24 = vsel %vm8503_vm3, %v324_v14, %v328_v59  ;;  %v358_v26 = vrot.slane %v356_v17, 5  ;;  %v370_v27 = vshll.u32 %v154_v13, 16 }
  0x22   : > { %7623 = vmatpush3.bf16.msra.mxu1 %v8467_v4  ;;  %v353_v25 = vor.u32 %v352_v16, %v348_v15  ;;  %v339_v29 = vsel %vm8503_vm3, %v334_v18, %v338_v9  ;;  %v363_v31 = vrot.slane %v361_v22, 4  ;;  %v366_v4 = vrot.slane %v364_v23, 5  ;;  %v161_v22 = vld [vmem:[%s8472_s24 + $0x50] sm:$0xf] }
  0x23   : > { %7735 = vmatmul.mubr.msk.bf16.gmra.mrb[8].mxu0 %vm1489_vm2, %v8232_v1  ;;  %v344_v30 = vrot.slane %v343_v20, 4  ;;  %v6514_v32 = vcombine.low %v329_v24, %v339_v29  ;;  %v372_v35 = vrot.slane %v370_v27, 5  ;;  %v374_v36 = vshrl.u32 %v154_v13, 16  ;;  %v8237_v27 = vld [vmem:[%s8472_s24 + $0x78] sm:$0xff]  }
  0x24   : > { %7738 = vmatprep.mubr.msk.bf16.mxu0 %vm1489_vm2, %v8233_v5  ;;  %v354_v33 = vrot.slane %v353_v25, 4  ;;  %v367_v39 = vor.u32 %v366_v4, %v363_v31  ;;  %v380_v40 = vshll.u32 %v155_v21, 16  ;;  %v384_v41 = vshrl.u32 %v155_v21, 16  ;;  %v8236_v21 = vld [vmem:[%s8472_s24 + $0x6c] sm:$0xff]   ;;  %v162_v4 = vld [vmem:[%s8472_s24 + $0x54] sm:$0xf] }
  0x25   : > { %v349_v38 = vsel %vm8503_vm3, %v344_v30, %v348_v15  ;;  %7530 = vmatprep.mubr.msk.bf16.mxu1 %vm1489_vm2, %v6514_v32  ;;  %v376_v45 = vrot.slane %v374_v36, 4  ;;  %v390_v47 = vshll.u32 %v156_v28, 16  ;;  %v394_v48 = vshrl.u32 %v156_v28, 16  ;;  %v248_v15 = vld [vmem:[%s8472_s24 + $0x4c] sm:$0x1] }
  0x26   : > { %v359_v44 = vsel %vm8503_vm3, %v354_v33, %v358_v26  ;;  %v368_v50 = vrot.slane %v367_v39, 4  ;;  %v382_v51 = vrot.slane %v380_v40, 5  ;;  %v386_v52 = vrot.slane %v384_v41, 4  ;;  %v163_v32 = vld [vmem:[%s8472_s24 + $0x58] sm:$0xf] }
  0x27   : > { %v6515_v49 = vcombine.low %v349_v38, %v359_v44  ;;  %v377_v54 = vor.u32 %v376_v45, %v372_v35  ;;  %v392_v55 = vrot.slane %v390_v47, 5  ;;  %v396_v56 = vrot.slane %v394_v48, 4 }
  0x28   : > { %v400_v57 = vshll.u32 %v247_v37, 16  ;;  %v373_v58 = vsel %vm8503_vm3, %v368_v50, %v372_v35  ;;  %v387_v59 = vor.u32 %v386_v52, %v382_v51  ;;  %v405_v61 = vshrl.u32 %v157_v42, 16  ;;  %v164_v50 = vld [vmem:[%s8472_s24 + $0x5c] sm:$0xf] }
  0x29   : > { %7531 = vmatmul.mubr.msk.bf16.gmra.mrb[4].mxu1 %vm1489_vm2, %v6515_v49  ;;  %v408_v62 = vshll.u32 %v157_v42, 16  ;;  %v378_v63 = vrot.slane %v377_v54, 4  ;;  %v397_v0 = vor.u32 %v396_v56, %v392_v55  ;;  %v414_v2 = vshll.u32 %v158_v43, 16 }
  0x2a   : > { %v402_v1 = vrot.slane %v400_v57, 5  ;;  %v388_v3 = vrot.slane %v387_v59, 4  ;;  %v407_v5 = vrot.slane %v405_v61, 4  ;;  %v418_v7 = vshrl.u32 %v158_v43, 16  ;;  %v8238_v59 = vld [vmem:[%s8472_s24 + $0x80] sm:$0xff]  }
  0x2b   : > { %7739 = vmatmul.mubr.msk.bf16.gmra.mrb[12].mxu0 %vm1489_vm2, %v8234_v46  ;;  %v410_v6 = vrot.slane %v408_v62, 5  ;;  %v383_v9 = vsel %vm8503_vm3, %v378_v63, %v382_v51  ;;  %v398_v10 = vrot.slane %v397_v0, 4  ;;  %v416_v13 = vrot.slane %v414_v2, 5  ;;  %v249_v51 = vld [vmem:[%s8472_s24 + $0x60] sm:$0x1] }
  0x2c   : > { %7742 = vmatprep.mubr.msk.bf16.mxu0 %vm1489_vm2, %v8235_v53  ;;  %v424_v14 = vshll.u32 %v159_v60, 16  ;;  %v6516_v16 = vcombine.low %v373_v58, %v383_v9  ;;  %v393_v17 = vsel %vm8503_vm3, %v388_v3, %v392_v55  ;;  %v420_v20 = vrot.slane %v418_v7, 4  ;;  %v165_v2 = vld [vmem:[%s8472_s24 + $0x64] sm:$0xf] }
  0x2d   : > { %v411_v18 = vor.u32 %v410_v6, %v407_v5  ;;  %v403_v23 = vsel %vm8503_vm3, %v398_v10, %v402_v1  ;;  %v428_v25 = vshrl.u32 %v159_v60, 16  ;;  %v434_v26 = vshll.u32 %v160_v8, 16  ;;  %v8239_v1 = vld [vmem:[%s8472_s24 + $0x8c] sm:$0xff]  }
  0x2e   : > { %v426_v24 = vrot.slane %v424_v14, 5  ;;  %7534 = vmatprep.mubr.msk.bf16.mxu1 %vm1489_vm2, %v6516_v16  ;;  %v6517_v28 = vcombine.low %v393_v17, %v403_v23  ;;  %v421_v30 = vor.u32 %v420_v20, %v416_v13  ;;  %v438_v31 = vshrl.u32 %v160_v8, 16  ;;  %v166_v8 = vld [vmem:[%s8472_s24 + $0x68] sm:$0xf] }
  0x2f   : > { %v412_v29 = vrot.slane %v411_v18, 4  ;;  %v430_v33 = vrot.slane %v428_v25, 4  ;;  %v436_v35 = vrot.slane %v434_v26, 5  ;;  %v444_v36 = vshll.u32 %v248_v15, 16  ;;  %v167_v18 = vld [vmem:[%s8472_s24 + $0x6c] sm:$0xf] }
  0x30   : > { %v449_v37 = vshrl.u32 %v161_v22, 16  ;;  %v422_v39 = vrot.slane %v421_v30, 4  ;;  %v440_v40 = vrot.slane %v438_v31, 4  ;;  %v452_v41 = vshll.u32 %v161_v22, 16  ;;  %v168_v25 = vld [vmem:[%s8472_s24 + $0x70] sm:$0xf] }
  0x31   : > { %7535 = vmatmul.mubr.msk.bf16.gmra.mrb[8].mxu1 %vm1489_vm2, %v6517_v28  ;;  %v417_v38 = vsel %vm8503_vm3, %v412_v29, %v416_v13  ;;  %v431_v42 = vor.u32 %v430_v33, %v426_v24  ;;  %v446_v43 = vrot.slane %v444_v36, 5  ;;  %v458_v45 = vshll.u32 %v162_v4, 16  ;;  %v8240_v33 = vld [vmem:[%s8472_s24 + $0x94] sm:$0xff]  }
  0x32   : > { %v451_v44 = vrot.slane %v449_v37, 4  ;;  %v427_v46 = vsel %vm8503_vm3, %v422_v39, %v426_v24  ;;  %v441_v47 = vor.u32 %v440_v40, %v436_v35  ;;  %v454_v48 = vrot.slane %v452_v41, 5  ;;  %v8241_v40 = vld [vmem:[%s8472_s24 + $0xa0] sm:$0xff]  }
  0x33   : > { %7743 = vmatmul.mubr.msk.bf16.gmra.mrb[16].mxu0 %vm1489_vm2, %v8236_v21  ;;  %v462_v49 = vshrl.u32 %v162_v4, 16  ;;  %v6518_v52 = vcombine.low %v417_v38, %v427_v46  ;;  %v432_v53 = vrot.slane %v431_v42, 4  ;;  %v460_v54 = vrot.slane %v458_v45, 5  ;;  %v250_v38 = vld [vmem:[%s8472_s24 + $0x74] sm:$0x1] }
  0x34   : > { %7746 = vmatprep.mubr.msk.bf16.mxu0 %vm1489_vm2, %v8237_v27  ;;  %v468_v55 = vshll.u32 %v163_v32, 16  ;;  %v442_v56 = vrot.slane %v441_v47, 4  ;;  %v455_v57 = vor.u32 %v454_v48, %v451_v44  ;;  %v472_v60 = vshrl.u32 %v163_v32, 16  ;;  %v169_v45 = vld [vmem:[%s8472_s24 + $0x78] sm:$0xf] }
  0x35   : > { %v464_v58 = vrot.slane %v462_v49, 4  ;;  %7538 = vmatprep.mubr.msk.bf16.mxu1 %vm1489_vm2, %v6518_v52  ;;  %v437_v61 = vsel %vm8503_vm3, %v432_v53, %v436_v35  ;;  %v478_v63 = vshll.u32 %v164_v50, 16  ;;  %v482_v0 = vshrl.u32 %v164_v50, 16  ;;  %v170_v50 = vld [vmem:[%s8472_s24 + $0x7c] sm:$0xf] }
  0x36   : > { %v470_v62 = vrot.slane %v468_v55, 5  ;;  %v447_v3 = vsel %vm8503_vm3, %v442_v56, %v446_v43  ;;  %v456_v5 = vrot.slane %v455_v57, 4  ;;  %v474_v7 = vrot.slane %v472_v60, 4  ;;  %v171_v57 = vld [vmem:[%s8472_s24 + $0x80] sm:$0xf]  ;;  %v8254_v60 = vld [vmem:[%s9664_s1 + $0x8] sm:$0xff]  }
  0x37   : > { %v465_v6 = vor.u32 %v464_v58, %v460_v54  ;;  %v6519_v9 = vcombine.low %v437_v61, %v447_v3  ;;  %v480_v10 = vrot.slane %v478_v63, 5  ;;  %v484_v13 = vrot.slane %v482_v0, 4  ;;  %7624 = vmatprep.subr.bf16.mxu1 %v8254_v60 }
  0x38   : > { %v488_v14 = vshll.u32 %v249_v51, 16  ;;  %v461_v15 = vsel %vm8503_vm3, %v456_v5, %v460_v54  ;;  %v475_v17 = vor.u32 %v474_v7, %v470_v62  ;;  %v493_v20 = vshrl.u32 %v165_v2, 16  ;;  %7625 = vmatpush3.bf16.msra.mxu1 %v8254_v60 }
  0x39   : > { %v466_v16 = vrot.slane %v465_v6, 4  ;;  %7539 = vmatmul.mubr.msk.bf16.gmra.mrb[12].mxu1 %vm1489_vm2, %v6519_v9  ;;  %v485_v21 = vor.u32 %v484_v13, %v480_v10  ;;  %v496_v23 = vshll.u32 %v165_v2, 16  ;;  %v502_v24 = vshll.u32 %v166_v8, 16  ;;  %v172_v6 = vld [vmem:[%s8472_s24 + $0x84] sm:$0xf] }
  0x3a   : > { %v490_v22 = vrot.slane %v488_v14, 5  ;;  %v476_v27 = vrot.slane %v475_v17, 4  ;;  %v495_v28 = vrot.slane %v493_v20, 4  ;;  %v506_v29 = vshrl.u32 %v166_v8, 16  ;;  %v251_v13 = vld [vmem:[%s8472_s24 + $0x88] sm:$0x1] }
  0x3b   : > { %7747 = vmatmul.mubr.msk.bf16.gmra.mrb[20].mxu0 %vm1489_vm2, %v8238_v59  ;;  %v471_v26 = vsel %vm8503_vm3, %v466_v16, %v470_v62  ;;  %v486_v31 = vrot.slane %v485_v21, 4  ;;  %v498_v4 = vrot.slane %v496_v23, 5  ;;  %v504_v32 = vrot.slane %v502_v24, 5  ;;  %v8256_v14 = vld [vmem:[%s9664_s1 + $0x38] sm:$0xff]  }
  0x3c   : > { %7750 = vmatprep.mubr.msk.bf16.mxu0 %vm1489_vm2, %v8239_v1  ;;  %v6520_v30 = vcombine.low %v461_v15, %v471_v26  ;;  %v481_v35 = vsel %vm8503_vm3, %v476_v27, %v480_v10  ;;  %v508_v36 = vrot.slane %v506_v29, 4  ;;  %v512_v37 = vshll.u32 %v167_v18, 16  ;;  %7824 = vmatprep.subr.bf16.mxu0 %v8256_v14 }
  0x3d   : > { %v516_v39 = vshrl.u32 %v167_v18, 16  ;;  %v491_v41 = vsel %vm8503_vm3, %v486_v31, %v490_v22  ;;  %v499_v42 = vor.u32 %v498_v4, %v495_v28  ;;  %v522_v43 = vshll.u32 %v168_v25, 16  ;;  %v8242_v22 = vld [vmem:[%s8472_s24 + $0xa8] sm:$0xff]   ;;  %v174_v31 = vld [vmem:[%s8472_s24 + $0x90] sm:$0xf]  ;;  %7825 = vmatpush3.bf16.msra.mxu0 %v8256_v14 }
  0x3e   : > { %7542 = vmatprep.mubr.msk.bf16.mxu1 %vm1489_vm2, %v6520_v30  ;;  %v526_v44 = vshrl.u32 %v168_v25, 16  ;;  %v6521_v46 = vcombine.low %v481_v35, %v491_v41  ;;  %v509_v47 = vor.u32 %v508_v36, %v504_v32  ;;  %v514_v48 = vrot.slane %v512_v37, 5  ;;  %v173_v25 = vld [vmem:[%s8472_s24 + $0x8c] sm:$0xf]  ;;  %v8243_v30 = vld [vmem:[%s8472_s24 + $0xb4] sm:$0xff]  }
  0x3f   : > { %v518_v49 = vrot.slane %v516_v39, 4  ;;  %v500_v51 = vrot.slane %v499_v42, 4  ;;  %v524_v52 = vrot.slane %v522_v43, 5  ;;  %v532_v54 = vshll.u32 %v250_v38, 16  ;;  %v175_v36 = vld [vmem:[%s8472_s24 + $0x94] sm:$0xf] }
  0x40   : > { %v528_v53 = vrot.slane %v526_v44, 4  ;;  %v510_v55 = vrot.slane %v509_v47, 4  ;;  %v537_v58 = vshrl.u32 %v169_v45, 16  ;;  %v540_v59 = vshll.u32 %v169_v45, 16  ;;  %v176_v45 = vld [vmem:[%s8472_s24 + $0x98] sm:$0xf] }
  0x41   : > { %v519_v56 = vor.u32 %v518_v49, %v514_v48  ;;  %7543 = vmatmul.mubr.msk.bf16.gmra.mrb[16].mxu1 %vm1489_vm2, %v6521_v46  ;;  %v505_v61 = vsel %vm8503_vm3, %v500_v51, %v504_v32  ;;  %v534_v63 = vrot.slane %v532_v54, 5  ;;  %v546_v0 = vshll.u32 %v170_v50, 16 }
  0x42   : > { %v529_v62 = vor.u32 %v528_v53, %v524_v52  ;;  %v515_v1 = vsel %vm8503_vm3, %v510_v55, %v514_v48  ;;  %v539_v3 = vrot.slane %v537_v58, 4  ;;  %v542_v5 = vrot.slane %v540_v59, 5  ;;  %v177_v59 = vld [vmem:[%s8472_s24 + $0xa0] sm:$0xf] }
  0x43   : > { %7751 = vmatmul.mubr.msk.bf16.gmra.mrb[24].mxu0 %vm1489_vm2, %v8240_v33  ;;  %v520_v2 = vrot.slane %v519_v56, 4  ;;  %v6522_v7 = vcombine.low %v505_v61, %v515_v1  ;;  %v548_v9 = vrot.slane %v546_v0, 5  ;;  %v550_v10 = vshrl.u32 %v170_v50, 16  ;;  %v252_v50 = vld [vmem:[%s8472_s24 + $0x9c] sm:$0x1]  ;;  %v8245_v1 = vld [vmem:[%s8472_s24 + $0xc8] sm:$0xff]  }
  0x44   : > { %7754 = vmatprep.mubr.msk.bf16.mxu0 %vm1489_vm2, %v8241_v40  ;;  %v530_v8 = vrot.slane %v529_v62, 4  ;;  %v543_v16 = vor.u32 %v542_v5, %v539_v3  ;;  %v556_v17 = vshll.u32 %v171_v57, 16  ;;  %v560_v18 = vshrl.u32 %v171_v57, 16  ;;  %v8244_v62 = vld [vmem:[%s8472_s24 + $0xbc] sm:$0xff]  }
  0x45   : > { %v525_v15 = vsel %vm8503_vm3, %v520_v2, %v524_v52  ;;  %7546 = vmatprep.mubr.msk.bf16.mxu1 %vm1489_vm2, %v6522_v7  ;;  %v552_v21 = vrot.slane %v550_v10, 4  ;;  %v566_v23 = vshll.u32 %v172_v6, 16  ;;  %v570_v24 = vshrl.u32 %v172_v6, 16  ;;  %v178_v7 = vld [vmem:[%s8472_s24 + $0xa4] sm:$0xf] }
  0x46   : > { %v535_v20 = vsel %vm8503_vm3, %v530_v8, %v534_v63  ;;  %v544_v27 = vrot.slane %v543_v16, 4  ;;  %v558_v28 = vrot.slane %v556_v17, 5  ;;  %v562_v29 = vrot.slane %v560_v18, 4  ;;  %v179_v17 = vld [vmem:[%s8472_s24 + $0xa8] sm:$0xf] }
  0x47   : > { %v6523_v26 = vcombine.low %v525_v15, %v535_v20  ;;  %v553_v4 = vor.u32 %v552_v21, %v548_v9  ;;  %v568_v32 = vrot.slane %v566_v23, 5  ;;  %v572_v33 = vrot.slane %v570_v24, 4  ;;  %v180_v24 = vld [vmem:[%s8472_s24 + $0xac] sm:$0xf] }
  0x48   : > { %v576_v35 = vshll.u32 %v251_v13, 16  ;;  %v549_v37 = vsel %vm8503_vm3, %v544_v27, %v548_v9  ;;  %v563_v38 = vor.u32 %v562_v29, %v558_v28  ;;  %v581_v39 = vshrl.u32 %v173_v25, 16 }
  0x49   : > { %v584_v40 = vshll.u32 %v173_v25, 16  ;;  %7547 = vmatmul.mubr.msk.bf16.gmra.mrb[20].mxu1 %vm1489_vm2, %v6523_v26  ;;  %v554_v41 = vrot.slane %v553_v4, 4  ;;  %v573_v42 = vor.u32 %v572_v33, %v568_v32  ;;  %v590_v44 = vshll.u32 %v174_v31, 16 }
  0x4a   : > { %v578_v43 = vrot.slane %v576_v35, 5  ;;  %v564_v46 = vrot.slane %v563_v38, 4  ;;  %v583_v47 = vrot.slane %v581_v39, 4  ;;  %v594_v49 = vshrl.u32 %v174_v31, 16  ;;  %v181_v39 = vld [vmem:[%s8472_s24 + $0xb4] sm:$0xf] }
  0x4b   : > { %7755 = vmatmul.mubr.msk.bf16.gmra.mrb[28].mxu0 %vm1489_vm2, %v8242_v22  ;;  %v586_v48 = vrot.slane %v584_v40, 5  ;;  %v559_v51 = vsel %vm8503_vm3, %v554_v41, %v558_v28  ;;  %v574_v52 = vrot.slane %v573_v42, 4  ;;  %v592_v53 = vrot.slane %v590_v44, 5  ;;  %v8247_v44 = vld [vmem:[%s8472_s24 + $0xdc] sm:$0xff]  }
  0x4c   : > { %7758 = vmatprep.mubr.msk.bf16.mxu0 %vm1489_vm2, %v8243_v30  ;;  %v600_v54 = vshll.u32 %v175_v36, 16  ;;  %v6524_v55 = vcombine.low %v549_v37, %v559_v51  ;;  %v569_v56 = vsel %vm8503_vm3, %v564_v46, %v568_v32  ;;  %v596_v58 = vrot.slane %v594_v49, 4  ;;  %v253_v32 = vld [vmem:[%s8472_s24 + $0xb0] sm:$0x1] }
  0x4d   : > { %v587_v57 = vor.u32 %v586_v48, %v583_v47  ;;  %v579_v60 = vsel %vm8503_vm3, %v574_v52, %v578_v43  ;;  %v604_v63 = vshrl.u32 %v175_v36, 16  ;;  %v610_v0 = vshll.u32 %v176_v45, 16  ;;  %v8246_v37 = vld [vmem:[%s8472_s24 + $0xd0] sm:$0xff]  }
  0x4e   : > { %v602_v61 = vrot.slane %v600_v54, 5  ;;  %7550 = vmatprep.mubr.msk.bf16.mxu1 %vm1489_vm2, %v6524_v55  ;;  %v6525_v2 = vcombine.low %v569_v56, %v579_v60  ;;  %v597_v5 = vor.u32 %v596_v58, %v592_v53  ;;  %v614_v6 = vshrl.u32 %v176_v45, 16  ;;  %v182_v45 = vld [vmem:[%s8472_s24 + $0xb8] sm:$0xf] }
  0x4f   : > { %v588_v3 = vrot.slane %v587_v57, 4  ;;  %v606_v8 = vrot.slane %v604_v63, 4  ;;  %v612_v9 = vrot.slane %v610_v0, 5  ;;  %v620_v10 = vshll.u32 %v252_v50, 16  ;;  %v183_v57 = vld [vmem:[%s8472_s24 + $0xbc] sm:$0xf] }
  0x50   : > { %v625_v13 = vshrl.u32 %v177_v59, 16  ;;  %v598_v15 = vrot.slane %v597_v5, 4  ;;  %v616_v16 = vrot.slane %v614_v6, 4  ;;  %v628_v18 = vshll.u32 %v177_v59, 16 }
  0x51   : > { %v593_v14 = vsel %vm8503_vm3, %v588_v3, %v592_v53  ;;  %7551 = vmatmul.mubr.msk.bf16.gmra.mrb[24].mxu1 %vm1489_vm2, %v6525_v2  ;;  %v607_v20 = vor.u32 %v606_v8, %v602_v61  ;;  %v622_v21 = vrot.slane %v620_v10, 5  ;;  %v634_v23 = vshll.u32 %v178_v7, 16  ;;  %v184_v3 = vld [vmem:[%s8472_s24 + $0xc0] sm:$0xf] }
  0x52   : > { %v627_v22 = vrot.slane %v625_v13, 4  ;;  %v603_v25 = vsel %vm8503_vm3, %v598_v15, %v602_v61  ;;  %v617_v26 = vor.u32 %v616_v16, %v612_v9  ;;  %v630_v27 = vrot.slane %v628_v18, 5  ;;  %v8248_v15 = vld [vmem:[%s8472_s24 + $0xe4] sm:$0xff]  }
  0x53   : > { %7759 = vmatmul.mubr.msk.bf16.gmra.mrb[32].mxu0 %vm1489_vm2, %v8244_v62  ;;  %v638_v28 = vshrl.u32 %v178_v7, 16  ;;  %v6526_v29 = vcombine.low %v593_v14, %v603_v25  ;;  %v608_v30 = vrot.slane %v607_v20, 4  ;;  %v636_v31 = vrot.slane %v634_v23, 5 }
  0x54   : > { %7762 = vmatprep.mubr.msk.bf16.mxu0 %vm1489_vm2, %v8245_v1  ;;  %v644_v4 = vshll.u32 %v179_v17, 16  ;;  %v618_v33 = vrot.slane %v617_v26, 4  ;;  %v631_v35 = vor.u32 %v630_v27, %v627_v22  ;;  %v648_v38 = vshrl.u32 %v179_v17, 16  ;;  %v185_v17 = vld [vmem:[%s8472_s24 + $0xc8] sm:$0xf]  ;;  %v8249_v27 = vld [vmem:[%s8472_s24 + $0xf0] sm:$0xff]  }
  0x55   : > { %v640_v36 = vrot.slane %v638_v28, 4  ;;  %7554 = vmatprep.mubr.msk.bf16.mxu1 %vm1489_vm2, %v6526_v29  ;;  %v613_v40 = vsel %vm8503_vm3, %v608_v30, %v612_v9  ;;  %v654_v42 = vshll.u32 %v180_v24, 16  ;;  %v658_v43 = vshrl.u32 %v180_v24, 16  ;;  %v254_v9 = vld [vmem:[%s8472_s24 + $0xc4] sm:$0x1] }
  0x56   : > { %v646_v41 = vrot.slane %v644_v4, 5  ;;  %v623_v46 = vsel %vm8503_vm3, %v618_v33, %v622_v21  ;;  %v632_v47 = vrot.slane %v631_v35, 4  ;;  %v650_v49 = vrot.slane %v648_v38, 4  ;;  %v186_v28 = vld [vmem:[%s8472_s24 + $0xcc] sm:$0xf] }
  0x57   : > { %v641_v48 = vor.u32 %v640_v36, %v636_v31  ;;  %v6527_v50 = vcombine.low %v613_v40, %v623_v46  ;;  %v656_v51 = vrot.slane %v654_v42, 5  ;;  %v660_v52 = vrot.slane %v658_v43, 4  ;;  %v187_v40 = vld [vmem:[%s8472_s24 + $0xd0] sm:$0xf]  ;;  %v188_v42 = vld [vmem:[%s8472_s24 + $0xd4] sm:$0xf] }
  0x58   : > { %v664_v53 = vshll.u32 %v253_v32, 16  ;;  %v637_v54 = vsel %vm8503_vm3, %v632_v47, %v636_v31  ;;  %v651_v56 = vor.u32 %v650_v49, %v646_v41  ;;  %v669_v58 = vshrl.u32 %v181_v39, 16  ;;  %v255_v47 = vld [vmem:[%s8472_s24 + $0xd8] sm:$0x1] }
  0x59   : > { %v642_v55 = vrot.slane %v641_v48, 4  ;;  %7555 = vmatmul.mubr.msk.bf16.gmra.mrb[28].mxu1 %vm1489_vm2, %v6527_v50  ;;  %v661_v59 = vor.u32 %v660_v52, %v656_v51  ;;  %v672_v61 = vshll.u32 %v181_v39, 16  ;;  %v678_v62 = vshll.u32 %v182_v45, 16  ;;  %v189_v52 = vld [vmem:[%s8472_s24 + $0xdc] sm:$0xf] }
  0x5a   : > { %v666_v60 = vrot.slane %v664_v53, 5  ;;  %v652_v0 = vrot.slane %v651_v56, 4  ;;  %v671_v1 = vrot.slane %v669_v58, 4  ;;  %v682_v2 = vshrl.u32 %v182_v45, 16 }
  0x5b   : > { %7763 = vmatmul.mubr.msk.bf16.gmra.mrb[36].mxu0 %vm1489_vm2, %v8246_v37  ;;  %v647_v63 = vsel %vm8503_vm3, %v642_v55, %v646_v41  ;;  %v662_v6 = vrot.slane %v661_v59, 4  ;;  %v674_v7 = vrot.slane %v672_v61, 5  ;;  %v680_v8 = vrot.slane %v678_v62, 5 }
  0x5c   : > { %7766 = vmatprep.mubr.msk.bf16.mxu0 %vm1489_vm2, %v8247_v44  ;;  %v6528_v5 = vcombine.low %v637_v54, %v647_v63  ;;  %v657_v10 = vsel %vm8503_vm3, %v652_v0, %v656_v51  ;;  %v684_v13 = vrot.slane %v682_v2, 4  ;;  %v688_v14 = vshll.u32 %v183_v57, 16 }
  0x5d   : > { %v692_v16 = vshrl.u32 %v183_v57, 16  ;;  %v667_v18 = vsel %vm8503_vm3, %v662_v6, %v666_v60  ;;  %v675_v20 = vor.u32 %v674_v7, %v671_v1  ;;  %v698_v21 = vshll.u32 %v184_v3, 16  ;;  %v190_v57 = vld [vmem:[%s8472_s24 + $0xe0] sm:$0xf]  ;;  %v8250_v60 = vld [vmem:[%s8472_s24 + $0xf8] sm:$0xff]  }
  0x5e   : > { %7558 = vmatprep.mubr.msk.bf16.mxu1 %vm1489_vm2, %v6528_v5  ;;  %v702_v22 = vshrl.u32 %v184_v3, 16  ;;  %v6529_v23 = vcombine.low %v657_v10, %v667_v18  ;;  %v685_v24 = vor.u32 %v684_v13, %v680_v8  ;;  %v690_v25 = vrot.slane %v688_v14, 5  ;;  %v8251_v3 = vld [vmem:[%s8472_s24 + $0x104] sm:$0xff]  }
  0x5f   : > { %v694_v26 = vrot.slane %v692_v16, 4  ;;  %v676_v29 = vrot.slane %v675_v20, 4  ;;  %v700_v30 = vrot.slane %v698_v21, 5  ;;  %v708_v4 = vshll.u32 %v254_v9, 16  ;;  %v191_v13 = vld [vmem:[%s8472_s24 + $0xe4] sm:$0xf] }
  0x60   : > { %v704_v31 = vrot.slane %v702_v22, 4  ;;  %v686_v32 = vrot.slane %v685_v24, 4  ;;  %v713_v35 = vshrl.u32 %v185_v17, 16  ;;  %v716_v36 = vshll.u32 %v185_v17, 16  ;;  %v192_v16 = vld [vmem:[%s8472_s24 + $0xe8] sm:$0xf] }
  0x61   : > { %v695_v33 = vor.u32 %v694_v26, %v690_v25  ;;  %7559 = vmatmul.mubr.msk.bf16.gmra.mrb[32].mxu1 %vm1489_vm2, %v6529_v23  ;;  %v681_v37 = vsel %vm8503_vm3, %v676_v29, %v680_v8  ;;  %v710_v39 = vrot.slane %v708_v4, 5  ;;  %v722_v41 = vshll.u32 %v186_v28, 16 }
  0x62   : > { %v705_v38 = vor.u32 %v704_v31, %v700_v30  ;;  %v691_v43 = vsel %vm8503_vm3, %v686_v32, %v690_v25  ;;  %v715_v45 = vrot.slane %v713_v35, 4  ;;  %v718_v46 = vrot.slane %v716_v36, 5  ;;  %v256_v35 = vld [vmem:[%s8472_s24 + $0xec] sm:$0x1]  ;;  %v193_v36 = vld [vmem:[%s8472_s24 + $0xf0] sm:$0xf] }
  0x63   : > { %7767 = vmatmul.mubr.msk.bf16.gmra.mrb[40].mxu0 %vm1489_vm2, %v8248_v15  ;;  %v696_v44 = vrot.slane %v695_v33, 4  ;;  %v6530_v48 = vcombine.low %v681_v37, %v691_v43  ;;  %v724_v50 = vrot.slane %v722_v41, 5  ;;  %v726_v51 = vshrl.u32 %v186_v28, 16  ;;  %v8252_v33 = vld [vmem:[%s8472_s24 + $0x10c] sm:$0xff]   ;;  %v8253_v41 = vld [vmem:[%s8472_s24 + $0x118] sm:$0xff]  }
  0x64   : > { %7770 = vmatprep.mubr.msk.bf16.mxu0 %vm1489_vm2, %v8249_v27  ;;  %v706_v49 = vrot.slane %v705_v38, 4  ;;  %v719_v54 = vor.u32 %v718_v46, %v715_v45  ;;  %v732_v55 = vshll.u32 %v187_v40, 16  ;;  %v736_v56 = vshrl.u32 %v187_v40, 16  ;;  %v194_v46 = vld [vmem:[%s8472_s24 + $0xf4] sm:$0xf] }
  0x65   : > { %v701_v53 = vsel %vm8503_vm3, %v696_v44, %v700_v30  ;;  %7562 = vmatprep.mubr.msk.bf16.mxu1 %vm1489_vm2, %v6530_v48  ;;  %v728_v59 = vrot.slane %v726_v51, 4  ;;  %v742_v61 = vshll.u32 %v188_v42, 16  ;;  %v746_v62 = vshrl.u32 %v188_v42, 16 }
  0x66   : > { %v711_v58 = vsel %vm8503_vm3, %v706_v49, %v710_v39  ;;  %v720_v0 = vrot.slane %v719_v54, 4  ;;  %v734_v1 = vrot.slane %v732_v55, 5  ;;  %v738_v2 = vrot.slane %v736_v56, 4 }
  0x67   : > { %v6531_v63 = vcombine.low %v701_v53, %v711_v58  ;;  %v729_v5 = vor.u32 %v728_v59, %v724_v50  ;;  %v744_v6 = vrot.slane %v742_v61, 5  ;;  %v748_v7 = vrot.slane %v746_v62, 4 }
  0x68   : > { %v752_v8 = vshll.u32 %v255_v47, 16  ;;  %v725_v9 = vsel %vm8503_vm3, %v720_v0, %v724_v50  ;;  %v739_v10 = vor.u32 %v738_v2, %v734_v1  ;;  %v757_v14 = vshrl.u32 %v189_v52, 16  ;;  %v195_v50 = vld [vmem:[%s8472_s24 + $0xf8] sm:$0xf]  ;;  %v196_v0 = vld [vmem:[%s8472_s24 + $0xfc] sm:$0xf] }
  0x69   : > { %v760_v15 = vshll.u32 %v189_v52, 16  ;;  %7563 = vmatmul.mubr.msk.bf16.gmra.mrb[36].mxu1 %vm1489_vm2, %v6531_v63  ;;  %v730_v17 = vrot.slane %v729_v5, 4  ;;  %v749_v18 = vor.u32 %v748_v7, %v744_v6  ;;  %v766_v21 = vshll.u32 %v190_v57, 16  ;;  %v197_v7 = vld [vmem:[%s8472_s24 + $0x104] sm:$0xf] }
  0x6a   : > { %v754_v20 = vrot.slane %v752_v8, 5  ;;  %v740_v22 = vrot.slane %v739_v10, 4  ;;  %v759_v23 = vrot.slane %v757_v14, 4  ;;  %v770_v25 = vshrl.u32 %v190_v57, 16 }
  0x6b   : > { %7771 = vmatmul.mubr.msk.bf16.gmra.mrb[44].mxu0 %vm1489_vm2, %v8250_v60  ;;  %v762_v24 = vrot.slane %v760_v15, 5  ;;  %v735_v26 = vsel %vm8503_vm3, %v730_v17, %v734_v1  ;;  %v750_v27 = vrot.slane %v749_v18, 4  ;;  %v768_v28 = vrot.slane %v766_v21, 5  ;;  %v257_v1 = vld [vmem:[%s8472_s24 + $0x100] sm:$0x1] }
  0x6c   : > { %7774 = vmatprep.mubr.msk.bf16.mxu0 %vm1489_vm2, %v8251_v3  ;;  %v776_v29 = vshll.u32 %v191_v13, 16  ;;  %v6532_v30 = vcombine.low %v725_v9, %v735_v26  ;;  %v745_v31 = vsel %vm8503_vm3, %v740_v22, %v744_v6  ;;  %v772_v32 = vrot.slane %v770_v25, 4  ;;  %v198_v25 = vld [vmem:[%s8472_s24 + $0x108] sm:$0xf] }
  0x6d   : > { %v763_v4 = vor.u32 %v762_v24, %v759_v23  ;;  %v755_v37 = vsel %vm8503_vm3, %v750_v27, %v754_v20  ;;  %v780_v39 = vshrl.u32 %v191_v13, 16  ;;  %v786_v40 = vshll.u32 %v192_v16, 16  ;;  %v8257_v24 = vld [vmem:[%s8472_s24 + $0x12c] sm:$0xff]  }
  0x6e   : > { %v778_v38 = vrot.slane %v776_v29, 5  ;;  %7566 = vmatprep.mubr.msk.bf16.mxu1 %vm1489_vm2, %v6532_v30  ;;  %v6533_v42 = vcombine.low %v745_v31, %v755_v37  ;;  %v773_v44 = vor.u32 %v772_v32, %v768_v28  ;;  %v790_v45 = vshrl.u32 %v192_v16, 16  ;;  %v8255_v16 = vld [vmem:[%s8472_s24 + $0x120] sm:$0xff]   ;;  %v199_v32 = vld [vmem:[%s8472_s24 + $0x10c] sm:$0xf] }
  0x6f   : > { %v764_v43 = vrot.slane %v763_v4, 4  ;;  %v782_v47 = vrot.slane %v780_v39, 4  ;;  %v788_v48 = vrot.slane %v786_v40, 5  ;;  %v796_v49 = vshll.u32 %v256_v35, 16  ;;  %v200_v39 = vld [vmem:[%s8472_s24 + $0x110] sm:$0xf] }
  0x70   : > { %v801_v51 = vshrl.u32 %v193_v36, 16  ;;  %v774_v53 = vrot.slane %v773_v44, 4  ;;  %v792_v54 = vrot.slane %v790_v45, 4  ;;  %v804_v55 = vshll.u32 %v193_v36, 16  ;;  %v258_v44 = vld [vmem:[%s8472_s24 + $0x114] sm:$0x1] }
  0x71   : > { %v769_v52 = vsel %vm8503_vm3, %v764_v43, %v768_v28  ;;  %7567 = vmatmul.mubr.msk.bf16.gmra.mrb[40].mxu1 %vm1489_vm2, %v6533_v42  ;;  %v783_v56 = vor.u32 %v782_v47, %v778_v38  ;;  %v798_v57 = vrot.slane %v796_v49, 5  ;;  %v810_v59 = vshll.u32 %v194_v46, 16  ;;  %v8258_v49 = vld [vmem:[%s8472_s24 + $0x134] sm:$0xff]  }
  0x72   : > { %v803_v58 = vrot.slane %v801_v51, 4  ;;  %v779_v60 = vsel %vm8503_vm3, %v774_v53, %v778_v38  ;;  %v793_v61 = vor.u32 %v792_v54, %v788_v48  ;;  %v806_v62 = vrot.slane %v804_v55, 5  ;;  %v8259_v54 = vld [vmem:[%s8472_s24 + $0x140] sm:$0xff]  }
  0x73   : > { %7775 = vmatmul.mubr.msk.bf16.gmra.mrb[48].mxu0 %vm1489_vm2, %v8252_v33  ;;  %v814_v63 = vshrl.u32 %v194_v46, 16  ;;  %v6534_v2 = vcombine.low %v769_v52, %v779_v60  ;;  %v784_v3 = vrot.slane %v783_v56, 4  ;;  %v812_v5 = vrot.slane %v810_v59, 5  ;;  %v201_v59 = vld [vmem:[%s8472_s24 + $0x118] sm:$0xf] }
  0x74   : > { %7778 = vmatprep.mubr.msk.bf16.mxu0 %vm1489_vm2, %v8253_v41  ;;  %v820_v6 = vshll.u32 %v195_v50, 16  ;;  %v794_v8 = vrot.slane %v793_v61, 4  ;;  %v807_v9 = vor.u32 %v806_v62, %v803_v58  ;;  %v824_v13 = vshrl.u32 %v195_v50, 16  ;;  %v202_v60 = vld [vmem:[%s8472_s24 + $0x11c] sm:$0xf] }
  0x75   : > { %v816_v10 = vrot.slane %v814_v63, 4  ;;  %7570 = vmatprep.mubr.msk.bf16.mxu1 %vm1489_vm2, %v6534_v2  ;;  %v789_v14 = vsel %vm8503_vm3, %v784_v3, %v788_v48  ;;  %v830_v17 = vshll.u32 %v196_v0, 16  ;;  %v834_v18 = vshrl.u32 %v196_v0, 16 }
  0x76   : > { %v822_v15 = vrot.slane %v820_v6, 5  ;;  %v799_v20 = vsel %vm8503_vm3, %v794_v8, %v798_v57  ;;  %v808_v21 = vrot.slane %v807_v9, 4  ;;  %v826_v23 = vrot.slane %v824_v13, 4  ;;  %v203_v8 = vld [vmem:[%s8472_s24 + $0x120] sm:$0xf] }
  0x77   : > { %v817_v22 = vor.u32 %v816_v10, %v812_v5  ;;  %v6535_v26 = vcombine.low %v789_v14, %v799_v20  ;;  %v832_v27 = vrot.slane %v830_v17, 5  ;;  %v836_v28 = vrot.slane %v834_v18, 4  ;;  %v204_v17 = vld [vmem:[%s8472_s24 + $0x124] sm:$0xf] }
  0x78   : > { %v840_v29 = vshll.u32 %v257_v1, 16  ;;  %v813_v30 = vsel %vm8503_vm3, %v808_v21, %v812_v5  ;;  %v827_v4 = vor.u32 %v826_v23, %v822_v15  ;;  %v845_v33 = vshrl.u32 %v197_v7, 16 }
  0x79   : > { %v818_v31 = vrot.slane %v817_v22, 4  ;;  %7571 = vmatmul.mubr.msk.bf16.gmra.mrb[44].mxu1 %vm1489_vm2, %v6535_v26  ;;  %v837_v35 = vor.u32 %v836_v28, %v832_v27  ;;  %v848_v37 = vshll.u32 %v197_v7, 16  ;;  %v854_v38 = vshll.u32 %v198_v25, 16 }
  0x7a   : > { %v842_v36 = vrot.slane %v840_v29, 5  ;;  %v828_v41 = vrot.slane %v827_v4, 4  ;;  %v847_v42 = vrot.slane %v845_v33, 4  ;;  %v858_v43 = vshrl.u32 %v198_v25, 16  ;;  %v205_v4 = vld [vmem:[%s8472_s24 + $0x12c] sm:$0xf] }
  0x7b   : > { %7779 = vmatmul.mubr.msk.bf16.gmra.mrb[52].mxu0 %vm1489_vm2, %v8255_v16  ;;  %v823_v40 = vsel %vm8503_vm3, %v818_v31, %v822_v15  ;;  %v838_v46 = vrot.slane %v837_v35, 4  ;;  %v850_v47 = vrot.slane %v848_v37, 5  ;;  %v856_v48 = vrot.slane %v854_v38, 5  ;;  %v8260_v35 = vld [vmem:[%s8472_s24 + $0x148] sm:$0xff]  }
  0x7c   : > { %7782 = vmatprep.mubr.msk.bf16.mxu0 %vm1489_vm2, %v8257_v24  ;;  %v6536_v45 = vcombine.low %v813_v30, %v823_v40  ;;  %v833_v50 = vsel %vm8503_vm3, %v828_v41, %v832_v27  ;;  %v860_v51 = vrot.slane %v858_v43, 4  ;;  %v864_v52 = vshll.u32 %v199_v32, 16  ;;  %v259_v27 = vld [vmem:[%s8472_s24 + $0x128] sm:$0x1]  ;;  %v206_v43 = vld [vmem:[%s8472_s24 + $0x130] sm:$0xf] }
  0x7d   : > { %v868_v53 = vshrl.u32 %v199_v32, 16  ;;  %v843_v55 = vsel %vm8503_vm3, %v838_v46, %v842_v36  ;;  %v851_v56 = vor.u32 %v850_v47, %v847_v42  ;;  %v874_v57 = vshll.u32 %v200_v39, 16  ;;  %v8261_v42 = vld [vmem:[%s8472_s24 + $0x154] sm:$0xff]  }
  0x7e   : > { %7574 = vmatprep.mubr.msk.bf16.mxu1 %vm1489_vm2, %v6536_v45  ;;  %v878_v58 = vshrl.u32 %v200_v39, 16  ;;  %v6537_v61 = vcombine.low %v833_v50, %v843_v55  ;;  %v861_v62 = vor.u32 %v860_v51, %v856_v48  ;;  %v866_v63 = vrot.slane %v864_v52, 5 }
  0x7f   : > { %v870_v0 = vrot.slane %v868_v53, 4  ;;  %v852_v1 = vrot.slane %v851_v56, 4  ;;  %v876_v2 = vrot.slane %v874_v57, 5  ;;  %v884_v5 = vshll.u32 %v258_v44, 16  ;;  %v208_v53 = vld [vmem:[%s8472_s24 + $0x138] sm:$0xf] }
  0x80   : > { %v880_v3 = vrot.slane %v878_v58, 4  ;;  %v862_v6 = vrot.slane %v861_v62, 4  ;;  %v889_v9 = vshrl.u32 %v201_v59, 16  ;;  %v892_v10 = vshll.u32 %v201_v59, 16  ;;  %v260_v62 = vld [vmem:[%s8472_s24 + $0x13c] sm:$0x1] }
  0x81   : > { %v871_v7 = vor.u32 %v870_v0, %v866_v63  ;;  %7575 = vmatmul.mubr.msk.bf16.gmra.mrb[48].mxu1 %vm1489_vm2, %v6537_v61  ;;  %v857_v13 = vsel %vm8503_vm3, %v852_v1, %v856_v48  ;;  %v886_v15 = vrot.slane %v884_v5, 5  ;;  %v898_v16 = vshll.u32 %v202_v60, 16  ;;  %v207_v48 = vld [vmem:[%s8472_s24 + $0x134] sm:$0xf] }
  0x82   : > { %v881_v14 = vor.u32 %v880_v3, %v876_v2  ;;  %v867_v18 = vsel %vm8503_vm3, %v862_v6, %v866_v63  ;;  %v891_v21 = vrot.slane %v889_v9, 4  ;;  %v894_v22 = vrot.slane %v892_v10, 5  ;;  %v209_v3 = vld [vmem:[%s8472_s24 + $0x140] sm:$0xf] }
  0x83   : > { %7783 = vmatmul.mubr.msk.bf16.gmra.mrb[56].mxu0 %vm1489_vm2, %v8258_v49  ;;  %v872_v20 = vrot.slane %v871_v7, 4  ;;  %v6538_v23 = vcombine.low %v857_v13, %v867_v18  ;;  %v900_v25 = vrot.slane %v898_v16, 5  ;;  %v902_v26 = vshrl.u32 %v202_v60, 16  ;;  %v8262_v13 = vld [vmem:[%s8472_s24 + $0x15c] sm:$0xff]   ;;  %v8263_v16 = vld [vmem:[%s8472_s24 + $0x168] sm:$0xff]  }
  0x84   : > { %7786 = vmatprep.mubr.msk.bf16.mxu0 %vm1489_vm2, %v8259_v54  ;;  %v882_v24 = vrot.slane %v881_v14, 4  ;;  %v895_v29 = vor.u32 %v894_v22, %v891_v21  ;;  %v908_v30 = vshll.u32 %v203_v8, 16  ;;  %v912_v31 = vshrl.u32 %v203_v8, 16  ;;  %v210_v22 = vld [vmem:[%s8472_s24 + $0x144] sm:$0xf] }
  0x85   : > { %v877_v28 = vsel %vm8503_vm3, %v872_v20, %v876_v2  ;;  %7578 = vmatprep.mubr.msk.bf16.mxu1 %vm1489_vm2, %v6538_v23  ;;  %v904_v33 = vrot.slane %v902_v26, 4  ;;  %v918_v36 = vshll.u32 %v204_v17, 16  ;;  %v922_v37 = vshrl.u32 %v204_v17, 16  ;;  %v211_v23 = vld [vmem:[%s8472_s24 + $0x148] sm:$0xf] }
  0x86   : > { %v887_v32 = vsel %vm8503_vm3, %v882_v24, %v886_v15  ;;  %v896_v39 = vrot.slane %v895_v29, 4  ;;  %v910_v40 = vrot.slane %v908_v30, 5  ;;  %v914_v41 = vrot.slane %v912_v31, 4 }
  0x87   : > { %v6539_v38 = vcombine.low %v877_v28, %v887_v32  ;;  %v905_v44 = vor.u32 %v904_v33, %v900_v25  ;;  %v920_v45 = vrot.slane %v918_v36, 5  ;;  %v924_v46 = vrot.slane %v922_v37, 4 }
  0x88   : > { %v928_v47 = vshll.u32 %v259_v27, 16  ;;  %v901_v49 = vsel %vm8503_vm3, %v896_v39, %v900_v25  ;;  %v915_v50 = vor.u32 %v914_v41, %v910_v40  ;;  %v933_v51 = vshrl.u32 %v205_v4, 16 }
  0x89   : > { %v936_v52 = vshll.u32 %v205_v4, 16  ;;  %7579 = vmatmul.mubr.msk.bf16.gmra.mrb[52].mxu1 %vm1489_vm2, %v6539_v38  ;;  %v906_v54 = vrot.slane %v905_v44, 4  ;;  %v925_v55 = vor.u32 %v924_v46, %v920_v45  ;;  %v942_v57 = vshll.u32 %v206_v43, 16 }
  0x8a   : > { %v930_v56 = vrot.slane %v928_v47, 5  ;;  %v916_v58 = vrot.slane %v915_v50, 4  ;;  %v935_v59 = vrot.slane %v933_v51, 4  ;;  %v946_v61 = vshrl.u32 %v206_v43, 16 }
  0x8b   : > { %7787 = vmatmul.mubr.msk.bf16.gmra.mrb[60].mxu0 %vm1489_vm2, %v8260_v35  ;;  %v938_v60 = vrot.slane %v936_v52, 5  ;;  %v911_v63 = vsel %vm8503_vm3, %v906_v54, %v910_v40  ;;  %v926_v0 = vrot.slane %v925_v55, 4  ;;  %v944_v1 = vrot.slane %v942_v57, 5  ;;  %v212_v40 = vld [vmem:[%s8472_s24 + $0x14c] sm:$0xf]  ;;  %v8265_v55 = vld [vmem:[%s8472_s24 + $0x17c] sm:$0xff]  }
  0x8c   : > { %7790 = vmatprep.mubr.msk.bf16.mxu0 %vm1489_vm2, %v8261_v42  ;;  %v952_v2 = vshll.u32 %v207_v48, 16  ;;  %v6540_v5 = vcombine.low %v901_v49, %v911_v63  ;;  %v921_v6 = vsel %vm8503_vm3, %v916_v58, %v920_v45  ;;  %v948_v8 = vrot.slane %v946_v61, 4  ;;  %v261_v49 = vld [vmem:[%s8472_s24 + $0x150] sm:$0x1]  ;;  %v214_v61 = vld [vmem:[%s8472_s24 + $0x158] sm:$0xf] }
  0x8d   : > { %v939_v7 = vor.u32 %v938_v60, %v935_v59  ;;  %v931_v9 = vsel %vm8503_vm3, %v926_v0, %v930_v56  ;;  %v956_v14 = vshrl.u32 %v207_v48, 16  ;;  %v962_v15 = vshll.u32 %v208_v53, 16  ;;  %v8264_v48 = vld [vmem:[%s8472_s24 + $0x170] sm:$0xff]  }
  0x8e   : > { %v954_v10 = vrot.slane %v952_v2, 5  ;;  %7582 = vmatprep.mubr.msk.bf16.mxu1 %vm1489_vm2, %v6540_v5  ;;  %v6541_v17 = vcombine.low %v921_v6, %v931_v9  ;;  %v949_v20 = vor.u32 %v948_v8, %v944_v1  ;;  %v966_v21 = vshrl.u32 %v208_v53, 16  ;;  %v213_v56 = vld [vmem:[%s8472_s24 + $0x154] sm:$0xf]  ;;  %v215_v6 = vld [vmem:[%s8472_s24 + $0x15c] sm:$0xf] }
  0x8f   : > { %v940_v18 = vrot.slane %v939_v7, 4  ;;  %v958_v24 = vrot.slane %v956_v14, 4  ;;  %v964_v25 = vrot.slane %v962_v15, 5  ;;  %v972_v26 = vshll.u32 %v260_v62, 16  ;;  %v216_v8 = vld [vmem:[%s8472_s24 + $0x160] sm:$0xf] }
  0x90   : > { %v977_v27 = vshrl.u32 %v209_v3, 16  ;;  %v950_v29 = vrot.slane %v949_v20, 4  ;;  %v968_v30 = vrot.slane %v966_v21, 4  ;;  %v980_v31 = vshll.u32 %v209_v3, 16 }
  0x91   : > { %v945_v28 = vsel %vm8503_vm3, %v940_v18, %v944_v1  ;;  %7583 = vmatmul.mubr.msk.bf16.gmra.mrb[56].mxu1 %vm1489_vm2, %v6541_v17  ;;  %v959_v4 = vor.u32 %v958_v24, %v954_v10  ;;  %v974_v32 = vrot.slane %v972_v26, 5  ;;  %v986_v35 = vshll.u32 %v210_v22, 16  ;;  %v8266_v24 = vld [vmem:[%s8472_s24 + $0x184] sm:$0xff]  }
  0x92   : > { %v979_v33 = vrot.slane %v977_v27, 4  ;;  %v955_v36 = vsel %vm8503_vm3, %v950_v29, %v954_v10  ;;  %v969_v37 = vor.u32 %v968_v30, %v964_v25  ;;  %v982_v38 = vrot.slane %v980_v31, 5  ;;  %v8267_v30 = vld [vmem:[%s8472_s24 + $0x190] sm:$0xff]  }
  0x93   : > { %7791 = vmatmul.mubr.msk.bf16.gmra.mrb[64].mxu0 %vm1489_vm2, %v8262_v13  ;;  %v990_v39 = vshrl.u32 %v210_v22, 16  ;;  %v6542_v41 = vcombine.low %v945_v28, %v955_v36  ;;  %v960_v42 = vrot.slane %v959_v4, 4  ;;  %v988_v43 = vrot.slane %v986_v35, 5  ;;  %v262_v28 = vld [vmem:[%s8472_s24 + $0x164] sm:$0x1] }
  0x94   : > { %7794 = vmatprep.mubr.msk.bf16.mxu0 %vm1489_vm2, %v8263_v16  ;;  %v996_v44 = vshll.u32 %v211_v23, 16  ;;  %v970_v45 = vrot.slane %v969_v37, 4  ;;  %v983_v46 = vor.u32 %v982_v38, %v979_v33  ;;  %v1000_v50 = vshrl.u32 %v211_v23, 16  ;;  %v217_v35 = vld [vmem:[%s8472_s24 + $0x168] sm:$0xf] }
  0x95   : > { %v992_v47 = vrot.slane %v990_v39, 4  ;;  %7586 = vmatprep.mubr.msk.bf16.mxu1 %vm1489_vm2, %v6542_v41  ;;  %v965_v51 = vsel %vm8503_vm3, %v960_v42, %v964_v25  ;;  %v1006_v53 = vshll.u32 %v212_v40, 16  ;;  %v1010_v54 = vshrl.u32 %v212_v40, 16  ;;  %v218_v40 = vld [vmem:[%s8472_s24 + $0x16c] sm:$0xf] }
  0x96   : > { %v998_v52 = vrot.slane %v996_v44, 5  ;;  %v975_v57 = vsel %vm8503_vm3, %v970_v45, %v974_v32  ;;  %v984_v58 = vrot.slane %v983_v46, 4  ;;  %v1002_v60 = vrot.slane %v1000_v50, 4 }
  0x97   : > { %v993_v59 = vor.u32 %v992_v47, %v988_v43  ;;  %v6543_v62 = vcombine.low %v965_v51, %v975_v57  ;;  %v1008_v63 = vrot.slane %v1006_v53, 5  ;;  %v1012_v0 = vrot.slane %v1010_v54, 4 }
  0x98   : > { %v1016_v1 = vshll.u32 %v261_v49, 16  ;;  %v989_v2 = vsel %vm8503_vm3, %v984_v58, %v988_v43  ;;  %v1003_v5 = vor.u32 %v1002_v60, %v998_v52  ;;  %v1021_v7 = vshrl.u32 %v213_v56, 16  ;;  %v220_v58 = vld [vmem:[%s8472_s24 + $0x174] sm:$0xf] }
  0x99   : > { %v994_v3 = vrot.slane %v993_v59, 4  ;;  %7587 = vmatmul.mubr.msk.bf16.gmra.mrb[60].mxu1 %vm1489_vm2, %v6543_v62  ;;  %v1013_v9 = vor.u32 %v1012_v0, %v1008_v63  ;;  %v1024_v13 = vshll.u32 %v213_v56, 16  ;;  %v1030_v14 = vshll.u32 %v214_v61, 16 }
  0x9a   : > { %v1018_v10 = vrot.slane %v1016_v1, 5  ;;  %v1004_v16 = vrot.slane %v1003_v5, 4  ;;  %v1023_v17 = vrot.slane %v1021_v7, 4  ;;  %v1034_v18 = vshrl.u32 %v214_v61, 16  ;;  %v8268_v7 = vld [vmem:[%s8472_s24 + $0x198] sm:$0xff]  }
  0x9b   : > { %7795 = vmatmul.mubr.msk.bf16.gmra.mrb[68].mxu0 %vm1489_vm2, %v8264_v48  ;;  %v999_v15 = vsel %vm8503_vm3, %v994_v3, %v998_v52  ;;  %v1014_v21 = vrot.slane %v1013_v9, 4  ;;  %v1026_v22 = vrot.slane %v1024_v13, 5  ;;  %v1032_v23 = vrot.slane %v1030_v14, 5  ;;  %v219_v52 = vld [vmem:[%s8472_s24 + $0x170] sm:$0xf] }
  0x9c   : > { %7798 = vmatprep.mubr.msk.bf16.mxu0 %vm1489_vm2, %v8265_v55  ;;  %v6544_v20 = vcombine.low %v989_v2, %v999_v15  ;;  %v1009_v25 = vsel %vm8503_vm3, %v1004_v16, %v1008_v63  ;;  %v1036_v26 = vrot.slane %v1034_v18, 4  ;;  %v1040_v27 = vshll.u32 %v215_v6, 16  ;;  %v263_v63 = vld [vmem:[%s8472_s24 + $0x178] sm:$0x1]  ;;  %v222_v18 = vld [vmem:[%s8472_s24 + $0x180] sm:$0xf] }
  0x9d   : > { %v1044_v29 = vshrl.u32 %v215_v6, 16  ;;  %v1019_v31 = vsel %vm8503_vm3, %v1014_v21, %v1018_v10  ;;  %v1027_v4 = vor.u32 %v1026_v22, %v1023_v17  ;;  %v1050_v32 = vshll.u32 %v216_v8, 16  ;;  %v221_v10 = vld [vmem:[%s8472_s24 + $0x17c] sm:$0xf]  ;;  %v8269_v17 = vld [vmem:[%s8472_s24 + $0x1a4] sm:$0xff]  }
  0x9e   : > { %7590 = vmatprep.mubr.msk.bf16.mxu1 %vm1489_vm2, %v6544_v20  ;;  %v1054_v33 = vshrl.u32 %v216_v8, 16  ;;  %v6545_v36 = vcombine.low %v1009_v25, %v1019_v31  ;;  %v1037_v37 = vor.u32 %v1036_v26, %v1032_v23  ;;  %v1042_v38 = vrot.slane %v1040_v27, 5  ;;  %v223_v26 = vld [vmem:[%s8472_s24 + $0x184] sm:$0xf] }
  0x9f   : > { %v1046_v39 = vrot.slane %v1044_v29, 4  ;;  %v1028_v41 = vrot.slane %v1027_v4, 4  ;;  %v1052_v42 = vrot.slane %v1050_v32, 5  ;;  %v1060_v44 = vshll.u32 %v262_v28, 16  ;;  %v224_v32 = vld [vmem:[%s8472_s24 + $0x188] sm:$0xf] }
  0xa0   : > { %v1056_v43 = vrot.slane %v1054_v33, 4  ;;  %v1038_v45 = vrot.slane %v1037_v37, 4  ;;  %v1065_v47 = vshrl.u32 %v217_v35, 16  ;;  %v1068_v48 = vshll.u32 %v217_v35, 16 }
  0xa1   : > { %v1047_v46 = vor.u32 %v1046_v39, %v1042_v38  ;;  %7591 = vmatmul.mubr.msk.bf16.gmra.mrb[64].mxu1 %vm1489_vm2, %v6545_v36  ;;  %v1033_v49 = vsel %vm8503_vm3, %v1028_v41, %v1032_v23  ;;  %v1062_v51 = vrot.slane %v1060_v44, 5  ;;  %v1074_v53 = vshll.u32 %v218_v40, 16 }
  0xa2   : > { %v1057_v50 = vor.u32 %v1056_v43, %v1052_v42  ;;  %v1043_v54 = vsel %vm8503_vm3, %v1038_v45, %v1042_v38  ;;  %v1067_v56 = vrot.slane %v1065_v47, 4  ;;  %v1070_v57 = vrot.slane %v1068_v48, 5  ;;  %v264_v38 = vld [vmem:[%s8472_s24 + $0x18c] sm:$0x1]  ;;  %v225_v47 = vld [vmem:[%s8472_s24 + $0x190] sm:$0xf] }
  0xa3   : > { %7799 = vmatmul.mubr.msk.bf16.gmra.mrb[72].mxu0 %vm1489_vm2, %v8266_v24  ;;  %v1048_v55 = vrot.slane %v1047_v46, 4  ;;  %v6546_v59 = vcombine.low %v1033_v49, %v1043_v54  ;;  %v1076_v61 = vrot.slane %v1074_v53, 5  ;;  %v1078_v62 = vshrl.u32 %v218_v40, 16 }
  0xa4   : > { %7802 = vmatprep.mubr.msk.bf16.mxu0 %vm1489_vm2, %v8267_v30  ;;  %v1058_v60 = vrot.slane %v1057_v50, 4  ;;  %v1071_v1 = vor.u32 %v1070_v57, %v1067_v56  ;;  %v1084_v2 = vshll.u32 %v219_v52, 16  ;;  %v1088_v3 = vshrl.u32 %v219_v52, 16  ;;  %v8270_v50 = vld [vmem:[%s8472_s24 + $0x1ac] sm:$0xff]   ;;  %v8271_v57 = vld [vmem:[%s8472_s24 + $0x1b8] sm:$0xff]  }
  0xa5   : > { %v1053_v0 = vsel %vm8503_vm3, %v1048_v55, %v1052_v42  ;;  %7594 = vmatprep.mubr.msk.bf16.mxu1 %vm1489_vm2, %v6546_v59  ;;  %v1080_v6 = vrot.slane %v1078_v62, 4  ;;  %v1094_v8 = vshll.u32 %v220_v58, 16  ;;  %v1098_v9 = vshrl.u32 %v220_v58, 16  ;;  %v226_v58 = vld [vmem:[%s8472_s24 + $0x194] sm:$0xf] }
  0xa6   : > { %v1063_v5 = vsel %vm8503_vm3, %v1058_v60, %v1062_v51  ;;  %v1072_v14 = vrot.slane %v1071_v1, 4  ;;  %v1086_v15 = vrot.slane %v1084_v2, 5  ;;  %v1090_v16 = vrot.slane %v1088_v3, 4  ;;  %v227_v2 = vld [vmem:[%s8472_s24 + $0x198] sm:$0xf] }
  0xa7   : > { %v6547_v13 = vcombine.low %v1053_v0, %v1063_v5  ;;  %v1081_v20 = vor.u32 %v1080_v6, %v1076_v61  ;;  %v1096_v21 = vrot.slane %v1094_v8, 5  ;;  %v1100_v22 = vrot.slane %v1098_v9, 4 }
  0xa8   : > { %v1104_v23 = vshll.u32 %v263_v63, 16  ;;  %v1077_v24 = vsel %vm8503_vm3, %v1072_v14, %v1076_v61  ;;  %v1091_v25 = vor.u32 %v1090_v16, %v1086_v15  ;;  %v1109_v27 = vshrl.u32 %v221_v10, 16 }
  0xa9   : > { %v1112_v28 = vshll.u32 %v221_v10, 16  ;;  %7595 = vmatmul.mubr.msk.bf16.gmra.mrb[68].mxu1 %vm1489_vm2, %v6547_v13  ;;  %v1082_v29 = vrot.slane %v1081_v20, 4  ;;  %v1101_v30 = vor.u32 %v1100_v22, %v1096_v21  ;;  %v1118_v4 = vshll.u32 %v222_v18, 16 }
  0xaa   : > { %v1106_v31 = vrot.slane %v1104_v23, 5  ;;  %v1092_v33 = vrot.slane %v1091_v25, 4  ;;  %v1111_v35 = vrot.slane %v1109_v27, 4  ;;  %v1122_v37 = vshrl.u32 %v222_v18, 16 }
  0xab   : > { %7803 = vmatmul.mubr.msk.bf16.gmra.mrb[76].mxu0 %vm1489_vm2, %v8268_v7  ;;  %v1114_v36 = vrot.slane %v1112_v28, 5  ;;  %v1087_v39 = vsel %vm8503_vm3, %v1082_v29, %v1086_v15  ;;  %v1102_v40 = vrot.slane %v1101_v30, 4  ;;  %v1120_v41 = vrot.slane %v1118_v4, 5  ;;  %v228_v15 = vld [vmem:[%s8472_s24 + $0x19c] sm:$0xf]  ;;  %v8272_v28 = vld [vmem:[%s8472_s24 + $0x1c0] sm:$0xff]  }
  0xac   : > { %7806 = vmatprep.mubr.msk.bf16.mxu0 %vm1489_vm2, %v8269_v17  ;;  %v1128_v42 = vshll.u32 %v223_v26, 16  ;;  %v6548_v43 = vcombine.low %v1077_v24, %v1087_v39  ;;  %v1097_v44 = vsel %vm8503_vm3, %v1092_v33, %v1096_v21  ;;  %v1124_v46 = vrot.slane %v1122_v37, 4  ;;  %v265_v24 = vld [vmem:[%s8472_s24 + $0x1a0] sm:$0x1]  ;;  %v230_v37 = vld [vmem:[%s8472_s24 + $0x1a8] sm:$0xf] }
  0xad   : > { %v1115_v45 = vor.u32 %v1114_v36, %v1111_v35  ;;  %v1107_v48 = vsel %vm8503_vm3, %v1102_v40, %v1106_v31  ;;  %v1132_v51 = vshrl.u32 %v223_v26, 16  ;;  %v1138_v52 = vshll.u32 %v224_v32, 16  ;;  %v229_v31 = vld [vmem:[%s8472_s24 + $0x1a4] sm:$0xf]  ;;  %v8273_v36 = vld [vmem:[%s8472_s24 + $0x1cc] sm:$0xff]  }
  0xae   : > { %v1130_v49 = vrot.slane %v1128_v42, 5  ;;  %7598 = vmatprep.mubr.msk.bf16.mxu1 %vm1489_vm2, %v6548_v43  ;;  %v6549_v53 = vcombine.low %v1097_v44, %v1107_v48  ;;  %v1125_v55 = vor.u32 %v1124_v46, %v1120_v41  ;;  %v1142_v56 = vshrl.u32 %v224_v32, 16  ;;  %v231_v48 = vld [vmem:[%s8472_s24 + $0x1ac] sm:$0xf] }
  0xaf   : > { %v1116_v54 = vrot.slane %v1115_v45, 4  ;;  %v1134_v59 = vrot.slane %v1132_v51, 4  ;;  %v1140_v60 = vrot.slane %v1138_v52, 5  ;;  %v1148_v61 = vshll.u32 %v264_v38, 16 }
  0xb0   : > { %v1153_v62 = vshrl.u32 %v225_v47, 16  ;;  %v1126_v0 = vrot.slane %v1125_v55, 4  ;;  %v1144_v1 = vrot.slane %v1142_v56, 4  ;;  %v1156_v3 = vshll.u32 %v225_v47, 16  ;;  %v232_v55 = vld [vmem:[%s8472_s24 + $0x1b0] sm:$0xf] }
  0xb1   : > { %v1121_v63 = vsel %vm8503_vm3, %v1116_v54, %v1120_v41  ;;  %7599 = vmatmul.mubr.msk.bf16.gmra.mrb[72].mxu1 %vm1489_vm2, %v6549_v53  ;;  %v1135_v5 = vor.u32 %v1134_v59, %v1130_v49  ;;  %v1150_v6 = vrot.slane %v1148_v61, 5  ;;  %v1162_v8 = vshll.u32 %v226_v58, 16 }
  0xb2   : > { %v1155_v7 = vrot.slane %v1153_v62, 4  ;;  %v1131_v9 = vsel %vm8503_vm3, %v1126_v0, %v1130_v49  ;;  %v1145_v10 = vor.u32 %v1144_v1, %v1140_v60  ;;  %v1158_v13 = vrot.slane %v1156_v3, 5  ;;  %v8274_v3 = vld [vmem:[%s8472_s24 + $0x1d4] sm:$0xff]  }
  0xb3   : > { %7807 = vmatmul.mubr.msk.bf16.gmra.mrb[80].mxu0 %vm1489_vm2, %v8270_v50  ;;  %v1166_v14 = vshrl.u32 %v226_v58, 16  ;;  %v6550_v16 = vcombine.low %v1121_v63, %v1131_v9  ;;  %v1136_v17 = vrot.slane %v1135_v5, 4  ;;  %v1164_v18 = vrot.slane %v1162_v8, 5  ;;  %v266_v63 = vld [vmem:[%s8472_s24 + $0x1b4] sm:$0x1] }
  0xb4   : > { %7810 = vmatprep.mubr.msk.bf16.mxu0 %vm1489_vm2, %v8271_v57  ;;  %v1172_v20 = vshll.u32 %v227_v2, 16  ;;  %v1146_v21 = vrot.slane %v1145_v10, 4  ;;  %v1159_v22 = vor.u32 %v1158_v13, %v1155_v7  ;;  %v1176_v25 = vshrl.u32 %v227_v2, 16  ;;  %v233_v7 = vld [vmem:[%s8472_s24 + $0x1b8] sm:$0xf] }
  0xb5   : > { %v1168_v23 = vrot.slane %v1166_v14, 4  ;;  %7602 = vmatprep.mubr.msk.bf16.mxu1 %vm1489_vm2, %v6550_v16  ;;  %v1141_v26 = vsel %vm8503_vm3, %v1136_v17, %v1140_v60  ;;  %v1182_v29 = vshll.u32 %v228_v15, 16  ;;  %v1186_v30 = vshrl.u32 %v228_v15, 16  ;;  %v8275_v14 = vld [vmem:[%s8472_s24 + $0x1e0] sm:$0xff]   ;;  %v234_v15 = vld [vmem:[%s8472_s24 + $0x1bc] sm:$0xf] }
  0xb6   : > { %v1174_v27 = vrot.slane %v1172_v20, 5  ;;  %v1151_v4 = vsel %vm8503_vm3, %v1146_v21, %v1150_v6  ;;  %v1160_v32 = vrot.slane %v1159_v22, 4  ;;  %v1178_v35 = vrot.slane %v1176_v25, 4 }
  0xb7   : > { %v1169_v33 = vor.u32 %v1168_v23, %v1164_v18  ;;  %v6551_v38 = vcombine.low %v1141_v26, %v1151_v4  ;;  %v1184_v39 = vrot.slane %v1182_v29, 5  ;;  %v1188_v40 = vrot.slane %v1186_v30, 4 }
  0xb8   : > { %v1192_v41 = vshll.u32 %v265_v24, 16  ;;  %v1165_v42 = vsel %vm8503_vm3, %v1160_v32, %v1164_v18  ;;  %v1179_v44 = vor.u32 %v1178_v35, %v1174_v27  ;;  %v1197_v45 = vshrl.u32 %v229_v31, 16 }
  0xb9   : > { %v1170_v43 = vrot.slane %v1169_v33, 4  ;;  %7603 = vmatmul.mubr.msk.bf16.gmra.mrb[76].mxu1 %vm1489_vm2, %v6551_v38  ;;  %v1189_v46 = vor.u32 %v1188_v40, %v1184_v39  ;;  %v1200_v49 = vshll.u32 %v229_v31, 16  ;;  %v1206_v50 = vshll.u32 %v230_v37, 16  ;;  %v236_v33 = vld [vmem:[%s8472_s24 + $0x1c4] sm:$0xf] }
  0xba   : > { %v1194_v47 = vrot.slane %v1192_v41, 5  ;;  %v1180_v52 = vrot.slane %v1179_v44, 4  ;;  %v1199_v53 = vrot.slane %v1197_v45, 4  ;;  %v1210_v54 = vshrl.u32 %v230_v37, 16 }
  0xbb   : > { %7811 = vmatmul.mubr.msk.bf16.gmra.mrb[84].mxu0 %vm1489_vm2, %v8272_v28  ;;  %v1175_v51 = vsel %vm8503_vm3, %v1170_v43, %v1174_v27  ;;  %v1190_v57 = vrot.slane %v1189_v46, 4  ;;  %v1202_v58 = vrot.slane %v1200_v49, 5  ;;  %v1208_v59 = vrot.slane %v1206_v50, 5  ;;  %v235_v28 = vld [vmem:[%s8472_s24 + $0x1c0] sm:$0xf]  ;;  %v8276_v46 = vld [vmem:[%s8472_s24 + $0x1e8] sm:$0xff]  }
  0xbc   : > { %7814 = vmatprep.mubr.msk.bf16.mxu0 %vm1489_vm2, %v8273_v36  ;;  %v6552_v56 = vcombine.low %v1165_v42, %v1175_v51  ;;  %v1185_v60 = vsel %vm8503_vm3, %v1180_v52, %v1184_v39  ;;  %v1212_v61 = vrot.slane %v1210_v54, 4  ;;  %v1216_v62 = vshll.u32 %v231_v48, 16  ;;  %v267_v42 = vld [vmem:[%s8472_s24 + $0x1c8] sm:$0x1]  ;;  %v6906_v49 = vld [vmem:[%s8472_s24 + $0x14] sm:$0xf] }
  0xbd   : > { %v1220_v0 = vshrl.u32 %v231_v48, 16  ;;  %v1195_v1 = vsel %vm8503_vm3, %v1190_v57, %v1194_v47  ;;  %v1203_v2 = vor.u32 %v1202_v58, %v1199_v53  ;;  %v1226_v5 = vshll.u32 %v232_v55, 16  ;;  %v6907_v54 = vld [vmem:[%s8472_s24 + $0x18] sm:$0xf] }
  0xbe   : > { %7606 = vmatprep.mubr.msk.bf16.mxu1 %vm1489_vm2, %v6552_v56  ;;  %v1230_v6 = vshrl.u32 %v232_v55, 16  ;;  %v6553_v8 = vcombine.low %v1185_v60, %v1195_v1  ;;  %v1213_v9 = vor.u32 %v1212_v61, %v1208_v59  ;;  %v1218_v10 = vrot.slane %v1216_v62, 5  ;;  %v6908_v61 = vld [vmem:[%s8472_s24 + $0x1c] sm:$0xf] }
  0xbf   : > { %v1222_v13 = vrot.slane %v1220_v0, 4  ;;  %v1204_v16 = vrot.slane %v1203_v2, 4  ;;  %v1228_v17 = vrot.slane %v1226_v5, 5  ;;  %v1236_v20 = vshll.u32 %v266_v63, 16 }
  0xc0   : > { %v1232_v18 = vrot.slane %v1230_v6, 4  ;;  %v1214_v21 = vrot.slane %v1213_v9, 4  ;;  %v1241_v23 = vshrl.u32 %v233_v7, 16  ;;  %v1244_v24 = vshll.u32 %v233_v7, 16  ;;  %v237_v9 = vld [vmem:[%s8472_s24 + $0x1cc] sm:$0xf] }
  0xc1   : > { %v1223_v22 = vor.u32 %v1222_v13, %v1218_v10  ;;  %7607 = vmatmul.mubr.msk.bf16.gmra.mrb[80].mxu1 %vm1489_vm2, %v6553_v8  ;;  %v1209_v25 = vsel %vm8503_vm3, %v1204_v16, %v1208_v59  ;;  %v1238_v27 = vrot.slane %v1236_v20, 5  ;;  %v1250_v29 = vshll.u32 %v234_v15, 16 }
  0xc2   : > { %v1233_v26 = vor.u32 %v1232_v18, %v1228_v17  ;;  %v1219_v30 = vsel %vm8503_vm3, %v1214_v21, %v1218_v10  ;;  %v1243_v4 = vrot.slane %v1241_v23, 4  ;;  %v1246_v32 = vrot.slane %v1244_v24, 5  ;;  %v238_v21 = vld [vmem:[%s8472_s24 + $0x1d0] sm:$0xf] }
  0xc3   : > { %7815 = vmatmul.mubr.msk.bf16.gmra.mrb[88].mxu0 %vm1489_vm2, %v8274_v3  ;;  %v1224_v31 = vrot.slane %v1223_v22, 4  ;;  %v6554_v35 = vcombine.low %v1209_v25, %v1219_v30  ;;  %v1252_v37 = vrot.slane %v1250_v29, 5  ;;  %v1254_v38 = vshrl.u32 %v234_v15, 16  ;;  %v239_v25 = vld [vmem:[%s8472_s24 + $0x1d4] sm:$0xf] }
  0xc4   : > { %7818 = vmatprep.mubr.msk.bf16.mxu0 %vm1489_vm2, %v8275_v14  ;;  %v1234_v36 = vrot.slane %v1233_v26, 4  ;;  %v1247_v40 = vor.u32 %v1246_v32, %v1243_v4  ;;  %v1260_v41 = vshll.u32 %v235_v28, 16  ;;  %v1264_v43 = vshrl.u32 %v235_v28, 16 }
  0xc5   : > { %v1229_v39 = vsel %vm8503_vm3, %v1224_v31, %v1228_v17  ;;  %7610 = vmatprep.mubr.msk.bf16.mxu1 %vm1489_vm2, %v6554_v35  ;;  %v1256_v45 = vrot.slane %v1254_v38, 4  ;;  %v1270_v47 = vshll.u32 %v236_v33, 16  ;;  %v1274_v48 = vshrl.u32 %v236_v33, 16  ;;  %v6909_v31 = vld [vmem:[%s8472_s24 + $0x20] sm:$0xf] }
  0xc6   : > { %v1239_v44 = vsel %vm8503_vm3, %v1234_v36, %v1238_v27  ;;  %v1248_v51 = vrot.slane %v1247_v40, 4  ;;  %v1262_v52 = vrot.slane %v1260_v41, 5  ;;  %v1266_v53 = vrot.slane %v1264_v43, 4  ;;  %v6910_v43 = vld [vmem:[%s8472_s24 + $0x24] sm:$0x1] }
  0xc7   : > { %v6555_v50 = vcombine.low %v1229_v39, %v1239_v44  ;;  %v1257_v55 = vor.u32 %v1256_v45, %v1252_v37  ;;  %v1272_v56 = vrot.slane %v1270_v47, 5  ;;  %v1276_v57 = vrot.slane %v1274_v48, 4 }
  0xc8   : > { %v1280_v58 = vshll.u32 %v267_v42, 16  ;;  %v1253_v59 = vsel %vm8503_vm3, %v1248_v51, %v1252_v37  ;;  %v1267_v60 = vor.u32 %v1266_v53, %v1262_v52  ;;  %v3996_v62 = vshrl.u32 %v6906_v49, 16 }
  0xc9   : > { %v3999_v63 = vshll.u32 %v6906_v49, 16  ;;  %7611 = vmatmul.mubr.msk.bf16.gmra.mrb[84].mxu1 %vm1489_vm2, %v6555_v50  ;;  %v1258_v0 = vrot.slane %v1257_v55, 4  ;;  %v1277_v1 = vor.u32 %v1276_v57, %v1272_v56  ;;  %v4005_v3 = vshll.u32 %v6907_v54, 16  ;;  %v240_v49 = vld [vmem:[%s8472_s24 + $0x1d8] sm:$0xf] }
  0xca   : > { %v1282_v2 = vrot.slane %v1280_v58, 5  ;;  %v1268_v5 = vrot.slane %v1267_v60, 4  ;;  %v3998_v6 = vrot.slane %v3996_v62, 4  ;;  %v4009_v8 = vshrl.u32 %v6907_v54, 16  ;;  %v268_v57 = vld [vmem:[%s8472_s24 + $0x1dc] sm:$0x1] }
  0xcb   : > { %7819 = vmatmul.mubr.msk.bf16.gmra.mrb[92].mxu0 %vm1489_vm2, %v8276_v46  ;;  %v4001_v7 = vrot.slane %v3999_v63, 5  ;;  %v1263_v10 = vsel %vm8503_vm3, %v1258_v0, %v1262_v52  ;;  %v1278_v13 = vrot.slane %v1277_v1, 4  ;;  %v4007_v14 = vrot.slane %v4005_v3, 5  ;;  %v6911_v63 = vld [vmem:[%s8472_s24 + $0x28] sm:$0xf] }
  0xcc   : > { %v4015_v15 = vshll.u32 %v6908_v61, 16  ;;  %v6556_v16 = vcombine.low %v1253_v59, %v1263_v10  ;;  %v1273_v17 = vsel %vm8503_vm3, %v1268_v5, %v1272_v56  ;;  %v4011_v20 = vrot.slane %v4009_v8, 4  ;;  %v6912_v5 = vld [vmem:[%s8472_s24 + $0x2c] sm:$0xf] }
  0xcd   : > { %v4002_v18 = vor.u32 %v4001_v7, %v3998_v6  ;;  %v1283_v22 = vsel %vm8503_vm3, %v1278_v13, %v1282_v2  ;;  %v4019_v24 = vshrl.u32 %v6908_v61, 16  ;;  %v1285_v26 = vshrl.u32 %v237_v9, 16 }
  0xce   : > { %v4017_v23 = vrot.slane %v4015_v15, 5  ;;  %7614 = vmatprep.mubr.msk.bf16.mxu1 %vm1489_vm2, %v6556_v16  ;;  %v6557_v27 = vcombine.low %v1273_v17, %v1283_v22  ;;  %v4012_v29 = vor.u32 %v4011_v20, %v4007_v14  ;;  %v1288_v30 = vshll.u32 %v237_v9, 16 }
  0xcf   : > { %v4003_v28 = vrot.slane %v4002_v18, 4  ;;  %v4021_v4 = vrot.slane %v4019_v24, 4  ;;  %v1287_v32 = vrot.slane %v1285_v26, 4  ;;  %v1294_v33 = vshll.u32 %v238_v21, 16  ;;  %v6913_v18 = vld [vmem:[%s8472_s24 + $0x30] sm:$0xf] }
  0xd0   : > { %v1298_v35 = vshrl.u32 %v238_v21, 16  ;;  %v4013_v37 = vrot.slane %v4012_v29, 4  ;;  %v1290_v38 = vrot.slane %v1288_v30, 5  ;;  %v1304_v39 = vshll.u32 %v239_v25, 16  ;;  %v6914_v26 = vld [vmem:[%s8472_s24 + $0x34] sm:$0xf] }
  0xd1   : > { %v4008_v36 = vsel %vm8503_vm3, %v4003_v28, %v4007_v14  ;;  %7615 = vmatmul.mubr.msk.bf16.gmra.mrb[88].mxu1 %vm1489_vm2, %v6557_v27  ;;  %v4022_v40 = vor.u32 %v4021_v4, %v4017_v23  ;;  %v1296_v41 = vrot.slane %v1294_v33, 5  ;;  %v4025_v44 = vshll.u32 %v6909_v31, 16 }
  0xd2   : > { %v1300_v42 = vrot.slane %v1298_v35, 4  ;;  %v4018_v45 = vsel %vm8503_vm3, %v4013_v37, %v4017_v23  ;;  %v1291_v46 = vor.u32 %v1290_v38, %v1287_v32  ;;  %v1306_v47 = vrot.slane %v1304_v39, 5  ;;  %v6915_v35 = vld [vmem:[%s8472_s24 + $0x38] sm:$0x1]  ;;  %v8324_v38 = vld [vmem:[%s8472_s24] sm:$0xf] }
  0xd3   : > { %v4029_v48 = vshrl.u32 %v6909_v31, 16  ;;  %v4023_v50 = vrot.slane %v4022_v40, 4  ;;  %v7030_v51 = vcombine.low %v4008_v36, %v4018_v45  ;;  %v4027_v53 = vrot.slane %v4025_v44, 5  ;;  %v8325_v39 = vld [vmem:[%s8472_s24 + $0x4] sm:$0xf] }
  0xd4   : > { %v1301_v52 = vor.u32 %v1300_v42, %v1296_v41  ;;  %v1292_v54 = vrot.slane %v1291_v46, 4  ;;  %v4035_v56 = vshll.u32 %v6910_v43, 16  ;;  %v1308_v58 = vshrl.u32 %v239_v25, 16  ;;  %v6916_v42 = vld [vmem:[%s8472_s24 + $0x3c] sm:$0xf] }
  0xd5   : > { %v4031_v55 = vrot.slane %v4029_v48, 4  ;;  %7826 = vmatprep.mubr.msk.bf16.mxu0 %vm1489_vm2, %v7030_v51  ;;  %v4028_v60 = vsel %vm8503_vm3, %v4023_v50, %v4027_v53  ;;  %v1314_v61 = vshll.u32 %v240_v49, 16  ;;  %v1318_v62 = vshrl.u32 %v240_v49, 16 }
  0xd6   : > { %v1302_v59 = vrot.slane %v1301_v52, 4  ;;  %v1297_v0 = vsel %vm8503_vm3, %v1292_v54, %v1296_v41  ;;  %v4037_v2 = vrot.slane %v4035_v56, 5  ;;  %v1310_v3 = vrot.slane %v1308_v58, 4 }
  0xd7   : > { %v4032_v1 = vor.u32 %v4031_v55, %v4027_v53  ;;  %v1316_v7 = vrot.slane %v1314_v61, 5  ;;  %v1320_v8 = vrot.slane %v1318_v62, 4  ;;  %v1324_v9 = vshll.u32 %v268_v57, 16 }
  0xd8   : > { %v1307_v6 = vsel %vm8503_vm3, %v1302_v59, %v1306_v47  ;;  %v1311_v14 = vor.u32 %v1310_v3, %v1306_v47  ;;  %v4040_v15 = vshrl.u32 %v6911_v63, 16  ;;  %v4043_v20 = vshll.u32 %v6911_v63, 16  ;;  %v6917_v47 = vld [vmem:[%s8472_s24 + $0x40] sm:$0xf]  ;;  %v6918_v59 = vld [vmem:[%s8472_s24 + $0x44] sm:$0xf] }
  0xd9   : > { %v6558_v10 = vcombine.low %v1297_v0, %v1307_v6  ;;  %v4033_v13 = vrot.slane %v4032_v1, 4  ;;  %v1321_v16 = vor.u32 %v1320_v8, %v1316_v7  ;;  %v1326_v17 = vrot.slane %v1324_v9, 5  ;;  %v6919_v1 = vld [vmem:[%s8472_s24 + $0x48] sm:$0xf] }
  0xda   : > { %v4049_v21 = vshll.u32 %v6912_v5, 16  ;;  %v1312_v23 = vrot.slane %v1311_v14, 4  ;;  %v4042_v24 = vrot.slane %v4040_v15, 4  ;;  %v4053_v25 = vshrl.u32 %v6912_v5, 16 }
  0xdb   : > { %7618 = vmatprep.mubr.msk.bf16.mxu1 %vm1489_vm2, %v6558_v10  ;;  %v4038_v22 = vsel %vm8503_vm3, %v4033_v13, %v4037_v2  ;;  %v1322_v28 = vrot.slane %v1321_v16, 4  ;;  %v4045_v29 = vrot.slane %v4043_v20, 5  ;;  %v4059_v32 = vshll.u32 %v6913_v18, 16  ;;  %v6920_v13 = vld [vmem:[%s8472_s24 + $0x4c] sm:$0x1] }
  0xdc   : > { %v7031_v27 = vcombine.low %v4028_v60, %v4038_v22  ;;  %v4051_v30 = vrot.slane %v4049_v21, 5  ;;  %v1317_v31 = vsel %vm8503_vm3, %v1312_v23, %v1316_v7  ;;  %v4055_v4 = vrot.slane %v4053_v25, 4  ;;  %v8326_v16 = vld [vmem:[%s8472_s24 + $0x14] sm:$0xf]  ;;  %v6921_v25 = vld [vmem:[%s8472_s24 + $0x50] sm:$0xf] }
  0xdd   : > { %v4063_v33 = vshrl.u32 %v6913_v18, 16  ;;  %v1327_v36 = vsel %vm8503_vm3, %v1322_v28, %v1326_v17  ;;  %v4046_v37 = vor.u32 %v4045_v29, %v4042_v24  ;;  %v6610_v40 = vcombine.low %v8324_v38, %v8325_v39  ;;  %v8327_v17 = vld [vmem:[%s8472_s24 + $0x18] sm:$0xf]  ;;  %v8328_v38 = vld [vmem:[%s8472_s24 + $0x1c] sm:$0xf] }
  0xde   : > { %7827 = vmatmul.mubr.msk.bf16.vlgmr.msra.gmra.mrb[0].mxu0 %vm1489_vm2, %v7031_v27  ;;  %v4069_v41 = vshll.u32 %v6914_v26, 16  ;;  %v6559_v43 = vcombine.low %v1317_v31, %v1327_v36  ;;  %v4056_v44 = vor.u32 %v4055_v4, %v4051_v30  ;;  %v4061_v45 = vrot.slane %v4059_v32, 5  ;;  %v8329_v39 = vld [vmem:[%s8472_s24 + $0x20] sm:$0xf] }
  0xdf   : > { %v4065_v46 = vrot.slane %v4063_v33, 4  ;;  %v4047_v48 = vrot.slane %v4046_v37, 4  ;;  %v4073_v50 = vshrl.u32 %v6914_v26, 16  ;;  %v4079_v51 = vshll.u32 %v6915_v35, 16  ;;  %v6923_v35 = vld [vmem:[%s8472_s24 + $0x58] sm:$0xf] }
  0xe0   : > { %v4071_v49 = vrot.slane %v4069_v41, 5  ;;  %7619 = vmatmul.mubr.msk.bf16.gmra.mrb[92].mxu1 %vm1489_vm2, %v6559_v43  ;;  %v4057_v52 = vrot.slane %v4056_v44, 4  ;;  %v4084_v54 = vshrl.u32 %v6916_v42, 16  ;;  %v4087_v55 = vshll.u32 %v6916_v42, 16 }
  0xe1   : > { %v4066_v53 = vor.u32 %v4065_v46, %v4061_v45  ;;  %v4052_v56 = vsel %vm8503_vm3, %v4047_v48, %v4051_v30  ;;  %7626 = vmatprep.mubr.msk.bf16.mxu1 %vm1489_vm2, %v6610_v40  ;;  %v4075_v57 = vrot.slane %v4073_v50, 4  ;;  %v4081_v58 = vrot.slane %v4079_v51, 5  ;;  %v6922_v30 = vld [vmem:[%s8472_s24 + $0x54] sm:$0xf] }
  0xe2   : > { %v4093_v60 = vshll.u32 %v6917_v47, 16  ;;  %v4062_v61 = vsel %vm8503_vm3, %v4057_v52, %v4061_v45  ;;  %v4086_v63 = vrot.slane %v4084_v54, 4  ;;  %v4089_v0 = vrot.slane %v4087_v55, 5 }
  0xe3   : > { %v4067_v62 = vrot.slane %v4066_v53, 4  ;;  %v7032_v2 = vcombine.low %v4052_v56, %v4062_v61  ;;  %v4076_v3 = vor.u32 %v4075_v57, %v4071_v49  ;;  %v4097_v6 = vshrl.u32 %v6917_v47, 16  ;;  %v6924_v47 = vld [vmem:[%s8472_s24 + $0x5c] sm:$0xf]  ;;  %v6925_v56 = vld [vmem:[%s8472_s24 + $0x60] sm:$0x1] }
  0xe4   : > { %v4095_v5 = vrot.slane %v4093_v60, 5  ;;  %v4090_v8 = vor.u32 %v4089_v0, %v4086_v63  ;;  %v4103_v9 = vshll.u32 %v6918_v59, 16  ;;  %v4107_v10 = vshrl.u32 %v6918_v59, 16  ;;  %v8330_v59 = vld [vmem:[%s8472_s24 + $0x28] sm:$0xf] }
  0xe5   : > { %v4072_v7 = vsel %vm8503_vm3, %v4067_v62, %v4071_v49  ;;  %7830 = vmatprep.mubr.msk.bf16.mxu0 %vm1489_vm2, %v7032_v2  ;;  %v4077_v14 = vrot.slane %v4076_v3, 4  ;;  %v4099_v15 = vrot.slane %v4097_v6, 4  ;;  %v6612_v18 = vcombine.low %v8326_v16, %v8327_v17  ;;  %v8331_v60 = vld [vmem:[%s8472_s24 + $0x2c] sm:$0xf]  ;;  %v6926_v63 = vld [vmem:[%s8472_s24 + $0x64] sm:$0xf] }
  0xe6   : > { %v4113_v20 = vshll.u32 %v6919_v1, 16  ;;  %v4091_v21 = vrot.slane %v4090_v8, 4  ;;  %v4105_v22 = vrot.slane %v4103_v9, 5  ;;  %v4109_v23 = vrot.slane %v4107_v10, 4  ;;  %v8332_v9 = vld [vmem:[%s8472_s24 + $0x30] sm:$0xf] }
  0xe7   : > { %v4117_v24 = vshrl.u32 %v6919_v1, 16  ;;  %v4082_v26 = vsel %vm8503_vm3, %v4077_v14, %v4081_v58  ;;  %v4100_v27 = vor.u32 %v4099_v15, %v4095_v5  ;;  %v4123_v29 = vshll.u32 %v6920_v13, 16  ;;  %v8333_v10 = vld [vmem:[%s8472_s24 + $0x34] sm:$0xf] }
  0xe8   : > { %v4115_v28 = vrot.slane %v4113_v20, 5  ;;  %v7033_v31 = vcombine.low %v4072_v7, %v4082_v26  ;;  %7627 = vmatmul.mubr.msk.bf16.vlgmr.msra.gmra.mrb[0].mxu1 %vm1489_vm2, %v6611_v19  ;;  %v4096_v4 = vsel %vm8503_vm3, %v4091_v21, %v4095_v5  ;;  %v4110_v32 = vor.u32 %v4109_v23, %v4105_v22  ;;  %v6927_v5 = vld [vmem:[%s8472_s24 + $0x68] sm:$0xf]  ;;  %v6928_v21 = vld [vmem:[%s8472_s24 + $0x6c] sm:$0xf] }
  0xe9   : > { %v4119_v33 = vrot.slane %v4117_v24, 4  ;;  %v4101_v36 = vrot.slane %v4100_v27, 4  ;;  %7630 = vmatprep.mubr.msk.bf16.mxu1 %vm1489_vm2, %v6612_v18  ;;  %v4125_v37 = vrot.slane %v4123_v29, 5  ;;  %v6613_v40 = vcombine.low %v8328_v38, %v8329_v39  ;;  %v8334_v39 = vld [vmem:[%s8472_s24 + $0x3c] sm:$0xf] }
  0xea   : > { %v4128_v41 = vshrl.u32 %v6921_v25, 16  ;;  %7831 = vmatmul.mubr.msk.bf16.gmra.mrb[4].mxu0 %vm1489_vm2, %v7033_v31  ;;  %v4111_v11 = vrot.slane %v4110_v32, 4  ;;  %v4131_v19 = vshll.u32 %v6921_v25, 16  ;;  %v4137_v42 = vshll.u32 %v6922_v30, 16 }
  0xeb   : > { %v4120_v12 = vor.u32 %v4119_v33, %v4115_v28  ;;  %v4106_v43 = vsel %vm8503_vm3, %v4101_v36, %v4105_v22  ;;  %v4141_v45 = vshrl.u32 %v6922_v30, 16  ;;  %v4147_v46 = vshll.u32 %v6923_v35, 16 }
  0xec   : > { %v4130_v44 = vrot.slane %v4128_v41, 4  ;;  %v7034_v48 = vcombine.low %v4096_v4, %v4106_v43  ;;  %v4116_v49 = vsel %vm8503_vm3, %v4111_v11, %v4115_v28  ;;  %v4133_v51 = vrot.slane %v4131_v19, 5  ;;  %v6929_v28 = vld [vmem:[%s8472_s24 + $0x70] sm:$0xf]  ;;  %v6930_v11 = vld [vmem:[%s8472_s24 + $0x74] sm:$0x1] }
  0xed   : > { %v4121_v50 = vrot.slane %v4120_v12, 4  ;;  %v4139_v52 = vrot.slane %v4137_v42, 5  ;;  %v4143_v53 = vrot.slane %v4141_v45, 4  ;;  %v4149_v54 = vrot.slane %v4147_v46, 5  ;;  %v6931_v45 = vld [vmem:[%s8472_s24 + $0x78] sm:$0xf] }
  0xee   : > { %v4151_v55 = vshrl.u32 %v6923_v35, 16  ;;  %7834 = vmatprep.mubr.msk.bf16.mxu0 %vm1489_vm2, %v7034_v48  ;;  %v4134_v58 = vor.u32 %v4133_v51, %v4130_v44  ;;  %v6614_v61 = vcombine.low %v8330_v59, %v8331_v60  ;;  %v4157_v62 = vshll.u32 %v6924_v47, 16 }
  0xef   : > { %v4126_v57 = vsel %vm8503_vm3, %v4121_v50, %v4125_v37  ;;  %v4144_v1 = vor.u32 %v4143_v53, %v4139_v52  ;;  %v4161_v3 = vshrl.u32 %v6924_v47, 16  ;;  %v4167_v8 = vshll.u32 %v6925_v56, 16  ;;  %v6932_v50 = vld [vmem:[%s8472_s24 + $0x7c] sm:$0xf] }
  0xf0   : > { %v7035_v0 = vcombine.low %v4116_v49, %v4126_v57  ;;  %v4153_v2 = vrot.slane %v4151_v55, 4  ;;  %7631 = vmatmul.mubr.msk.bf16.gmra.mrb[4].mxu1 %vm1489_vm2, %v6613_v40  ;;  %v4135_v6 = vrot.slane %v4134_v58, 4  ;;  %v4159_v7 = vrot.slane %v4157_v62, 5  ;;  %v8335_v40 = vld [vmem:[%s8472_s24 + $0x40] sm:$0xf] }
  0xf1   : > { %v6615_v13 = vcombine.low %v8332_v9, %v8333_v10  ;;  %v4145_v14 = vrot.slane %v4144_v1, 4  ;;  %7634 = vmatprep.mubr.msk.bf16.mxu1 %vm1489_vm2, %v6614_v61  ;;  %v4163_v16 = vrot.slane %v4161_v3, 4  ;;  %v4172_v17 = vshrl.u32 %v6926_v63, 16  ;;  %v8337_v55 = vld [vmem:[%s8472_s24 + $0x48] sm:$0xf] }
  0xf2   : > { %v4154_v15 = vor.u32 %v4153_v2, %v4149_v54  ;;  %7835 = vmatmul.mubr.msk.bf16.gmra.mrb[8].mxu0 %vm1489_vm2, %v7035_v0  ;;  %v4140_v18 = vsel %vm8503_vm3, %v4135_v6, %v4139_v52  ;;  %v4169_v20 = vrot.slane %v4167_v8, 5  ;;  %v4175_v22 = vshll.u32 %v6926_v63, 16  ;;  %v6933_v0 = vld [vmem:[%s8472_s24 + $0x80] sm:$0xf] }
  0xf3   : > { %v4181_v23 = vshll.u32 %v6927_v5, 16  ;;  %v4150_v24 = vsel %vm8503_vm3, %v4145_v14, %v4149_v54  ;;  %v4164_v26 = vor.u32 %v4163_v16, %v4159_v7  ;;  %v4174_v27 = vrot.slane %v4172_v17, 4  ;;  %v8336_v54 = vld [vmem:[%s8472_s24 + $0x44] sm:$0xf] }
  0xf4   : > { %v4155_v25 = vrot.slane %v4154_v15, 4  ;;  %v7036_v29 = vcombine.low %v4140_v18, %v4150_v24  ;;  %v4177_v30 = vrot.slane %v4175_v22, 5  ;;  %v4185_v4 = vshrl.u32 %v6927_v5, 16  ;;  %v6935_v18 = vld [vmem:[%s8472_s24 + $0x88] sm:$0x1] }
  0xf5   : > { %v4183_v31 = vrot.slane %v4181_v23, 5  ;;  %v4165_v33 = vrot.slane %v4164_v26, 4  ;;  %v4191_v35 = vshll.u32 %v6928_v21, 16  ;;  %v4195_v36 = vshrl.u32 %v6928_v21, 16  ;;  %v8338_v21 = vld [vmem:[%s8472_s24 + $0x50] sm:$0xf] }
  0xf6   : > { %v4160_v32 = vsel %vm8503_vm3, %v4155_v25, %v4159_v7  ;;  %7838 = vmatprep.mubr.msk.bf16.mxu0 %vm1489_vm2, %v7036_v29  ;;  %v4178_v37 = vor.u32 %v4177_v30, %v4174_v27  ;;  %v4187_v38 = vrot.slane %v4185_v4, 4  ;;  %v6616_v41 = vcombine.low %v8334_v39, %v8335_v40  ;;  %v6934_v7 = vld [vmem:[%s8472_s24 + $0x84] sm:$0xf]  ;;  %v8339_v22 = vld [vmem:[%s8472_s24 + $0x54] sm:$0xf] }
  0xf7   : > { %v4201_v12 = vshll.u32 %v6929_v28, 16  ;;  %v4170_v19 = vsel %vm8503_vm3, %v4165_v33, %v4169_v20  ;;  %v4193_v42 = vrot.slane %v4191_v35, 5  ;;  %v4197_v43 = vrot.slane %v4195_v36, 4  ;;  %v6936_v26 = vld [vmem:[%s8472_s24 + $0x8c] sm:$0xf] }
  0xf8   : > { %v4205_v44 = vshrl.u32 %v6929_v28, 16  ;;  %v7037_v46 = vcombine.low %v4160_v32, %v4170_v19  ;;  %7635 = vmatmul.mubr.msk.bf16.gmra.mrb[8].mxu1 %vm1489_vm2, %v6615_v13  ;;  %v4179_v47 = vrot.slane %v4178_v37, 4  ;;  %v4188_v48 = vor.u32 %v4187_v38, %v4183_v31  ;;  %v6937_v35 = vld [vmem:[%s8472_s24 + $0x90] sm:$0xf]  ;;  %v8340_v38 = vld [vmem:[%s8472_s24 + $0x58] sm:$0xf] }
  0xf9   : > { %v4203_v49 = vrot.slane %v4201_v12, 5  ;;  %7638 = vmatprep.mubr.msk.bf16.mxu1 %vm1489_vm2, %v6616_v41  ;;  %v4198_v51 = vor.u32 %v4197_v43, %v4193_v42  ;;  %v4211_v53 = vshll.u32 %v6930_v11, 16  ;;  %v6617_v56 = vcombine.low %v8336_v54, %v8337_v55  ;;  %v8341_v39 = vld [vmem:[%s8472_s24 + $0x5c] sm:$0xf] }
  0xfa   : > { %v4207_v52 = vrot.slane %v4205_v44, 4  ;;  %7839 = vmatmul.mubr.msk.bf16.gmra.mrb[12].mxu0 %vm1489_vm2, %v7037_v46  ;;  %v4184_v57 = vsel %vm8503_vm3, %v4179_v47, %v4183_v31  ;;  %v4189_v58 = vrot.slane %v4188_v48, 4  ;;  %v4216_v59 = vshrl.u32 %v6931_v45, 16 }
  0xfb   : > { %v4219_v60 = vshll.u32 %v6931_v45, 16  ;;  %v4199_v61 = vrot.slane %v4198_v51, 4  ;;  %v4213_v63 = vrot.slane %v4211_v53, 5  ;;  %v4225_v1 = vshll.u32 %v6932_v50, 16 }
  0xfc   : > { %v4208_v62 = vor.u32 %v4207_v52, %v4203_v49  ;;  %v4194_v2 = vsel %vm8503_vm3, %v4189_v58, %v4193_v42  ;;  %v4218_v3 = vrot.slane %v4216_v59, 4  ;;  %v4229_v6 = vshrl.u32 %v6932_v50, 16  ;;  %v6938_v42 = vld [vmem:[%s8472_s24 + $0x94] sm:$0xf]  ;;  %v6939_v52 = vld [vmem:[%s8472_s24 + $0x98] sm:$0xf] }
  0xfd   : > { %v4221_v5 = vrot.slane %v4219_v60, 5  ;;  %v7038_v8 = vcombine.low %v4184_v57, %v4194_v2  ;;  %v4204_v9 = vsel %vm8503_vm3, %v4199_v61, %v4203_v49  ;;  %v4227_v13 = vrot.slane %v4225_v1, 5  ;;  %v6940_v57 = vld [vmem:[%s8472_s24 + $0x9c] sm:$0x1]  ;;  %v8342_v61 = vld [vmem:[%s8472_s24 + $0x64] sm:$0xf] }
  0xfe   : > { %v4209_v10 = vrot.slane %v4208_v62, 4  ;;  %v4231_v15 = vrot.slane %v4229_v6, 4  ;;  %v4235_v16 = vshll.u32 %v6933_v0, 16  ;;  %v4239_v17 = vshrl.u32 %v6933_v0, 16  ;;  %v8343_v62 = vld [vmem:[%s8472_s24 + $0x68] sm:$0xf] }
  0xff   : > { %v4222_v14 = vor.u32 %v4221_v5, %v4218_v3  ;;  %7842 = vmatprep.mubr.msk.bf16.mxu0 %vm1489_vm2, %v7038_v8  ;;  %v6618_v23 = vcombine.low %v8338_v21, %v8339_v22  ;;  %v4245_v24 = vshll.u32 %v6934_v7, 16  ;;  %v4249_v25 = vshrl.u32 %v6934_v7, 16  ;;  %v6941_v0 = vld [vmem:[%s8472_s24 + $0xa0] sm:$0xf] }
 0x100   : > { %v4214_v20 = vsel %vm8503_vm3, %v4209_v10, %v4213_v63  ;;  %7639 = vmatmul.mubr.msk.bf16.gmra.mrb[12].mxu1 %vm1489_vm2, %v6617_v56  ;;  %v4232_v29 = vor.u32 %v4231_v15, %v4227_v13  ;;  %v4237_v30 = vrot.slane %v4235_v16, 5  ;;  %v4241_v31 = vrot.slane %v4239_v17, 4  ;;  %v8345_v15 = vld [vmem:[%s8472_s24 + $0x70] sm:$0xf]  ;;  %v6942_v17 = vld [vmem:[%s8472_s24 + $0xa4] sm:$0xf] }
 0x101   : > { %v7039_v27 = vcombine.low %v4204_v9, %v4214_v20  ;;  %v4223_v28 = vrot.slane %v4222_v14, 4  ;;  %7642 = vmatprep.mubr.msk.bf16.mxu1 %vm1489_vm2, %v6618_v23  ;;  %v4247_v4 = vrot.slane %v4245_v24, 5  ;;  %v4251_v32 = vrot.slane %v4249_v25, 4  ;;  %v8344_v14 = vld [vmem:[%s8472_s24 + $0x6c] sm:$0xf] }
 0x102   : > { %v4255_v33 = vshll.u32 %v6935_v18, 16  ;;  %v4233_v37 = vrot.slane %v4232_v29, 4  ;;  %v6619_v40 = vcombine.low %v8340_v38, %v8341_v39  ;;  %v4260_v41 = vshrl.u32 %v6936_v26, 16  ;;  %v6943_v24 = vld [vmem:[%s8472_s24 + $0xa8] sm:$0xf] }
 0x103   : > { %7843 = vmatmul.mubr.msk.bf16.gmra.mrb[16].mxu0 %vm1489_vm2, %v7039_v27  ;;  %v4228_v36 = vsel %vm8503_vm3, %v4223_v28, %v4227_v13  ;;  %v4242_v11 = vor.u32 %v4241_v31, %v4237_v30  ;;  %v4252_v12 = vor.u32 %v4251_v32, %v4247_v4  ;;  %v4263_v43 = vshll.u32 %v6936_v26, 16  ;;  %v6944_v32 = vld [vmem:[%s8472_s24 + $0xac] sm:$0xf]  ;;  %v6945_v38 = vld [vmem:[%s8472_s24 + $0xb0] sm:$0x1] }
 0x104   : > { %v4257_v19 = vrot.slane %v4255_v33, 5  ;;  %v4238_v44 = vsel %vm8503_vm3, %v4233_v37, %v4237_v30  ;;  %v4262_v45 = vrot.slane %v4260_v41, 4  ;;  %v4269_v46 = vshll.u32 %v6937_v35, 16 }
 0x105   : > { %v4273_v47 = vshrl.u32 %v6937_v35, 16  ;;  %v7040_v48 = vcombine.low %v4228_v36, %v4238_v44  ;;  %v4243_v49 = vrot.slane %v4242_v11, 4  ;;  %v4253_v50 = vrot.slane %v4252_v12, 4  ;;  %v8346_v11 = vld [vmem:[%s8472_s24 + $0x78] sm:$0xf] }
 0x106   : > { %v4265_v51 = vrot.slane %v4263_v43, 5  ;;  %v4271_v53 = vrot.slane %v4269_v46, 5  ;;  %v4279_v55 = vshll.u32 %v6938_v42, 16  ;;  %v4283_v56 = vshrl.u32 %v6938_v42, 16  ;;  %v8347_v12 = vld [vmem:[%s8472_s24 + $0x7c] sm:$0xf] }
 0x107   : > { %v4275_v54 = vrot.slane %v4273_v47, 4  ;;  %7846 = vmatprep.mubr.msk.bf16.mxu0 %vm1489_vm2, %v7040_v48  ;;  %v4248_v58 = vsel %vm8503_vm3, %v4243_v49, %v4247_v4  ;;  %v4258_v59 = vsel %vm8503_vm3, %v4253_v50, %v4257_v19  ;;  %v6620_v63 = vcombine.low %v8342_v61, %v8343_v62  ;;  %v6946_v50 = vld [vmem:[%s8472_s24 + $0xb4] sm:$0xf] }
 0x108   : > { %v4266_v60 = vor.u32 %v4265_v51, %v4262_v45  ;;  %v7041_v1 = vcombine.low %v4248_v58, %v4258_v59  ;;  %7643 = vmatmul.mubr.msk.bf16.gmra.mrb[16].mxu1 %vm1489_vm2, %v6619_v40  ;;  %v4281_v3 = vrot.slane %v4279_v55, 5  ;;  %v4285_v5 = vrot.slane %v4283_v56, 4  ;;  %v6947_v55 = vld [vmem:[%s8472_s24 + $0xb8] sm:$0xf]  ;;  %v8348_v59 = vld [vmem:[%s8472_s24 + $0x80] sm:$0xf] }
 0x109   : > { %v4276_v2 = vor.u32 %v4275_v54, %v4271_v53  ;;  %7646 = vmatprep.mubr.msk.bf16.mxu1 %vm1489_vm2, %v6620_v63  ;;  %v4289_v7 = vshll.u32 %v6939_v52, 16  ;;  %v4293_v8 = vshrl.u32 %v6939_v52, 16  ;;  %v4299_v9 = vshll.u32 %v6940_v57, 16 }
 0x10a   : > { %v4267_v6 = vrot.slane %v4266_v60, 4  ;;  %v4286_v13 = vor.u32 %v4285_v5, %v4281_v3  ;;  %v6621_v16 = vcombine.low %v8344_v14, %v8345_v15  ;;  %v4304_v18 = vshrl.u32 %v6941_v0, 16  ;;  %v8349_v60 = vld [vmem:[%s8472_s24 + $0x84] sm:$0xf] }
 0x10b   : > { %7847 = vmatmul.mubr.msk.bf16.gmra.mrb[20].mxu0 %vm1489_vm2, %v7041_v1  ;;  %v4277_v10 = vrot.slane %v4276_v2, 4  ;;  %v4291_v21 = vrot.slane %v4289_v7, 5  ;;  %v4295_v22 = vrot.slane %v4293_v8, 4  ;;  %v4301_v23 = vrot.slane %v4299_v9, 5  ;;  %v6949_v8 = vld [vmem:[%s8472_s24 + $0xc0] sm:$0xf] }
 0x10c   : > { %v4272_v20 = vsel %vm8503_vm3, %v4267_v6, %v4271_v53  ;;  %v4287_v26 = vrot.slane %v4286_v13, 4  ;;  %v4306_v27 = vrot.slane %v4304_v18, 4  ;;  %v4307_v28 = vshll.u32 %v6941_v0, 16  ;;  %v6948_v0 = vld [vmem:[%s8472_s24 + $0xbc] sm:$0xf] }
 0x10d   : > { %v4282_v25 = vsel %vm8503_vm3, %v4277_v10, %v4281_v3  ;;  %v4296_v30 = vor.u32 %v4295_v22, %v4291_v21  ;;  %v4313_v31 = vshll.u32 %v6942_v17, 16  ;;  %v4317_v4 = vshrl.u32 %v6942_v17, 16  ;;  %v8350_v22 = vld [vmem:[%s8472_s24 + $0x8c] sm:$0xf] }
 0x10e   : > { %v7042_v29 = vcombine.low %v4272_v20, %v4282_v25  ;;  %v4292_v33 = vsel %vm8503_vm3, %v4287_v26, %v4291_v21  ;;  %v4309_v35 = vrot.slane %v4307_v28, 5  ;;  %v4323_v36 = vshll.u32 %v6943_v24, 16  ;;  %v6950_v25 = vld [vmem:[%s8472_s24 + $0xc4] sm:$0x1] }
 0x10f   : > { %v4327_v37 = vshrl.u32 %v6943_v24, 16  ;;  %v4297_v39 = vrot.slane %v4296_v30, 4  ;;  %v4315_v40 = vrot.slane %v4313_v31, 5  ;;  %v4319_v41 = vrot.slane %v4317_v4, 4  ;;  %v6951_v31 = vld [vmem:[%s8472_s24 + $0xc8] sm:$0xf] }
 0x110   : > { %7850 = vmatprep.mubr.msk.bf16.mxu0 %vm1489_vm2, %v7042_v29  ;;  %v6622_v19 = vcombine.low %v8346_v11, %v8347_v12  ;;  %7647 = vmatmul.mubr.msk.bf16.gmra.mrb[20].mxu1 %vm1489_vm2, %v6621_v16  ;;  %v4310_v42 = vor.u32 %v4309_v35, %v4306_v27  ;;  %v4325_v43 = vrot.slane %v4323_v36, 5  ;;  %v4333_v45 = vshll.u32 %v6944_v32, 16  ;;  %v6952_v36 = vld [vmem:[%s8472_s24 + $0xcc] sm:$0xf] }
 0x111   : > { %v4329_v44 = vrot.slane %v4327_v37, 4  ;;  %v4302_v46 = vsel %vm8503_vm3, %v4297_v39, %v4301_v23  ;;  %v4320_v47 = vor.u32 %v4319_v41, %v4315_v40  ;;  %v4337_v48 = vshrl.u32 %v6944_v32, 16  ;;  %v8351_v23 = vld [vmem:[%s8472_s24 + $0x90] sm:$0xf]  ;;  %v8353_v41 = vld [vmem:[%s8472_s24 + $0x98] sm:$0xf] }
 0x112   : > { %7650 = vmatprep.mubr.msk.bf16.mxu1 %vm1489_vm2, %v6622_v19  ;;  %v4343_v49 = vshll.u32 %v6945_v38, 16  ;;  %v7043_v51 = vcombine.low %v4292_v33, %v4302_v46  ;;  %v4311_v52 = vrot.slane %v4310_v42, 4  ;;  %v4335_v54 = vrot.slane %v4333_v45, 5  ;;  %v6953_v42 = vld [vmem:[%s8472_s24 + $0xd0] sm:$0xf] }
 0x113   : > { %v4330_v53 = vor.u32 %v4329_v44, %v4325_v43  ;;  %v4321_v56 = vrot.slane %v4320_v47, 4  ;;  %v4339_v57 = vrot.slane %v4337_v48, 4  ;;  %v6623_v61 = vcombine.low %v8348_v59, %v8349_v60 }
 0x114   : > { %v4345_v58 = vrot.slane %v4343_v49, 5  ;;  %7851 = vmatmul.mubr.msk.bf16.gmra.mrb[24].mxu0 %vm1489_vm2, %v7043_v51  ;;  %v4316_v62 = vsel %vm8503_vm3, %v4311_v52, %v4315_v40  ;;  %v4348_v1 = vshrl.u32 %v6946_v50, 16  ;;  %v4351_v2 = vshll.u32 %v6946_v50, 16  ;;  %v8352_v40 = vld [vmem:[%s8472_s24 + $0x94] sm:$0xf] }
 0x115   : > { %v4331_v63 = vrot.slane %v4330_v53, 4  ;;  %v4326_v3 = vsel %vm8503_vm3, %v4321_v56, %v4325_v43  ;;  %v4340_v5 = vor.u32 %v4339_v57, %v4335_v54  ;;  %v4357_v6 = vshll.u32 %v6947_v55, 16  ;;  %v6954_v53 = vld [vmem:[%s8472_s24 + $0xd4] sm:$0xf] }
 0x116   : > { %v4361_v7 = vshrl.u32 %v6947_v55, 16  ;;  %v7044_v9 = vcombine.low %v4316_v62, %v4326_v3  ;;  %v4350_v13 = vrot.slane %v4348_v1, 4  ;;  %v4353_v14 = vrot.slane %v4351_v2, 5  ;;  %v8355_v62 = vld [vmem:[%s8472_s24 + $0xa4] sm:$0xf] }
 0x117   : > { %v4336_v10 = vsel %vm8503_vm3, %v4331_v63, %v4335_v54  ;;  %v4341_v15 = vrot.slane %v4340_v5, 4  ;;  %v4359_v16 = vrot.slane %v4357_v6, 5  ;;  %v4367_v18 = vshll.u32 %v6948_v0, 16  ;;  %v6956_v6 = vld [vmem:[%s8472_s24 + $0xdc] sm:$0xf] }
 0x118   : > { %v4363_v17 = vrot.slane %v4361_v7, 4  ;;  %7854 = vmatprep.mubr.msk.bf16.mxu0 %vm1489_vm2, %v7044_v9  ;;  %7651 = vmatmul.mubr.msk.bf16.gmra.mrb[24].mxu1 %vm1489_vm2, %v6623_v61  ;;  %v4354_v20 = vor.u32 %v4353_v14, %v4350_v13  ;;  %v4371_v21 = vshrl.u32 %v6948_v0, 16  ;;  %v6624_v24 = vcombine.low %v8350_v22, %v8351_v23  ;;  %v8354_v61 = vld [vmem:[%s8472_s24 + $0xa0] sm:$0xf]  ;;  %v6955_v0 = vld [vmem:[%s8472_s24 + $0xd8] sm:$0x1] }
 0x119   : > { %v4377_v26 = vshll.u32 %v6949_v8, 16  ;;  %v4346_v27 = vsel %vm8503_vm3, %v4341_v15, %v4345_v58  ;;  %v4369_v29 = vrot.slane %v4367_v18, 5  ;;  %v4381_v30 = vshrl.u32 %v6949_v8, 16  ;;  %v6957_v13 = vld [vmem:[%s8472_s24 + $0xe0] sm:$0xf] }
 0x11a   : > { %v4364_v28 = vor.u32 %v4363_v17, %v4359_v16  ;;  %v7045_v4 = vcombine.low %v4336_v10, %v4346_v27  ;;  %v4355_v32 = vrot.slane %v4354_v20, 4  ;;  %7654 = vmatprep.mubr.msk.bf16.mxu1 %vm1489_vm2, %v6624_v24  ;;  %v4373_v33 = vrot.slane %v4371_v21, 4  ;;  %v8356_v17 = vld [vmem:[%s8472_s24 + $0xa8] sm:$0xf]  ;;  %v8357_v18 = vld [vmem:[%s8472_s24 + $0xac] sm:$0xf] }
 0x11b   : > { %v4379_v35 = vrot.slane %v4377_v26, 5  ;;  %v4383_v38 = vrot.slane %v4381_v30, 4  ;;  %v4387_v39 = vshll.u32 %v6950_v25, 16  ;;  %v6625_v11 = vcombine.low %v8352_v40, %v8353_v41  ;;  %v6958_v24 = vld [vmem:[%s8472_s24 + $0xe4] sm:$0xf] }
 0x11c   : > { %v4365_v37 = vrot.slane %v4364_v28, 4  ;;  %7855 = vmatmul.mubr.msk.bf16.gmra.mrb[28].mxu0 %vm1489_vm2, %v7045_v4  ;;  %v4360_v12 = vsel %vm8503_vm3, %v4355_v32, %v4359_v16  ;;  %v4374_v19 = vor.u32 %v4373_v33, %v4369_v29  ;;  %v4392_v43 = vshrl.u32 %v6951_v31, 16 }
 0x11d   : > { %v4395_v44 = vshll.u32 %v6951_v31, 16  ;;  %v4384_v46 = vor.u32 %v4383_v38, %v4379_v35  ;;  %v4389_v47 = vrot.slane %v4387_v39, 5  ;;  %v4401_v48 = vshll.u32 %v6952_v36, 16  ;;  %v6959_v38 = vld [vmem:[%s8472_s24 + $0xe8] sm:$0xf] }
 0x11e   : > { %v4370_v45 = vsel %vm8503_vm3, %v4365_v37, %v4369_v29  ;;  %v4375_v50 = vrot.slane %v4374_v19, 4  ;;  %v4394_v51 = vrot.slane %v4392_v43, 4  ;;  %v4405_v56 = vshrl.u32 %v6952_v36, 16 }
 0x11f   : > { %v7046_v49 = vcombine.low %v4360_v12, %v4370_v45  ;;  %v4397_v52 = vrot.slane %v4395_v44, 5  ;;  %v4385_v54 = vrot.slane %v4384_v46, 4  ;;  %v4403_v55 = vrot.slane %v4401_v48, 5  ;;  %v6960_v12 = vld [vmem:[%s8472_s24 + $0xec] sm:$0x1] }
 0x120   : > { %v4411_v57 = vshll.u32 %v6953_v42, 16  ;;  %v4380_v58 = vsel %vm8503_vm3, %v4375_v50, %v4379_v35  ;;  %7655 = vmatmul.mubr.msk.bf16.gmra.mrb[28].mxu1 %vm1489_vm2, %v6625_v11  ;;  %v4415_v60 = vshrl.u32 %v6953_v42, 16  ;;  %v6626_v63 = vcombine.low %v8354_v61, %v8355_v62  ;;  %v8358_v44 = vld [vmem:[%s8472_s24 + $0xb4] sm:$0xf]  ;;  %v8359_v45 = vld [vmem:[%s8472_s24 + $0xb8] sm:$0xf] }
 0x121   : > { %7858 = vmatprep.mubr.msk.bf16.mxu0 %vm1489_vm2, %v7046_v49  ;;  %v4398_v59 = vor.u32 %v4397_v52, %v4394_v51  ;;  %v4390_v1 = vsel %vm8503_vm3, %v4385_v54, %v4389_v47  ;;  %v4407_v2 = vrot.slane %v4405_v56, 4  ;;  %v4421_v5 = vshll.u32 %v6954_v53, 16  ;;  %v6961_v51 = vld [vmem:[%s8472_s24 + $0xf0] sm:$0xf]  ;;  %v6962_v56 = vld [vmem:[%s8472_s24 + $0xf4] sm:$0xf] }
 0x122   : > { %v4413_v3 = vrot.slane %v4411_v57, 5  ;;  %v7047_v7 = vcombine.low %v4380_v58, %v4390_v1  ;;  %7658 = vmatprep.mubr.msk.bf16.mxu1 %vm1489_vm2, %v6626_v63  ;;  %v4417_v9 = vrot.slane %v4415_v60, 4  ;;  %v4425_v10 = vshrl.u32 %v6954_v53, 16  ;;  %v8360_v60 = vld [vmem:[%s8472_s24 + $0xbc] sm:$0xf] }
 0x123   : > { %v4399_v8 = vrot.slane %v4398_v59, 4  ;;  %v4408_v14 = vor.u32 %v4407_v2, %v4403_v55  ;;  %v4423_v15 = vrot.slane %v4421_v5, 5  ;;  %v4431_v16 = vshll.u32 %v6955_v0, 16  ;;  %v8361_v61 = vld [vmem:[%s8472_s24 + $0xc0] sm:$0xf] }
 0x124   : > { %v6627_v20 = vcombine.low %v8356_v17, %v8357_v18  ;;  %7859 = vmatmul.mubr.msk.bf16.gmra.mrb[32].mxu0 %vm1489_vm2, %v7047_v7  ;;  %v4418_v22 = vor.u32 %v4417_v9, %v4413_v3  ;;  %v4427_v23 = vrot.slane %v4425_v10, 4  ;;  %v4436_v25 = vshrl.u32 %v6956_v6, 16  ;;  %v6963_v2 = vld [vmem:[%s8472_s24 + $0xf8] sm:$0xf] }
 0x125   : > { %v4404_v21 = vsel %vm8503_vm3, %v4399_v8, %v4403_v55  ;;  %v4409_v26 = vrot.slane %v4408_v14, 4  ;;  %v4433_v27 = vrot.slane %v4431_v16, 5  ;;  %v4439_v28 = vshll.u32 %v6956_v6, 16 }
 0x126   : > { %v4445_v29 = vshll.u32 %v6957_v13, 16  ;;  %v4419_v30 = vrot.slane %v4418_v22, 4  ;;  %v4428_v31 = vor.u32 %v4427_v23, %v4423_v15  ;;  %v4438_v4 = vrot.slane %v4436_v25, 4  ;;  %v8363_v25 = vld [vmem:[%s8472_s24 + $0xcc] sm:$0xf] }
 0x127   : > { %v4449_v32 = vshrl.u32 %v6957_v13, 16  ;;  %v4414_v33 = vsel %vm8503_vm3, %v4409_v26, %v4413_v3  ;;  %v4441_v35 = vrot.slane %v4439_v28, 5  ;;  %v4455_v37 = vshll.u32 %v6958_v24, 16 }
 0x128   : > { %v4447_v36 = vrot.slane %v4445_v29, 5  ;;  %v7048_v39 = vcombine.low %v4404_v21, %v4414_v33  ;;  %v4424_v40 = vsel %vm8503_vm3, %v4419_v30, %v4423_v15  ;;  %v4429_v41 = vrot.slane %v4428_v31, 4  ;;  %7659 = vmatmul.mubr.msk.bf16.gmra.mrb[32].mxu1 %vm1489_vm2, %v6627_v20  ;;  %v6964_v15 = vld [vmem:[%s8472_s24 + $0xfc] sm:$0xf] }
 0x129   : > { %v4451_v11 = vrot.slane %v4449_v32, 4  ;;  %v4442_v19 = vor.u32 %v4441_v35, %v4438_v4  ;;  %v4457_v42 = vrot.slane %v4455_v37, 5  ;;  %v4459_v43 = vshrl.u32 %v6958_v24, 16  ;;  %v8362_v24 = vld [vmem:[%s8472_s24 + $0xc8] sm:$0xf] }
 0x12a   : > { %v6628_v46 = vcombine.low %v8358_v44, %v8359_v45  ;;  %7862 = vmatprep.mubr.msk.bf16.mxu0 %vm1489_vm2, %v7048_v39  ;;  %v4434_v47 = vsel %vm8503_vm3, %v4429_v41, %v4433_v27  ;;  %v4465_v49 = vshll.u32 %v6959_v38, 16  ;;  %v4469_v50 = vshrl.u32 %v6959_v38, 16  ;;  %v6965_v27 = vld [vmem:[%s8472_s24 + $0x100] sm:$0x1]  ;;  %v6966_v4 = vld [vmem:[%s8472_s24 + $0x104] sm:$0xf] }
 0x12b   : > { %v4452_v48 = vor.u32 %v4451_v11, %v4447_v36  ;;  %v7049_v52 = vcombine.low %v4424_v40, %v4434_v47  ;;  %v4443_v53 = vrot.slane %v4442_v19, 4  ;;  %v4461_v54 = vrot.slane %v4459_v43, 4  ;;  %v6967_v37 = vld [vmem:[%s8472_s24 + $0x108] sm:$0xf]  ;;  %v8364_v41 = vld [vmem:[%s8472_s24 + $0xd0] sm:$0xf] }
 0x12c   : > { %7662 = vmatprep.mubr.msk.bf16.mxu1 %vm1489_vm2, %v6628_v46  ;;  %v4475_v55 = vshll.u32 %v6960_v12, 16  ;;  %v4467_v58 = vrot.slane %v4465_v49, 5  ;;  %v4471_v59 = vrot.slane %v4469_v50, 4  ;;  %v6629_v62 = vcombine.low %v8360_v60, %v8361_v61  ;;  %v8365_v11 = vld [vmem:[%s8472_s24 + $0xd4] sm:$0xf] }
 0x12d   : > { %v4453_v57 = vrot.slane %v4452_v48, 4  ;;  %7863 = vmatmul.mubr.msk.bf16.gmra.mrb[36].mxu0 %vm1489_vm2, %v7049_v52  ;;  %v4448_v63 = vsel %vm8503_vm3, %v4443_v53, %v4447_v36  ;;  %v4462_v0 = vor.u32 %v4461_v54, %v4457_v42  ;;  %v4480_v3 = vshrl.u32 %v6961_v51, 16  ;;  %v6968_v47 = vld [vmem:[%s8472_s24 + $0x10c] sm:$0xf]  ;;  %v6969_v54 = vld [vmem:[%s8472_s24 + $0x110] sm:$0xf] }
 0x12e   : > { %v4477_v1 = vrot.slane %v4475_v55, 5  ;;  %v4472_v6 = vor.u32 %v4471_v59, %v4467_v58  ;;  %v4483_v7 = vshll.u32 %v6961_v51, 16  ;;  %v4489_v8 = vshll.u32 %v6962_v56, 16 }
 0x12f   : > { %v4458_v5 = vsel %vm8503_vm3, %v4453_v57, %v4457_v42  ;;  %v4463_v10 = vrot.slane %v4462_v0, 4  ;;  %v4482_v13 = vrot.slane %v4480_v3, 4  ;;  %v4493_v14 = vshrl.u32 %v6962_v56, 16 }
 0x130   : > { %v7050_v9 = vcombine.low %v4448_v63, %v4458_v5  ;;  %v4473_v16 = vrot.slane %v4472_v6, 4  ;;  %7663 = vmatmul.mubr.msk.bf16.gmra.mrb[36].mxu1 %vm1489_vm2, %v6629_v62  ;;  %v4485_v17 = vrot.slane %v4483_v7, 5  ;;  %v4491_v18 = vrot.slane %v4489_v8, 5  ;;  %v6970_v5 = vld [vmem:[%s8472_s24 + $0x114] sm:$0x1] }
 0x131   : > { %v4499_v20 = vshll.u32 %v6963_v2, 16  ;;  %v4468_v21 = vsel %vm8503_vm3, %v4463_v10, %v4467_v58  ;;  %v4495_v22 = vrot.slane %v4493_v14, 4  ;;  %v4503_v23 = vshrl.u32 %v6963_v2, 16  ;;  %v8367_v2 = vld [vmem:[%s8472_s24 + $0xe0] sm:$0xf] }
 0x132   : > { %7866 = vmatprep.mubr.msk.bf16.mxu0 %vm1489_vm2, %v7050_v9  ;;  %v6630_v26 = vcombine.low %v8362_v24, %v8363_v25  ;;  %v4478_v28 = vsel %vm8503_vm3, %v4473_v16, %v4477_v1  ;;  %v4486_v29 = vor.u32 %v4485_v17, %v4482_v13  ;;  %v4509_v31 = vshll.u32 %v6964_v15, 16  ;;  %v8366_v1 = vld [vmem:[%s8472_s24 + $0xdc] sm:$0xf]  ;;  %v6971_v13 = vld [vmem:[%s8472_s24 + $0x118] sm:$0xf] }
 0x133   : > { %v4501_v30 = vrot.slane %v4499_v20, 5  ;;  %v7051_v32 = vcombine.low %v4468_v21, %v4478_v28  ;;  %v4496_v33 = vor.u32 %v4495_v22, %v4491_v18  ;;  %v4505_v35 = vrot.slane %v4503_v23, 4  ;;  %v8368_v23 = vld [vmem:[%s8472_s24 + $0xe4] sm:$0xf]  ;;  %v8369_v24 = vld [vmem:[%s8472_s24 + $0xe8] sm:$0xf] }
 0x134   : > { %7666 = vmatprep.mubr.msk.bf16.mxu1 %vm1489_vm2, %v6630_v26  ;;  %v4513_v36 = vshrl.u32 %v6964_v15, 16  ;;  %v4487_v38 = vrot.slane %v4486_v29, 4  ;;  %v4511_v39 = vrot.slane %v4509_v31, 5  ;;  %v4519_v40 = vshll.u32 %v6965_v27, 16 }
 0x135   : > { %v6631_v12 = vcombine.low %v8364_v41, %v8365_v11  ;;  %7867 = vmatmul.mubr.msk.bf16.gmra.mrb[40].mxu0 %vm1489_vm2, %v7051_v32  ;;  %v4497_v19 = vrot.slane %v4496_v33, 4  ;;  %v4506_v42 = vor.u32 %v4505_v35, %v4501_v30  ;;  %v4524_v44 = vshrl.u32 %v6966_v4, 16  ;;  %v6973_v32 = vld [vmem:[%s8472_s24 + $0x120] sm:$0xf] }
 0x136   : > { %v4515_v43 = vrot.slane %v4513_v36, 4  ;;  %v4492_v45 = vsel %vm8503_vm3, %v4487_v38, %v4491_v18  ;;  %v4521_v46 = vrot.slane %v4519_v40, 5  ;;  %v4527_v48 = vshll.u32 %v6966_v4, 16  ;;  %v6972_v18 = vld [vmem:[%s8472_s24 + $0x11c] sm:$0xf] }
 0x137   : > { %v4533_v49 = vshll.u32 %v6967_v37, 16  ;;  %v4502_v50 = vsel %vm8503_vm3, %v4497_v19, %v4501_v30  ;;  %v4507_v51 = vrot.slane %v4506_v42, 4  ;;  %v4526_v53 = vrot.slane %v4524_v44, 4 }
 0x138   : > { %v4516_v52 = vor.u32 %v4515_v43, %v4511_v39  ;;  %v7052_v55 = vcombine.low %v4492_v45, %v4502_v50  ;;  %7667 = vmatmul.mubr.msk.bf16.gmra.mrb[40].mxu1 %vm1489_vm2, %v6631_v12  ;;  %v4529_v56 = vrot.slane %v4527_v48, 5  ;;  %v4537_v58 = vshrl.u32 %v6967_v37, 16  ;;  %v6975_v45 = vld [vmem:[%s8472_s24 + $0x128] sm:$0x1]  ;;  %v8371_v48 = vld [vmem:[%s8472_s24 + $0xf4] sm:$0xf] }
 0x139   : > { %v4535_v57 = vrot.slane %v4533_v49, 5  ;;  %v4512_v59 = vsel %vm8503_vm3, %v4507_v51, %v4511_v39  ;;  %v4543_v61 = vshll.u32 %v6968_v47, 16  ;;  %v4547_v62 = vshrl.u32 %v6968_v47, 16  ;;  %v6974_v39 = vld [vmem:[%s8472_s24 + $0x124] sm:$0xf] }
 0x13a   : > { %v4517_v60 = vrot.slane %v4516_v52, 4  ;;  %7870 = vmatprep.mubr.msk.bf16.mxu0 %vm1489_vm2, %v7052_v55  ;;  %v4530_v63 = vor.u32 %v4529_v56, %v4526_v53  ;;  %v4539_v0 = vrot.slane %v4537_v58, 4  ;;  %v6632_v3 = vcombine.low %v8366_v1, %v8367_v2  ;;  %v8370_v47 = vld [vmem:[%s8472_s24 + $0xf0] sm:$0xf]  ;;  %v6976_v52 = vld [vmem:[%s8472_s24 + $0x12c] sm:$0xf] }
 0x13b   : > { %v4553_v6 = vshll.u32 %v6969_v54, 16  ;;  %v4545_v8 = vrot.slane %v4543_v61, 5  ;;  %v4549_v9 = vrot.slane %v4547_v62, 4  ;;  %v4557_v10 = vshrl.u32 %v6969_v54, 16  ;;  %v6977_v61 = vld [vmem:[%s8472_s24 + $0x130] sm:$0xf] }
 0x13c   : > { %v4522_v7 = vsel %vm8503_vm3, %v4517_v60, %v4521_v46  ;;  %v4531_v15 = vrot.slane %v4530_v63, 4  ;;  %v4540_v16 = vor.u32 %v4539_v0, %v4535_v57  ;;  %7670 = vmatprep.mubr.msk.bf16.mxu1 %vm1489_vm2, %v6632_v3  ;;  %v4563_v22 = vshll.u32 %v6970_v5, 16  ;;  %v8372_v0 = vld [vmem:[%s8472_s24 + $0xf8] sm:$0xf]  ;;  %v8373_v1 = vld [vmem:[%s8472_s24 + $0xfc] sm:$0xf] }
 0x13d   : > { %v7053_v14 = vcombine.low %v4512_v59, %v4522_v7  ;;  %v4555_v17 = vrot.slane %v4553_v6, 5  ;;  %v4550_v20 = vor.u32 %v4549_v9, %v4545_v8  ;;  %v4559_v21 = vrot.slane %v4557_v10, 4 }
 0x13e   : > { %v6633_v25 = vcombine.low %v8368_v23, %v8369_v24  ;;  %v4536_v26 = vsel %vm8503_vm3, %v4531_v15, %v4535_v57  ;;  %v4541_v27 = vrot.slane %v4540_v16, 4  ;;  %v4568_v28 = vshrl.u32 %v6971_v13, 16 }
 0x13f   : > { %7871 = vmatmul.mubr.msk.bf16.gmra.mrb[44].mxu0 %vm1489_vm2, %v7053_v14  ;;  %v4571_v29 = vshll.u32 %v6971_v13, 16  ;;  %v4551_v30 = vrot.slane %v4550_v20, 4  ;;  %v4560_v31 = vor.u32 %v4559_v21, %v4555_v17  ;;  %v4565_v4 = vrot.slane %v4563_v22, 5  ;;  %v6979_v21 = vld [vmem:[%s8472_s24 + $0x138] sm:$0xf] }
 0x140   : > { %v4577_v33 = vshll.u32 %v6972_v18, 16  ;;  %v4546_v35 = vsel %vm8503_vm3, %v4541_v27, %v4545_v8  ;;  %7671 = vmatmul.mubr.msk.bf16.gmra.mrb[44].mxu1 %vm1489_vm2, %v6633_v25  ;;  %v4570_v36 = vrot.slane %v4568_v28, 4  ;;  %v4581_v38 = vshrl.u32 %v6972_v18, 16  ;;  %v6978_v8 = vld [vmem:[%s8472_s24 + $0x134] sm:$0xf] }
 0x141   : > { %v4573_v37 = vrot.slane %v4571_v29, 5  ;;  %v7054_v40 = vcombine.low %v4536_v26, %v4546_v35  ;;  %v4556_v41 = vsel %vm8503_vm3, %v4551_v30, %v4555_v17  ;;  %v4561_v11 = vrot.slane %v4560_v31, 4  ;;  %v6980_v26 = vld [vmem:[%s8472_s24 + $0x13c] sm:$0x1]  ;;  %v8374_v30 = vld [vmem:[%s8472_s24 + $0x104] sm:$0xf] }
 0x142   : > { %v4579_v12 = vrot.slane %v4577_v33, 5  ;;  %v4583_v42 = vrot.slane %v4581_v38, 4  ;;  %v4587_v43 = vshll.u32 %v6973_v32, 16  ;;  %v4591_v44 = vshrl.u32 %v6973_v32, 16  ;;  %v8375_v31 = vld [vmem:[%s8472_s24 + $0x108] sm:$0xf] }
 0x143   : > { %v4574_v19 = vor.u32 %v4573_v37, %v4570_v36  ;;  %7874 = vmatprep.mubr.msk.bf16.mxu0 %vm1489_vm2, %v7054_v40  ;;  %v4566_v46 = vsel %vm8503_vm3, %v4561_v11, %v4565_v4  ;;  %v6634_v49 = vcombine.low %v8370_v47, %v8371_v48  ;;  %v4597_v50 = vshll.u32 %v6974_v39, 16  ;;  %v6981_v32 = vld [vmem:[%s8472_s24 + $0x140] sm:$0xf] }
 0x144   : > { %v4601_v51 = vshrl.u32 %v6974_v39, 16  ;;  %v7055_v53 = vcombine.low %v4556_v41, %v4566_v46  ;;  %v4584_v55 = vor.u32 %v4583_v42, %v4579_v12  ;;  %v4589_v56 = vrot.slane %v4587_v43, 5  ;;  %v8377_v42 = vld [vmem:[%s8472_s24 + $0x110] sm:$0xf] }
 0x145   : > { %v4575_v54 = vrot.slane %v4574_v19, 4  ;;  %7674 = vmatprep.mubr.msk.bf16.mxu1 %vm1489_vm2, %v6634_v49  ;;  %v4593_v57 = vrot.slane %v4591_v44, 4  ;;  %v4599_v58 = vrot.slane %v4597_v50, 5  ;;  %v4607_v60 = vshll.u32 %v6975_v45, 16  ;;  %v8376_v19 = vld [vmem:[%s8472_s24 + $0x10c] sm:$0xf] }
 0x146   : > { %v4603_v59 = vrot.slane %v4601_v51, 4  ;;  %v4585_v63 = vrot.slane %v4584_v55, 4  ;;  %v6635_v2 = vcombine.low %v8372_v0, %v8373_v1  ;;  %v4612_v3 = vshrl.u32 %v6976_v52, 16  ;;  %v6982_v44 = vld [vmem:[%s8472_s24 + $0x144] sm:$0xf] }
 0x147   : > { %7875 = vmatmul.mubr.msk.bf16.gmra.mrb[48].mxu0 %vm1489_vm2, %v7055_v53  ;;  %v4580_v62 = vsel %vm8503_vm3, %v4575_v54, %v4579_v12  ;;  %v4594_v5 = vor.u32 %v4593_v57, %v4589_v56  ;;  %v4609_v7 = vrot.slane %v4607_v60, 5  ;;  %v4615_v9 = vshll.u32 %v6976_v52, 16  ;;  %v6983_v50 = vld [vmem:[%s8472_s24 + $0x148] sm:$0xf]  ;;  %v6985_v0 = vld [vmem:[%s8472_s24 + $0x150] sm:$0x1] }
 0x148   : > { %v4604_v6 = vor.u32 %v4603_v59, %v4599_v58  ;;  %v4590_v10 = vsel %vm8503_vm3, %v4585_v63, %v4589_v56  ;;  %7675 = vmatmul.mubr.msk.bf16.gmra.mrb[48].mxu1 %vm1489_vm2, %v6635_v2  ;;  %v4614_v13 = vrot.slane %v4612_v3, 4  ;;  %v4621_v14 = vshll.u32 %v6977_v61, 16  ;;  %v6984_v59 = vld [vmem:[%s8472_s24 + $0x14c] sm:$0xf] }
 0x149   : > { %v4625_v15 = vshrl.u32 %v6977_v61, 16  ;;  %v7056_v16 = vcombine.low %v4580_v62, %v4590_v10  ;;  %v4595_v17 = vrot.slane %v4594_v5, 4  ;;  %v4617_v20 = vrot.slane %v4615_v9, 5  ;;  %v8378_v5 = vld [vmem:[%s8472_s24 + $0x118] sm:$0xf] }
 0x14a   : > { %v4605_v18 = vrot.slane %v4604_v6, 4  ;;  %v4623_v22 = vrot.slane %v4621_v14, 5  ;;  %v4631_v24 = vshll.u32 %v6978_v8, 16  ;;  %v4635_v25 = vshrl.u32 %v6978_v8, 16  ;;  %v8379_v6 = vld [vmem:[%s8472_s24 + $0x11c] sm:$0xf] }
 0x14b   : > { %v4627_v23 = vrot.slane %v4625_v15, 4  ;;  %7878 = vmatprep.mubr.msk.bf16.mxu0 %vm1489_vm2, %v7056_v16  ;;  %v4600_v27 = vsel %vm8503_vm3, %v4595_v17, %v4599_v58  ;;  %v4618_v29 = vor.u32 %v4617_v20, %v4614_v13  ;;  %v6636_v4 = vcombine.low %v8374_v30, %v8375_v31 }
 0x14c   : > { %v4610_v28 = vsel %vm8503_vm3, %v4605_v18, %v4609_v7  ;;  %v4633_v36 = vrot.slane %v4631_v24, 5  ;;  %v4637_v37 = vrot.slane %v4635_v25, 4  ;;  %v4641_v39 = vshll.u32 %v6979_v21, 16  ;;  %v6986_v18 = vld [vmem:[%s8472_s24 + $0x154] sm:$0xf] }
 0x14d   : > { %v7057_v33 = vcombine.low %v4600_v27, %v4610_v28  ;;  %v4628_v35 = vor.u32 %v4627_v23, %v4623_v22  ;;  %v4619_v38 = vrot.slane %v4618_v29, 4  ;;  %7678 = vmatprep.mubr.msk.bf16.mxu1 %vm1489_vm2, %v6636_v4  ;;  %v4645_v40 = vshrl.u32 %v6979_v21, 16  ;;  %v6987_v24 = vld [vmem:[%s8472_s24 + $0x158] sm:$0xf]  ;;  %v8380_v28 = vld [vmem:[%s8472_s24 + $0x120] sm:$0xf] }
 0x14e   : > { %v4651_v41 = vshll.u32 %v6980_v26, 16  ;;  %v4638_v12 = vor.u32 %v4637_v37, %v4633_v36  ;;  %v6637_v43 = vcombine.low %v8376_v19, %v8377_v42  ;;  %v4656_v45 = vshrl.u32 %v6981_v32, 16  ;;  %v8381_v29 = vld [vmem:[%s8472_s24 + $0x124] sm:$0xf] }
 0x14f   : > { %7879 = vmatmul.mubr.msk.bf16.gmra.mrb[52].mxu0 %vm1489_vm2, %v7057_v33  ;;  %v4629_v11 = vrot.slane %v4628_v35, 4  ;;  %v4624_v46 = vsel %vm8503_vm3, %v4619_v38, %v4623_v22  ;;  %v4643_v47 = vrot.slane %v4641_v39, 5  ;;  %v4647_v48 = vrot.slane %v4645_v40, 4  ;;  %v6989_v40 = vld [vmem:[%s8472_s24 + $0x160] sm:$0xf] }
 0x150   : > { %v4653_v49 = vrot.slane %v4651_v41, 5  ;;  %v4639_v52 = vrot.slane %v4638_v12, 4  ;;  %7679 = vmatmul.mubr.msk.bf16.gmra.mrb[52].mxu1 %vm1489_vm2, %v6637_v43  ;;  %v4658_v53 = vrot.slane %v4656_v45, 4  ;;  %v4659_v54 = vshll.u32 %v6981_v32, 16  ;;  %v6988_v32 = vld [vmem:[%s8472_s24 + $0x15c] sm:$0xf] }
 0x151   : > { %v4634_v51 = vsel %vm8503_vm3, %v4629_v11, %v4633_v36  ;;  %v4648_v56 = vor.u32 %v4647_v48, %v4643_v47  ;;  %v4665_v57 = vshll.u32 %v6982_v44, 16  ;;  %v4669_v58 = vshrl.u32 %v6982_v44, 16  ;;  %v8382_v48 = vld [vmem:[%s8472_s24 + $0x12c] sm:$0xf] }
 0x152   : > { %v7058_v55 = vcombine.low %v4624_v46, %v4634_v51  ;;  %v4644_v60 = vsel %vm8503_vm3, %v4639_v52, %v4643_v47  ;;  %v4661_v61 = vrot.slane %v4659_v54, 5  ;;  %v4675_v62 = vshll.u32 %v6983_v50, 16  ;;  %v6990_v51 = vld [vmem:[%s8472_s24 + $0x164] sm:$0x1] }
 0x153   : > { %v4679_v63 = vshrl.u32 %v6983_v50, 16  ;;  %v4649_v1 = vrot.slane %v4648_v56, 4  ;;  %v4667_v2 = vrot.slane %v4665_v57, 5  ;;  %v4671_v3 = vrot.slane %v4669_v58, 4  ;;  %v6991_v57 = vld [vmem:[%s8472_s24 + $0x168] sm:$0xf] }
 0x154   : > { %7882 = vmatprep.mubr.msk.bf16.mxu0 %vm1489_vm2, %v7058_v55  ;;  %v6638_v7 = vcombine.low %v8378_v5, %v8379_v6  ;;  %v4662_v8 = vor.u32 %v4661_v61, %v4658_v53  ;;  %v4677_v9 = vrot.slane %v4675_v62, 5  ;;  %v4685_v13 = vshll.u32 %v6984_v59, 16  ;;  %v6992_v62 = vld [vmem:[%s8472_s24 + $0x16c] sm:$0xf] }
 0x155   : > { %v4681_v10 = vrot.slane %v4679_v63, 4  ;;  %v4654_v14 = vsel %vm8503_vm3, %v4649_v1, %v4653_v49  ;;  %v4672_v15 = vor.u32 %v4671_v3, %v4667_v2  ;;  %v4689_v16 = vshrl.u32 %v6984_v59, 16  ;;  %v8383_v49 = vld [vmem:[%s8472_s24 + $0x130] sm:$0xf]  ;;  %v8385_v3 = vld [vmem:[%s8472_s24 + $0x138] sm:$0xf] }
 0x156   : > { %7682 = vmatprep.mubr.msk.bf16.mxu1 %vm1489_vm2, %v6638_v7  ;;  %v4695_v17 = vshll.u32 %v6985_v0, 16  ;;  %v7059_v20 = vcombine.low %v4644_v60, %v4654_v14  ;;  %v4663_v21 = vrot.slane %v4662_v8, 4  ;;  %v4687_v23 = vrot.slane %v4685_v13, 5  ;;  %v6993_v8 = vld [vmem:[%s8472_s24 + $0x170] sm:$0xf] }
 0x157   : > { %v4682_v22 = vor.u32 %v4681_v10, %v4677_v9  ;;  %v4673_v25 = vrot.slane %v4672_v15, 4  ;;  %v4691_v26 = vrot.slane %v4689_v16, 4  ;;  %v6639_v30 = vcombine.low %v8380_v28, %v8381_v29 }
 0x158   : > { %v4697_v27 = vrot.slane %v4695_v17, 5  ;;  %7883 = vmatmul.mubr.msk.bf16.gmra.mrb[56].mxu0 %vm1489_vm2, %v7059_v20  ;;  %v4668_v31 = vsel %vm8503_vm3, %v4663_v21, %v4667_v2  ;;  %v4700_v33 = vshrl.u32 %v6986_v18, 16  ;;  %v4703_v35 = vshll.u32 %v6986_v18, 16  ;;  %v8384_v2 = vld [vmem:[%s8472_s24 + $0x134] sm:$0xf] }
 0x159   : > { %v4683_v4 = vrot.slane %v4682_v22, 4  ;;  %v4678_v36 = vsel %vm8503_vm3, %v4673_v25, %v4677_v9  ;;  %v4692_v37 = vor.u32 %v4691_v26, %v4687_v23  ;;  %7683 = vmatmul.mubr.msk.bf16.gmra.mrb[56].mxu1 %vm1489_vm2, %v6639_v30  ;;  %v4709_v38 = vshll.u32 %v6987_v24, 16  ;;  %v6994_v22 = vld [vmem:[%s8472_s24 + $0x174] sm:$0xf]  ;;  %v8386_v30 = vld [vmem:[%s8472_s24 + $0x140] sm:$0xf] }
 0x15a   : > { %v4713_v39 = vshrl.u32 %v6987_v24, 16  ;;  %v7060_v41 = vcombine.low %v4668_v31, %v4678_v36  ;;  %v4702_v12 = vrot.slane %v4700_v33, 4  ;;  %v4705_v19 = vrot.slane %v4703_v35, 5  ;;  %v8387_v31 = vld [vmem:[%s8472_s24 + $0x144] sm:$0xf] }
 0x15b   : > { %v4688_v11 = vsel %vm8503_vm3, %v4683_v4, %v4687_v23  ;;  %v4693_v42 = vrot.slane %v4692_v37, 4  ;;  %v4711_v43 = vrot.slane %v4709_v38, 5  ;;  %v4719_v45 = vshll.u32 %v6988_v32, 16  ;;  %v6996_v38 = vld [vmem:[%s8472_s24 + $0x17c] sm:$0xf] }
 0x15c   : > { %v4715_v44 = vrot.slane %v4713_v39, 4  ;;  %7886 = vmatprep.mubr.msk.bf16.mxu0 %vm1489_vm2, %v7060_v41  ;;  %v4706_v46 = vor.u32 %v4705_v19, %v4702_v12  ;;  %v4723_v47 = vshrl.u32 %v6988_v32, 16  ;;  %v6640_v50 = vcombine.low %v8382_v48, %v8383_v49  ;;  %v6995_v32 = vld [vmem:[%s8472_s24 + $0x178] sm:$0x1]  ;;  %v6997_v12 = vld [vmem:[%s8472_s24 + $0x180] sm:$0xf] }
 0x15d   : > { %v4729_v52 = vshll.u32 %v6989_v40, 16  ;;  %v4698_v53 = vsel %vm8503_vm3, %v4693_v42, %v4697_v27  ;;  %v4721_v55 = vrot.slane %v4719_v45, 5  ;;  %v4733_v56 = vshrl.u32 %v6989_v40, 16  ;;  %v8389_v45 = vld [vmem:[%s8472_s24 + $0x14c] sm:$0xf] }
 0x15e   : > { %v4716_v54 = vor.u32 %v4715_v44, %v4711_v43  ;;  %v7061_v58 = vcombine.low %v4688_v11, %v4698_v53  ;;  %v4707_v59 = vrot.slane %v4706_v46, 4  ;;  %7686 = vmatprep.mubr.msk.bf16.mxu1 %vm1489_vm2, %v6640_v50  ;;  %v4725_v60 = vrot.slane %v4723_v47, 4  ;;  %v8388_v44 = vld [vmem:[%s8472_s24 + $0x148] sm:$0xf]  ;;  %v6998_v50 = vld [vmem:[%s8472_s24 + $0x184] sm:$0xf] }
 0x15f   : > { %v4731_v61 = vrot.slane %v4729_v52, 5  ;;  %v4735_v0 = vrot.slane %v4733_v56, 4  ;;  %v4739_v1 = vshll.u32 %v6990_v51, 16  ;;  %v6641_v5 = vcombine.low %v8384_v2, %v8385_v3 }
 0x160   : > { %v4717_v63 = vrot.slane %v4716_v54, 4  ;;  %7887 = vmatmul.mubr.msk.bf16.gmra.mrb[60].mxu0 %vm1489_vm2, %v7061_v58  ;;  %v4712_v6 = vsel %vm8503_vm3, %v4707_v59, %v4711_v43  ;;  %v4726_v7 = vor.u32 %v4725_v60, %v4721_v55  ;;  %v4744_v9 = vshrl.u32 %v6991_v57, 16 }
 0x161   : > { %v4747_v10 = vshll.u32 %v6991_v57, 16  ;;  %v4736_v14 = vor.u32 %v4735_v0, %v4731_v61  ;;  %v4741_v15 = vrot.slane %v4739_v1, 5  ;;  %7687 = vmatmul.mubr.msk.bf16.gmra.mrb[60].mxu1 %vm1489_vm2, %v6641_v5  ;;  %v4753_v16 = vshll.u32 %v6992_v62, 16  ;;  %v6999_v0 = vld [vmem:[%s8472_s24 + $0x188] sm:$0xf] }
 0x162   : > { %v4722_v13 = vsel %vm8503_vm3, %v4717_v63, %v4721_v55  ;;  %v4727_v18 = vrot.slane %v4726_v7, 4  ;;  %v4746_v20 = vrot.slane %v4744_v9, 4  ;;  %v4757_v25 = vshrl.u32 %v6992_v62, 16 }
 0x163   : > { %v7062_v17 = vcombine.low %v4712_v6, %v4722_v13  ;;  %v4749_v21 = vrot.slane %v4747_v10, 5  ;;  %v4737_v23 = vrot.slane %v4736_v14, 4  ;;  %v4755_v24 = vrot.slane %v4753_v16, 5  ;;  %v7000_v6 = vld [vmem:[%s8472_s24 + $0x18c] sm:$0x1] }
 0x164   : > { %v4763_v26 = vshll.u32 %v6993_v8, 16  ;;  %v4732_v27 = vsel %vm8503_vm3, %v4727_v18, %v4731_v61  ;;  %v4767_v29 = vshrl.u32 %v6993_v8, 16  ;;  %v6642_v4 = vcombine.low %v8386_v30, %v8387_v31  ;;  %v8390_v10 = vld [vmem:[%s8472_s24 + $0x154] sm:$0xf]  ;;  %v8391_v13 = vld [vmem:[%s8472_s24 + $0x158] sm:$0xf] }
 0x165   : > { %7890 = vmatprep.mubr.msk.bf16.mxu0 %vm1489_vm2, %v7062_v17  ;;  %v4750_v28 = vor.u32 %v4749_v21, %v4746_v20  ;;  %v4742_v33 = vsel %vm8503_vm3, %v4737_v23, %v4741_v15  ;;  %v4759_v35 = vrot.slane %v4757_v25, 4  ;;  %v4773_v37 = vshll.u32 %v6994_v22, 16  ;;  %v7001_v20 = vld [vmem:[%s8472_s24 + $0x190] sm:$0xf]  ;;  %v7002_v25 = vld [vmem:[%s8472_s24 + $0x194] sm:$0xf] }
 0x166   : > { %v4765_v36 = vrot.slane %v4763_v26, 5  ;;  %v7063_v39 = vcombine.low %v4732_v27, %v4742_v33  ;;  %7690 = vmatprep.mubr.msk.bf16.mxu1 %vm1489_vm2, %v6642_v4  ;;  %v4769_v41 = vrot.slane %v4767_v29, 4  ;;  %v4777_v11 = vshrl.u32 %v6994_v22, 16  ;;  %v8392_v29 = vld [vmem:[%s8472_s24 + $0x15c] sm:$0xf] }
 0x167   : > { %v4751_v40 = vrot.slane %v4750_v28, 4  ;;  %v4760_v19 = vor.u32 %v4759_v35, %v4755_v24  ;;  %v4775_v42 = vrot.slane %v4773_v37, 5  ;;  %v4783_v43 = vshll.u32 %v6995_v32, 16  ;;  %v8393_v30 = vld [vmem:[%s8472_s24 + $0x160] sm:$0xf] }
 0x168   : > { %v6643_v46 = vcombine.low %v8388_v44, %v8389_v45  ;;  %7891 = vmatmul.mubr.msk.bf16.gmra.mrb[64].mxu0 %vm1489_vm2, %v7063_v39  ;;  %v4770_v48 = vor.u32 %v4769_v41, %v4765_v36  ;;  %v4779_v49 = vrot.slane %v4777_v11, 4  ;;  %v4788_v51 = vshrl.u32 %v6996_v38, 16  ;;  %v7003_v35 = vld [vmem:[%s8472_s24 + $0x198] sm:$0xf] }
 0x169   : > { %v4756_v47 = vsel %vm8503_vm3, %v4751_v40, %v4755_v24  ;;  %v4761_v52 = vrot.slane %v4760_v19, 4  ;;  %v4785_v53 = vrot.slane %v4783_v43, 5  ;;  %v4791_v54 = vshll.u32 %v6996_v38, 16 }
 0x16a   : > { %7691 = vmatmul.mubr.msk.bf16.gmra.mrb[64].mxu1 %vm1489_vm2, %v6643_v46  ;;  %v4797_v55 = vshll.u32 %v6997_v12, 16  ;;  %v4771_v56 = vrot.slane %v4770_v48, 4  ;;  %v4780_v57 = vor.u32 %v4779_v49, %v4775_v42  ;;  %v4790_v58 = vrot.slane %v4788_v51, 4  ;;  %v8395_v51 = vld [vmem:[%s8472_s24 + $0x16c] sm:$0xf] }
 0x16b   : > { %v4801_v59 = vshrl.u32 %v6997_v12, 16  ;;  %v4766_v60 = vsel %vm8503_vm3, %v4761_v52, %v4765_v36  ;;  %v4793_v61 = vrot.slane %v4791_v54, 5  ;;  %v4807_v63 = vshll.u32 %v6998_v50, 16 }
 0x16c   : > { %v4799_v62 = vrot.slane %v4797_v55, 5  ;;  %v7064_v1 = vcombine.low %v4756_v47, %v4766_v60  ;;  %v4776_v2 = vsel %vm8503_vm3, %v4771_v56, %v4775_v42  ;;  %v4781_v3 = vrot.slane %v4780_v57, 4  ;;  %v7004_v42 = vld [vmem:[%s8472_s24 + $0x19c] sm:$0xf] }
 0x16d   : > { %v4803_v5 = vrot.slane %v4801_v59, 4  ;;  %v4794_v7 = vor.u32 %v4793_v61, %v4790_v58  ;;  %v4809_v8 = vrot.slane %v4807_v63, 5  ;;  %v4811_v9 = vshrl.u32 %v6998_v50, 16  ;;  %v8394_v50 = vld [vmem:[%s8472_s24 + $0x168] sm:$0xf] }
 0x16e   : > { %v6644_v14 = vcombine.low %v8390_v10, %v8391_v13  ;;  %7894 = vmatprep.mubr.msk.bf16.mxu0 %vm1489_vm2, %v7064_v1  ;;  %v4786_v15 = vsel %vm8503_vm3, %v4781_v3, %v4785_v53  ;;  %v4817_v17 = vshll.u32 %v6999_v0, 16  ;;  %v4821_v18 = vshrl.u32 %v6999_v0, 16  ;;  %v7005_v53 = vld [vmem:[%s8472_s24 + $0x1a0] sm:$0x1]  ;;  %v7006_v58 = vld [vmem:[%s8472_s24 + $0x1a4] sm:$0xf] }
 0x16f   : > { %v4804_v16 = vor.u32 %v4803_v5, %v4799_v62  ;;  %v7065_v21 = vcombine.low %v4776_v2, %v4786_v15  ;;  %v4795_v22 = vrot.slane %v4794_v7, 4  ;;  %v4813_v23 = vrot.slane %v4811_v9, 4  ;;  %v7007_v63 = vld [vmem:[%s8472_s24 + $0x1a8] sm:$0xf]  ;;  %v8396_v3 = vld [vmem:[%s8472_s24 + $0x170] sm:$0xf] }
 0x170   : > { %7694 = vmatprep.mubr.msk.bf16.mxu1 %vm1489_vm2, %v6644_v14  ;;  %v4827_v24 = vshll.u32 %v7000_v6, 16  ;;  %v4819_v27 = vrot.slane %v4817_v17, 5  ;;  %v4823_v28 = vrot.slane %v4821_v18, 4  ;;  %v6645_v31 = vcombine.low %v8392_v29, %v8393_v30  ;;  %v8397_v5 = vld [vmem:[%s8472_s24 + $0x174] sm:$0xf] }
 0x171   : > { %v4805_v26 = vrot.slane %v4804_v16, 4  ;;  %7895 = vmatmul.mubr.msk.bf16.gmra.mrb[68].mxu0 %vm1489_vm2, %v7065_v21  ;;  %v4800_v4 = vsel %vm8503_vm3, %v4795_v22, %v4799_v62  ;;  %v4814_v32 = vor.u32 %v4813_v23, %v4809_v8  ;;  %v4832_v36 = vshrl.u32 %v7001_v20, 16  ;;  %v7008_v15 = vld [vmem:[%s8472_s24 + $0x1ac] sm:$0xf]  ;;  %v7009_v23 = vld [vmem:[%s8472_s24 + $0x1b0] sm:$0xf] }
 0x172   : > { %v4829_v33 = vrot.slane %v4827_v24, 5  ;;  %v4824_v38 = vor.u32 %v4823_v28, %v4819_v27  ;;  %7695 = vmatmul.mubr.msk.bf16.gmra.mrb[68].mxu1 %vm1489_vm2, %v6645_v31  ;;  %v4835_v39 = vshll.u32 %v7001_v20, 16  ;;  %v4841_v40 = vshll.u32 %v7002_v25, 16 }
 0x173   : > { %v4810_v37 = vsel %vm8503_vm3, %v4805_v26, %v4809_v8  ;;  %v4815_v11 = vrot.slane %v4814_v32, 4  ;;  %v4834_v12 = vrot.slane %v4832_v36, 4  ;;  %v4845_v19 = vshrl.u32 %v7002_v25, 16 }
 0x174   : > { %v7066_v41 = vcombine.low %v4800_v4, %v4810_v37  ;;  %v4825_v43 = vrot.slane %v4824_v38, 4  ;;  %v4837_v44 = vrot.slane %v4835_v39, 5  ;;  %v4843_v45 = vrot.slane %v4841_v40, 5  ;;  %v7010_v37 = vld [vmem:[%s8472_s24 + $0x1b4] sm:$0x1] }
 0x175   : > { %v4851_v46 = vshll.u32 %v7003_v35, 16  ;;  %v4820_v47 = vsel %vm8503_vm3, %v4815_v11, %v4819_v27  ;;  %v4847_v48 = vrot.slane %v4845_v19, 4  ;;  %v4855_v49 = vshrl.u32 %v7003_v35, 16  ;;  %v8399_v35 = vld [vmem:[%s8472_s24 + $0x180] sm:$0xf] }
 0x176   : > { %7898 = vmatprep.mubr.msk.bf16.mxu0 %vm1489_vm2, %v7066_v41  ;;  %v6646_v52 = vcombine.low %v8394_v50, %v8395_v51  ;;  %v4830_v54 = vsel %vm8503_vm3, %v4825_v43, %v4829_v33  ;;  %v4838_v55 = vor.u32 %v4837_v44, %v4834_v12  ;;  %v4861_v57 = vshll.u32 %v7004_v42, 16  ;;  %v8398_v33 = vld [vmem:[%s8472_s24 + $0x17c] sm:$0xf]  ;;  %v7011_v12 = vld [vmem:[%s8472_s24 + $0x1b8] sm:$0xf] }
 0x177   : > { %v4853_v56 = vrot.slane %v4851_v46, 5  ;;  %v7067_v59 = vcombine.low %v4820_v47, %v4830_v54  ;;  %v4848_v60 = vor.u32 %v4847_v48, %v4843_v45  ;;  %v4857_v61 = vrot.slane %v4855_v49, 4  ;;  %v8400_v49 = vld [vmem:[%s8472_s24 + $0x184] sm:$0xf]  ;;  %v8401_v50 = vld [vmem:[%s8472_s24 + $0x188] sm:$0xf] }
 0x178   : > { %7698 = vmatprep.mubr.msk.bf16.mxu1 %vm1489_vm2, %v6646_v52  ;;  %v4865_v62 = vshrl.u32 %v7004_v42, 16  ;;  %v4839_v0 = vrot.slane %v4838_v55, 4  ;;  %v4863_v1 = vrot.slane %v4861_v57, 5  ;;  %v4871_v2 = vshll.u32 %v7005_v53, 16 }
 0x179   : > { %v6647_v6 = vcombine.low %v8396_v3, %v8397_v5  ;;  %7899 = vmatmul.mubr.msk.bf16.gmra.mrb[72].mxu0 %vm1489_vm2, %v7067_v59  ;;  %v4849_v7 = vrot.slane %v4848_v60, 4  ;;  %v4858_v8 = vor.u32 %v4857_v61, %v4853_v56  ;;  %v4876_v10 = vshrl.u32 %v7006_v58, 16  ;;  %v7013_v59 = vld [vmem:[%s8472_s24 + $0x1c0] sm:$0xf] }
 0x17a   : > { %v4867_v9 = vrot.slane %v4865_v62, 4  ;;  %v4844_v13 = vsel %vm8503_vm3, %v4839_v0, %v4843_v45  ;;  %v4873_v14 = vrot.slane %v4871_v2, 5  ;;  %v4879_v16 = vshll.u32 %v7006_v58, 16  ;;  %v7012_v45 = vld [vmem:[%s8472_s24 + $0x1bc] sm:$0xf] }
 0x17b   : > { %7699 = vmatmul.mubr.msk.bf16.gmra.mrb[72].mxu1 %vm1489_vm2, %v6647_v6  ;;  %v4885_v17 = vshll.u32 %v7007_v63, 16  ;;  %v4854_v18 = vsel %vm8503_vm3, %v4849_v7, %v4853_v56  ;;  %v4859_v20 = vrot.slane %v4858_v8, 4  ;;  %v4878_v22 = vrot.slane %v4876_v10, 4 }
 0x17c   : > { %v4868_v21 = vor.u32 %v4867_v9, %v4863_v1  ;;  %v7068_v24 = vcombine.low %v4844_v13, %v4854_v18  ;;  %v4881_v25 = vrot.slane %v4879_v16, 5  ;;  %v4889_v27 = vshrl.u32 %v7007_v63, 16  ;;  %v7015_v13 = vld [vmem:[%s8472_s24 + $0x1c8] sm:$0x1]  ;;  %v8403_v16 = vld [vmem:[%s8472_s24 + $0x194] sm:$0xf] }
 0x17d   : > { %v4887_v26 = vrot.slane %v4885_v17, 5  ;;  %v4864_v28 = vsel %vm8503_vm3, %v4859_v20, %v4863_v1  ;;  %v4895_v30 = vshll.u32 %v7008_v15, 16  ;;  %v4899_v31 = vshrl.u32 %v7008_v15, 16  ;;  %v7014_v1 = vld [vmem:[%s8472_s24 + $0x1c4] sm:$0xf] }
 0x17e   : > { %v4869_v29 = vrot.slane %v4868_v21, 4  ;;  %7902 = vmatprep.mubr.msk.bf16.mxu0 %vm1489_vm2, %v7068_v24  ;;  %v4882_v4 = vor.u32 %v4881_v25, %v4878_v22  ;;  %v4891_v32 = vrot.slane %v4889_v27, 4  ;;  %v6648_v36 = vcombine.low %v8398_v33, %v8399_v35  ;;  %v8402_v15 = vld [vmem:[%s8472_s24 + $0x190] sm:$0xf]  ;;  %v7016_v21 = vld [vmem:[%s8472_s24 + $0x1cc] sm:$0xf] }
 0x17f   : > { %v4905_v38 = vshll.u32 %v7009_v23, 16  ;;  %v4897_v40 = vrot.slane %v4895_v30, 5  ;;  %v4901_v41 = vrot.slane %v4899_v31, 4  ;;  %v4909_v11 = vshrl.u32 %v7009_v23, 16  ;;  %v7017_v30 = vld [vmem:[%s8472_s24 + $0x1d0] sm:$0xf] }
 0x180   : > { %v4874_v39 = vsel %vm8503_vm3, %v4869_v29, %v4873_v14  ;;  %v4883_v42 = vrot.slane %v4882_v4, 4  ;;  %v4892_v43 = vor.u32 %v4891_v32, %v4887_v26  ;;  %7702 = vmatprep.mubr.msk.bf16.mxu1 %vm1489_vm2, %v6648_v36  ;;  %v4915_v48 = vshll.u32 %v7010_v37, 16  ;;  %v8404_v32 = vld [vmem:[%s8472_s24 + $0x198] sm:$0xf]  ;;  %v8405_v33 = vld [vmem:[%s8472_s24 + $0x19c] sm:$0xf] }
 0x181   : > { %v7069_v19 = vcombine.low %v4864_v28, %v4874_v39  ;;  %v4907_v44 = vrot.slane %v4905_v38, 5  ;;  %v4902_v46 = vor.u32 %v4901_v41, %v4897_v40  ;;  %v4911_v47 = vrot.slane %v4909_v11, 4 }
 0x182   : > { %v6649_v51 = vcombine.low %v8400_v49, %v8401_v50  ;;  %v4888_v52 = vsel %vm8503_vm3, %v4883_v42, %v4887_v26  ;;  %v4893_v53 = vrot.slane %v4892_v43, 4  ;;  %v4920_v54 = vshrl.u32 %v7011_v12, 16 }
 0x183   : > { %7903 = vmatmul.mubr.msk.bf16.gmra.mrb[76].mxu0 %vm1489_vm2, %v7069_v19  ;;  %v4923_v55 = vshll.u32 %v7011_v12, 16  ;;  %v4903_v56 = vrot.slane %v4902_v46, 4  ;;  %v4912_v57 = vor.u32 %v4911_v47, %v4907_v44  ;;  %v4917_v58 = vrot.slane %v4915_v48, 5  ;;  %v7019_v47 = vld [vmem:[%s8472_s24 + $0x1d8] sm:$0xf] }
 0x184   : > { %7703 = vmatmul.mubr.msk.bf16.gmra.mrb[76].mxu1 %vm1489_vm2, %v6649_v51  ;;  %v4929_v60 = vshll.u32 %v7012_v45, 16  ;;  %v4898_v61 = vsel %vm8503_vm3, %v4893_v53, %v4897_v40  ;;  %v4922_v62 = vrot.slane %v4920_v54, 4  ;;  %v4933_v0 = vshrl.u32 %v7012_v45, 16  ;;  %v7018_v40 = vld [vmem:[%s8472_s24 + $0x1d4] sm:$0xf] }
 0x185   : > { %v4925_v63 = vrot.slane %v4923_v55, 5  ;;  %v7070_v2 = vcombine.low %v4888_v52, %v4898_v61  ;;  %v4908_v3 = vsel %vm8503_vm3, %v4903_v56, %v4907_v44  ;;  %v4913_v5 = vrot.slane %v4912_v57, 4  ;;  %v7020_v52 = vld [vmem:[%s8472_s24 + $0x1dc] sm:$0x1]  ;;  %v8406_v56 = vld [vmem:[%s8472_s24 + $0x1a4] sm:$0xf] }
 0x186   : > { %v4931_v6 = vrot.slane %v4929_v60, 5  ;;  %v4935_v8 = vrot.slane %v4933_v0, 4  ;;  %v4939_v9 = vshll.u32 %v7013_v59, 16  ;;  %v4943_v10 = vshrl.u32 %v7013_v59, 16  ;;  %v8407_v57 = vld [vmem:[%s8472_s24 + $0x1a8] sm:$0xf] }
 0x187   : > { %v4926_v7 = vor.u32 %v4925_v63, %v4922_v62  ;;  %7906 = vmatprep.mubr.msk.bf16.mxu0 %vm1489_vm2, %v7070_v2  ;;  %v4918_v14 = vsel %vm8503_vm3, %v4913_v5, %v4917_v58  ;;  %v6650_v17 = vcombine.low %v8402_v15, %v8403_v16  ;;  %v4949_v18 = vshll.u32 %v7014_v1, 16  ;;  %v7021_v59 = vld [vmem:[%s8472_s24 + $0x1e0] sm:$0xf] }
 0x188   : > { %v4953_v20 = vshrl.u32 %v7014_v1, 16  ;;  %v7071_v22 = vcombine.low %v4908_v3, %v4918_v14  ;;  %v4936_v24 = vor.u32 %v4935_v8, %v4931_v6  ;;  %v4941_v25 = vrot.slane %v4939_v9, 5  ;;  %v8409_v8 = vld [vmem:[%s8472_s24 + $0x1b0] sm:$0xf] }
 0x189   : > { %v4927_v23 = vrot.slane %v4926_v7, 4  ;;  %7706 = vmatprep.mubr.msk.bf16.mxu1 %vm1489_vm2, %v6650_v17  ;;  %v4945_v26 = vrot.slane %v4943_v10, 4  ;;  %v4951_v27 = vrot.slane %v4949_v18, 5  ;;  %v4959_v29 = vshll.u32 %v7015_v13, 16  ;;  %v8408_v7 = vld [vmem:[%s8472_s24 + $0x1ac] sm:$0xf] }
 0x18a   : > { %v4955_v28 = vrot.slane %v4953_v20, 4  ;;  %v4937_v4 = vrot.slane %v4936_v24, 4  ;;  %v6651_v35 = vcombine.low %v8404_v32, %v8405_v33  ;;  %v4964_v36 = vshrl.u32 %v7016_v21, 16  ;;  %v7022_v10 = vld [vmem:[%s8472_s24 + $0x1e4] sm:$0xf] }
 0x18b   : > { %7907 = vmatmul.mubr.msk.bf16.gmra.mrb[80].mxu0 %vm1489_vm2, %v7071_v22  ;;  %v4932_v31 = vsel %vm8503_vm3, %v4927_v23, %v4931_v6  ;;  %v4946_v37 = vor.u32 %v4945_v26, %v4941_v25  ;;  %v4961_v39 = vrot.slane %v4959_v29, 5  ;;  %v4967_v41 = vshll.u32 %v7016_v21, 16  ;;  %v7023_v18 = vld [vmem:[%s8472_s24 + $0x1e8] sm:$0xf]  ;;  %v7025_v32 = vld [vmem:[%s8472_s24 + $0x1f0] sm:$0x1] }
 0x18c   : > { %v4956_v38 = vor.u32 %v4955_v28, %v4951_v27  ;;  %v4942_v11 = vsel %vm8503_vm3, %v4937_v4, %v4941_v25  ;;  %7707 = vmatmul.mubr.msk.bf16.gmra.mrb[80].mxu1 %vm1489_vm2, %v6651_v35  ;;  %v4966_v12 = vrot.slane %v4964_v36, 4  ;;  %v4973_v19 = vshll.u32 %v7017_v30, 16  ;;  %v7024_v28 = vld [vmem:[%s8472_s24 + $0x1ec] sm:$0xf] }
 0x18d   : > { %v4977_v42 = vshrl.u32 %v7017_v30, 16  ;;  %v7072_v43 = vcombine.low %v4932_v31, %v4942_v11  ;;  %v4947_v44 = vrot.slane %v4946_v37, 4  ;;  %v4969_v46 = vrot.slane %v4967_v41, 5  ;;  %v8410_v37 = vld [vmem:[%s8472_s24 + $0x1b8] sm:$0xf] }
 0x18e   : > { %v4957_v45 = vrot.slane %v4956_v38, 4  ;;  %v4975_v48 = vrot.slane %v4973_v19, 5  ;;  %v4983_v50 = vshll.u32 %v7018_v40, 16  ;;  %v4987_v51 = vshrl.u32 %v7018_v40, 16  ;;  %v8411_v38 = vld [vmem:[%s8472_s24 + $0x1bc] sm:$0xf] }
 0x18f   : > { %v4979_v49 = vrot.slane %v4977_v42, 4  ;;  %7910 = vmatprep.mubr.msk.bf16.mxu0 %vm1489_vm2, %v7072_v43  ;;  %v4952_v53 = vsel %vm8503_vm3, %v4947_v44, %v4951_v27  ;;  %v4970_v55 = vor.u32 %v4969_v46, %v4966_v12  ;;  %v6652_v58 = vcombine.low %v8406_v56, %v8407_v57  ;;  %v8414_v56 = vld [vmem:[%s8472_s24 + $0x1cc] sm:$0xf]  ;;  %v8415_v57 = vld [vmem:[%s8472_s24 + $0x1d0] sm:$0xf] }
 0x190   : > { %v4962_v54 = vsel %vm8503_vm3, %v4957_v45, %v4961_v39  ;;  %v4985_v62 = vrot.slane %v4983_v50, 5  ;;  %v4989_v63 = vrot.slane %v4987_v51, 4  ;;  %v4993_v1 = vshll.u32 %v7019_v47, 16  ;;  %v8412_v51 = vld [vmem:[%s8472_s24 + $0x1c0] sm:$0xf] }
 0x191   : > { %v7073_v60 = vcombine.low %v4952_v53, %v4962_v54  ;;  %v4980_v61 = vor.u32 %v4979_v49, %v4975_v48  ;;  %v4971_v0 = vrot.slane %v4970_v55, 4  ;;  %7710 = vmatprep.mubr.msk.bf16.mxu1 %vm1489_vm2, %v6652_v58  ;;  %v4997_v2 = vshrl.u32 %v7019_v47, 16 }
 0x192   : > { %v5003_v3 = vshll.u32 %v7020_v52, 16  ;;  %v4990_v6 = vor.u32 %v4989_v63, %v4985_v62  ;;  %v6653_v9 = vcombine.low %v8408_v7, %v8409_v8  ;;  %v5008_v13 = vshrl.u32 %v7021_v59, 16  ;;  %v8413_v52 = vld [vmem:[%s8472_s24 + $0x1c4] sm:$0xf] }
 0x193   : > { %7911 = vmatmul.mubr.msk.bf16.gmra.mrb[84].mxu0 %vm1489_vm2, %v7073_v60  ;;  %v4981_v5 = vrot.slane %v4980_v61, 4  ;;  %v4976_v14 = vsel %vm8503_vm3, %v4971_v0, %v4975_v48  ;;  %v4995_v15 = vrot.slane %v4993_v1, 5  ;;  %v4999_v16 = vrot.slane %v4997_v2, 4  ;;  %v8416_v2 = vld [vmem:[%s8472_s24 + $0x1d4] sm:$0xf] }
 0x194   : > { %v5005_v17 = vrot.slane %v5003_v3, 5  ;;  %v4991_v21 = vrot.slane %v4990_v6, 4  ;;  %7711 = vmatmul.mubr.msk.bf16.gmra.mrb[84].mxu1 %vm1489_vm2, %v6653_v9  ;;  %v5010_v22 = vrot.slane %v5008_v13, 4  ;;  %v5011_v23 = vshll.u32 %v7021_v59, 16  ;;  %v8417_v3 = vld [vmem:[%s8472_s24 + $0x1d8] sm:$0xf] }
 0x195   : > { %v4986_v20 = vsel %vm8503_vm3, %v4981_v5, %v4985_v62  ;;  %v5000_v25 = vor.u32 %v4999_v16, %v4995_v15  ;;  %v5017_v26 = vshll.u32 %v7022_v10, 16  ;;  %v5021_v27 = vshrl.u32 %v7022_v10, 16 }
 0x196   : > { %v7074_v24 = vcombine.low %v4976_v14, %v4986_v20  ;;  %v4996_v29 = vsel %vm8503_vm3, %v4991_v21, %v4995_v15  ;;  %v5013_v30 = vrot.slane %v5011_v23, 5  ;;  %v5027_v31 = vshll.u32 %v7023_v18, 16 }
 0x197   : > { %v5031_v4 = vshrl.u32 %v7023_v18, 16  ;;  %v5001_v33 = vrot.slane %v5000_v25, 4  ;;  %v5019_v35 = vrot.slane %v5017_v26, 5  ;;  %v5023_v36 = vrot.slane %v5021_v27, 4 }
 0x198   : > { %7914 = vmatprep.mubr.msk.bf16.mxu0 %vm1489_vm2, %v7074_v24  ;;  %v6654_v39 = vcombine.low %v8410_v37, %v8411_v38  ;;  %v5014_v40 = vor.u32 %v5013_v30, %v5010_v22  ;;  %v5029_v41 = vrot.slane %v5027_v31, 5  ;;  %v5037_v12 = vshll.u32 %v7024_v28, 16 }
 0x199   : > { %v5033_v11 = vrot.slane %v5031_v4, 4  ;;  %v5006_v19 = vsel %vm8503_vm3, %v5001_v33, %v5005_v17  ;;  %v5024_v42 = vor.u32 %v5023_v36, %v5019_v35  ;;  %v5041_v43 = vshrl.u32 %v7024_v28, 16 }
 0x19a   : > { %7714 = vmatprep.mubr.msk.bf16.mxu1 %vm1489_vm2, %v6654_v39  ;;  %v5047_v44 = vshll.u32 %v7025_v32, 16  ;;  %v7075_v45 = vcombine.low %v4996_v29, %v5006_v19  ;;  %v5015_v46 = vrot.slane %v5014_v40, 4  ;;  %v5039_v48 = vrot.slane %v5037_v12, 5 }
 0x19b   : > { %v5034_v47 = vor.u32 %v5033_v11, %v5029_v41  ;;  %v5025_v49 = vrot.slane %v5024_v42, 4  ;;  %v5043_v50 = vrot.slane %v5041_v43, 4  ;;  %v6655_v53 = vcombine.low %v8412_v51, %v8413_v52 }
 0x19c   : > { %7915 = vmatmul.mubr.msk.bf16.gmra.mrb[88].mxu0 %vm1489_vm2, %v7075_v45  ;;  %v5020_v54 = vsel %vm8503_vm3, %v5015_v46, %v5019_v35  ;;  %v6656_v58 = vcombine.low %v8414_v56, %v8415_v57  ;;  %v5049_v61 = vrot.slane %v5047_v44, 5  ;;  %v6657_v5 = vcombine.low %v8416_v2, %v8417_v3 }
 0x19d   : > { %v5035_v55 = vrot.slane %v5034_v47, 4  ;;  %v5030_v59 = vsel %vm8503_vm3, %v5025_v49, %v5029_v41  ;;  %v5044_v60 = vor.u32 %v5043_v50, %v5039_v48  ;;  %7715 = vmatmul.mubr.msk.bf16.gmra.mrb[88].mxu1 %vm1489_vm2, %v6655_v53 }
 0x19e   : > { %v7076_v62 = vcombine.low %v5020_v54, %v5030_v59  ;;  %7718 = vmatprep.mubr.msk.bf16.mxu1 %vm1489_vm2, %v6656_v58 }
 0x19f   : > { %v5040_v63 = vsel %vm8503_vm3, %v5035_v55, %v5039_v48  ;;  %v5045_v0 = vrot.slane %v5044_v60, 4 }
 0x1a0   : > { %7918 = vmatprep.mubr.msk.bf16.mxu0 %vm1489_vm2, %v7076_v62 }
 0x1a1   : > { %v5050_v1 = vsel %vm8503_vm3, %v5045_v0, %v5049_v61 }
 0x1a2   : > { %v7077_v6 = vcombine.low %v5040_v63, %v5050_v1 }
 0x1a4   : > { %7919 = vmatmul.mubr.msk.bf16.gmra.mrb[92].mxu0 %vm1489_vm2, %v7077_v6 }
 0x1a5   : > { %7719 = vmatmul.mubr.msk.bf16.gmra.mrb[92].mxu1 %vm1489_vm2, %v6657_v5 }
 0x1b1   : > { %v7828_v7 = vpop.f32.mrb[0].mxu0 }
 0x1b2   : > { %v5390_v8 = vpop.f32.mrb[1].mxu0 }
 0x1b3   : > { %v7829_v9 = vpop.f32.mrb[2].mxu0 }
 0x1b4   : > { %v5393_v10 = vpop.f32.mrb[3].mxu0 }
 0x1bb   : > { %v7628_v13 = vpop.f32.mrb[0].mxu1 }
 0x1bc   : > { %v7922_v14 = vadd.f32 %v7828_v7, %v7628_v13  ;;  %v2481_v15 = vpop.f32.mrb[1].mxu1 }
 0x1bd   : > { %v7832_v16 = vpop.f32.mrb[4].mxu0  ;;  %v7923_v17 = vadd.f32 %v5390_v8, %v2481_v15  ;;  %v7629_v34 = vpop.f32.mrb[2].mxu1 }
 0x1be   : > { %v5871_v18 = vmax.f32 %v7922_v14, 0.0  ;;  %v5406_v20 = vpop.f32.mrb[5].mxu0  ;;  %v7924_v21 = vadd.f32 %v7829_v9, %v7629_v34  ;;  %v2484_v22 = vpop.f32.mrb[3].mxu1 }
 0x1bf   : > { %v5869_v23 = vmax.f32 %v7923_v17, 0.0  ;;  %v7833_v24 = vpop.f32.mrb[6].mxu0  ;;  %v7925_v25 = vadd.f32 %v5393_v10, %v2484_v22 }
 0x1c0   : > { %v7228_v26 = vpack.c.bf16 %v5871_v18, %v5871_v18  ;;  %v5872_v27 = vmax.f32 %v7924_v21, 0.0  ;;  %v5409_v28 = vpop.f32.mrb[7].mxu0 }
 0x1c1   : > { %v7226_v29 = vpack.c.bf16 %v5869_v23, %v5869_v23  ;;  %v5870_v30 = vmax.f32 %v7925_v25, 0.0 }
 0x1c2   : > { %6352 = vst.msk [vmem:[%s9466_s6 + $0x8] sm:$0xf] %vm6349_vm4, %v7228_v26  ;;  %v7229_v31 = vpack.c.bf16 %v5872_v27, %v5872_v27 }
 0x1c3   : > { %6350 = vst.msk [vmem:[%s9466_s6] sm:$0xf] %vm6349_vm4, %v7226_v29  ;;  %v7227_v4 = vpack.c.bf16 %v5870_v30, %v5870_v30  ;;  %v7632_v32 = vpop.f32.mrb[4].mxu1 }
 0x1c4   : > { %6353 = vst.msk [vmem:[%s9466_s6 + $0xc] sm:$0xf] %vm6349_vm4, %v7229_v31  ;;  %v7926_v33 = vadd.f32 %v7832_v16, %v7632_v32  ;;  %v2497_v35 = vpop.f32.mrb[5].mxu1 }
 0x1c5   : > { %6351 = vst.msk [vmem:[%s9466_s6 + $0x4] sm:$0xf] %vm6349_vm4, %v7227_v4  ;;  %v7836_v36 = vpop.f32.mrb[8].mxu0  ;;  %v7927_v37 = vadd.f32 %v5406_v20, %v2497_v35  ;;  %v7633_v38 = vpop.f32.mrb[6].mxu1 }
 0x1c6   : > { %v5875_v39 = vmax.f32 %v7926_v33, 0.0  ;;  %v5422_v40 = vpop.f32.mrb[9].mxu0  ;;  %v7928_v41 = vadd.f32 %v7833_v24, %v7633_v38  ;;  %v2500_v11 = vpop.f32.mrb[7].mxu1 }
 0x1c7   : > { %v5873_v12 = vmax.f32 %v7927_v37, 0.0  ;;  %v7837_v19 = vpop.f32.mrb[10].mxu0  ;;  %v7929_v42 = vadd.f32 %v5409_v28, %v2500_v11 }
 0x1c8   : > { %v7232_v43 = vpack.c.bf16 %v5875_v39, %v5875_v39  ;;  %v5876_v44 = vmax.f32 %v7928_v41, 0.0  ;;  %v5425_v45 = vpop.f32.mrb[11].mxu0 }
 0x1c9   : > { %v7230_v46 = vpack.c.bf16 %v5873_v12, %v5873_v12  ;;  %v5874_v47 = vmax.f32 %v7929_v42, 0.0 }
 0x1ca   : > { %6356 = vst.msk [vmem:[%s9466_s6 + $0x18] sm:$0xf] %vm6349_vm4, %v7232_v43  ;;  %v7233_v48 = vpack.c.bf16 %v5876_v44, %v5876_v44 }
 0x1cb   : > { %6354 = vst.msk [vmem:[%s9466_s6 + $0x10] sm:$0xf] %vm6349_vm4, %v7230_v46  ;;  %v7231_v49 = vpack.c.bf16 %v5874_v47, %v5874_v47  ;;  %v7636_v50 = vpop.f32.mrb[8].mxu1 }
 0x1cc   : > { %6357 = vst.msk [vmem:[%s9466_s6 + $0x1c] sm:$0xf] %vm6349_vm4, %v7233_v48  ;;  %v7930_v51 = vadd.f32 %v7836_v36, %v7636_v50  ;;  %v2513_v52 = vpop.f32.mrb[9].mxu1 }
 0x1cd   : > { %6355 = vst.msk [vmem:[%s9466_s6 + $0x14] sm:$0xf] %vm6349_vm4, %v7231_v49  ;;  %v7840_v53 = vpop.f32.mrb[12].mxu0  ;;  %v7931_v54 = vadd.f32 %v5422_v40, %v2513_v52  ;;  %v7637_v55 = vpop.f32.mrb[10].mxu1 }
 0x1ce   : > { %v5879_v56 = vmax.f32 %v7930_v51, 0.0  ;;  %v5438_v57 = vpop.f32.mrb[13].mxu0  ;;  %v7932_v58 = vadd.f32 %v7837_v19, %v7637_v55  ;;  %v2516_v59 = vpop.f32.mrb[11].mxu1 }
 0x1cf   : > { %v5877_v60 = vmax.f32 %v7931_v54, 0.0  ;;  %v7841_v61 = vpop.f32.mrb[14].mxu0  ;;  %v7933_v62 = vadd.f32 %v5425_v45, %v2516_v59 }
 0x1d0   : > { %v7236_v63 = vpack.c.bf16 %v5879_v56, %v5879_v56  ;;  %v5880_v0 = vmax.f32 %v7932_v58, 0.0  ;;  %v5441_v1 = vpop.f32.mrb[15].mxu0 }
 0x1d1   : > { %v7234_v2 = vpack.c.bf16 %v5877_v60, %v5877_v60  ;;  %v5878_v3 = vmax.f32 %v7933_v62, 0.0 }
 0x1d2   : > { %6360 = vst.msk [vmem:[%s9466_s6 + $0x28] sm:$0xf] %vm6349_vm4, %v7236_v63  ;;  %v7237_v5 = vpack.c.bf16 %v5880_v0, %v5880_v0 }
 0x1d3   : > { %6358 = vst.msk [vmem:[%s9466_s6 + $0x20] sm:$0xf] %vm6349_vm4, %v7234_v2  ;;  %v7235_v6 = vpack.c.bf16 %v5878_v3, %v5878_v3  ;;  %v7640_v7 = vpop.f32.mrb[12].mxu1 }
 0x1d4   : > { %6361 = vst.msk [vmem:[%s9466_s6 + $0x2c] sm:$0xf] %vm6349_vm4, %v7237_v5  ;;  %v7934_v8 = vadd.f32 %v7840_v53, %v7640_v7  ;;  %v2529_v9 = vpop.f32.mrb[13].mxu1 }
 0x1d5   : > { %6359 = vst.msk [vmem:[%s9466_s6 + $0x24] sm:$0xf] %vm6349_vm4, %v7235_v6  ;;  %v7935_v13 = vadd.f32 %v5438_v57, %v2529_v9  ;;  %v7641_v14 = vpop.f32.mrb[14].mxu1 }
 0x1d6   : > { %v7844_v10 = vpop.f32.mrb[16].mxu0  ;;  %v5883_v15 = vmax.f32 %v7934_v8, 0.0  ;;  %v7936_v17 = vadd.f32 %v7841_v61, %v7641_v14  ;;  %v2532_v34 = vpop.f32.mrb[15].mxu1 }
 0x1d7   : > { %v5454_v16 = vpop.f32.mrb[17].mxu0  ;;  %v5881_v18 = vmax.f32 %v7935_v13, 0.0  ;;  %v7937_v21 = vadd.f32 %v5441_v1, %v2532_v34 }
 0x1d8   : > { %v7845_v20 = vpop.f32.mrb[18].mxu0  ;;  %v7240_v22 = vpack.c.bf16 %v5883_v15, %v5883_v15  ;;  %v5884_v23 = vmax.f32 %v7936_v17, 0.0 }
 0x1d9   : > { %v5457_v24 = vpop.f32.mrb[19].mxu0  ;;  %v7238_v25 = vpack.c.bf16 %v5881_v18, %v5881_v18  ;;  %v5882_v26 = vmax.f32 %v7937_v21, 0.0 }
 0x1da   : > { %6364 = vst.msk [vmem:[%s9466_s6 + $0x38] sm:$0xf] %vm6349_vm4, %v7240_v22  ;;  %v7241_v27 = vpack.c.bf16 %v5884_v23, %v5884_v23 }
 0x1db   : > { %6362 = vst.msk [vmem:[%s9466_s6 + $0x30] sm:$0xf] %vm6349_vm4, %v7238_v25  ;;  %v7239_v28 = vpack.c.bf16 %v5882_v26, %v5882_v26  ;;  %v7644_v29 = vpop.f32.mrb[16].mxu1 }
 0x1dc   : > { %6365 = vst.msk [vmem:[%s9466_s6 + $0x3c] sm:$0xf] %vm6349_vm4, %v7241_v27  ;;  %v7938_v30 = vadd.f32 %v7844_v10, %v7644_v29  ;;  %v2545_v31 = vpop.f32.mrb[17].mxu1 }
 0x1dd   : > { %6363 = vst.msk [vmem:[%s9466_s6 + $0x34] sm:$0xf] %vm6349_vm4, %v7239_v28  ;;  %v7939_v32 = vadd.f32 %v5454_v16, %v2545_v31  ;;  %v7645_v33 = vpop.f32.mrb[18].mxu1 }
 0x1de   : > { %v7848_v4 = vpop.f32.mrb[20].mxu0  ;;  %v5887_v35 = vmax.f32 %v7938_v30, 0.0  ;;  %v7940_v37 = vadd.f32 %v7845_v20, %v7645_v33  ;;  %v2548_v38 = vpop.f32.mrb[19].mxu1 }
 0x1df   : > { %v5470_v36 = vpop.f32.mrb[21].mxu0  ;;  %v5885_v39 = vmax.f32 %v7939_v32, 0.0  ;;  %v7941_v41 = vadd.f32 %v5457_v24, %v2548_v38 }
 0x1e0   : > { %v7849_v40 = vpop.f32.mrb[22].mxu0  ;;  %v7244_v11 = vpack.c.bf16 %v5887_v35, %v5887_v35  ;;  %v5888_v12 = vmax.f32 %v7940_v37, 0.0 }
 0x1e1   : > { %v5473_v19 = vpop.f32.mrb[23].mxu0  ;;  %v7242_v42 = vpack.c.bf16 %v5885_v39, %v5885_v39  ;;  %v5886_v43 = vmax.f32 %v7941_v41, 0.0 }
 0x1e2   : > { %6368 = vst.msk [vmem:[%s9466_s6 + $0x48] sm:$0xf] %vm6349_vm4, %v7244_v11  ;;  %v7245_v44 = vpack.c.bf16 %v5888_v12, %v5888_v12 }
 0x1e3   : > { %6366 = vst.msk [vmem:[%s9466_s6 + $0x40] sm:$0xf] %vm6349_vm4, %v7242_v42  ;;  %v7243_v45 = vpack.c.bf16 %v5886_v43, %v5886_v43  ;;  %v7648_v46 = vpop.f32.mrb[20].mxu1 }
 0x1e4   : > { %6369 = vst.msk [vmem:[%s9466_s6 + $0x4c] sm:$0xf] %vm6349_vm4, %v7245_v44  ;;  %v7942_v47 = vadd.f32 %v7848_v4, %v7648_v46  ;;  %v2561_v48 = vpop.f32.mrb[21].mxu1 }
 0x1e5   : > { %6367 = vst.msk [vmem:[%s9466_s6 + $0x44] sm:$0xf] %vm6349_vm4, %v7243_v45  ;;  %v7943_v49 = vadd.f32 %v5470_v36, %v2561_v48  ;;  %v7649_v50 = vpop.f32.mrb[22].mxu1 }
 0x1e6   : > { %v5891_v51 = vmax.f32 %v7942_v47, 0.0  ;;  %v7944_v52 = vadd.f32 %v7849_v40, %v7649_v50  ;;  %v2564_v53 = vpop.f32.mrb[23].mxu1 }
 0x1e7   : > { %v7852_v54 = vpop.f32.mrb[24].mxu0  ;;  %v5889_v55 = vmax.f32 %v7943_v49, 0.0  ;;  %v7945_v56 = vadd.f32 %v5473_v19, %v2564_v53 }
 0x1e8   : > { %v7248_v57 = vpack.c.bf16 %v5891_v51, %v5891_v51  ;;  %v5486_v58 = vpop.f32.mrb[25].mxu0  ;;  %v5892_v59 = vmax.f32 %v7944_v52, 0.0 }
 0x1e9   : > { %v7246_v60 = vpack.c.bf16 %v5889_v55, %v5889_v55  ;;  %v7853_v61 = vpop.f32.mrb[26].mxu0  ;;  %v5890_v62 = vmax.f32 %v7945_v56, 0.0 }
 0x1ea   : > { %6372 = vst.msk [vmem:[%s9466_s6 + $0x58] sm:$0xf] %vm6349_vm4, %v7248_v57  ;;  %v7249_v63 = vpack.c.bf16 %v5892_v59, %v5892_v59  ;;  %v5489_v0 = vpop.f32.mrb[27].mxu0 }
 0x1eb   : > { %6370 = vst.msk [vmem:[%s9466_s6 + $0x50] sm:$0xf] %vm6349_vm4, %v7246_v60  ;;  %v7247_v1 = vpack.c.bf16 %v5890_v62, %v5890_v62  ;;  %v7652_v2 = vpop.f32.mrb[24].mxu1 }
 0x1ec   : > { %6373 = vst.msk [vmem:[%s9466_s6 + $0x5c] sm:$0xf] %vm6349_vm4, %v7249_v63  ;;  %v7946_v3 = vadd.f32 %v7852_v54, %v7652_v2  ;;  %v2577_v5 = vpop.f32.mrb[25].mxu1 }
 0x1ed   : > { %6371 = vst.msk [vmem:[%s9466_s6 + $0x54] sm:$0xf] %vm6349_vm4, %v7247_v1  ;;  %v7947_v6 = vadd.f32 %v5486_v58, %v2577_v5  ;;  %v7653_v7 = vpop.f32.mrb[26].mxu1 }
 0x1ee   : > { %v5895_v8 = vmax.f32 %v7946_v3, 0.0  ;;  %v7948_v9 = vadd.f32 %v7853_v61, %v7653_v7  ;;  %v2580_v10 = vpop.f32.mrb[27].mxu1 }
 0x1ef   : > { %v7856_v13 = vpop.f32.mrb[28].mxu0  ;;  %v5893_v14 = vmax.f32 %v7947_v6, 0.0  ;;  %v7949_v15 = vadd.f32 %v5489_v0, %v2580_v10 }
 0x1f0   : > { %v7252_v16 = vpack.c.bf16 %v5895_v8, %v5895_v8  ;;  %v5502_v17 = vpop.f32.mrb[29].mxu0  ;;  %v5896_v34 = vmax.f32 %v7948_v9, 0.0 }
 0x1f1   : > { %v7250_v18 = vpack.c.bf16 %v5893_v14, %v5893_v14  ;;  %v7857_v20 = vpop.f32.mrb[30].mxu0  ;;  %v5894_v21 = vmax.f32 %v7949_v15, 0.0 }
 0x1f2   : > { %6376 = vst.msk [vmem:[%s9466_s6 + $0x68] sm:$0xf] %vm6349_vm4, %v7252_v16  ;;  %v7253_v22 = vpack.c.bf16 %v5896_v34, %v5896_v34  ;;  %v5505_v23 = vpop.f32.mrb[31].mxu0 }
 0x1f3   : > { %6374 = vst.msk [vmem:[%s9466_s6 + $0x60] sm:$0xf] %vm6349_vm4, %v7250_v18  ;;  %v7251_v24 = vpack.c.bf16 %v5894_v21, %v5894_v21  ;;  %v7656_v25 = vpop.f32.mrb[28].mxu1 }
 0x1f4   : > { %6377 = vst.msk [vmem:[%s9466_s6 + $0x6c] sm:$0xf] %vm6349_vm4, %v7253_v22  ;;  %v7950_v26 = vadd.f32 %v7856_v13, %v7656_v25  ;;  %v2593_v27 = vpop.f32.mrb[29].mxu1 }
 0x1f5   : > { %6375 = vst.msk [vmem:[%s9466_s6 + $0x64] sm:$0xf] %vm6349_vm4, %v7251_v24  ;;  %v7951_v28 = vadd.f32 %v5502_v17, %v2593_v27  ;;  %v7657_v29 = vpop.f32.mrb[30].mxu1 }
 0x1f6   : > { %v5899_v30 = vmax.f32 %v7950_v26, 0.0  ;;  %v7952_v31 = vadd.f32 %v7857_v20, %v7657_v29  ;;  %v2596_v4 = vpop.f32.mrb[31].mxu1 }
 0x1f7   : > { %v7860_v32 = vpop.f32.mrb[32].mxu0  ;;  %v5897_v33 = vmax.f32 %v7951_v28, 0.0  ;;  %v7953_v35 = vadd.f32 %v5505_v23, %v2596_v4 }
 0x1f8   : > { %v7256_v36 = vpack.c.bf16 %v5899_v30, %v5899_v30  ;;  %v5518_v37 = vpop.f32.mrb[33].mxu0  ;;  %v5900_v38 = vmax.f32 %v7952_v31, 0.0 }
 0x1f9   : > { %v7254_v39 = vpack.c.bf16 %v5897_v33, %v5897_v33  ;;  %v7861_v40 = vpop.f32.mrb[34].mxu0  ;;  %v5898_v41 = vmax.f32 %v7953_v35, 0.0 }
 0x1fa   : > { %6380 = vst.msk [vmem:[%s9466_s6 + $0x78] sm:$0xf] %vm6349_vm4, %v7256_v36  ;;  %v7257_v11 = vpack.c.bf16 %v5900_v38, %v5900_v38  ;;  %v5521_v12 = vpop.f32.mrb[35].mxu0 }
 0x1fb   : > { %6378 = vst.msk [vmem:[%s9466_s6 + $0x70] sm:$0xf] %vm6349_vm4, %v7254_v39  ;;  %v7255_v19 = vpack.c.bf16 %v5898_v41, %v5898_v41  ;;  %v7660_v42 = vpop.f32.mrb[32].mxu1 }
 0x1fc   : > { %6381 = vst.msk [vmem:[%s9466_s6 + $0x7c] sm:$0xf] %vm6349_vm4, %v7257_v11  ;;  %v7954_v43 = vadd.f32 %v7860_v32, %v7660_v42  ;;  %v2609_v44 = vpop.f32.mrb[33].mxu1 }
 0x1fd   : > { %6379 = vst.msk [vmem:[%s9466_s6 + $0x74] sm:$0xf] %vm6349_vm4, %v7255_v19  ;;  %v7955_v45 = vadd.f32 %v5518_v37, %v2609_v44  ;;  %v7661_v46 = vpop.f32.mrb[34].mxu1 }
 0x1fe   : > { %v5903_v47 = vmax.f32 %v7954_v43, 0.0  ;;  %v7956_v48 = vadd.f32 %v7861_v40, %v7661_v46  ;;  %v2612_v49 = vpop.f32.mrb[35].mxu1 }
 0x1ff   : > { %v5901_v50 = vmax.f32 %v7955_v45, 0.0  ;;  %v7957_v51 = vadd.f32 %v5521_v12, %v2612_v49 }
 0x200   : > { %v7864_v52 = vpop.f32.mrb[36].mxu0  ;;  %v7260_v53 = vpack.c.bf16 %v5903_v47, %v5903_v47  ;;  %v5904_v54 = vmax.f32 %v7956_v48, 0.0 }
 0x201   : > { %v5534_v55 = vpop.f32.mrb[37].mxu0  ;;  %v7258_v56 = vpack.c.bf16 %v5901_v50, %v5901_v50  ;;  %v5902_v57 = vmax.f32 %v7957_v51, 0.0 }
 0x202   : > { %6384 = vst.msk [vmem:[%s9466_s6 + $0x88] sm:$0xf] %vm6349_vm4, %v7260_v53  ;;  %v7865_v58 = vpop.f32.mrb[38].mxu0  ;;  %v7261_v59 = vpack.c.bf16 %v5904_v54, %v5904_v54 }
 0x203   : > { %6382 = vst.msk [vmem:[%s9466_s6 + $0x80] sm:$0xf] %vm6349_vm4, %v7258_v56  ;;  %v5537_v60 = vpop.f32.mrb[39].mxu0  ;;  %v7259_v61 = vpack.c.bf16 %v5902_v57, %v5902_v57  ;;  %v7664_v62 = vpop.f32.mrb[36].mxu1 }
 0x204   : > { %6385 = vst.msk [vmem:[%s9466_s6 + $0x8c] sm:$0xf] %vm6349_vm4, %v7261_v59  ;;  %v7958_v63 = vadd.f32 %v7864_v52, %v7664_v62  ;;  %v2625_v0 = vpop.f32.mrb[37].mxu1 }
 0x205   : > { %6383 = vst.msk [vmem:[%s9466_s6 + $0x84] sm:$0xf] %vm6349_vm4, %v7259_v61  ;;  %v7959_v1 = vadd.f32 %v5534_v55, %v2625_v0  ;;  %v7665_v2 = vpop.f32.mrb[38].mxu1 }
 0x206   : > { %v5907_v3 = vmax.f32 %v7958_v63, 0.0  ;;  %v7960_v5 = vadd.f32 %v7865_v58, %v7665_v2  ;;  %v2628_v6 = vpop.f32.mrb[39].mxu1 }
 0x207   : > { %v5905_v7 = vmax.f32 %v7959_v1, 0.0  ;;  %v7961_v8 = vadd.f32 %v5537_v60, %v2628_v6 }
 0x208   : > { %v7868_v9 = vpop.f32.mrb[40].mxu0  ;;  %v7264_v10 = vpack.c.bf16 %v5907_v3, %v5907_v3  ;;  %v5908_v13 = vmax.f32 %v7960_v5, 0.0 }
 0x209   : > { %v5550_v14 = vpop.f32.mrb[41].mxu0  ;;  %v7262_v15 = vpack.c.bf16 %v5905_v7, %v5905_v7  ;;  %v5906_v16 = vmax.f32 %v7961_v8, 0.0 }
 0x20a   : > { %6388 = vst.msk [vmem:[%s9466_s6 + $0x98] sm:$0xf] %vm6349_vm4, %v7264_v10  ;;  %v7869_v17 = vpop.f32.mrb[42].mxu0  ;;  %v7265_v34 = vpack.c.bf16 %v5908_v13, %v5908_v13 }
 0x20b   : > { %6386 = vst.msk [vmem:[%s9466_s6 + $0x90] sm:$0xf] %vm6349_vm4, %v7262_v15  ;;  %v5553_v18 = vpop.f32.mrb[43].mxu0  ;;  %v7263_v20 = vpack.c.bf16 %v5906_v16, %v5906_v16  ;;  %v7668_v21 = vpop.f32.mrb[40].mxu1 }
 0x20c   : > { %6389 = vst.msk [vmem:[%s9466_s6 + $0x9c] sm:$0xf] %vm6349_vm4, %v7265_v34  ;;  %v7962_v22 = vadd.f32 %v7868_v9, %v7668_v21  ;;  %v2641_v23 = vpop.f32.mrb[41].mxu1 }
 0x20d   : > { %6387 = vst.msk [vmem:[%s9466_s6 + $0x94] sm:$0xf] %vm6349_vm4, %v7263_v20  ;;  %v7963_v24 = vadd.f32 %v5550_v14, %v2641_v23  ;;  %v7669_v25 = vpop.f32.mrb[42].mxu1 }
 0x20e   : > { %v5911_v26 = vmax.f32 %v7962_v22, 0.0  ;;  %v7964_v27 = vadd.f32 %v7869_v17, %v7669_v25  ;;  %v2644_v28 = vpop.f32.mrb[43].mxu1 }
 0x20f   : > { %v5909_v29 = vmax.f32 %v7963_v24, 0.0  ;;  %v7965_v30 = vadd.f32 %v5553_v18, %v2644_v28 }
 0x210   : > { %v7268_v31 = vpack.c.bf16 %v5911_v26, %v5911_v26  ;;  %v5912_v4 = vmax.f32 %v7964_v27, 0.0 }
 0x211   : > { %v7266_v33 = vpack.c.bf16 %v5909_v29, %v5909_v29  ;;  %v5910_v35 = vmax.f32 %v7965_v30, 0.0 }
 0x212   : > { %v7872_v32 = vpop.f32.mrb[44].mxu0  ;;  %6392 = vst.msk [vmem:[%s9466_s6 + $0xa8] sm:$0xf] %vm6349_vm4, %v7268_v31  ;;  %v7269_v37 = vpack.c.bf16 %v5912_v4, %v5912_v4 }
 0x213   : > { %v5566_v36 = vpop.f32.mrb[45].mxu0  ;;  %6390 = vst.msk [vmem:[%s9466_s6 + $0xa0] sm:$0xf] %vm6349_vm4, %v7266_v33  ;;  %v7267_v39 = vpack.c.bf16 %v5910_v35, %v5910_v35  ;;  %v7672_v40 = vpop.f32.mrb[44].mxu1 }
 0x214   : > { %v7873_v38 = vpop.f32.mrb[46].mxu0  ;;  %6393 = vst.msk [vmem:[%s9466_s6 + $0xac] sm:$0xf] %vm6349_vm4, %v7269_v37  ;;  %v7966_v11 = vadd.f32 %v7872_v32, %v7672_v40  ;;  %v2657_v12 = vpop.f32.mrb[45].mxu1 }
 0x215   : > { %v5569_v41 = vpop.f32.mrb[47].mxu0  ;;  %6391 = vst.msk [vmem:[%s9466_s6 + $0xa4] sm:$0xf] %vm6349_vm4, %v7267_v39  ;;  %v7967_v19 = vadd.f32 %v5566_v36, %v2657_v12  ;;  %v7673_v42 = vpop.f32.mrb[46].mxu1 }
 0x216   : > { %v5915_v43 = vmax.f32 %v7966_v11, 0.0  ;;  %v7968_v44 = vadd.f32 %v7873_v38, %v7673_v42  ;;  %v2660_v45 = vpop.f32.mrb[47].mxu1 }
 0x217   : > { %v5913_v46 = vmax.f32 %v7967_v19, 0.0  ;;  %v7969_v47 = vadd.f32 %v5569_v41, %v2660_v45 }
 0x218   : > { %v7272_v48 = vpack.c.bf16 %v5915_v43, %v5915_v43  ;;  %v5916_v49 = vmax.f32 %v7968_v44, 0.0 }
 0x219   : > { %v7270_v51 = vpack.c.bf16 %v5913_v46, %v5913_v46  ;;  %v5914_v52 = vmax.f32 %v7969_v47, 0.0 }
 0x21a   : > { %v7876_v50 = vpop.f32.mrb[48].mxu0  ;;  %6396 = vst.msk [vmem:[%s9466_s6 + $0xb8] sm:$0xf] %vm6349_vm4, %v7272_v48  ;;  %v7273_v54 = vpack.c.bf16 %v5916_v49, %v5916_v49 }
 0x21b   : > { %v5582_v53 = vpop.f32.mrb[49].mxu0  ;;  %6394 = vst.msk [vmem:[%s9466_s6 + $0xb0] sm:$0xf] %vm6349_vm4, %v7270_v51  ;;  %v7271_v56 = vpack.c.bf16 %v5914_v52, %v5914_v52  ;;  %v7676_v57 = vpop.f32.mrb[48].mxu1 }
 0x21c   : > { %v7877_v55 = vpop.f32.mrb[50].mxu0  ;;  %6397 = vst.msk [vmem:[%s9466_s6 + $0xbc] sm:$0xf] %vm6349_vm4, %v7273_v54  ;;  %v7970_v59 = vadd.f32 %v7876_v50, %v7676_v57  ;;  %v2673_v60 = vpop.f32.mrb[49].mxu1 }
 0x21d   : > { %v5585_v58 = vpop.f32.mrb[51].mxu0  ;;  %6395 = vst.msk [vmem:[%s9466_s6 + $0xb4] sm:$0xf] %vm6349_vm4, %v7271_v56  ;;  %v7971_v61 = vadd.f32 %v5582_v53, %v2673_v60  ;;  %v7677_v62 = vpop.f32.mrb[50].mxu1 }
 0x21e   : > { %v5919_v63 = vmax.f32 %v7970_v59, 0.0  ;;  %v7972_v0 = vadd.f32 %v7877_v55, %v7677_v62  ;;  %v2676_v1 = vpop.f32.mrb[51].mxu1 }
 0x21f   : > { %v5917_v2 = vmax.f32 %v7971_v61, 0.0  ;;  %v7973_v3 = vadd.f32 %v5585_v58, %v2676_v1 }
 0x220   : > { %v7276_v5 = vpack.c.bf16 %v5919_v63, %v5919_v63  ;;  %v5920_v6 = vmax.f32 %v7972_v0, 0.0 }
 0x221   : > { %v7274_v8 = vpack.c.bf16 %v5917_v2, %v5917_v2  ;;  %v5918_v9 = vmax.f32 %v7973_v3, 0.0 }
 0x222   : > { %v7880_v7 = vpop.f32.mrb[52].mxu0  ;;  %6400 = vst.msk [vmem:[%s9466_s6 + $0xc8] sm:$0xf] %vm6349_vm4, %v7276_v5  ;;  %v7277_v13 = vpack.c.bf16 %v5920_v6, %v5920_v6 }
 0x223   : > { %v5598_v10 = vpop.f32.mrb[53].mxu0  ;;  %6398 = vst.msk [vmem:[%s9466_s6 + $0xc0] sm:$0xf] %vm6349_vm4, %v7274_v8  ;;  %v7275_v15 = vpack.c.bf16 %v5918_v9, %v5918_v9  ;;  %v7680_v16 = vpop.f32.mrb[52].mxu1 }
 0x224   : > { %v7881_v14 = vpop.f32.mrb[54].mxu0  ;;  %6401 = vst.msk [vmem:[%s9466_s6 + $0xcc] sm:$0xf] %vm6349_vm4, %v7277_v13  ;;  %v7974_v34 = vadd.f32 %v7880_v7, %v7680_v16  ;;  %v2689_v18 = vpop.f32.mrb[53].mxu1 }
 0x225   : > { %v5601_v17 = vpop.f32.mrb[55].mxu0  ;;  %6399 = vst.msk [vmem:[%s9466_s6 + $0xc4] sm:$0xf] %vm6349_vm4, %v7275_v15  ;;  %v7975_v20 = vadd.f32 %v5598_v10, %v2689_v18  ;;  %v7681_v21 = vpop.f32.mrb[54].mxu1 }
 0x226   : > { %v5923_v22 = vmax.f32 %v7974_v34, 0.0  ;;  %v7976_v23 = vadd.f32 %v7881_v14, %v7681_v21  ;;  %v2692_v24 = vpop.f32.mrb[55].mxu1 }
 0x227   : > { %v5921_v25 = vmax.f32 %v7975_v20, 0.0  ;;  %v7977_v26 = vadd.f32 %v5601_v17, %v2692_v24 }
 0x228   : > { %v7280_v27 = vpack.c.bf16 %v5923_v22, %v5923_v22  ;;  %v5924_v28 = vmax.f32 %v7976_v23, 0.0 }
 0x229   : > { %v7278_v29 = vpack.c.bf16 %v5921_v25, %v5921_v25  ;;  %v5922_v30 = vmax.f32 %v7977_v26, 0.0 }
 0x22a   : > { %6404 = vst.msk [vmem:[%s9466_s6 + $0xd8] sm:$0xf] %vm6349_vm4, %v7280_v27  ;;  %v7281_v31 = vpack.c.bf16 %v5924_v28, %v5924_v28 }
 0x22b   : > { %v7884_v4 = vpop.f32.mrb[56].mxu0  ;;  %6402 = vst.msk [vmem:[%s9466_s6 + $0xd0] sm:$0xf] %vm6349_vm4, %v7278_v29  ;;  %v7279_v32 = vpack.c.bf16 %v5922_v30, %v5922_v30 }
 0x22c   : > { %v5614_v33 = vpop.f32.mrb[57].mxu0  ;;  %6405 = vst.msk [vmem:[%s9466_s6 + $0xdc] sm:$0xf] %vm6349_vm4, %v7281_v31  ;;  %v7684_v35 = vpop.f32.mrb[56].mxu1 }
 0x22d   : > { %v7885_v36 = vpop.f32.mrb[58].mxu0  ;;  %6403 = vst.msk [vmem:[%s9466_s6 + $0xd4] sm:$0xf] %vm6349_vm4, %v7279_v32  ;;  %v7978_v37 = vadd.f32 %v7884_v4, %v7684_v35  ;;  %v2705_v38 = vpop.f32.mrb[57].mxu1 }
 0x22e   : > { %v5617_v39 = vpop.f32.mrb[59].mxu0  ;;  %v7979_v40 = vadd.f32 %v5614_v33, %v2705_v38  ;;  %v7685_v41 = vpop.f32.mrb[58].mxu1 }
 0x22f   : > { %v5927_v11 = vmax.f32 %v7978_v37, 0.0  ;;  %v7980_v12 = vadd.f32 %v7885_v36, %v7685_v41  ;;  %v2708_v19 = vpop.f32.mrb[59].mxu1 }
 0x230   : > { %v5925_v42 = vmax.f32 %v7979_v40, 0.0  ;;  %v7981_v43 = vadd.f32 %v5617_v39, %v2708_v19 }
 0x231   : > { %v7284_v44 = vpack.c.bf16 %v5927_v11, %v5927_v11  ;;  %v5928_v45 = vmax.f32 %v7980_v12, 0.0 }
 0x232   : > { %v7282_v46 = vpack.c.bf16 %v5925_v42, %v5925_v42  ;;  %v5926_v47 = vmax.f32 %v7981_v43, 0.0 }
 0x233   : > { %v7888_v48 = vpop.f32.mrb[60].mxu0  ;;  %6408 = vst.msk [vmem:[%s9466_s6 + $0xe8] sm:$0xf] %vm6349_vm4, %v7284_v44  ;;  %v7285_v49 = vpack.c.bf16 %v5928_v45, %v5928_v45 }
 0x234   : > { %v5630_v50 = vpop.f32.mrb[61].mxu0  ;;  %6406 = vst.msk [vmem:[%s9466_s6 + $0xe0] sm:$0xf] %vm6349_vm4, %v7282_v46  ;;  %v7283_v51 = vpack.c.bf16 %v5926_v47, %v5926_v47  ;;  %v7688_v52 = vpop.f32.mrb[60].mxu1 }
 0x235   : > { %v7889_v53 = vpop.f32.mrb[62].mxu0  ;;  %6409 = vst.msk [vmem:[%s9466_s6 + $0xec] sm:$0xf] %vm6349_vm4, %v7285_v49  ;;  %v7982_v54 = vadd.f32 %v7888_v48, %v7688_v52  ;;  %v2721_v55 = vpop.f32.mrb[61].mxu1 }
 0x236   : > { %v5633_v56 = vpop.f32.mrb[63].mxu0  ;;  %6407 = vst.msk [vmem:[%s9466_s6 + $0xe4] sm:$0xf] %vm6349_vm4, %v7283_v51  ;;  %v7983_v57 = vadd.f32 %v5630_v50, %v2721_v55  ;;  %v7689_v58 = vpop.f32.mrb[62].mxu1 }
 0x237   : > { %v5931_v59 = vmax.f32 %v7982_v54, 0.0  ;;  %v7984_v60 = vadd.f32 %v7889_v53, %v7689_v58  ;;  %v2724_v61 = vpop.f32.mrb[63].mxu1 }
 0x238   : > { %v5929_v62 = vmax.f32 %v7983_v57, 0.0  ;;  %v7985_v63 = vadd.f32 %v5633_v56, %v2724_v61 }
 0x239   : > { %v7288_v0 = vpack.c.bf16 %v5931_v59, %v5931_v59  ;;  %v5932_v1 = vmax.f32 %v7984_v60, 0.0 }
 0x23a   : > { %v7286_v2 = vpack.c.bf16 %v5929_v62, %v5929_v62  ;;  %v5930_v3 = vmax.f32 %v7985_v63, 0.0 }
 0x23b   : > { %v7892_v5 = vpop.f32.mrb[64].mxu0  ;;  %6412 = vst.msk [vmem:[%s9466_s6 + $0xf8] sm:$0xf] %vm6349_vm4, %v7288_v0  ;;  %v7289_v6 = vpack.c.bf16 %v5932_v1, %v5932_v1 }
 0x23c   : > { %v5646_v7 = vpop.f32.mrb[65].mxu0  ;;  %6410 = vst.msk [vmem:[%s9466_s6 + $0xf0] sm:$0xf] %vm6349_vm4, %v7286_v2  ;;  %v7287_v8 = vpack.c.bf16 %v5930_v3, %v5930_v3 }
 0x23d   : > { %v7692_v9 = vpop.f32.mrb[64].mxu1  ;;  %v7893_v10 = vpop.f32.mrb[66].mxu0  ;;  %6413 = vst.msk [vmem:[%s9466_s6 + $0xfc] sm:$0xf] %vm6349_vm4, %v7289_v6 }
 0x23e   : > { %v7986_v13 = vadd.f32 %v7892_v5, %v7692_v9  ;;  %v2737_v14 = vpop.f32.mrb[65].mxu1  ;;  %v5649_v15 = vpop.f32.mrb[67].mxu0  ;;  %6411 = vst.msk [vmem:[%s9466_s6 + $0xf4] sm:$0xf] %vm6349_vm4, %v7287_v8 }
 0x23f   : > { %v7987_v16 = vadd.f32 %v5646_v7, %v2737_v14  ;;  %v7693_v17 = vpop.f32.mrb[66].mxu1 }
 0x240   : > { %v5935_v34 = vmax.f32 %v7986_v13, 0.0  ;;  %v7988_v18 = vadd.f32 %v7893_v10, %v7693_v17  ;;  %v2740_v20 = vpop.f32.mrb[67].mxu1 }
 0x241   : > { %v5933_v21 = vmax.f32 %v7987_v16, 0.0  ;;  %v7989_v22 = vadd.f32 %v5649_v15, %v2740_v20 }
 0x242   : > { %v7292_v23 = vpack.c.bf16 %v5935_v34, %v5935_v34  ;;  %v5936_v24 = vmax.f32 %v7988_v18, 0.0 }
 0x243   : > { %v7290_v25 = vpack.c.bf16 %v5933_v21, %v5933_v21  ;;  %v5934_v26 = vmax.f32 %v7989_v22, 0.0 }
 0x244   : > { %6416 = vst.msk [vmem:[%s9466_s6 + $0x108] sm:$0xf] %vm6349_vm4, %v7292_v23  ;;  %v7293_v27 = vpack.c.bf16 %v5936_v24, %v5936_v24  ;;  %v7896_v28 = vpop.f32.mrb[68].mxu0 }
 0x245   : > { %6414 = vst.msk [vmem:[%s9466_s6 + $0x100] sm:$0xf] %vm6349_vm4, %v7290_v25  ;;  %v7291_v29 = vpack.c.bf16 %v5934_v26, %v5934_v26  ;;  %v5662_v30 = vpop.f32.mrb[69].mxu0  ;;  %v7696_v31 = vpop.f32.mrb[68].mxu1 }
 0x246   : > { %6417 = vst.msk [vmem:[%s9466_s6 + $0x10c] sm:$0xf] %vm6349_vm4, %v7293_v27  ;;  %v7897_v4 = vpop.f32.mrb[70].mxu0  ;;  %v7990_v32 = vadd.f32 %v7896_v28, %v7696_v31  ;;  %v2753_v33 = vpop.f32.mrb[69].mxu1 }
 0x247   : > { %6415 = vst.msk [vmem:[%s9466_s6 + $0x104] sm:$0xf] %vm6349_vm4, %v7291_v29  ;;  %v5665_v35 = vpop.f32.mrb[71].mxu0  ;;  %v7991_v36 = vadd.f32 %v5662_v30, %v2753_v33  ;;  %v7697_v37 = vpop.f32.mrb[70].mxu1 }
 0x248   : > { %v5939_v38 = vmax.f32 %v7990_v32, 0.0  ;;  %v7992_v39 = vadd.f32 %v7897_v4, %v7697_v37  ;;  %v2756_v40 = vpop.f32.mrb[71].mxu1 }
 0x249   : > { %v5937_v41 = vmax.f32 %v7991_v36, 0.0  ;;  %v7993_v11 = vadd.f32 %v5665_v35, %v2756_v40 }
 0x24a   : > { %v7296_v12 = vpack.c.bf16 %v5939_v38, %v5939_v38  ;;  %v5940_v19 = vmax.f32 %v7992_v39, 0.0 }
 0x24b   : > { %v7294_v42 = vpack.c.bf16 %v5937_v41, %v5937_v41  ;;  %v5938_v43 = vmax.f32 %v7993_v11, 0.0 }
 0x24c   : > { %v7900_v44 = vpop.f32.mrb[72].mxu0  ;;  %6420 = vst.msk [vmem:[%s9466_s6 + $0x118] sm:$0xf] %vm6349_vm4, %v7296_v12  ;;  %v7297_v45 = vpack.c.bf16 %v5940_v19, %v5940_v19 }
 0x24d   : > { %v5678_v46 = vpop.f32.mrb[73].mxu0  ;;  %6418 = vst.msk [vmem:[%s9466_s6 + $0x110] sm:$0xf] %vm6349_vm4, %v7294_v42  ;;  %v7295_v47 = vpack.c.bf16 %v5938_v43, %v5938_v43 }
 0x24e   : > { %v7700_v48 = vpop.f32.mrb[72].mxu1  ;;  %v7901_v49 = vpop.f32.mrb[74].mxu0  ;;  %6421 = vst.msk [vmem:[%s9466_s6 + $0x11c] sm:$0xf] %vm6349_vm4, %v7297_v45 }
 0x24f   : > { %v7994_v50 = vadd.f32 %v7900_v44, %v7700_v48  ;;  %v2769_v51 = vpop.f32.mrb[73].mxu1  ;;  %v5681_v52 = vpop.f32.mrb[75].mxu0  ;;  %6419 = vst.msk [vmem:[%s9466_s6 + $0x114] sm:$0xf] %vm6349_vm4, %v7295_v47 }
 0x250   : > { %v7995_v53 = vadd.f32 %v5678_v46, %v2769_v51  ;;  %v7701_v54 = vpop.f32.mrb[74].mxu1 }
 0x251   : > { %v5943_v55 = vmax.f32 %v7994_v50, 0.0  ;;  %v7996_v56 = vadd.f32 %v7901_v49, %v7701_v54  ;;  %v2772_v57 = vpop.f32.mrb[75].mxu1 }
 0x252   : > { %v5941_v58 = vmax.f32 %v7995_v53, 0.0  ;;  %v7997_v59 = vadd.f32 %v5681_v52, %v2772_v57 }
 0x253   : > { %v7300_v60 = vpack.c.bf16 %v5943_v55, %v5943_v55  ;;  %v5944_v61 = vmax.f32 %v7996_v56, 0.0 }
 0x254   : > { %v7298_v62 = vpack.c.bf16 %v5941_v58, %v5941_v58  ;;  %v5942_v63 = vmax.f32 %v7997_v59, 0.0 }
 0x255   : > { %6424 = vst.msk [vmem:[%s9466_s6 + $0x128] sm:$0xf] %vm6349_vm4, %v7300_v60  ;;  %v7301_v0 = vpack.c.bf16 %v5944_v61, %v5944_v61 }
 0x256   : > { %v7904_v1 = vpop.f32.mrb[76].mxu0  ;;  %6422 = vst.msk [vmem:[%s9466_s6 + $0x120] sm:$0xf] %vm6349_vm4, %v7298_v62  ;;  %v7299_v2 = vpack.c.bf16 %v5942_v63, %v5942_v63 }
 0x257   : > { %v5694_v3 = vpop.f32.mrb[77].mxu0  ;;  %6425 = vst.msk [vmem:[%s9466_s6 + $0x12c] sm:$0xf] %vm6349_vm4, %v7301_v0  ;;  %v7704_v5 = vpop.f32.mrb[76].mxu1 }
 0x258   : > { %v7905_v6 = vpop.f32.mrb[78].mxu0  ;;  %6423 = vst.msk [vmem:[%s9466_s6 + $0x124] sm:$0xf] %vm6349_vm4, %v7299_v2  ;;  %v7998_v7 = vadd.f32 %v7904_v1, %v7704_v5  ;;  %v2785_v8 = vpop.f32.mrb[77].mxu1 }
 0x259   : > { %v5697_v9 = vpop.f32.mrb[79].mxu0  ;;  %v7999_v10 = vadd.f32 %v5694_v3, %v2785_v8  ;;  %v7705_v13 = vpop.f32.mrb[78].mxu1 }
 0x25a   : > { %v5947_v14 = vmax.f32 %v7998_v7, 0.0  ;;  %v8000_v15 = vadd.f32 %v7905_v6, %v7705_v13  ;;  %v2788_v16 = vpop.f32.mrb[79].mxu1 }
 0x25b   : > { %v5945_v17 = vmax.f32 %v7999_v10, 0.0  ;;  %v8001_v34 = vadd.f32 %v5697_v9, %v2788_v16 }
 0x25c   : > { %v7304_v18 = vpack.c.bf16 %v5947_v14, %v5947_v14  ;;  %v5948_v20 = vmax.f32 %v8000_v15, 0.0 }
 0x25d   : > { %v7302_v21 = vpack.c.bf16 %v5945_v17, %v5945_v17  ;;  %v5946_v22 = vmax.f32 %v8001_v34, 0.0 }
 0x25e   : > { %v7908_v23 = vpop.f32.mrb[80].mxu0  ;;  %6428 = vst.msk [vmem:[%s9466_s6 + $0x138] sm:$0xf] %vm6349_vm4, %v7304_v18  ;;  %v7305_v24 = vpack.c.bf16 %v5948_v20, %v5948_v20 }
 0x25f   : > { %v5710_v25 = vpop.f32.mrb[81].mxu0  ;;  %6426 = vst.msk [vmem:[%s9466_s6 + $0x130] sm:$0xf] %vm6349_vm4, %v7302_v21  ;;  %v7303_v26 = vpack.c.bf16 %v5946_v22, %v5946_v22  ;;  %v7708_v28 = vpop.f32.mrb[80].mxu1 }
 0x260   : > { %v7909_v27 = vpop.f32.mrb[82].mxu0  ;;  %6429 = vst.msk [vmem:[%s9466_s6 + $0x13c] sm:$0xf] %vm6349_vm4, %v7305_v24  ;;  %v8002_v30 = vadd.f32 %v7908_v23, %v7708_v28  ;;  %v2801_v31 = vpop.f32.mrb[81].mxu1 }
 0x261   : > { %v5713_v29 = vpop.f32.mrb[83].mxu0  ;;  %6427 = vst.msk [vmem:[%s9466_s6 + $0x134] sm:$0xf] %vm6349_vm4, %v7303_v26  ;;  %v8003_v4 = vadd.f32 %v5710_v25, %v2801_v31  ;;  %v7709_v32 = vpop.f32.mrb[82].mxu1 }
 0x262   : > { %v5951_v33 = vmax.f32 %v8002_v30, 0.0  ;;  %v8004_v35 = vadd.f32 %v7909_v27, %v7709_v32  ;;  %v2804_v36 = vpop.f32.mrb[83].mxu1 }
 0x263   : > { %v5949_v37 = vmax.f32 %v8003_v4, 0.0  ;;  %v8005_v38 = vadd.f32 %v5713_v29, %v2804_v36 }
 0x264   : > { %v7308_v39 = vpack.c.bf16 %v5951_v33, %v5951_v33  ;;  %v5952_v40 = vmax.f32 %v8004_v35, 0.0 }
 0x265   : > { %v7306_v11 = vpack.c.bf16 %v5949_v37, %v5949_v37  ;;  %v5950_v12 = vmax.f32 %v8005_v38, 0.0 }
 0x266   : > { %v7912_v41 = vpop.f32.mrb[84].mxu0  ;;  %6432 = vst.msk [vmem:[%s9466_s6 + $0x148] sm:$0xf] %vm6349_vm4, %v7308_v39  ;;  %v7309_v42 = vpack.c.bf16 %v5952_v40, %v5952_v40 }
 0x267   : > { %v5726_v19 = vpop.f32.mrb[85].mxu0  ;;  %6430 = vst.msk [vmem:[%s9466_s6 + $0x140] sm:$0xf] %vm6349_vm4, %v7306_v11  ;;  %v7307_v44 = vpack.c.bf16 %v5950_v12, %v5950_v12  ;;  %v7712_v45 = vpop.f32.mrb[84].mxu1 }
 0x268   : > { %v7913_v43 = vpop.f32.mrb[86].mxu0  ;;  %6433 = vst.msk [vmem:[%s9466_s6 + $0x14c] sm:$0xf] %vm6349_vm4, %v7309_v42  ;;  %v8006_v47 = vadd.f32 %v7912_v41, %v7712_v45  ;;  %v2817_v48 = vpop.f32.mrb[85].mxu1 }
 0x269   : > { %v5729_v46 = vpop.f32.mrb[87].mxu0  ;;  %6431 = vst.msk [vmem:[%s9466_s6 + $0x144] sm:$0xf] %vm6349_vm4, %v7307_v44  ;;  %v8007_v49 = vadd.f32 %v5726_v19, %v2817_v48  ;;  %v7713_v50 = vpop.f32.mrb[86].mxu1 }
 0x26a   : > { %v5955_v51 = vmax.f32 %v8006_v47, 0.0  ;;  %v8008_v52 = vadd.f32 %v7913_v43, %v7713_v50  ;;  %v2820_v53 = vpop.f32.mrb[87].mxu1 }
 0x26b   : > { %v5953_v54 = vmax.f32 %v8007_v49, 0.0  ;;  %v8009_v55 = vadd.f32 %v5729_v46, %v2820_v53 }
 0x26c   : > { %v7312_v56 = vpack.c.bf16 %v5955_v51, %v5955_v51  ;;  %v5956_v57 = vmax.f32 %v8008_v52, 0.0 }
 0x26d   : > { %v7310_v58 = vpack.c.bf16 %v5953_v54, %v5953_v54  ;;  %v5954_v59 = vmax.f32 %v8009_v55, 0.0 }
 0x26e   : > { %6436 = vst.msk [vmem:[%s9466_s6 + $0x158] sm:$0xf] %vm6349_vm4, %v7312_v56  ;;  %v7313_v60 = vpack.c.bf16 %v5956_v57, %v5956_v57 }
 0x26f   : > { %v7916_v61 = vpop.f32.mrb[88].mxu0  ;;  %6434 = vst.msk [vmem:[%s9466_s6 + $0x150] sm:$0xf] %vm6349_vm4, %v7310_v58  ;;  %v7311_v62 = vpack.c.bf16 %v5954_v59, %v5954_v59 }
 0x270   : > { %v5742_v63 = vpop.f32.mrb[89].mxu0  ;;  %6437 = vst.msk [vmem:[%s9466_s6 + $0x15c] sm:$0xf] %vm6349_vm4, %v7313_v60  ;;  %v7716_v0 = vpop.f32.mrb[88].mxu1 }
 0x271   : > { %v7917_v1 = vpop.f32.mrb[90].mxu0  ;;  %6435 = vst.msk [vmem:[%s9466_s6 + $0x154] sm:$0xf] %vm6349_vm4, %v7311_v62  ;;  %v8010_v2 = vadd.f32 %v7916_v61, %v7716_v0  ;;  %v2833_v3 = vpop.f32.mrb[89].mxu1 }
 0x272   : > { %v5745_v5 = vpop.f32.mrb[91].mxu0  ;;  %v8011_v6 = vadd.f32 %v5742_v63, %v2833_v3  ;;  %v7717_v7 = vpop.f32.mrb[90].mxu1 }
 0x273   : > { %v5959_v8 = vmax.f32 %v8010_v2, 0.0  ;;  %v8012_v9 = vadd.f32 %v7917_v1, %v7717_v7  ;;  %v2836_v10 = vpop.f32.mrb[91].mxu1 }
 0x274   : > { %v5957_v13 = vmax.f32 %v8011_v6, 0.0  ;;  %v8013_v14 = vadd.f32 %v5745_v5, %v2836_v10 }
 0x275   : > { %v7316_v15 = vpack.c.bf16 %v5959_v8, %v5959_v8  ;;  %v5960_v16 = vmax.f32 %v8012_v9, 0.0 }
 0x276   : > { %v7314_v17 = vpack.c.bf16 %v5957_v13, %v5957_v13  ;;  %v5958_v34 = vmax.f32 %v8013_v14, 0.0 }
 0x277   : > { %v7920_v18 = vpop.f32.mrb[92].mxu0  ;;  %6440 = vst.msk [vmem:[%s9466_s6 + $0x168] sm:$0xf] %vm6349_vm4, %v7316_v15  ;;  %v7317_v20 = vpack.c.bf16 %v5960_v16, %v5960_v16 }
 0x278   : > { %v5758_v21 = vpop.f32.mrb[93].mxu0  ;;  %6438 = vst.msk [vmem:[%s9466_s6 + $0x160] sm:$0xf] %vm6349_vm4, %v7314_v17  ;;  %v7315_v22 = vpack.c.bf16 %v5958_v34, %v5958_v34  ;;  %v7720_v23 = vpop.f32.mrb[92].mxu1 }
 0x279   : > { %v7921_v24 = vpop.f32.mrb[94].mxu0  ;;  %6441 = vst.msk [vmem:[%s9466_s6 + $0x16c] sm:$0xf] %vm6349_vm4, %v7317_v20  ;;  %v8014_v25 = vadd.f32 %v7920_v18, %v7720_v23  ;;  %v2849_v26 = vpop.f32.mrb[93].mxu1 }
 0x27a   : > { %v5761_v27 = vpop.f32.mrb[95].mxu0  ;;  %6439 = vst.msk [vmem:[%s9466_s6 + $0x164] sm:$0xf] %vm6349_vm4, %v7315_v22  ;;  %v8015_v28 = vadd.f32 %v5758_v21, %v2849_v26  ;;  %v7721_v29 = vpop.f32.mrb[94].mxu1 }
 0x27b   : > { %v5963_v30 = vmax.f32 %v8014_v25, 0.0  ;;  %v8016_v31 = vadd.f32 %v7921_v24, %v7721_v29  ;;  %v2852_v4 = vpop.f32.mrb[95].mxu1 }
 0x27c   : > { %v5961_v32 = vmax.f32 %v8015_v28, 0.0  ;;  %v8017_v33 = vadd.f32 %v5761_v27, %v2852_v4 }
 0x27d   : > { %v7320_v35 = vpack.c.bf16 %v5963_v30, %v5963_v30  ;;  %v5964_v36 = vmax.f32 %v8016_v31, 0.0 }
 0x27e   : > { %v7318_v37 = vpack.c.bf16 %v5961_v32, %v5961_v32  ;;  %v5962_v38 = vmax.f32 %v8017_v33, 0.0 }
 0x27f   : > { %6444 = vst.msk [vmem:[%s9466_s6 + $0x178] sm:$0xf] %vm6349_vm4, %v7320_v35  ;;  %v7321_v39 = vpack.c.bf16 %v5964_v36, %v5964_v36 }
 0x280   : > { %6442 = vst.msk [vmem:[%s9466_s6 + $0x170] sm:$0xf] %vm6349_vm4, %v7318_v37  ;;  %v7319_v40 = vpack.c.bf16 %v5962_v38, %v5962_v38 }
 0x281   : > { %6445 = vst.msk [vmem:[%s9466_s6 + $0x17c] sm:$0xf] %vm6349_vm4, %v7321_v39 }
 0x282   : > { %6443 = vst.msk [vmem:[%s9466_s6 + $0x174] sm:$0xf] %vm6349_vm4, %v7319_v40 }
 0x283 PF: > { %s12_s9 = sadd.s32 1, %s8424_s9  }
 0x284   : > { %p9_p4 = scmp.ge.s32.totalorder %s12_s9, 4  }
 0x286   :  { %11 = sbr.rel (!%p9_p4) target bundleno = 1 (0x1), region = 62 }

// kernel: my_model_forward.4
= control target key start
LH: loop header
LB: loop body
LE: loop exit
PB: predicated region body
PF: predicated region fallthrough
CT: control target
= control target key end

     0   :  { %s2730_s9 = smov 0   ;;  %s3238_s0 = inlined_call_operand.vmem [shape: bf16[2,13,17,128], index: 0, kind: input, shape index: {}]   ;;  %s3239_s1 = inlined_call_operand.vmem [shape: bf16[4,128,32], index: 1, kind: input, shape index: {}]   ;;  %s3240_s2 = inlined_call_operand.vmem [shape: bf16[2,12,16,32], index: 2, kind: output, shape index: {}]  }
   0x1 LB: > { %s2084_s10 = sadd.s32 4294967295, %s2713_s9   ;;  %p2088_p0 = scmp.ge.s32.totalorder %s2713_s9, 1  ;;  %s2713_s9 = sphi %s2730_s9, %s12_s9  }
   0x2   : > { %p112_p1 = scmp.lt.s32.totalorder %s2713_s9, 3 }
   0x4   : > { %p113_p2 = pnand %p2088_p0, %p112_p1 }
   0x5   : > { %v2651_v0 = vld [vmem:[%s3239_s1 + $0x40] sm:$0xff] (!%p113_p2)   ;;  %p134_p3 = scmp.lt.s32.totalorder (!%p113_p2), %s2084_s10, 1  ;;  %v2653_v2 = vld [vmem:[%s3239_s1 + $0x48] sm:$0xff] (!%p113_p2)   ;;  %v2655_v4 = vld [vmem:[%s3239_s1 + $0x50] sm:$0xff] (!%p113_p2)   ;;  %vm197_vm0 = vsmask.f32 (!%p113_p2), 3328 }
   0x6   : > { %116 = sbr.rel (%p113_p2) target bundleno = 354 (0x162), region = 28  ;;  %v2652_v1 = vld [vmem:[%s3239_s1 + $0x80] sm:$0xff] (!%p113_p2)   ;;  %2409 = vmatprep.subr.bf16.mxu1 (!%p113_p2), %v2651_v0  ;;  %v2654_v3 = vld [vmem:[%s3239_s1 + $0x88] sm:$0xff] (!%p113_p2)   ;;  %v2656_v5 = vld [vmem:[%s3239_s1 + $0x90] sm:$0xff] (!%p113_p2)   ;;  %vm198_vm1 = vsmask.f32 (!%p113_p2), 7440 }
   0x7   : > { %2489 = vmatprep.subr.bf16.mxu0 (!%p113_p2), %v2652_v1  ;;  %2410 = vmatpush3.bf16.msra.mxu1 (!%p113_p2), %v2651_v0  ;;  %v2657_v6 = vld [vmem:[%s3239_s1 + $0x58] sm:$0xff] (!%p113_p2)   ;;  %v2659_v8 = vld [vmem:[%s3239_s1 + $0x60] sm:$0xff] (!%p113_p2)   ;;  %v2661_v10 = vld [vmem:[%s3239_s1 + $0x68] sm:$0xff] (!%p113_p2)   ;;  %vm2004_vm3 = vcmask (!%p113_p2), 257024  }
   0x8   : > { %2490 = vmatpush3.bf16.msra.mxu0 (!%p113_p2), %v2652_v1  ;;  %2411 = vmatprep.subr.bf16.mxu1 (!%p113_p2), %v2653_v2  ;;  %v2658_v7 = vld [vmem:[%s3239_s1 + $0x98] sm:$0xff] (!%p113_p2)   ;;  %v2660_v9 = vld [vmem:[%s3239_s1 + $0xa0] sm:$0xff] (!%p113_p2)   ;;  %v2662_v11 = vld [vmem:[%s3239_s1 + $0xa8] sm:$0xff] (!%p113_p2)  }
   0x9   : > { %2491 = vmatprep.subr.bf16.mxu0 (!%p113_p2), %v2654_v3  ;;  %v2663_v17 = vld [vmem:[%s3239_s1 + $0x70] sm:$0xff] (!%p113_p2)   ;;  %vm2815_vm2 = vmor (!%p113_p2), %vm197_vm0, %vm198_vm1  ;;  %v2665_v46 = vld [vmem:[%s3239_s1 + $0x78] sm:$0xff] (!%p113_p2)  }
   0xa   : > { %v2664_v31 = vld [vmem:[%s3239_s1 + $0xb0] sm:$0xff] (!%p113_p2)   ;;  %v2666_v47 = vld [vmem:[%s3239_s1 + $0xb8] sm:$0xff] (!%p113_p2)   ;;  %v2668_v57 = vld [vmem:[%s3239_s1] sm:$0xff] (!%p113_p2)  }
   0xb   : > { %2412 = vmatpush3.bf16.msra.mxu1 (!%p113_p2), %v2653_v2  ;;  %v2670_v58 = vld [vmem:[%s3239_s1 + $0xc0] sm:$0xff] (!%p113_p2)  }
   0xc   : > { %2492 = vmatpush3.bf16.msra.mxu0 (!%p113_p2), %v2654_v3  ;;  %2413 = vmatprep.subr.bf16.mxu1 (!%p113_p2), %v2655_v4 }
   0xd   : > { %s3246_s10 = smov (!%p134_p3, %s2084_s10), 1  ;;  %2493 = vmatprep.subr.bf16.mxu0 %v2656_v5 }
   0xe   : > { %s2641_s27 = smul.u32 156, %s3246_s10 }
   0xf   : > { %2414 = vmatpush3.bf16.msra.mxu1 %v2655_v4  ;;  %v2671_v4 = vld [vmem:[%s3239_s1 + $0x8] sm:$0xff]  }
  0x10   : > { %2494 = vmatpush3.bf16.msra.mxu0 %v2656_v5  ;;  %2415 = vmatprep.subr.bf16.mxu1 %v2657_v6  ;;  %s2774_s6 = scalar_lea.vmem %s3238_s0, %s2641_s27 }
  0x11   : > { %2495 = vmatprep.subr.bf16.mxu0 %v2658_v7  ;;  %v2783_v12 = vld [vmem:[%s2774_s6] sm:$0xf]  ;;  %v2786_v13 = vld [vmem:[%s2774_s6 + $0x4] sm:$0xf]  ;;  %v185_v14 = vld [vmem:[%s2774_s6 + $0x8] sm:$0x1] }
  0x12   : > { %v201_v15 = vshrl.u32 %v2783_v12, 16  ;;  %v204_v16 = vshll.u32 %v2783_v12, 16  ;;  %v210_v18 = vshll.u32 %v2786_v13, 16  ;;  %v214_v19 = vshrl.u32 %v2786_v13, 16  ;;  %v2667_v21 = vld [vmem:[%s2774_s6 + $0xc] sm:$0xff]   ;;  %v2669_v0 = vld [vmem:[%s2774_s6 + $0x18] sm:$0xff]  }
  0x13   : > { %2416 = vmatpush3.bf16.msra.mxu1 %v2657_v6  ;;  %v220_v20 = vshll.u32 %v185_v14, 16  ;;  %v2127_v22 = vcombine.low %v2783_v12, %v2786_v13  ;;  %v2800_v25 = vld [vmem:[%s2774_s6 + $0xc] sm:$0xf]  ;;  %v2803_v29 = vld [vmem:[%s2774_s6 + $0x10] sm:$0xf]  ;;  %2505 = vmatprep.mubr.bf16.mxu0 %v2667_v21  ;;  %v2673_v21 = vld [vmem:[%s2774_s6 + $0x24] sm:$0xff]  }
  0x14   : > { %2496 = vmatpush3.bf16.msra.mxu0 %v2658_v7  ;;  %2417 = vmatprep.subr.bf16.mxu1 %v2659_v8  ;;  %v203_v23 = vrot.slane %v201_v15, 4  ;;  %v206_v24 = vrot.slane %v204_v16, 5  ;;  %v212_v26 = vrot.slane %v210_v18, 5  ;;  %v216_v27 = vrot.slane %v214_v19, 4  ;;  %v186_v33 = vld [vmem:[%s2774_s6 + $0x14] sm:$0x1] }
  0x15   : > { %2497 = vmatprep.subr.bf16.mxu0 %v2660_v9  ;;  %v222_v28 = vrot.slane %v220_v20, 5  ;;  %v225_v30 = vshrl.u32 %v2800_v25, 16  ;;  %v228_v34 = vshll.u32 %v2800_v25, 16  ;;  %v234_v35 = vshll.u32 %v2803_v29, 16  ;;  %v2838_v59 = vld [vmem:[%s2774_s6 + $0x18] sm:$0xf] }
  0x16   : > { %v207_v32 = vor.u32 %v206_v24, %v203_v23  ;;  %v238_v36 = vshrl.u32 %v2803_v29, 16  ;;  %v217_v38 = vor.u32 %v216_v27, %v212_v26  ;;  %v244_v40 = vshll.u32 %v186_v33, 16  ;;  %v2841_v60 = vld [vmem:[%s2774_s6 + $0x1c] sm:$0xf]  ;;  %v187_v61 = vld [vmem:[%s2774_s6 + $0x20] sm:$0x1] }
  0x17   : > { %2418 = vmatpush3.bf16.msra.mxu1 %v2659_v8  ;;  %v227_v39 = vrot.slane %v225_v30, 4  ;;  %v2128_v41 = vcombine.low %v2800_v25, %v2803_v29  ;;  %v230_v43 = vrot.slane %v228_v34, 5  ;;  %v236_v44 = vrot.slane %v234_v35, 5  ;;  %v2857_v8 = vld [vmem:[%s2774_s6 + $0x24] sm:$0xf] }
  0x18   : > { %2498 = vmatpush3.bf16.msra.mxu0 %v2660_v9  ;;  %2419 = vmatprep.subr.bf16.mxu1 %v2661_v10  ;;  %v208_v42 = vrot.slane %v207_v32, 4  ;;  %v240_v45 = vrot.slane %v238_v36, 4  ;;  %v218_v48 = vrot.slane %v217_v38, 4  ;;  %v246_v49 = vrot.slane %v244_v40, 5  ;;  %v2672_v9 = vld [vmem:[%s3239_s1 + $0xc8] sm:$0xff]   ;;  %v2676_v40 = vld [vmem:[%s3239_s1 + $0xd0] sm:$0xff]  }
  0x19   : > { %2499 = vmatprep.subr.bf16.mxu0 %v2662_v11  ;;  %v231_v51 = vor.u32 %v230_v43, %v227_v39  ;;  %v249_v1 = vshrl.u32 %v2838_v59, 16  ;;  %v252_v2 = vshll.u32 %v2838_v59, 16  ;;  %v258_v5 = vshll.u32 %v2841_v60, 16  ;;  %v2863_v14 = vld [vmem:[%s2774_s6 + $0x28] sm:$0xf]  ;;  %v2675_v39 = vld [vmem:[%s3239_s1 + $0x10] sm:$0xff]  }
  0x1a   : > { %v213_v50 = vsel %vm2815_vm2, %v208_v42, %v212_v26  ;;  %v241_v52 = vor.u32 %v240_v45, %v236_v44  ;;  %v223_v53 = vsel %vm2815_vm2, %v218_v48, %v222_v28  ;;  %v262_v6 = vshrl.u32 %v2841_v60, 16  ;;  %v188_v15 = vld [vmem:[%s2774_s6 + $0x2c] sm:$0x1]  ;;  %v2882_v45 = vld [vmem:[%s2774_s6 + $0x30] sm:$0xf] }
  0x1b   : > { %2420 = vmatpush3.bf16.msra.mxu1 %v2661_v10  ;;  %v2107_v54 = vcombine.low %v213_v50, %v223_v53  ;;  %v232_v55 = vrot.slane %v231_v51, 4  ;;  %v268_v7 = vshll.u32 %v187_v61, 16  ;;  %v251_v10 = vrot.slane %v249_v1, 4  ;;  %v2900_v1 = vld [vmem:[%s2774_s6 + $0x3c] sm:$0xf] }
  0x1c   : > { %2500 = vmatpush3.bf16.msra.mxu0 %v2662_v11  ;;  %2421 = vmatprep.subr.bf16.mxu1 %v2663_v17  ;;  %v242_v56 = vrot.slane %v241_v52, 4  ;;  %v254_v11 = vrot.slane %v252_v2, 5  ;;  %v260_v16 = vrot.slane %v258_v5, 5  ;;  %v273_v19 = vshrl.u32 %v2857_v8, 16  ;;  %v2907_v5 = vld [vmem:[%s2774_s6 + $0x40] sm:$0xf] }
  0x1d   : > { %2501 = vmatprep.subr.bf16.mxu0 %v2664_v31  ;;  %2425 = vmatprep.mubr.bf16.mxu1 %v2107_v54  ;;  %v237_v62 = vsel %vm2815_vm2, %v232_v55, %v236_v44  ;;  %v270_v18 = vrot.slane %v268_v7, 5  ;;  %v276_v23 = vshll.u32 %v2857_v8, 16  ;;  %v282_v24 = vshll.u32 %v2863_v14, 16  ;;  %v2217_v13 = vld [vmem:[%s2774_s6 + $0x34] sm:$0xf] }
  0x1e   : > { %v247_v63 = vsel %vm2815_vm2, %v242_v56, %v246_v49  ;;  %v255_v20 = vor.u32 %v254_v11, %v251_v10  ;;  %v286_v26 = vshrl.u32 %v2863_v14, 16  ;;  %v275_v28 = vrot.slane %v273_v19, 4  ;;  %v2674_v49 = vld [vmem:[%s2774_s6 + $0x30] sm:$0xff]  }
  0x1f   : > { %2422 = vmatpush3.bf16.msra.mxu1 %v2663_v17  ;;  %v2108_v3 = vcombine.low %v237_v62, %v247_v63  ;;  %v264_v17 = vrot.slane %v262_v6, 4  ;;  %v292_v30 = vshll.u32 %v188_v15, 16  ;;  %v278_v33 = vrot.slane %v276_v23, 5  ;;  %v190_v6 = vld [vmem:[%s2774_s6 + $0x44] sm:$0x1] }
  0x20   : > { %2502 = vmatpush3.bf16.msra.mxu0 %v2664_v31  ;;  %2423 = vmatprep.subr.bf16.mxu1 %v2665_v46  ;;  %v2130_v31 = vcombine.low %v2857_v8, %v2863_v14  ;;  %v256_v32 = vrot.slane %v255_v20, 4  ;;  %v284_v34 = vrot.slane %v282_v24, 5  ;;  %v288_v35 = vrot.slane %v286_v26, 4  ;;  %v2680_v20 = vld [vmem:[%s3239_s1 + $0xd8] sm:$0xff]  }
  0x21   : > { %2503 = vmatprep.subr.bf16.mxu0 %v2666_v47  ;;  %v265_v27 = vor.u32 %v264_v17, %v260_v16  ;;  %v294_v38 = vrot.slane %v292_v30, 5  ;;  %v279_v43 = vor.u32 %v278_v33, %v275_v28  ;;  %v297_v50 = vshrl.u32 %v2882_v45, 16  ;;  %v2678_v30 = vld [vmem:[%s2774_s6 + $0x48] sm:$0xff]  }
  0x22   : > { %v261_v42 = vsel %vm2815_vm2, %v256_v32, %v260_v16  ;;  %v289_v44 = vor.u32 %v288_v35, %v284_v34  ;;  %v300_v51 = vshll.u32 %v2882_v45, 16  ;;  %v321_v7 = vshrl.u32 %v2900_v1, 16  ;;  %v2682_v32 = vld [vmem:[%s3239_s1 + $0x20] sm:$0xff]  }
  0x23   : > { %2424 = vmatpush3.bf16.msra.mxu1 %v2665_v46  ;;  %v266_v36 = vrot.slane %v265_v27, 4  ;;  %v2885_v46 = vld [vmem:[%s2774_s6 + $0x34] sm:$0xf]  ;;  %v280_v54 = vrot.slane %v279_v43, 4  ;;  %v299_v61 = vrot.slane %v297_v50, 4  ;;  %v324_v15 = vshll.u32 %v2900_v1, 16 }
  0x24   : > { %2504 = vmatpush3.bf16.msra.mxu0 %v2666_v47  ;;  %2449 = vmatprep.subr.bf16.mxu1 %v2668_v57  ;;  %v189_v47 = vld [vmem:[%s2774_s6 + $0x38] sm:$0x1]  ;;  %v306_v52 = vshll.u32 %v2885_v46, 16  ;;  %v290_v55 = vrot.slane %v289_v44, 4  ;;  %v310_v56 = vshrl.u32 %v2885_v46, 16  ;;  %v302_v62 = vrot.slane %v300_v51, 5 }
  0x25   : > { %2529 = vmatprep.subr.bf16.mxu0 %v2670_v58  ;;  %v271_v48 = vsel %vm2815_vm2, %v266_v36, %v270_v18  ;;  %v285_v2 = vsel %vm2815_vm2, %v280_v54, %v284_v34  ;;  %v323_v17 = vrot.slane %v321_v7, 4  ;;  %v330_v18 = vshll.u32 %v2907_v5, 16  ;;  %v2924_v36 = vld [vmem:[%s2774_s6 + $0x48] sm:$0xf]  ;;  %v191_v43 = vld [vmem:[%s2774_s6 + $0x50] sm:$0x1] }
  0x26   : > { %2426 = vmatmul.mubr.bf16.vlgmr.msra.gmra.mrb[0].mxu1 %v2108_v3  ;;  %v2109_v53 = vcombine.low %v261_v42, %v271_v48  ;;  %v308_v63 = vrot.slane %v306_v52, 5  ;;  %v295_v3 = vsel %vm2815_vm2, %v290_v55, %v294_v38  ;;  %v303_v10 = vor.u32 %v302_v62, %v299_v61  ;;  %v2681_v38 = vld [vmem:[%s2774_s6 + $0x54] sm:$0xff]   ;;  %v2930_v42 = vld [vmem:[%s2774_s6 + $0x4c] sm:$0xf]  ;;  %v2684_v52 = vld [vmem:[%s3239_s1 + $0xe0] sm:$0xff]  }
  0x27   : > { %2506 = vmatmul.mubr.bf16.vlgmr.msra.gmra.mrb[0].mxu0 %v2669_v0  ;;  %2450 = vmatpush3.bf16.msra.mxu1 %v2668_v57  ;;  %v2677_v57 = vld [vmem:[%s2774_s6 + $0x3c] sm:$0xff]   ;;  %v316_v0 = vshll.u32 %v189_v47, 16  ;;  %v334_v19 = vshrl.u32 %v2907_v5, 16  ;;  %v326_v23 = vrot.slane %v324_v15, 5  ;;  %v340_v24 = vshll.u32 %v190_v6, 16 }
  0x28   : > { %2530 = vmatpush3.bf16.msra.mxu0 %v2670_v58  ;;  %2451 = vmatprep.subr.bf16.mxu1 %v2671_v4  ;;  %v2679_v58 = vld [vmem:[%s3239_s1 + $0x18] sm:$0xff]   ;;  %v332_v27 = vrot.slane %v330_v18, 5  ;;  %v345_v44 = vshrl.u32 %v2924_v36, 16  ;;  %v348_v47 = vshll.u32 %v2924_v36, 16  ;;  %v354_v50 = vshll.u32 %v2930_v42, 16 }
  0x29   : > { %2531 = vmatprep.subr.bf16.mxu0 %v2672_v9  ;;  %2509 = vmatprep.mubr.bf16.mxu0 %v2673_v21  ;;  %v318_v11 = vrot.slane %v316_v0, 5  ;;  %v304_v21 = vrot.slane %v303_v10, 4  ;;  %v336_v28 = vrot.slane %v334_v19, 4  ;;  %v327_v34 = vor.u32 %v326_v23, %v323_v17  ;;  %v2943_v62 = vld [vmem:[%s2774_s6 + $0x54] sm:$0xf]  ;;  %v2685_v23 = vld [vmem:[%s3239_s1 + $0x28] sm:$0xff]  }
  0x2a   : > { %2429 = vmatprep.mubr.bf16.mxu1 %v2109_v53  ;;  %v342_v35 = vrot.slane %v340_v24, 5  ;;  %v358_v51 = vshrl.u32 %v2930_v42, 16  ;;  %v347_v54 = vrot.slane %v345_v44, 4  ;;  %v350_v55 = vrot.slane %v348_v47, 5 }
  0x2b   : > { %2452 = vmatpush3.bf16.msra.mxu1 %v2671_v4  ;;  %v312_v4 = vrot.slane %v310_v56, 4  ;;  %v309_v33 = vsel %vm2815_vm2, %v304_v21, %v308_v63  ;;  %v364_v56 = vshll.u32 %v191_v43, 16  ;;  %v369_v6 = vshrl.u32 %v2943_v62, 16  ;;  %v193_v43 = vld [vmem:[%s2774_s6 + $0x68] sm:$0x1] }
  0x2c   : > { %2532 = vmatpush3.bf16.msra.mxu0 %v2672_v9  ;;  %2453 = vmatprep.subr.bf16.mxu1 %v2675_v39  ;;  %v2110_v9 = vcombine.low %v285_v2, %v295_v3  ;;  %v360_v61 = vrot.slane %v358_v51, 4  ;;  %v351_v2 = vor.u32 %v350_v55, %v347_v54  ;;  %v372_v10 = vshll.u32 %v2943_v62, 16 }
  0x2d   : > { %2533 = vmatprep.subr.bf16.mxu0 %v2676_v40  ;;  %v313_v16 = vor.u32 %v312_v4, %v308_v63  ;;  %v2946_v63 = vld [vmem:[%s2774_s6 + $0x58] sm:$0xf]  ;;  %v366_v3 = vrot.slane %v364_v56, 5  ;;  %v192_v4 = vld [vmem:[%s2774_s6 + $0x5c] sm:$0x1]  ;;  %v412_v51 = vshll.u32 %v193_v43, 16 }
  0x2e   : > { %2430 = vmatmul.mubr.bf16.gmra.mrb[4].mxu1 %v2110_v9  ;;  %v352_v15 = vrot.slane %v351_v2, 4  ;;  %v382_v17 = vshrl.u32 %v2946_v63, 16  ;;  %v388_v18 = vshll.u32 %v192_v4, 16  ;;  %v2986_v2 = vld [vmem:[%s2774_s6 + $0x70] sm:$0xf]  ;;  %v2129_v4 = vcombine.low %v2838_v59, %v2841_v60 }
  0x2f   : > { %2510 = vmatmul.mubr.bf16.gmra.mrb[4].mxu0 %v2674_v49  ;;  %2454 = vmatpush3.bf16.msra.mxu1 %v2675_v39  ;;  %v314_v26 = vrot.slane %v313_v16, 4  ;;  %v328_v49 = vrot.slane %v327_v34, 4  ;;  %v371_v16 = vrot.slane %v369_v6, 4  ;;  %v2223_v59 = vld [vmem:[%s2774_s6 + $0x4c] sm:$0xf] }
  0x30   : > { %2534 = vmatpush3.bf16.msra.mxu0 %v2676_v40  ;;  %2513 = vmatprep.mubr.bf16.mxu0 %v2677_v57  ;;  %v337_v40 = vor.u32 %v336_v28, %v332_v27  ;;  %v390_v34 = vrot.slane %v388_v18, 5 }
  0x31   : > { %2455 = vmatprep.subr.bf16.mxu1 %v2679_v58  ;;  %2535 = vmatprep.subr.bf16.mxu0 %v2680_v20  ;;  %v319_v39 = vsel %vm2815_vm2, %v314_v26, %v318_v11  ;;  %v333_v57 = vsel %vm2815_vm2, %v328_v49, %v332_v27  ;;  %v378_v11 = vshll.u32 %v2946_v63, 16  ;;  %v384_v26 = vrot.slane %v382_v17, 4  ;;  %v2683_v27 = vld [vmem:[%s2774_s6 + $0x60] sm:$0xff]  }
  0x32   : > { %v2111_v48 = vcombine.low %v309_v33, %v319_v39  ;;  %v338_v53 = vrot.slane %v337_v40, 4  ;;  %v2970_v39 = vld [vmem:[%s2774_s6 + $0x64] sm:$0xf]  ;;  %v430_v17 = vshrl.u32 %v2986_v2, 16 }
  0x33   : > { %2456 = vmatpush3.bf16.msra.mxu1 %v2679_v58  ;;  %v356_v58 = vrot.slane %v354_v50, 5  ;;  %v380_v21 = vrot.slane %v378_v11, 5  ;;  %v406_v50 = vshrl.u32 %v2970_v39, 16 }
  0x34   : > { %2536 = vmatpush3.bf16.msra.mxu0 %v2680_v20  ;;  %2457 = vmatprep.subr.bf16.mxu1 %v2682_v32  ;;  %v343_v0 = vsel %vm2815_vm2, %v338_v53, %v342_v35  ;;  %v374_v20 = vrot.slane %v372_v10, 5  ;;  %v2686_v35 = vld [vmem:[%s3239_s1 + $0xe8] sm:$0xff]  }
  0x35   : > { %2433 = vmatprep.mubr.bf16.mxu1 %v2111_v48  ;;  %2537 = vmatprep.subr.bf16.mxu0 %v2684_v52  ;;  %v2112_v7 = vcombine.low %v333_v57, %v343_v0  ;;  %v361_v9 = vor.u32 %v360_v61, %v356_v58  ;;  %v357_v24 = vsel %vm2815_vm2, %v352_v15, %v356_v58  ;;  %v402_v48 = vshll.u32 %v2970_v39, 16  ;;  %v2983_v0 = vld [vmem:[%s2774_s6 + $0x6c] sm:$0xf] }
  0x36   : > { %v385_v33 = vor.u32 %v384_v26, %v380_v21  ;;  %v408_v58 = vrot.slane %v406_v50, 4  ;;  %v414_v61 = vrot.slane %v412_v51, 5  ;;  %v417_v10 = vshrl.u32 %v2983_v0, 16 }
  0x37   : > { %2514 = vmatmul.mubr.bf16.gmra.mrb[8].mxu0 %v2678_v30  ;;  %2458 = vmatpush3.bf16.msra.mxu1 %v2682_v32  ;;  %v362_v19 = vrot.slane %v361_v9, 4  ;;  %v375_v30 = vor.u32 %v374_v20, %v371_v16  ;;  %v404_v56 = vrot.slane %v402_v48, 5  ;;  %v194_v9 = vld [vmem:[%s2774_s6 + $0x74] sm:$0x1]  ;;  %v420_v11 = vshll.u32 %v2983_v0, 16 }
  0x38   : > { %2517 = vmatprep.mubr.bf16.mxu0 %v2681_v38  ;;  %2538 = vmatpush3.bf16.msra.mxu0 %v2684_v52  ;;  %v2967_v38 = vld [vmem:[%s2774_s6 + $0x60] sm:$0xf]  ;;  %v386_v49 = vrot.slane %v385_v33, 4  ;;  %v2687_v52 = vld [vmem:[%s2774_s6 + $0x6c] sm:$0xff]   ;;  %v426_v16 = vshll.u32 %v2986_v2, 16  ;;  %v436_v18 = vshll.u32 %v194_v9, 16  ;;  %v2131_v26 = vcombine.low %v2882_v45, %v2885_v46 }
  0x39   : > { %2434 = vmatmul.mubr.bf16.gmra.mrb[8].mxu1 %v2112_v7  ;;  %v367_v28 = vsel %vm2815_vm2, %v362_v19, %v366_v3  ;;  %2459 = vmatprep.subr.bf16.mxu1 %v2685_v23  ;;  %v376_v40 = vrot.slane %v375_v30, 4  ;;  %v393_v44 = vshrl.u32 %v2967_v38, 16  ;;  %v396_v47 = vshll.u32 %v2967_v38, 16  ;;  %v2688_v3 = vld [vmem:[%s2774_s6 + $0x78] sm:$0xff]   ;;  %v2689_v19 = vld [vmem:[%s3239_s1 + $0x30] sm:$0xff]  }
  0x3a   : > { %v2113_v32 = vcombine.low %v357_v24, %v367_v28  ;;  %2539 = vmatprep.subr.bf16.mxu0 %v2686_v35  ;;  %v391_v57 = vsel %vm2815_vm2, %v386_v49, %v390_v34  ;;  %v409_v15 = vor.u32 %v408_v58, %v404_v56  ;;  %v2690_v24 = vld [vmem:[%s3239_s1 + $0xf0] sm:$0xff]   ;;  %v428_v28 = vrot.slane %v426_v16, 5  ;;  %v195_v48 = vld [vmem:[%s2774_s6 + $0x80] sm:$0x1]  ;;  %v3025_v9 = vld [vmem:[%s2774_s6 + $0x84] sm:$0xf] }
  0x3b   : > { %2460 = vmatpush3.bf16.msra.mxu1 %v2685_v23  ;;  %v381_v53 = vsel %vm2815_vm2, %v376_v40, %v380_v21  ;;  %v395_v54 = vrot.slane %v393_v44, 4  ;;  %v398_v55 = vrot.slane %v396_v47, 5  ;;  %v419_v21 = vrot.slane %v417_v10, 4  ;;  %v3014_v47 = vld [vmem:[%s2774_s6 + $0x7c] sm:$0xf] }
  0x3c   : > { %2437 = vmatprep.mubr.bf16.mxu1 %v2113_v32  ;;  %2540 = vmatpush3.bf16.msra.mxu0 %v2686_v35  ;;  %v2114_v6 = vcombine.low %v381_v53, %v391_v57  ;;  %v422_v23 = vrot.slane %v420_v11, 5  ;;  %v432_v30 = vrot.slane %v430_v17, 4  ;;  %v438_v32 = vrot.slane %v436_v18, 5  ;;  %v3007_v35 = vld [vmem:[%s2774_s6 + $0x78] sm:$0xf] }
  0x3d   : > { %v399_v7 = vor.u32 %v398_v55, %v395_v54  ;;  %2461 = vmatprep.subr.bf16.mxu1 %v2689_v19  ;;  %2541 = vmatprep.subr.bf16.mxu0 %v2690_v24  ;;  %v2132_v40 = vcombine.low %v2900_v1, %v2907_v5  ;;  %v441_v49 = vshrl.u32 %v3007_v35, 16  ;;  %v444_v50 = vshll.u32 %v3007_v35, 16  ;;  %v2691_v55 = vld [vmem:[%s2774_s6 + $0x84] sm:$0xff]   ;;  %v196_v18 = vld [vmem:[%s2774_s6 + $0x8c] sm:$0x1] }
  0x3e   : > { %v423_v34 = vor.u32 %v422_v23, %v419_v21  ;;  %v433_v44 = vor.u32 %v432_v30, %v428_v28  ;;  %v450_v53 = vshll.u32 %v3014_v47, 16  ;;  %v454_v54 = vshrl.u32 %v3014_v47, 16  ;;  %v3028_v10 = vld [vmem:[%s2774_s6 + $0x88] sm:$0xf]  ;;  %v2233_v5 = vld [vmem:[%s2774_s6 + $0x74] sm:$0x1] }
  0x3f   : > { %2518 = vmatmul.mubr.bf16.gmra.mrb[12].mxu0 %v2683_v27  ;;  %v400_v20 = vrot.slane %v399_v7, 4  ;;  %v410_v27 = vrot.slane %v409_v15, 4  ;;  %2462 = vmatpush3.bf16.msra.mxu1 %v2689_v19  ;;  %v443_v57 = vrot.slane %v441_v49, 4  ;;  %v446_v58 = vrot.slane %v444_v50, 5  ;;  %v2694_v49 = vld [vmem:[%s3239_s1 + $0xf8] sm:$0xff]  }
  0x40   : > { %2521 = vmatprep.mubr.bf16.mxu0 %v2687_v52  ;;  %v424_v52 = vrot.slane %v423_v34, 4  ;;  %2542 = vmatpush3.bf16.msra.mxu0 %v2690_v24  ;;  %v456_v7 = vrot.slane %v454_v54, 4  ;;  %v2133_v11 = vcombine.low %v2924_v36, %v2930_v42  ;;  %v465_v19 = vshrl.u32 %v3025_v9, 16  ;;  %v2234_v42 = vld [vmem:[%s2774_s6 + $0x78] sm:$0xf] }
  0x41   : > { %2438 = vmatmul.mubr.bf16.gmra.mrb[12].mxu1 %v2114_v6  ;;  %v405_v33 = vsel %vm2815_vm2, %v400_v20, %v404_v56  ;;  %v415_v43 = vsel %vm2815_vm2, %v410_v27, %v414_v61  ;;  %v434_v56 = vrot.slane %v433_v44, 4  ;;  %v460_v61 = vshll.u32 %v195_v48, 16  ;;  %v2692_v27 = vld [vmem:[%s2774_s6 + $0x90] sm:$0xff]   ;;  %2543 = vmatprep.subr.bf16.mxu0 %v2694_v49 }
  0x42   : > { %v2115_v51 = vcombine.low %v405_v33, %v415_v43  ;;  %v452_v6 = vrot.slane %v450_v53, 5  ;;  %v447_v16 = vor.u32 %v446_v58, %v443_v57  ;;  %v468_v23 = vshll.u32 %v3025_v9, 16  ;;  %v2207_v57 = vld [vmem:[%s2774_s6 + $0xc] sm:$0xf]  ;;  %v2208_v58 = vld [vmem:[%s2774_s6 + $0x10] sm:$0xf] }
  0x43   : > { %v439_v15 = vsel %vm2815_vm2, %v434_v56, %v438_v32  ;;  %v462_v17 = vrot.slane %v460_v61, 5  ;;  %v474_v24 = vshll.u32 %v3028_v10, 16  ;;  %v467_v33 = vrot.slane %v465_v19, 4  ;;  %v2209_v61 = vld [vmem:[%s2774_s6 + $0x14] sm:$0x1] }
  0x44   : > { %2441 = vmatprep.mubr.bf16.mxu1 %v2115_v51  ;;  %v457_v21 = vor.u32 %v456_v7, %v452_v6  ;;  %v448_v30 = vrot.slane %v447_v16, 4  ;;  %v478_v32 = vshrl.u32 %v3028_v10, 16  ;;  %v484_v34 = vshll.u32 %v196_v18, 16  ;;  %2544 = vmatpush3.bf16.msra.mxu0 %v2694_v49  ;;  %v2210_v19 = vld [vmem:[%s2774_s6 + $0x18] sm:$0xf] }
  0x45   : > { %v470_v44 = vrot.slane %v468_v23, 5  ;;  %v476_v48 = vrot.slane %v474_v24, 5  ;;  %v2134_v50 = vcombine.low %v2943_v62, %v2946_v63  ;;  %v2135_v54 = vcombine.low %v2967_v38, %v2970_v39  ;;  %v2211_v24 = vld [vmem:[%s2774_s6 + $0x1c] sm:$0xf] }
  0x46   : > { %v458_v43 = vrot.slane %v457_v21, 4  ;;  %v453_v51 = vsel %vm2815_vm2, %v448_v30, %v452_v6  ;;  %v486_v53 = vrot.slane %v484_v34, 5  ;;  %v1331_v16 = vshrl.u32 %v2207_v57, 16 }
  0x47   : > { %2522 = vmatmul.mubr.bf16.gmra.mrb[16].mxu0 %v2688_v3  ;;  %v429_v3 = vsel %vm2815_vm2, %v424_v52, %v428_v28  ;;  %v2693_v28 = vld [vmem:[%s3239_s1 + $0x38] sm:$0xff]   ;;  %v480_v52 = vrot.slane %v478_v32, 4  ;;  %v471_v56 = vor.u32 %v470_v44, %v467_v33  ;;  %v1334_v18 = vshll.u32 %v2207_v57, 16  ;;  %v2212_v33 = vld [vmem:[%s2774_s6 + $0x20] sm:$0x1] }
  0x48   : > { %2525 = vmatprep.mubr.bf16.mxu0 %v2691_v55  ;;  %v2116_v20 = vcombine.low %v429_v3, %v439_v15  ;;  %2463 = vmatprep.subr.bf16.mxu1 %v2693_v28  ;;  %v463_v55 = vsel %vm2815_vm2, %v458_v43, %v462_v17  ;;  %v1344_v21 = vshrl.u32 %v2208_v58, 16  ;;  %v1350_v23 = vshll.u32 %v2209_v61, 16  ;;  %v2215_v3 = vld [vmem:[%s2774_s6 + $0x2c] sm:$0x1] }
  0x49   : > { %2464 = vmatpush3.bf16.msra.mxu1 %v2693_v28  ;;  %v2117_v7 = vcombine.low %v453_v51, %v463_v55  ;;  %v481_v15 = vor.u32 %v480_v52, %v476_v48  ;;  %v472_v17 = vrot.slane %v471_v56, 4  ;;  %v1333_v28 = vrot.slane %v1331_v16, 4  ;;  %v2213_v51 = vld [vmem:[%s2774_s6 + $0x24] sm:$0xf] }
  0x4a   : > { %2442 = vmatmul.mubr.bf16.gmra.mrb[16].mxu1 %v2116_v20  ;;  %v1340_v20 = vshll.u32 %v2208_v58, 16  ;;  %v1336_v30 = vrot.slane %v1334_v18, 5  ;;  %v1355_v32 = vshrl.u32 %v2210_v19, 16  ;;  %v1346_v44 = vrot.slane %v1344_v21, 4 }
  0x4b   : > { %2445 = vmatprep.mubr.bf16.mxu1 %v2117_v7  ;;  %v477_v34 = vsel %vm2815_vm2, %v472_v17, %v476_v48  ;;  %v1352_v49 = vrot.slane %v1350_v23, 5  ;;  %v1358_v57 = vshll.u32 %v2210_v19, 16  ;;  %v1364_v7 = vshll.u32 %v2211_v24, 16  ;;  %v2214_v17 = vld [vmem:[%s2774_s6 + $0x28] sm:$0xf] }
  0x4c   : > { %v1342_v43 = vrot.slane %v1340_v20, 5  ;;  %v1337_v55 = vor.u32 %v1336_v30, %v1333_v28  ;;  %v1357_v56 = vrot.slane %v1355_v32, 4  ;;  %v1374_v48 = vshll.u32 %v2212_v33, 16  ;;  %v2216_v30 = vld [vmem:[%s2774_s6 + $0x30] sm:$0xf] }
  0x4d   : > { %v1360_v18 = vrot.slane %v1358_v57, 5  ;;  %v1379_v20 = vshrl.u32 %v2213_v51, 16  ;;  %v1366_v23 = vrot.slane %v1364_v7, 5  ;;  %v1398_v12 = vshll.u32 %v2215_v3, 16 }
  0x4e   : > { %v1347_v61 = vor.u32 %v1346_v44, %v1342_v43  ;;  %v1338_v16 = vrot.slane %v1337_v55, 4  ;;  %v1388_v44 = vshll.u32 %v2214_v17, 16  ;;  %v1392_v55 = vshrl.u32 %v2214_v17, 16 }
  0x4f   : > { %2526 = vmatmul.mubr.bf16.gmra.mrb[20].mxu0 %v2692_v27  ;;  %v482_v27 = vrot.slane %v481_v15, 4  ;;  %v1368_v15 = vshrl.u32 %v2211_v24, 16  ;;  %v1361_v24 = vor.u32 %v1360_v18, %v1357_v56  ;;  %v1381_v28 = vrot.slane %v1379_v20, 4  ;;  %v2218_v56 = vld [vmem:[%s2774_s6 + $0x38] sm:$0x1] }
  0x50   : > { %v1348_v21 = vrot.slane %v1347_v61, 4  ;;  %v1343_v19 = vsel %vm2815_vm2, %v1338_v16, %v1342_v43  ;;  %v1390_v43 = vrot.slane %v1388_v44, 5  ;;  %v1406_v7 = vshll.u32 %v2216_v30, 16 }
  0x51   : > { %v487_v52 = vsel %vm2815_vm2, %v482_v27, %v486_v53  ;;  %v1370_v6 = vrot.slane %v1368_v15, 4  ;;  %v1382_v53 = vshll.u32 %v2213_v51, 16  ;;  %v1376_v27 = vrot.slane %v1374_v48, 5  ;;  %v2219_v15 = vld [vmem:[%s2774_s6 + $0x3c] sm:$0xf] }
  0x52   : > { %v2118_v58 = vcombine.low %v477_v34, %v487_v52  ;;  %v1353_v33 = vsel %vm2815_vm2, %v1348_v21, %v1352_v49  ;;  %v1362_v52 = vrot.slane %v1361_v24, 4  ;;  %v1394_v49 = vrot.slane %v1392_v55, 4 }
  0x53   : > { %v1371_v32 = vor.u32 %v1370_v6, %v1366_v23  ;;  %v1384_v34 = vrot.slane %v1382_v53, 5  ;;  %v2259_v51 = vcombine.low %v1343_v19, %v1353_v33  ;;  %v1400_v6 = vrot.slane %v1398_v12, 5  ;;  %v2220_v19 = vld [vmem:[%s2774_s6 + $0x40] sm:$0xf] }
  0x54   : > { %2446 = vmatmul.mubr.bf16.gmra.mrb[20].mxu1 %v2118_v58  ;;  %v1403_v58 = vshrl.u32 %v2216_v30, 16  ;;  %v1367_v61 = vsel %vm2815_vm2, %v1362_v52, %v1366_v23  ;;  %v1412_v48 = vshll.u32 %v2217_v13, 16  ;;  %v1395_v20 = vor.u32 %v1394_v49, %v1390_v43  ;;  %v2222_v52 = vld [vmem:[%s2774_s6 + $0x48] sm:$0xf]  ;;  %v2224_v49 = vld [vmem:[%s2774_s6 + $0x50] sm:$0x1] }
  0x55   : > { %2465 = vmatprep.mubr.bf16.mxu1 %v2127_v22  ;;  %v1372_v22 = vrot.slane %v1371_v32, 4  ;;  %v1385_v57 = vor.u32 %v1384_v34, %v1381_v28  ;;  %2545 = vmatprep.mubr.bf16.mxu0 %v2259_v51  ;;  %v1408_v21 = vrot.slane %v1406_v7, 5  ;;  %v1416_v53 = vshrl.u32 %v2217_v13, 16  ;;  %v2221_v34 = vld [vmem:[%s2774_s6 + $0x44] sm:$0x1] }
  0x56   : > { %v1405_v3 = vrot.slane %v1403_v58, 4  ;;  %v1414_v24 = vrot.slane %v1412_v48, 5  ;;  %v1422_v28 = vshll.u32 %v2218_v56, 16  ;;  %v1396_v30 = vrot.slane %v1395_v20, 4 }
  0x57   : > { %v1377_v16 = vsel %vm2815_vm2, %v1372_v22, %v1376_v27  ;;  %v1386_v18 = vrot.slane %v1385_v57, 4  ;;  %v1427_v27 = vshrl.u32 %v2219_v15, 16  ;;  %v1418_v32 = vrot.slane %v1416_v53, 4  ;;  %v2226_v53 = vld [vmem:[%s2774_s6 + $0x58] sm:$0xf] }
  0x58   : > { %v2260_v17 = vcombine.low %v1367_v61, %v1377_v16  ;;  %v1409_v33 = vor.u32 %v1408_v21, %v1405_v3  ;;  %v1430_v44 = vshll.u32 %v2219_v15, 16  ;;  %v1424_v25 = vrot.slane %v1422_v28, 5  ;;  %v2225_v3 = vld [vmem:[%s2774_s6 + $0x54] sm:$0xf] }
  0x59   : > { %v1391_v23 = vsel %vm2815_vm2, %v1386_v18, %v1390_v43  ;;  %v1429_v29 = vrot.slane %v1427_v27, 4  ;;  %v1440_v51 = vshrl.u32 %v2220_v19, 16  ;;  %v1401_v55 = vsel %vm2815_vm2, %v1396_v30, %v1400_v6 }
  0x5a   : > { %2546 = vmatmul.mubr.bf16.vlgmr.msra.gmra.mrb[0].mxu0 %v2260_v17  ;;  %v1410_v12 = vrot.slane %v1409_v33, 4  ;;  %v1419_v13 = vor.u32 %v1418_v32, %v1414_v24  ;;  %v1432_v22 = vrot.slane %v1430_v44, 5  ;;  %v2261_v60 = vcombine.low %v1391_v23, %v1401_v55 }
  0x5b   : > { %v1442_v57 = vrot.slane %v1440_v51, 4  ;;  %v1446_v43 = vshll.u32 %v2221_v34, 16  ;;  %v1451_v7 = vshrl.u32 %v2222_v52, 16  ;;  %v1454_v16 = vshll.u32 %v2222_v52, 16 }
  0x5c   : > { %2466 = vmatmul.mubr.bf16.vlgmr.msra.gmra.mrb[0].mxu1 %v2128_v41  ;;  %v1436_v41 = vshll.u32 %v2220_v19, 16  ;;  %v1415_v56 = vsel %vm2815_vm2, %v1410_v12, %v1414_v24  ;;  %v1420_v58 = vrot.slane %v1419_v13, 4  ;;  %v1433_v61 = vor.u32 %v1432_v22, %v1429_v29  ;;  %2549 = vmatprep.mubr.bf16.mxu0 %v2261_v60 }
  0x5d   : > { %2469 = vmatprep.mubr.bf16.mxu1 %v2129_v4  ;;  %v1448_v6 = vrot.slane %v1446_v43, 5  ;;  %v1460_v18 = vshll.u32 %v2223_v59, 16  ;;  %v1453_v20 = vrot.slane %v1451_v7, 4  ;;  %v1464_v21 = vshrl.u32 %v2223_v59, 16 }
  0x5e   : > { %v1438_v4 = vrot.slane %v1436_v41, 5  ;;  %v1425_v48 = vsel %vm2815_vm2, %v1420_v58, %v1424_v25  ;;  %v1434_v17 = vrot.slane %v1433_v61, 4  ;;  %v1456_v24 = vrot.slane %v1454_v16, 5  ;;  %v2228_v25 = vld [vmem:[%s2774_s6 + $0x60] sm:$0xf] }
  0x5f   : > { %v2262_v19 = vcombine.low %v1415_v56, %v1425_v48  ;;  %v1462_v28 = vrot.slane %v1460_v18, 5  ;;  %v1466_v30 = vrot.slane %v1464_v21, 4  ;;  %v1470_v33 = vshll.u32 %v2224_v49, 16  ;;  %v2230_v56 = vld [vmem:[%s2774_s6 + $0x68] sm:$0x1] }
  0x60   : > { %v1443_v15 = vor.u32 %v1442_v57, %v1438_v4  ;;  %v1439_v27 = vsel %vm2815_vm2, %v1434_v17, %v1438_v4  ;;  %v1475_v32 = vshrl.u32 %v2225_v3, 16  ;;  %v1457_v14 = vor.u32 %v1456_v24, %v1453_v20  ;;  %v2231_v61 = vld [vmem:[%s2774_s6 + $0x6c] sm:$0xf]  ;;  %v2232_v16 = vld [vmem:[%s2774_s6 + $0x70] sm:$0xf] }
  0x61   : > { %v1478_v34 = vshll.u32 %v2225_v3, 16  ;;  %v1484_v44 = vshll.u32 %v2226_v53, 16  ;;  %v1467_v41 = vor.u32 %v1466_v30, %v1462_v28  ;;  %v1472_v45 = vrot.slane %v1470_v33, 5 }
  0x62   : > { %v1444_v23 = vrot.slane %v1443_v15, 4  ;;  %2550 = vmatmul.mubr.bf16.gmra.mrb[4].mxu0 %v2262_v19  ;;  %v1477_v46 = vrot.slane %v1475_v32, 4  ;;  %v1458_v51 = vrot.slane %v1457_v14, 4  ;;  %v1488_v12 = vshrl.u32 %v2226_v53, 16  ;;  %v2235_v14 = vld [vmem:[%s2774_s6 + $0x7c] sm:$0xf] }
  0x63   : > { %v1480_v52 = vrot.slane %v1478_v34, 5  ;;  %v1486_v55 = vrot.slane %v1484_v44, 5  ;;  %v1468_v13 = vrot.slane %v1467_v41, 4  ;;  %v1499_v59 = vshrl.u32 %v2228_v25, 16 }
  0x64   : > { %2470 = vmatmul.mubr.bf16.gmra.mrb[4].mxu1 %v2130_v31  ;;  %v1449_v8 = vsel %vm2815_vm2, %v1444_v23, %v1448_v6  ;;  %v2227_v31 = vld [vmem:[%s2774_s6 + $0x5c] sm:$0x1]  ;;  %v1502_v60 = vshll.u32 %v2228_v25, 16  ;;  %v1463_v4 = vsel %vm2815_vm2, %v1458_v51, %v1462_v28  ;;  %v1490_v43 = vrot.slane %v1488_v12, 4 }
  0x65   : > { %2473 = vmatprep.mubr.bf16.mxu1 %v2131_v26  ;;  %v2263_v29 = vcombine.low %v1439_v27, %v1449_v8  ;;  %v2229_v26 = vld [vmem:[%s2774_s6 + $0x64] sm:$0xf]  ;;  %v1494_v22 = vshll.u32 %v2227_v31, 16  ;;  %v1481_v57 = vor.u32 %v1480_v52, %v1477_v46  ;;  %v1473_v49 = vsel %vm2815_vm2, %v1468_v13, %v1472_v45  ;;  %v2236_v45 = vld [vmem:[%s2774_s6 + $0x80] sm:$0x1] }
  0x66   : > { %v1508_v58 = vshll.u32 %v2229_v26, 16  ;;  %v1501_v15 = vrot.slane %v1499_v59, 4  ;;  %v1504_v6 = vrot.slane %v1502_v60, 5  ;;  %v2264_v18 = vcombine.low %v1463_v4, %v1473_v49  ;;  %v2237_v4 = vld [vmem:[%s2774_s6 + $0x84] sm:$0xf] }
  0x67   : > { %2553 = vmatprep.mubr.bf16.mxu0 %v2263_v29  ;;  %v1496_v7 = vrot.slane %v1494_v22, 5  ;;  %v1482_v3 = vrot.slane %v1481_v57, 4  ;;  %v1491_v48 = vor.u32 %v1490_v43, %v1486_v55  ;;  %v1512_v21 = vshrl.u32 %v2229_v26, 16 }
  0x68   : > { %v1510_v17 = vrot.slane %v1508_v58, 5  ;;  %v1505_v20 = vor.u32 %v1504_v6, %v1501_v15  ;;  %v1518_v53 = vshll.u32 %v2230_v56, 16  ;;  %v1523_v19 = vshrl.u32 %v2231_v61, 16  ;;  %v2239_v6 = vld [vmem:[%s2774_s6 + $0x8c] sm:$0x1] }
  0x69   : > { %v1487_v23 = vsel %vm2815_vm2, %v1482_v3, %v1486_v55  ;;  %v1492_v1 = vrot.slane %v1491_v48, 4  ;;  %v1532_v24 = vshll.u32 %v2232_v16, 16  ;;  %v1514_v27 = vrot.slane %v1512_v21, 4  ;;  %v2240_v48 = vld [vmem:[%s2774_s6 + $0x90] sm:$0xf] }
  0x6a   : > { %2554 = vmatmul.mubr.bf16.gmra.mrb[8].mxu0 %v2264_v18  ;;  %v1506_v28 = vrot.slane %v1505_v20, 4  ;;  %v1520_v30 = vrot.slane %v1518_v53, 5  ;;  %v1525_v36 = vrot.slane %v1523_v19, 4  ;;  %v1536_v8 = vshrl.u32 %v2232_v16, 16  ;;  %v2241_v19 = vld [vmem:[%s2774_s6 + $0x94] sm:$0xf] }
  0x6b   : > { %v1534_v32 = vrot.slane %v1532_v24, 5  ;;  %v1515_v44 = vor.u32 %v1514_v27, %v1510_v17  ;;  %v1542_v25 = vshll.u32 %v2233_v5, 16  ;;  %v1547_v46 = vshrl.u32 %v2234_v42, 16  ;;  %v2242_v27 = vld [vmem:[%s2774_s6 + $0x98] sm:$0x1] }
  0x6c   : > { %2474 = vmatmul.mubr.bf16.gmra.mrb[8].mxu1 %v2132_v40  ;;  %v1526_v40 = vshll.u32 %v2231_v61, 16  ;;  %v1511_v34 = vsel %vm2815_vm2, %v1506_v28, %v1510_v17  ;;  %v1538_v41 = vrot.slane %v1536_v8, 4  ;;  %v1550_v26 = vshll.u32 %v2234_v42, 16  ;;  %v2238_v61 = vld [vmem:[%s2774_s6 + $0x88] sm:$0xf]  ;;  %s2642_s6 = smul.u32 96, %s3246_s10 }
  0x6d   : > { %2477 = vmatprep.mubr.bf16.mxu1 %v2133_v11  ;;  %v1497_v11 = vsel %vm2815_vm2, %v1492_v1, %v1496_v7  ;;  %v1516_v51 = vrot.slane %v1515_v44, 4  ;;  %v1544_v52 = vrot.slane %v1542_v25, 5  ;;  %v1556_v55 = vshll.u32 %v2235_v14, 16 }
  0x6e   : > { %v1528_v33 = vrot.slane %v1526_v40, 5  ;;  %v2265_v31 = vcombine.low %v1487_v23, %v1497_v11  ;;  %v1560_v12 = vshrl.u32 %v2235_v14, 16  ;;  %v1539_v22 = vor.u32 %v1538_v41, %v1534_v32  ;;  %s3185_s30 = scalar_lea.vmem %s3240_s2, %s2642_s6 }
  0x6f   : > { %v1549_v59 = vrot.slane %v1547_v46, 4  ;;  %v1552_v60 = vrot.slane %v1550_v26, 5  ;;  %v1521_v57 = vsel %vm2815_vm2, %v1516_v51, %v1520_v30  ;;  %v1558_v43 = vrot.slane %v1556_v55, 5 }
  0x70   : > { %v1529_v29 = vor.u32 %v1528_v33, %v1525_v36  ;;  %2557 = vmatprep.mubr.bf16.mxu0 %v2265_v31  ;;  %v1562_v56 = vrot.slane %v1560_v12, 4  ;;  %v1566_v58 = vshll.u32 %v2236_v45, 16  ;;  %v2266_v62 = vcombine.low %v1511_v34, %v1521_v57 }
  0x71   : > { %v1553_v49 = vor.u32 %v1552_v60, %v1549_v59  ;;  %v1571_v16 = vshrl.u32 %v2237_v4, 16  ;;  %v1574_v18 = vshll.u32 %v2237_v4, 16  ;;  %v1584_v3 = vshrl.u32 %v2238_v61, 16 }
  0x72   : > { %v1530_v13 = vrot.slane %v1529_v29, 4  ;;  %v1563_v7 = vor.u32 %v1562_v56, %v1558_v43  ;;  %v1568_v15 = vrot.slane %v1566_v58, 5  ;;  %2558 = vmatmul.mubr.bf16.gmra.mrb[12].mxu0 %v2266_v62  ;;  %v1590_v40 = vshll.u32 %v2239_v6, 16 }
  0x73   : > { %v1554_v39 = vrot.slane %v1553_v49, 4  ;;  %v1573_v21 = vrot.slane %v1571_v16, 4  ;;  %v1576_v53 = vrot.slane %v1574_v18, 5  ;;  %v1586_v5 = vrot.slane %v1584_v3, 4 }
  0x74   : > { %2478 = vmatmul.mubr.bf16.gmra.mrb[12].mxu1 %v2134_v50  ;;  %v1535_v63 = vsel %vm2815_vm2, %v1530_v13, %v1534_v32  ;;  %v1540_v50 = vrot.slane %v1539_v22, 4  ;;  %v1564_v20 = vrot.slane %v1563_v7, 4  ;;  %v1595_v30 = vshrl.u32 %v2240_v48, 16 }
  0x75   : > { %2481 = vmatprep.mubr.bf16.mxu1 %v2135_v54  ;;  %v1580_v54 = vshll.u32 %v2238_v61, 16  ;;  %v1559_v23 = vsel %vm2815_vm2, %v1554_v39, %v1558_v43  ;;  %v1577_v28 = vor.u32 %v1576_v53, %v1573_v21  ;;  %v1598_v36 = vshll.u32 %v2240_v48, 16 }
  0x76   : > { %v1545_v38 = vsel %vm2815_vm2, %v1540_v50, %v1544_v52  ;;  %v1569_v24 = vsel %vm2815_vm2, %v1564_v20, %v1568_v15  ;;  %v3243_v42 = vcombine.low %v2983_v0, %v2986_v2  ;;  %v1592_v32 = vrot.slane %v1590_v40, 5 }
  0x77   : > { %v2267_v17 = vcombine.low %v1535_v63, %v1545_v38  ;;  %v1582_v1 = vrot.slane %v1580_v54, 5  ;;  %v2268_v11 = vcombine.low %v1559_v23, %v1569_v24  ;;  %v1604_v8 = vshll.u32 %v2241_v19, 16 }
  0x78   : > { %v3244_v14 = vcombine.low %v3007_v35, %v3014_v47  ;;  %v1578_v31 = vrot.slane %v1577_v28, 4  ;;  %v1597_v34 = vrot.slane %v1595_v30, 4  ;;  %v1600_v44 = vrot.slane %v1598_v36, 5 }
  0x79   : > { %2561 = vmatprep.mubr.bf16.mxu0 %v2267_v17  ;;  %v1587_v33 = vor.u32 %v1586_v5, %v1582_v1  ;;  %v1608_v25 = vshrl.u32 %v2241_v19, 16  ;;  %v1606_v41 = vrot.slane %v1604_v8, 5  ;;  %v1614_v45 = vshll.u32 %v2242_v27, 16 }
  0x7a   : > { %v1583_v46 = vsel %vm2815_vm2, %v1578_v31, %v1582_v1  ;;  %v1601_v0 = vor.u32 %v1600_v44, %v1597_v34  ;;  %2562 = vmatmul.mubr.bf16.gmra.mrb[16].mxu0 %v2268_v11  ;;  %v2138_v35 = vcombine.low %v3025_v9, %v3028_v10 }
  0x7b   : > { %v1588_v29 = vrot.slane %v1587_v33, 4  ;;  %v1610_v2 = vrot.slane %v1608_v25, 4  ;;  %v1616_v55 = vrot.slane %v1614_v45, 5 }
  0x7c   : > { %2482 = vmatmul.mubr.bf16.gmra.mrb[16].mxu1 %v3243_v42  ;;  %v1602_v51 = vrot.slane %v1601_v0, 4 }
  0x7d   : > { %2485 = vmatprep.mubr.bf16.mxu1 %v3244_v14  ;;  %v1593_v26 = vsel %vm2815_vm2, %v1588_v29, %v1592_v32  ;;  %v1611_v52 = vor.u32 %v1610_v2, %v1606_v41 }
  0x7e   : > { %v2269_v47 = vcombine.low %v1583_v46, %v1593_v26  ;;  %v1607_v12 = vsel %vm2815_vm2, %v1602_v51, %v1606_v41 }
  0x7f   : > { %v1612_v13 = vrot.slane %v1611_v52, 4 }
  0x80   : > { %2565 = vmatprep.mubr.bf16.mxu0 %v2269_v47 }
  0x81   : > { %v1617_v22 = vsel %vm2815_vm2, %v1612_v13, %v1616_v55 }
  0x82   : > { %v2270_v59 = vcombine.low %v1607_v12, %v1617_v22 }
  0x84   : > { %2486 = vmatmul.mubr.bf16.gmra.mrb[20].mxu1 %v2138_v35  ;;  %2566 = vmatmul.mubr.bf16.gmra.mrb[20].mxu0 %v2270_v59 }
 0x12d   : > { %v2547_v4 = vpop.f32.mrb[0].mxu0 }
 0x12e   : > { %v1765_v10 = vpop.f32.mrb[1].mxu0 }
 0x12f   : > { %v2467_v60 = vpop.f32.mrb[0].mxu1  ;;  %v2548_v58 = vpop.f32.mrb[2].mxu0 }
 0x130   : > { %v884_v57 = vpop.f32.mrb[1].mxu1  ;;  %v2569_v9 = vadd.f32 %v2547_v4, %v2467_v60  ;;  %v1768_v50 = vpop.f32.mrb[3].mxu0 }
 0x131   : > { %v2468_v43 = vpop.f32.mrb[2].mxu1  ;;  %v2570_v56 = vadd.f32 %v1765_v10, %v884_v57 }
 0x132   : > { %v887_v61 = vpop.f32.mrb[3].mxu1  ;;  %v1886_v62 = vmax.f32 %v2569_v9, 0.0  ;;  %v2571_v63 = vadd.f32 %v2548_v58, %v2468_v43 }
 0x133   : > { %v1884_v37 = vmax.f32 %v2570_v56, 0.0  ;;  %v2572_v49 = vadd.f32 %v1768_v50, %v887_v61 }
 0x134   : > { %v2307_v7 = vpack.c.bf16 %v1886_v62, %v1886_v62  ;;  %v1887_v15 = vmax.f32 %v2571_v63, 0.0 }
 0x135   : > { %v2305_v6 = vpack.c.bf16 %v1884_v37, %v1884_v37  ;;  %v1885_v16 = vmax.f32 %v2572_v49, 0.0  ;;  %v2551_v3 = vpop.f32.mrb[4].mxu0 }
 0x136   : > { %2007 = vst.msk [vmem:[%s3185_s30 + $0x8] sm:$0xf] %vm2004_vm3, %v2307_v7  ;;  %v2308_v18 = vpack.c.bf16 %v1887_v15, %v1887_v15  ;;  %v1781_v20 = vpop.f32.mrb[5].mxu0 }
 0x137   : > { %v2471_v38 = vpop.f32.mrb[4].mxu1  ;;  %2005 = vst.msk [vmem:[%s3185_s30] sm:$0xf] %vm2004_vm3, %v2305_v6  ;;  %v2306_v39 = vpack.c.bf16 %v1885_v16, %v1885_v16  ;;  %v2552_v19 = vpop.f32.mrb[6].mxu0 }
 0x138   : > { %v900_v54 = vpop.f32.mrb[5].mxu1  ;;  %2008 = vst.msk [vmem:[%s3185_s30 + $0xc] sm:$0xf] %vm2004_vm3, %v2308_v18  ;;  %v2573_v17 = vadd.f32 %v2551_v3, %v2471_v38  ;;  %v1784_v5 = vpop.f32.mrb[7].mxu0 }
 0x139   : > { %v2472_v48 = vpop.f32.mrb[6].mxu1  ;;  %2006 = vst.msk [vmem:[%s3185_s30 + $0x4] sm:$0xf] %vm2004_vm3, %v2306_v39  ;;  %v2574_v53 = vadd.f32 %v1781_v20, %v900_v54 }
 0x13a   : > { %v903_v21 = vpop.f32.mrb[7].mxu1  ;;  %v1890_v23 = vmax.f32 %v2573_v17, 0.0  ;;  %v2575_v1 = vadd.f32 %v2552_v19, %v2472_v48 }
 0x13b   : > { %v1888_v40 = vmax.f32 %v2574_v53, 0.0  ;;  %v2576_v24 = vadd.f32 %v1784_v5, %v903_v21 }
 0x13c   : > { %v2311_v28 = vpack.c.bf16 %v1890_v23, %v1890_v23  ;;  %v1891_v27 = vmax.f32 %v2575_v1, 0.0 }
 0x13d   : > { %v2309_v30 = vpack.c.bf16 %v1888_v40, %v1888_v40  ;;  %v1889_v36 = vmax.f32 %v2576_v24, 0.0  ;;  %v2555_v8 = vpop.f32.mrb[8].mxu0 }
 0x13e   : > { %2011 = vst.msk [vmem:[%s3185_s30 + $0x18] sm:$0xf] %vm2004_vm3, %v2311_v28  ;;  %v2312_v11 = vpack.c.bf16 %v1891_v27, %v1891_v27  ;;  %v1797_v34 = vpop.f32.mrb[9].mxu0 }
 0x13f   : > { %v2475_v42 = vpop.f32.mrb[8].mxu1  ;;  %2009 = vst.msk [vmem:[%s3185_s30 + $0x10] sm:$0xf] %vm2004_vm3, %v2309_v30  ;;  %v2310_v32 = vpack.c.bf16 %v1889_v36, %v1889_v36  ;;  %v2556_v29 = vpop.f32.mrb[10].mxu0 }
 0x140   : > { %v916_v33 = vpop.f32.mrb[9].mxu1  ;;  %2012 = vst.msk [vmem:[%s3185_s30 + $0x1c] sm:$0xf] %vm2004_vm3, %v2312_v11  ;;  %v2577_v31 = vadd.f32 %v2555_v8, %v2475_v42  ;;  %v1800_v46 = vpop.f32.mrb[11].mxu0 }
 0x141   : > { %v2476_v14 = vpop.f32.mrb[10].mxu1  ;;  %2010 = vst.msk [vmem:[%s3185_s30 + $0x14] sm:$0xf] %vm2004_vm3, %v2310_v32  ;;  %v2578_v25 = vadd.f32 %v1797_v34, %v916_v33 }
 0x142   : > { %v919_v44 = vpop.f32.mrb[11].mxu1  ;;  %v1894_v41 = vmax.f32 %v2577_v31, 0.0  ;;  %v2579_v45 = vadd.f32 %v2556_v29, %v2476_v14 }
 0x143   : > { %v1892_v0 = vmax.f32 %v2578_v25, 0.0  ;;  %v2580_v2 = vadd.f32 %v1800_v46, %v919_v44 }
 0x144   : > { %v2315_v26 = vpack.c.bf16 %v1894_v41, %v1894_v41  ;;  %v1895_v35 = vmax.f32 %v2579_v45, 0.0 }
 0x145   : > { %v2313_v47 = vpack.c.bf16 %v1892_v0, %v1892_v0  ;;  %v1893_v51 = vmax.f32 %v2580_v2, 0.0  ;;  %v2559_v60 = vpop.f32.mrb[12].mxu0 }
 0x146   : > { %2015 = vst.msk [vmem:[%s3185_s30 + $0x28] sm:$0xf] %vm2004_vm3, %v2315_v26  ;;  %v2316_v55 = vpack.c.bf16 %v1895_v35, %v1895_v35  ;;  %v1813_v57 = vpop.f32.mrb[13].mxu0 }
 0x147   : > { %v2479_v52 = vpop.f32.mrb[12].mxu1  ;;  %2013 = vst.msk [vmem:[%s3185_s30 + $0x20] sm:$0xf] %vm2004_vm3, %v2313_v47  ;;  %v2314_v13 = vpack.c.bf16 %v1893_v51, %v1893_v51  ;;  %v2560_v10 = vpop.f32.mrb[14].mxu0 }
 0x148   : > { %v932_v12 = vpop.f32.mrb[13].mxu1  ;;  %2016 = vst.msk [vmem:[%s3185_s30 + $0x2c] sm:$0xf] %vm2004_vm3, %v2316_v55  ;;  %v2581_v4 = vadd.f32 %v2559_v60, %v2479_v52  ;;  %v1816_v58 = vpop.f32.mrb[15].mxu0 }
 0x149   : > { %v2480_v22 = vpop.f32.mrb[14].mxu1  ;;  %2014 = vst.msk [vmem:[%s3185_s30 + $0x24] sm:$0xf] %vm2004_vm3, %v2314_v13  ;;  %v2582_v9 = vadd.f32 %v1813_v57, %v932_v12 }
 0x14a   : > { %v935_v59 = vpop.f32.mrb[15].mxu1  ;;  %v1898_v43 = vmax.f32 %v2581_v4, 0.0  ;;  %v2583_v56 = vadd.f32 %v2560_v10, %v2480_v22 }
 0x14b   : > { %v1896_v61 = vmax.f32 %v2582_v9, 0.0  ;;  %v2584_v62 = vadd.f32 %v1816_v58, %v935_v59 }
 0x14c   : > { %v2319_v50 = vpack.c.bf16 %v1898_v43, %v1898_v43  ;;  %v1899_v37 = vmax.f32 %v2583_v56, 0.0 }
 0x14d   : > { %v2317_v7 = vpack.c.bf16 %v1896_v61, %v1896_v61  ;;  %v1897_v15 = vmax.f32 %v2584_v62, 0.0  ;;  %v2563_v39 = vpop.f32.mrb[16].mxu0 }
 0x14e   : > { %2019 = vst.msk [vmem:[%s3185_s30 + $0x38] sm:$0xf] %vm2004_vm3, %v2319_v50  ;;  %v2320_v16 = vpack.c.bf16 %v1899_v37, %v1899_v37  ;;  %v1829_v3 = vpop.f32.mrb[17].mxu0 }
 0x14f   : > { %v2483_v63 = vpop.f32.mrb[16].mxu1  ;;  %2017 = vst.msk [vmem:[%s3185_s30 + $0x30] sm:$0xf] %vm2004_vm3, %v2317_v7  ;;  %v2318_v38 = vpack.c.bf16 %v1897_v15, %v1897_v15  ;;  %v2564_v17 = vpop.f32.mrb[18].mxu0 }
 0x150   : > { %v948_v49 = vpop.f32.mrb[17].mxu1  ;;  %2020 = vst.msk [vmem:[%s3185_s30 + $0x3c] sm:$0xf] %vm2004_vm3, %v2320_v16  ;;  %v2585_v54 = vadd.f32 %v2563_v39, %v2483_v63  ;;  %v1832_v53 = vpop.f32.mrb[19].mxu0 }
 0x151   : > { %v2484_v6 = vpop.f32.mrb[18].mxu1  ;;  %2018 = vst.msk [vmem:[%s3185_s30 + $0x34] sm:$0xf] %vm2004_vm3, %v2318_v38  ;;  %v2586_v48 = vadd.f32 %v1829_v3, %v948_v49 }
 0x152   : > { %v951_v18 = vpop.f32.mrb[19].mxu1  ;;  %v1902_v20 = vmax.f32 %v2585_v54, 0.0  ;;  %v2587_v21 = vadd.f32 %v2564_v17, %v2484_v6 }
 0x153   : > { %v1900_v19 = vmax.f32 %v2586_v48, 0.0  ;;  %v2588_v23 = vadd.f32 %v1832_v53, %v951_v18 }
 0x154   : > { %v2323_v5 = vpack.c.bf16 %v1902_v20, %v1902_v20  ;;  %v1903_v40 = vmax.f32 %v2587_v21, 0.0 }
 0x155   : > { %v2321_v28 = vpack.c.bf16 %v1900_v19, %v1900_v19  ;;  %v1901_v27 = vmax.f32 %v2588_v23, 0.0 }
 0x156   : > { %2023 = vst.msk [vmem:[%s3185_s30 + $0x48] sm:$0xf] %vm2004_vm3, %v2323_v5  ;;  %v2324_v36 = vpack.c.bf16 %v1903_v40, %v1903_v40 }
 0x157   : > { %v2487_v1 = vpop.f32.mrb[20].mxu1  ;;  %2021 = vst.msk [vmem:[%s3185_s30 + $0x40] sm:$0xf] %vm2004_vm3, %v2321_v28  ;;  %v2322_v11 = vpack.c.bf16 %v1901_v27, %v1901_v27  ;;  %v2567_v33 = vpop.f32.mrb[20].mxu0 }
 0x158   : > { %v964_v24 = vpop.f32.mrb[21].mxu1  ;;  %2024 = vst.msk [vmem:[%s3185_s30 + $0x4c] sm:$0xf] %vm2004_vm3, %v2324_v36  ;;  %v2589_v32 = vadd.f32 %v2567_v33, %v2487_v1  ;;  %v1845_v8 = vpop.f32.mrb[21].mxu0 }
 0x159   : > { %v2488_v30 = vpop.f32.mrb[22].mxu1  ;;  %2022 = vst.msk [vmem:[%s3185_s30 + $0x44] sm:$0xf] %vm2004_vm3, %v2322_v11  ;;  %v2590_v14 = vadd.f32 %v1845_v8, %v964_v24  ;;  %v2568_v31 = vpop.f32.mrb[22].mxu0 }
 0x15a   : > { %v967_v42 = vpop.f32.mrb[23].mxu1  ;;  %v1906_v34 = vmax.f32 %v2589_v32, 0.0  ;;  %v2591_v44 = vadd.f32 %v2568_v31, %v2488_v30  ;;  %v1848_v25 = vpop.f32.mrb[23].mxu0 }
 0x15b   : > { %v1904_v29 = vmax.f32 %v2590_v14, 0.0  ;;  %v2592_v41 = vadd.f32 %v1848_v25, %v967_v42 }
 0x15c   : > { %v2327_v45 = vpack.c.bf16 %v1906_v34, %v1906_v34  ;;  %v1907_v46 = vmax.f32 %v2591_v44, 0.0 }
 0x15d   : > { %v2325_v0 = vpack.c.bf16 %v1904_v29, %v1904_v29  ;;  %v1905_v2 = vmax.f32 %v2592_v41, 0.0 }
 0x15e   : > { %2027 = vst.msk [vmem:[%s3185_s30 + $0x58] sm:$0xf] %vm2004_vm3, %v2327_v45  ;;  %v2328_v26 = vpack.c.bf16 %v1907_v46, %v1907_v46 }
 0x15f   : > { %2025 = vst.msk [vmem:[%s3185_s30 + $0x50] sm:$0xf] %vm2004_vm3, %v2325_v0  ;;  %v2326_v35 = vpack.c.bf16 %v1905_v2, %v1905_v2 }
 0x160   : > { %2028 = vst.msk [vmem:[%s3185_s30 + $0x5c] sm:$0xf] %vm2004_vm3, %v2328_v26 }
 0x161   : > { %2026 = vst.msk [vmem:[%s3185_s30 + $0x54] sm:$0xf] %vm2004_vm3, %v2326_v35 }
 0x162 PF: > { %s12_s9 = sadd.s32 1, %s2713_s9  }
 0x163   : > { %p9_p4 = scmp.ge.s32.totalorder %s12_s9, 4  }
 0x165   :  { %11 = sbr.rel (!%p9_p4) target bundleno = 1 (0x1), region = 62 }

// kernel: my_model_forward.5
= control target key start
LH: loop header
LB: loop body
LE: loop exit
PB: predicated region body
PF: predicated region fallthrough
CT: control target
= control target key end

     0   :  { %s7265_s21 = smov 0   ;;  %s8626_s0 = inlined_call_operand.vmem [shape: bf16[2,7,9,128], index: 0, kind: input, shape index: {}]   ;;  %s8627_s1 = inlined_call_operand.vmem [shape: bf16[4,128,32], index: 1, kind: input, shape index: {}]   ;;  %s8628_s2 = inlined_call_operand.vmem [shape: bf16[3,3,32,32], index: 2, kind: input, shape index: {}]   ;;  %s8629_s3 = inlined_call_operand.vmem [shape: bf16[3,3,32,32], index: 3, kind: input, shape index: {}]   ;;  %s8630_s4 = inlined_call_operand.vmem [shape: bf16[3,3,32,64], index: 4, kind: input, shape index: {}]   ;;  %s8631_s5 = inlined_call_operand.vmem [shape: f32[1,64], index: 5, kind: input, shape index: {}]   ;;  %s8632_s6 = inlined_call_operand.vmem [shape: f32[2,48,64], index: 6, kind: output, shape index: {}]  }
   0x1 LB: > { %s5491_s22 = sadd.s32 4294967295, %s7225_s21   ;;  %p5495_p0 = scmp.ge.s32.totalorder %s7225_s21, 1  ;;  %s7225_s21 = sphi %s7265_s21, %s16_s21  }
   0x2   : > { %p212_p1 = scmp.lt.s32.totalorder %s7225_s21, 3 }
   0x4   : > { %p213_p2 = pnand %p5495_p0, %p212_p1 }
   0x5   : > { %v7076_v0 = vld [vmem:[%s8627_s1 + $0x40] sm:$0xff] (!%p213_p2)   ;;  %v7227_v1 = vmov (!%p213_p2), 0.0   ;;  %v7077_v2 = vld [vmem:[%s8627_s1 + $0x48] sm:$0xff] (!%p213_p2)   ;;  %vm7228_vm0 = vmmov (!%p213_p2), 0   ;;  %p242_p3 = scmp.lt.s32.totalorder (!%p213_p2), %s5491_s22, 1  ;;  %v7078_v3 = vld [vmem:[%s8627_s1 + $0x50] sm:$0xff] (!%p213_p2)  }
   0x6   : > { %216 = sbr.rel (%p213_p2) target bundleno = 1667 (0x683), region = 44  ;;  %6197 = vmatprep.subr.bf16.mxu0 (!%p213_p2), %v7227_v1  ;;  %6741 = vmatprep.subr.bf16.mxu1 (!%p213_p2), %v7227_v1  ;;  %v7079_v6 = vld [vmem:[%s8627_s1 + $0x58] sm:$0xff] (!%p213_p2)   ;;  %v7080_v11 = vld [vmem:[%s8627_s1 + $0x60] sm:$0xff] (!%p213_p2)   ;;  %vm341_vm1 = vsmask.f32 (!%p213_p2), 3328  ;;  %v7081_v21 = vld [vmem:[%s8627_s1 + $0x68] sm:$0xff] (!%p213_p2)  }
   0x7   : > { %6198 = vmatpush3.bf16.msra.mxu0 (!%p213_p2), %v7076_v0  ;;  %6213 = vmatprep.mubr.msk.bf16.mxu0 (!%p213_p2), %vm7228_vm0, %v7227_v1  ;;  %vm342_vm2 = vsmask.f32 (!%p213_p2), 7440  ;;  %v7082_v36 = vld [vmem:[%s8627_s1 + $0x70] sm:$0xff] (!%p213_p2)   ;;  %v7083_v47 = vld [vmem:[%s8627_s1 + $0x78] sm:$0xff] (!%p213_p2)   ;;  %v7084_v58 = vld [vmem:[%s8627_s1] sm:$0xff] (!%p213_p2)   ;;  %vm253_vm4 = vcmask (!%p213_p2), 257024  }
   0x8   : > { %6199 = vmatprep.subr.bf16.mxu0 (!%p213_p2), %v7227_v1  ;;  %6337 = vmatprep.mubr.msk.bf16.mxu1 (!%p213_p2), %vm7228_vm0, %v7227_v1  ;;  %vm7346_vm3 = vmor (!%p213_p2), %vm341_vm1, %vm342_vm2  ;;  %vm255_vm5 = vcmask (!%p213_p2), 253952   ;;  %vm261_vm6 = vsmask.f32 (!%p213_p2), 256  ;;  %vm287_vm8 = vsmask.f32 (!%p213_p2), 7938  ;;  %vm1323_vm11 = vcmask (!%p213_p2), 261120  }
   0x9   : > { %vm7419_vm7 = vmand (!%p213_p2), %vm255_vm5, %vm261_vm6  ;;  %vm1501_vm12 = vcmask (!%p213_p2), 1042432   ;;  %vm1502_vm13 = vcmask (!%p213_p2), 1046532   ;;  %vm5429_vm1 = vcmask (!%p213_p2), 523264  }
   0xa   : > { %vm7427_vm9 = vmand (!%p213_p2), %vm255_vm5, %vm287_vm8 }
   0xb   : > { %6200 = vmatpush3.bf16.msra.mxu0 (!%p213_p2), %v7077_v2  ;;  %vm7603_vm10 = vmand (!%p213_p2), %vm253_vm4, %vm287_vm8 }
   0xc   : > { %6201 = vmatprep.subr.bf16.mxu0 (!%p213_p2), %v7227_v1  ;;  %vm7686_vm14 = vmor (!%p213_p2), %vm1501_vm12, %vm1502_vm13 }
   0xd   : > { %s8644_s22 = smov (!%p242_p3, %s5491_s22), 1 }
   0xe   : > { %s7063_s29 = smul.u32 56, %s8644_s22 }
   0xf   : > { %6202 = vmatpush3.bf16.msra.mxu0 %v7078_v3  ;;  %v7229_v3 = vmov 0  }
  0x10   : > { %s7296_s8 = scalar_lea.vmem %s8626_s0, %s7063_s29  ;;  %6203 = vmatprep.subr.bf16.mxu0 %v7227_v1  ;;  %254 = vst.msk [vmem:[#allocation2] sm:$0xf] %vm253_vm4, %v7229_v3  ;;  %258 = vst.msk [vmem:[#allocation2 + $0x38] sm:$0xf] %vm253_vm4, %v7229_v3 }
  0x11   : > { %v7299_v4 = vld [vmem:[%s7296_s8] sm:$0xf]  ;;  %v7302_v5 = vld [vmem:[%s7296_s8 + $0x8] sm:$0xf]  ;;  %v335_v12 = vld [vmem:[%s7296_s8 + $0x4] sm:$0x1] }
  0x12   : > { %v345_v7 = vshrl.u32 %v7299_v4, 16  ;;  %v348_v8 = vshll.u32 %v7299_v4, 16  ;;  %v359_v9 = vshrl.u32 %v7302_v5, 16  ;;  %v362_v10 = vshll.u32 %v7302_v5, 16  ;;  %v336_v17 = vld [vmem:[%s7296_s8 + $0xc] sm:$0x1] }
  0x13   : > { %6204 = vmatpush3.bf16.msra.mxu0 %v7079_v6  ;;  %v7319_v18 = vld [vmem:[%s7296_s8 + $0x10] sm:$0xf]  ;;  %v7322_v19 = vld [vmem:[%s7296_s8 + $0x18] sm:$0xf]  ;;  %v354_v22 = vshll.u32 %v335_v12, 16  ;;  %v368_v28 = vshll.u32 %v336_v17, 16 }
  0x14   : > { %v347_v13 = vrot.slane %v345_v7, 4  ;;  %v350_v14 = vrot.slane %v348_v8, 5  ;;  %v361_v15 = vrot.slane %v359_v9, 4  ;;  %v364_v16 = vrot.slane %v362_v10, 5  ;;  %6205 = vmatprep.subr.bf16.mxu0 %v7227_v1  ;;  %v337_v23 = vld [vmem:[%s7296_s8 + $0x14] sm:$0x1] }
  0x15   : > { %v373_v20 = vshrl.u32 %v7319_v18, 16  ;;  %v376_v24 = vshll.u32 %v7319_v18, 16  ;;  %v387_v25 = vshrl.u32 %v7322_v19, 16  ;;  %v338_v29 = vld [vmem:[%s7296_s8 + $0x1c] sm:$0x1]  ;;  %v390_v30 = vshll.u32 %v7322_v19, 16 }
  0x16   : > { %v351_v26 = vor.u32 %v350_v14, %v347_v13  ;;  %v365_v27 = vor.u32 %v364_v16, %v361_v15  ;;  %v382_v34 = vshll.u32 %v337_v23, 16  ;;  %v396_v37 = vshll.u32 %v338_v29, 16  ;;  %v7338_v38 = vld [vmem:[%s7296_s8 + $0x20] sm:$0xf]  ;;  %v7341_v43 = vld [vmem:[%s7296_s8 + $0x28] sm:$0xf] }
  0x17   : > { %6206 = vmatpush3.bf16.msra.mxu0 %v7080_v11  ;;  %v375_v31 = vrot.slane %v373_v20, 4  ;;  %v378_v32 = vrot.slane %v376_v24, 5  ;;  %v389_v33 = vrot.slane %v387_v25, 4  ;;  %v392_v35 = vrot.slane %v390_v30, 5  ;;  %v339_v59 = vld [vmem:[%s7296_s8 + $0x24] sm:$0x1] }
  0x18   : > { %6207 = vmatprep.subr.bf16.mxu0 %v7227_v1  ;;  %v352_v39 = vrot.slane %v351_v26, 4  ;;  %v356_v40 = vrot.slane %v354_v22, 5  ;;  %v366_v41 = vrot.slane %v365_v27, 4  ;;  %v370_v42 = vrot.slane %v368_v28, 5  ;;  %v340_v60 = vld [vmem:[%s7296_s8 + $0x2c] sm:$0x1] }
  0x19   : > { %v379_v45 = vor.u32 %v378_v32, %v375_v31  ;;  %v393_v46 = vor.u32 %v392_v35, %v389_v33  ;;  %v384_v48 = vrot.slane %v382_v34, 5  ;;  %v401_v49 = vshrl.u32 %v7338_v38, 16  ;;  %256 = vst.msk [vmem:[#allocation2 + $0x4] sm:$0x1] %vm255_vm5, %v7229_v3  ;;  %259 = vst.msk [vmem:[#allocation2 + $0x3c] sm:$0x1] %vm255_vm5, %v7229_v3 }
  0x1a   : > { %v398_v50 = vrot.slane %v396_v37, 5  ;;  %v404_v51 = vshll.u32 %v7338_v38, 16  ;;  %v415_v52 = vshrl.u32 %v7341_v43, 16  ;;  %v418_v53 = vshll.u32 %v7341_v43, 16  ;;  %v7085_v9 = vld [vmem:[%s8627_s1 + $0x8] sm:$0xff]   ;;  %v7086_v13 = vld [vmem:[%s8627_s1 + $0x10] sm:$0xff]  }
  0x1b   : > { %6208 = vmatpush3.bf16.msra.mxu0 %v7081_v21  ;;  %v357_v54 = vsel %vm7346_vm3, %v352_v39, %v356_v40  ;;  %v371_v55 = vsel %vm7346_vm3, %v366_v41, %v370_v42  ;;  %v380_v56 = vrot.slane %v379_v45, 4  ;;  %v394_v57 = vrot.slane %v393_v46, 4  ;;  %v7087_v21 = vld [vmem:[%s8627_s1 + $0x18] sm:$0xff]   ;;  %v7088_v25 = vld [vmem:[%s8627_s1 + $0x20] sm:$0xff]   ;;  %v7089_v26 = vld [vmem:[%s8627_s1 + $0x28] sm:$0xff]  }
  0x1c   : > { %6209 = vmatprep.subr.bf16.mxu0 %v7227_v1  ;;  %v403_v61 = vrot.slane %v401_v49, 4  ;;  %v5514_v62 = vcombine.low %v357_v54, %v371_v55  ;;  %v406_v63 = vrot.slane %v404_v51, 5  ;;  %v417_v0 = vrot.slane %v415_v52, 4  ;;  %v7090_v27 = vld [vmem:[%s8627_s1 + $0x30] sm:$0xff]   ;;  %v7091_v28 = vld [vmem:[%s8627_s1 + $0x38] sm:$0xff]   ;;  %v7093_v37 = vld [vmem:[%s8627_s1 + $0x80] sm:$0xff]  }
  0x1d   : > { %v420_v2 = vrot.slane %v418_v53, 5  ;;  %v385_v6 = vsel %vm7346_vm3, %v380_v56, %v384_v48  ;;  %v410_v7 = vshll.u32 %v339_v59, 16  ;;  %v424_v8 = vshll.u32 %v340_v60, 16  ;;  %v266_v29 = vld [vmem:[#allocation2 + $0x8] sm:$0x1]  ;;  %v7096_v45 = vld [vmem:[%s8627_s1 + $0x98] sm:$0xff]  }
  0x1e   : > { %v399_v10 = vsel %vm7346_vm3, %v394_v57, %v398_v50  ;;  %v407_v11 = vor.u32 %v406_v63, %v403_v61  ;;  %v292_v31 = vld [vmem:[#allocation2 + $0xc] sm:$0x1]  ;;  %v267_v34 = vsel %vm7419_vm7, 0, %v266_v29  ;;  %v5526_v42 = vcombine.low %v7319_v18, %v7322_v19  ;;  %v7098_v46 = vld [vmem:[%s8627_s1 + $0xa0] sm:$0xff]   ;;  %v7106_v51 = vld [vmem:[%s8627_s1 + $0xd0] sm:$0xff]  }
  0x1f   : > { %6210 = vmatpush3.bf16.msra.mxu0 %v7082_v36  ;;  %v421_v12 = vor.u32 %v420_v2, %v417_v0  ;;  %v5515_v14 = vcombine.low %v385_v6, %v399_v10  ;;  %v412_v15 = vrot.slane %v410_v7, 5  ;;  %v426_v16 = vrot.slane %v424_v8, 5  ;;  %268 = vst [vmem:[#allocation2 + $0x8] sm:$0x1] %v267_v34  ;;  %v7099_v19 = vld [vmem:[%s8627_s1 + $0xa8] sm:$0xff]   ;;  %v7104_v48 = vld [vmem:[%s8627_s1 + $0xc0] sm:$0xff]  }
  0x20   : > { %6211 = vmatprep.subr.bf16.mxu0 %v7227_v1  ;;  %v408_v17 = vrot.slane %v407_v11, 4  ;;  %v289_v30 = vld [vmem:[#allocation2 + $0x4] sm:$0x1]  ;;  %v310_v32 = vld [vmem:[#allocation2 + $0x3c] sm:$0x1]  ;;  %v5525_v36 = vcombine.low %v7299_v4, %v7302_v5  ;;  %v293_v40 = vsel %vm7427_vm9, 0, %v292_v31  ;;  %v5527_v18 = vcombine.low %v7338_v38, %v7341_v43 }
  0x21   : > { %v422_v20 = vrot.slane %v421_v12, 4  ;;  %v290_v39 = vsel %vm7427_vm9, 0, %v289_v30  ;;  %v311_v41 = vsel %vm7427_vm9, 0, %v310_v32  ;;  %294 = vst [vmem:[#allocation2 + $0xc] sm:$0x1] %v293_v40  ;;  %v7094_v4 = vld [vmem:[%s8627_s1 + $0x88] sm:$0xff]  }
  0x22   : > { %v413_v22 = vsel %vm7346_vm3, %v408_v17, %v412_v15  ;;  %291 = vst [vmem:[#allocation2 + $0x4] sm:$0x1] %v290_v39  ;;  %312 = vst [vmem:[#allocation2 + $0x3c] sm:$0x1] %v311_v41  ;;  %v7095_v5 = vld [vmem:[%s8627_s1 + $0x90] sm:$0xff]   ;;  %v7102_v38 = vld [vmem:[%s8627_s1 + $0xb8] sm:$0xff]  }
  0x23   : > { %6212 = vmatpush3.bf16.msra.mxu0 %v7083_v47  ;;  %v427_v23 = vsel %vm7346_vm3, %v422_v20, %v426_v16  ;;  %v7101_v47 = vld [vmem:[%s8627_s1 + $0xb0] sm:$0xff]   ;;  %v7105_v49 = vld [vmem:[%s8627_s1 + $0xc8] sm:$0xff]   ;;  %v7108_v50 = vld [vmem:[%s7296_s8 + $0x18] ss:$8 sps:$4 sm:$0xff]  }
  0x24   : > { %6225 = vmatprep.subr.bf16.mxu0 %v7227_v1  ;;  %v5516_v24 = vcombine.low %v413_v22, %v427_v23  ;;  %v7103_v43 = vld [vmem:[%s7296_s8 + $0x8] ss:$8 sps:$4 sm:$0xff]   ;;  %v7107_v56 = vld [vmem:[%s8627_s1 + $0xd8] sm:$0xff]   ;;  %v7109_v59 = vld [vmem:[%s8627_s1 + $0xe0] sm:$0xff]  }
  0x25   : > { %v5569_v52 = vld [vmem:[%s7296_s8 + $0x8] sm:$0xf]  ;;  %v5571_v53 = vld [vmem:[%s7296_s8 + $0x10] sm:$0xf]  ;;  %v5570_v63 = vld [vmem:[%s7296_s8 + $0xc] sm:$0x1] }
  0x26   : > { %6214 = vmatmul.mubr.bf16.vlgmr.msra.gmra.mrb[0].mxu0 %v5514_v62  ;;  %v851_v54 = vshrl.u32 %v5569_v52, 16  ;;  %v854_v55 = vshll.u32 %v5569_v52, 16  ;;  %v865_v57 = vshrl.u32 %v5571_v53, 16  ;;  %v7111_v60 = vld [vmem:[%s7296_s8 + $0x28] ss:$8 sps:$4 sm:$0xff]   ;;  %v860_v10 = vshll.u32 %v5570_v63, 16 }
  0x27   : > { %6226 = vmatpush3.bf16.msra.mxu0 %v7084_v58  ;;  %6217 = vmatprep.mubr.msk.bf16.mxu0 %vm7228_vm0, %v7227_v1  ;;  %v868_v58 = vshll.u32 %v5571_v53, 16  ;;  %v5573_v6 = vld [vmem:[%s7296_s8 + $0x18] sm:$0xf]  ;;  %v5572_v7 = vld [vmem:[%s7296_s8 + $0x14] sm:$0x1]  ;;  %v7593_v35 = vld [vmem:[%s8628_s2 + $0x8] sm:$0xff]  }
  0x28   : > { %6227 = vmatprep.subr.bf16.mxu0 %v7227_v1  ;;  %v853_v61 = vrot.slane %v851_v54, 4  ;;  %v856_v62 = vrot.slane %v854_v55, 5  ;;  %v867_v0 = vrot.slane %v865_v57, 4  ;;  %v5575_v8 = vld [vmem:[%s7296_s8 + $0x20] sm:$0xf]  ;;  %v879_v11 = vshrl.u32 %v5573_v6, 16 }
  0x29   : > { %v870_v2 = vrot.slane %v868_v58, 5  ;;  %v882_v12 = vshll.u32 %v5573_v6, 16  ;;  %v874_v15 = vshll.u32 %v5572_v7, 16  ;;  %v893_v16 = vshrl.u32 %v5575_v8, 16  ;;  %v7112_v20 = vld [vmem:[%s8627_s1 + $0xf0] sm:$0xff]  }
  0x2a   : > { %v896_v17 = vshll.u32 %v5575_v8, 16  ;;  %v862_v23 = vrot.slane %v860_v10, 5  ;;  %v5577_v31 = vld [vmem:[%s7296_s8 + $0x28] sm:$0xf]  ;;  %v5579_v32 = vld [vmem:[%s7296_s8 + $0x30] sm:$0xf] }
  0x2b   : > { %6228 = vmatpush3.bf16.msra.mxu0 %v7085_v9  ;;  %v857_v9 = vor.u32 %v856_v62, %v853_v61  ;;  %v895_v29 = vrot.slane %v893_v16, 4  ;;  %v907_v40 = vshrl.u32 %v5577_v31, 16  ;;  %v910_v41 = vshll.u32 %v5577_v31, 16  ;;  %v5580_v53 = vld [vmem:[%s7296_s8 + $0x34] sm:$0x1] }
  0x2c   : > { %6229 = vmatprep.subr.bf16.mxu0 %v7227_v1  ;;  %v898_v30 = vrot.slane %v896_v17, 5  ;;  %v269_v8 = vld [vmem:[#allocation2 + $0x10] sm:$0x1]  ;;  %v263_v16 = vld [vmem:[#allocation2] sm:$0x1] }
  0x2d   : > { %v858_v22 = vrot.slane %v857_v9, 4  ;;  %v295_v9 = vld [vmem:[#allocation2 + $0x14] sm:$0x1]  ;;  %v270_v10 = vsel %vm7419_vm7, 0, %v269_v8  ;;  %v275_v17 = vld [vmem:[#allocation2 + $0x20] sm:$0x1] }
  0x2e   : > { %6218 = vmatmul.mubr.bf16.gmra.mrb[4].mxu0 %v5515_v14  ;;  %v871_v14 = vor.u32 %v870_v2, %v867_v0  ;;  %271 = vst [vmem:[#allocation2 + $0x10] sm:$0x1] %v270_v10 }
  0x2f   : > { %6230 = vmatpush3.bf16.msra.mxu0 %v7086_v13  ;;  %6221 = vmatprep.mubr.msk.bf16.mxu0 %vm7228_vm0, %v7227_v1  ;;  %v7110_v13 = vld [vmem:[%s8627_s1 + $0xe8] sm:$0xff]  }
  0x30   : > { %6231 = vmatprep.subr.bf16.mxu0 %v7227_v1 }
  0x33   : > { %6232 = vmatpush3.bf16.msra.mxu0 %v7087_v21  ;;  %v5574_v21 = vld [vmem:[%s7296_s8 + $0x1c] sm:$0x1] }
  0x34   : > { %6233 = vmatprep.subr.bf16.mxu0 %v7227_v1  ;;  %v888_v34 = vshll.u32 %v5574_v21, 16  ;;  %v301_v21 = vld [vmem:[#allocation2 + $0x24] sm:$0x1] }
  0x36   : > { %6222 = vmatmul.mubr.bf16.gmra.mrb[8].mxu0 %v5516_v24  ;;  %v5576_v24 = vld [vmem:[%s7296_s8 + $0x24] sm:$0x1] }
  0x37   : > { %6234 = vmatpush3.bf16.msra.mxu0 %v7088_v25  ;;  %6241 = vmatprep.mubr.msk.bf16.mxu0 %vm7228_vm0, %v7227_v1  ;;  %v881_v25 = vrot.slane %v879_v11, 4  ;;  %v296_v11 = vsel %vm7427_vm9, 0, %v295_v9 }
  0x38   : > { %6235 = vmatprep.subr.bf16.mxu0 %v7227_v1  ;;  %297 = vst [vmem:[#allocation2 + $0x14] sm:$0x1] %v296_v11 }
  0x3b   : > { %6236 = vmatpush3.bf16.msra.mxu0 %v7089_v26  ;;  %v884_v26 = vrot.slane %v882_v12, 5  ;;  %v272_v12 = vld [vmem:[#allocation2 + $0x18] sm:$0x1] }
  0x3c   : > { %6237 = vmatprep.subr.bf16.mxu0 %v7227_v1 }
  0x3d   : > { %v885_v39 = vor.u32 %v884_v26, %v881_v25  ;;  %v304_v25 = vld [vmem:[#allocation2 + $0x2c] sm:$0x1] }
  0x3f   : > { %6238 = vmatpush3.bf16.msra.mxu0 %v7090_v27  ;;  %v872_v27 = vrot.slane %v871_v14, 4  ;;  %v298_v14 = vld [vmem:[#allocation2 + $0x1c] sm:$0x1] }
  0x40   : > { %6239 = vmatprep.subr.bf16.mxu0 %v7227_v1 }
  0x43   : > { %6240 = vmatpush3.bf16.msra.mxu0 %v7091_v28  ;;  %v876_v28 = vrot.slane %v874_v15, 5  ;;  %v299_v15 = vsel %vm7427_vm9, 0, %v298_v14 }
  0x44   : > { %6253 = vmatprep.subr.bf16.mxu0 %v7227_v1  ;;  %300 = vst [vmem:[#allocation2 + $0x1c] sm:$0x1] %v299_v15 }
  0x46   : > { %6242 = vmatmul.mubr.bf16.vlgmr.msra.gmra.mrb[0].mxu0 %v5525_v36  ;;  %v902_v36 = vshll.u32 %v5576_v24, 16  ;;  %v278_v24 = vld [vmem:[#allocation2 + $0x28] sm:$0x1] }
  0x47   : > { %6254 = vmatpush3.bf16.msra.mxu0 %v7093_v37  ;;  %6245 = vmatprep.mubr.msk.bf16.mxu0 %vm7228_vm0, %v7227_v1  ;;  %v863_v37 = vsel %vm7346_vm3, %v858_v22, %v862_v23  ;;  %v264_v22 = vsel %vm7419_vm7, 0, %v263_v16  ;;  %v302_v23 = vsel %vm7427_vm9, 0, %v301_v21  ;;  %v279_v26 = vsel %vm7419_vm7, 0, %v278_v24 }
  0x48   : > { %6255 = vmatprep.subr.bf16.mxu0 %v7227_v1  ;;  %265 = vst [vmem:[#allocation2] sm:$0x1] %v264_v22  ;;  %303 = vst [vmem:[#allocation2 + $0x24] sm:$0x1] %v302_v23 }
  0x49   : > { %280 = vst [vmem:[#allocation2 + $0x28] sm:$0x1] %v279_v26 }
  0x4b   : > { %6256 = vmatpush3.bf16.msra.mxu0 %v7094_v4  ;;  %v7113_v4 = vld [vmem:[%s8627_s1 + $0xf8] sm:$0xff]  }
  0x4c   : > { %6257 = vmatprep.subr.bf16.mxu0 %v7227_v1  ;;  %v1176_v26 = vld [vmem:[#allocation2 + $0x1c] sm:$0x1] }
  0x4e   : > { %6246 = vmatmul.mubr.bf16.gmra.mrb[4].mxu0 %v5526_v42  ;;  %v899_v42 = vor.u32 %v898_v30, %v895_v29  ;;  %v307_v29 = vld [vmem:[#allocation2 + $0x34] sm:$0x1] }
  0x4f   : > { %6258 = vmatpush3.bf16.msra.mxu0 %v7095_v5  ;;  %6249 = vmatprep.mubr.msk.bf16.mxu0 %vm7228_vm0, %v7227_v1  ;;  %v877_v5 = vsel %vm7346_vm3, %v872_v27, %v876_v28  ;;  %v305_v27 = vsel %vm7427_vm9, 0, %v304_v25  ;;  %v281_v28 = vld [vmem:[#allocation2 + $0x30] sm:$0x1]  ;;  %v308_v31 = vsel %vm7427_vm9, 0, %v307_v29 }
  0x50   : > { %6259 = vmatprep.subr.bf16.mxu0 %v7227_v1  ;;  %306 = vst [vmem:[#allocation2 + $0x2c] sm:$0x1] %v305_v27  ;;  %v282_v30 = vsel %vm7419_vm7, 0, %v281_v28  ;;  %309 = vst [vmem:[#allocation2 + $0x34] sm:$0x1] %v308_v31 }
  0x51   : > { %283 = vst [vmem:[#allocation2 + $0x30] sm:$0x1] %v282_v30 }
  0x53   : > { %6260 = vmatpush3.bf16.msra.mxu0 %v7096_v45  ;;  %v921_v45 = vshrl.u32 %v5579_v32, 16 }
  0x54   : > { %6261 = vmatprep.subr.bf16.mxu0 %v7227_v1 }
  0x56   : > { %6250 = vmatmul.mubr.bf16.gmra.mrb[8].mxu0 %v5527_v18  ;;  %v890_v18 = vrot.slane %v888_v34, 5  ;;  %v7115_v34 = vld [vmem:[%s8628_s2 + $0x18] sm:$0xff]  }
  0x57   : > { %6262 = vmatpush3.bf16.msra.mxu0 %v7098_v46  ;;  %6269 = vmatprep.mubr.msk.bf16.mxu0 %vm7228_vm0, %v7227_v1  ;;  %v924_v46 = vshll.u32 %v5579_v32, 16  ;;  %v7114_v32 = vld [vmem:[%s8628_s2 + $0x10] sm:$0xff]  }
  0x58   : > { %6263 = vmatprep.subr.bf16.mxu0 %v7227_v1 }
  0x59   : > { %v926_v52 = vrot.slane %v924_v46, 5 }
  0x5b   : > { %6264 = vmatpush3.bf16.msra.mxu0 %v7099_v19  ;;  %v5597_v19 = vcombine.low %v863_v37, %v877_v5  ;;  %v284_v37 = vld [vmem:[#allocation2 + $0x38] sm:$0x1] }
  0x5c   : > { %6265 = vmatprep.subr.bf16.mxu0 %v7227_v1 }
  0x5f   : > { %6266 = vmatpush3.bf16.msra.mxu0 %v7101_v47  ;;  %v886_v47 = vrot.slane %v885_v39, 4  ;;  %v285_v39 = vsel %vm7419_vm7, 0, %v284_v37 }
  0x60   : > { %6267 = vmatprep.subr.bf16.mxu0 %v7227_v1  ;;  %286 = vst [vmem:[#allocation2 + $0x38] sm:$0x1] %v285_v39  ;;  %v1182_v39 = vld [vmem:[#allocation2 + $0x24] sm:$0x1] }
  0x61   : > { %v891_v54 = vsel %vm7346_vm3, %v886_v47, %v890_v18  ;;  %v7599_v47 = vld [vmem:[#allocation2] sm:$0xf] }
  0x63   : > { %6268 = vmatpush3.bf16.msra.mxu0 %v7102_v38  ;;  %v904_v38 = vrot.slane %v902_v36, 5  ;;  %v7585_v36 = vld [vmem:[%s8628_s2] sm:$0xff]  }
  0x64   : > { %6281 = vmatprep.subr.bf16.mxu0 %v7227_v1  ;;  %6743 = vmatpush3.bf16.msra.mxu1 %v7585_v36 }
  0x65   : > { %6742 = vmatprep.subr.bf16.mxu1 %v7227_v1 }
  0x66   : > { %6270 = vmatmul.mubr.bf16.vlgmr.msra.gmra.mrb[0].mxu0 %v7103_v43  ;;  %v909_v43 = vrot.slane %v907_v40, 4 }
  0x67   : > { %6282 = vmatpush3.bf16.msra.mxu0 %v7104_v48  ;;  %6273 = vmatprep.mubr.msk.bf16.mxu0 %vm7228_vm0, %v7227_v1  ;;  %v900_v48 = vrot.slane %v899_v42, 4 }
  0x68   : > { %6283 = vmatprep.subr.bf16.mxu0 %v7227_v1  ;;  %6744 = vmatpush3.bf16.msra.mxu1 %v7593_v35 }
  0x69   : > { %6341 = vmatprep.subr.bf16.mxu1 %v7227_v1 }
  0x6b   : > { %6284 = vmatpush3.bf16.msra.mxu0 %v7105_v49  ;;  %v5578_v49 = vld [vmem:[%s7296_s8 + $0x2c] sm:$0x1]  ;;  %s7064_s8 = smul.u32 48, %s8644_s22 }
  0x6c   : > { %6285 = vmatprep.subr.bf16.mxu0 %v7227_v1  ;;  %v916_v55 = vshll.u32 %v5578_v49, 16 }
  0x6d   : > { %s251_s29 = scalar_lea.vmem %s8632_s6, %s7064_s8 }
  0x6e   : > { %6274 = vmatmul.mubr.bf16.gmra.mrb[4].mxu0 %v7108_v50  ;;  %v912_v50 = vrot.slane %v910_v41, 5  ;;  %v918_v62 = vrot.slane %v916_v55, 5  ;;  %v1217_v55 = vshll.u32 %v7599_v47, 16 }
  0x6f   : > { %6286 = vmatpush3.bf16.msra.mxu0 %v7106_v51  ;;  %6277 = vmatprep.mubr.msk.bf16.mxu0 %vm7228_vm0, %v7227_v1  ;;  %v923_v51 = vrot.slane %v921_v45, 4 }
  0x70   : > { %6287 = vmatprep.subr.bf16.mxu0 %v7227_v1  ;;  %v913_v57 = vor.u32 %v912_v50, %v909_v43  ;;  %v1219_v14 = vrot.slane %v1217_v55, 5  ;;  %v1185_v55 = vld [vmem:[#allocation2 + $0x28] sm:$0xf] }
  0x71   : > { %v927_v58 = vor.u32 %v926_v52, %v923_v51  ;;  %v1164_v51 = vld [vmem:[#allocation2 + $0xc] sm:$0x1] }
  0x72   : > { %v914_v61 = vrot.slane %v913_v57, 4 }
  0x73   : > { %6288 = vmatpush3.bf16.msra.mxu0 %v7107_v56  ;;  %v905_v56 = vsel %vm7346_vm3, %v900_v48, %v904_v38  ;;  %v928_v63 = vrot.slane %v927_v58, 4  ;;  %v1161_v48 = vld [vmem:[#allocation2 + $0x8] sm:$0xf] }
  0x74   : > { %6289 = vmatprep.subr.bf16.mxu0 %v7227_v1  ;;  %v919_v2 = vsel %vm7346_vm3, %v914_v61, %v918_v62  ;;  %v1167_v61 = vld [vmem:[#allocation2 + $0x10] sm:$0xf]  ;;  %v1170_v62 = vld [vmem:[#allocation2 + $0x14] sm:$0x1] }
  0x76   : > { %6278 = vmatmul.mubr.bf16.gmra.mrb[8].mxu0 %v7111_v60  ;;  %v5598_v60 = vcombine.low %v891_v54, %v905_v56  ;;  %v1214_v54 = vshrl.u32 %v7599_v47, 16 }
  0x77   : > { %6290 = vmatpush3.bf16.msra.mxu0 %v7109_v59  ;;  %6297 = vmatprep.mubr.msk.bf16.mxu0 %vm7228_vm0, %v7227_v1  ;;  %v930_v59 = vshll.u32 %v5580_v53, 16 }
  0x78   : > { %6291 = vmatprep.subr.bf16.mxu0 %v7227_v1 }
  0x79   : > { %v932_v0 = vrot.slane %v930_v59, 5 }
  0x7b   : > { %6292 = vmatpush3.bf16.msra.mxu0 %v7110_v13  ;;  %v933_v6 = vsel %vm7346_vm3, %v928_v63, %v932_v0  ;;  %v273_v13 = vsel %vm7419_vm7, 0, %v272_v12 }
  0x7c   : > { %6293 = vmatprep.subr.bf16.mxu0 %v7227_v1  ;;  %v5599_v7 = vcombine.low %v919_v2, %v933_v6  ;;  %274 = vst [vmem:[#allocation2 + $0x18] sm:$0x1] %v273_v13  ;;  %v1216_v13 = vrot.slane %v1214_v54, 4 }
  0x7e   : > { %v1220_v30 = vor.u32 %v1219_v14, %v1216_v13 }
  0x7f   : > { %6294 = vmatpush3.bf16.msra.mxu0 %v7112_v20  ;;  %v276_v20 = vsel %vm7419_vm7, 0, %v275_v17  ;;  %v7617_v17 = vld [vmem:[#allocation2 + $0x4] sm:$0x1] }
  0x80   : > { %6295 = vmatprep.subr.bf16.mxu0 %v7227_v1  ;;  %277 = vst [vmem:[#allocation2 + $0x20] sm:$0x1] %v276_v20  ;;  %v1223_v20 = vshll.u32 %v7617_v17, 16 }
  0x83   : > { %6296 = vmatpush3.bf16.msra.mxu0 %v7113_v4  ;;  %v1173_v23 = vld [vmem:[#allocation2 + $0x18] sm:$0xf] }
  0x84   : > { %6309 = vmatprep.subr.bf16.mxu0 %v7227_v1 }
  0x86   : > { %6298 = vmatmul.mubr.bf16.vlgmr.msra.gmra.mrb[0].mxu0 %v5597_v19 }
  0x87   : > { %6301 = vmatprep.mubr.msk.bf16.mxu0 %vm7228_vm0, %v7227_v1  ;;  %6310 = vmatpush3.bf16.msra.mxu0 %v7114_v32  ;;  %v1179_v27 = vld [vmem:[#allocation2 + $0x20] sm:$0xf] }
  0x88   : > { %6311 = vmatprep.subr.bf16.mxu0 %v7227_v1 }
  0x8b   : > { %6312 = vmatpush3.bf16.msra.mxu0 %v7115_v34 }
  0x8c   : > { %6325 = vmatprep.subr.bf16.mxu0 %v7227_v1 }
  0x8e   : > { %6302 = vmatmul.mubr.bf16.gmra.mrb[4].mxu0 %v5598_v60 }
  0x8f   : > { %6305 = vmatprep.mubr.msk.bf16.mxu0 %vm7228_vm0, %v7227_v1 }
  0x96   : > { %6306 = vmatmul.mubr.bf16.gmra.mrb[8].mxu0 %v5599_v7 }
  0x97   : > { %6313 = vmatprep.mubr.msk.bf16.mxu0 %vm7228_vm0, %v7227_v1 }
 0x159   : > { %v1045_v40 = vpop.f32.mrb[0].mxu0 }
 0x15a   : > { %v1074_v41 = vmax.f32 %v1045_v40, 0.0  ;;  %v6299_v4 = vpop.f32.mrb[1].mxu0 }
 0x15b   : > { %v1048_v5 = vpop.f32.mrb[2].mxu0 }
 0x15c   : > { %v6000_v42 = vpack.c.bf16 %v1074_v41, %v1074_v41  ;;  %v1075_v45 = vmax.f32 %v1048_v5, 0.0  ;;  %v6300_v46 = vpop.f32.mrb[3].mxu0 }
 0x15e   : > { %v1099_v18 = vshrl.u32 %v6000_v42, 16  ;;  %v6001_v19 = vpack.c.bf16 %v1075_v45, %v1075_v45  ;;  %v1102_v43 = vshll.u32 %v6000_v42, 16  ;;  %v7622_v45 = vrot.slane %v1223_v20, 5 }
 0x160   : > { %v1101_v38 = vrot.slane %v1099_v18, 7  ;;  %v1107_v49 = vshrl.u32 %v6001_v19, 16  ;;  %v1110_v52 = vshll.u32 %v6001_v19, 16 }
 0x161   : > { %v1053_v53 = vpop.f32.mrb[4].mxu0 }
 0x162   : > { %v1104_v56 = vor.u32 %v1102_v43, %v1101_v38  ;;  %v1105_v57 = vrot.slane %v1101_v38, 4  ;;  %v1109_v58 = vrot.slane %v1107_v49, 7  ;;  %v1076_v59 = vmax.f32 %v1053_v53, 0.0  ;;  %v6303_v60 = vpop.f32.mrb[5].mxu0 }
 0x163   : > { %v1056_v63 = vpop.f32.mrb[6].mxu0 }
 0x164   : > { %v1162_v0 = vsel %vm7603_vm10, %v1104_v56, %v1161_v48  ;;  %v1165_v2 = vsel %vm7419_vm7, %v1105_v57, %v1164_v51  ;;  %v1112_v6 = vor.u32 %v1110_v52, %v1109_v58  ;;  %v1113_v7 = vrot.slane %v1109_v58, 4  ;;  %v6304_v8 = vpop.f32.mrb[7].mxu0 }
 0x165   : > { %1163 = vst [vmem:[#allocation2 + $0x8] sm:$0xf] %v1162_v0  ;;  %1166 = vst [vmem:[#allocation2 + $0xc] sm:$0x1] %v1165_v2  ;;  %v6002_v9 = vpack.c.bf16 %v1076_v59, %v1076_v59  ;;  %v1077_v10 = vmax.f32 %v1056_v63, 0.0  ;;  %v1221_v56 = vrot.slane %v1220_v30, 4 }
 0x166   : > { %v1168_v11 = vsel %vm7603_vm10, %v1112_v6, %v1167_v61  ;;  %v1171_v12 = vsel %vm7419_vm7, %v1113_v7, %v1170_v62  ;;  %v1188_v62 = vld [vmem:[#allocation2 + $0x2c] sm:$0x1] }
 0x167   : > { %1169 = vst [vmem:[#allocation2 + $0x10] sm:$0xf] %v1168_v11  ;;  %1172 = vst [vmem:[#allocation2 + $0x14] sm:$0x1] %v1171_v12  ;;  %v1115_v15 = vshrl.u32 %v6002_v9, 16  ;;  %v6003_v16 = vpack.c.bf16 %v1077_v10, %v1077_v10  ;;  %v1118_v22 = vshll.u32 %v6002_v9, 16 }
 0x168   : > { %v1191_v11 = vld [vmem:[#allocation2 + $0x30] sm:$0xf]  ;;  %v1194_v12 = vld [vmem:[#allocation2 + $0x34] sm:$0x1] }
 0x169   : > { %v1117_v21 = vrot.slane %v1115_v15, 7  ;;  %v1123_v24 = vshrl.u32 %v6003_v16, 16  ;;  %v1061_v25 = vpop.f32.mrb[8].mxu0  ;;  %v1126_v37 = vshll.u32 %v6003_v16, 16 }
 0x16a   : > { %v1078_v28 = vmax.f32 %v1061_v25, 0.0  ;;  %v6307_v29 = vpop.f32.mrb[9].mxu0 }
 0x16b   : > { %v1120_v31 = vor.u32 %v1118_v22, %v1117_v21  ;;  %v1121_v32 = vrot.slane %v1117_v21, 4  ;;  %v1125_v34 = vrot.slane %v1123_v24, 7  ;;  %v1064_v40 = vpop.f32.mrb[10].mxu0  ;;  %v1226_v24 = vsel %vm7346_vm3, %v1221_v56, %v7622_v45 }
 0x16c   : > { %v6004_v41 = vpack.c.bf16 %v1078_v28, %v1078_v28  ;;  %v1079_v4 = vmax.f32 %v1064_v40, 0.0  ;;  %v6308_v5 = vpop.f32.mrb[11].mxu0  ;;  %v7620_v42 = vld [vmem:[#allocation2 + $0x8] sm:$0xf]  ;;  %v7628_v49 = vld [vmem:[#allocation2 + $0xc] sm:$0x1] }
 0x16d   : > { %v1174_v46 = vsel %vm7603_vm10, %v1120_v31, %v1173_v23  ;;  %v1177_v18 = vsel %vm7419_vm7, %v1121_v32, %v1176_v26  ;;  %v1128_v19 = vor.u32 %v1126_v37, %v1125_v34  ;;  %v1129_v38 = vrot.slane %v1125_v34, 4  ;;  %v1483_v37 = vld [vmem:[#allocation2] sm:$0xe] }
 0x16e   : > { %1175 = vst [vmem:[#allocation2 + $0x18] sm:$0xf] %v1174_v46  ;;  %1178 = vst [vmem:[#allocation2 + $0x1c] sm:$0x1] %v1177_v18  ;;  %v1131_v43 = vshrl.u32 %v6004_v41, 16  ;;  %v6005_v48 = vpack.c.bf16 %v1079_v4, %v1079_v4  ;;  %v1228_v51 = vshrl.u32 %v7620_v42, 16 }
 0x16f   : > { %v7631_v52 = vld [vmem:[#allocation2 + $0x10] sm:$0xf]  ;;  %v1180_v53 = vsel %vm7603_vm10, %v1128_v19, %v1179_v27  ;;  %v1183_v54 = vsel %vm7419_vm7, %v1129_v38, %v1182_v39  ;;  %v1231_v57 = vshll.u32 %v7620_v42, 16  ;;  %v1134_v59 = vshll.u32 %v6004_v41, 16  ;;  %v7645_v23 = vld [vmem:[#allocation2 + $0x14] sm:$0x1] }
 0x170   : > { %1181 = vst [vmem:[#allocation2 + $0x20] sm:$0xf] %v1180_v53  ;;  %1184 = vst [vmem:[#allocation2 + $0x24] sm:$0x1] %v1183_v54  ;;  %v1133_v58 = vrot.slane %v1131_v43, 7  ;;  %v1139_v60 = vshrl.u32 %v6005_v48, 16 }
 0x171   : > { %v1230_v61 = vrot.slane %v1228_v51, 4  ;;  %v1233_v63 = vrot.slane %v1231_v57, 5  ;;  %v1237_v0 = vshll.u32 %v7628_v49, 16  ;;  %v1242_v2 = vshrl.u32 %v7631_v52, 16  ;;  %v1484_v18 = vld [vmem:[#allocation2 + $0x8] sm:$0xe] }
 0x172   : > { %v1245_v6 = vshll.u32 %v7631_v52, 16  ;;  %v1136_v7 = vor.u32 %v1134_v59, %v1133_v58  ;;  %v1137_v8 = vrot.slane %v1133_v58, 4  ;;  %v1141_v9 = vrot.slane %v1139_v60, 7 }
 0x173   : > { %v1142_v10 = vshll.u32 %v6005_v48, 16  ;;  %v1234_v13 = vor.u32 %v1233_v63, %v1230_v61  ;;  %v1244_v14 = vrot.slane %v1242_v2, 4  ;;  %v1239_v26 = vrot.slane %v1237_v0, 5 }
 0x174   : > { %v1247_v15 = vrot.slane %v1245_v6, 5  ;;  %v1186_v16 = vsel %vm7603_vm10, %v1136_v7, %v1185_v55  ;;  %v1189_v20 = vsel %vm7419_vm7, %v1137_v8, %v1188_v62  ;;  %v1145_v22 = vrot.slane %v1141_v9, 4  ;;  %v7119_v55 = vld [vmem:[%s8628_s2 + $0x20] sm:$0xff]  }
 0x175   : > { %v1144_v21 = vor.u32 %v1142_v10, %v1141_v9  ;;  %1187 = vst [vmem:[#allocation2 + $0x28] sm:$0xf] %v1186_v16  ;;  %1190 = vst [vmem:[#allocation2 + $0x2c] sm:$0x1] %v1189_v20  ;;  %v1235_v25 = vrot.slane %v1234_v13, 4  ;;  %v1251_v41 = vshll.u32 %v7645_v23, 16 }
 0x176   : > { %v7650_v27 = vld [vmem:[#allocation2 + $0x18] sm:$0xf]  ;;  %v7652_v28 = vld [vmem:[#allocation2 + $0x1c] sm:$0x1]  ;;  %v1248_v29 = vor.u32 %v1247_v15, %v1244_v14  ;;  %v1195_v31 = vsel %vm7419_vm7, %v1145_v22, %v1194_v12  ;;  %v5634_v38 = vrot.slane %v1483_v37, 9  ;;  %v1506_v53 = vrot.slane %v7617_v17, 5 }
 0x177   : > { %v1192_v30 = vsel %vm7603_vm10, %v1144_v21, %v1191_v11  ;;  %v1256_v32 = vshrl.u32 %v7650_v27, 16  ;;  %v1259_v34 = vshll.u32 %v7650_v27, 16  ;;  %1196 = vst [vmem:[#allocation2 + $0x34] sm:$0x1] %v1195_v31  ;;  %v1240_v39 = vsel %vm7346_vm3, %v1235_v25, %v1239_v26  ;;  %v1201_v40 = vld [vmem:[#allocation2 + $0x20] sm:$0xf] }
 0x178   : > { %1193 = vst [vmem:[#allocation2 + $0x30] sm:$0xf] %v1192_v30  ;;  %v1265_v4 = vshll.u32 %v7652_v28, 16  ;;  %v5618_v5 = vcombine.low %v1226_v24, %v1240_v39  ;;  %v1270_v19 = vshrl.u32 %v1201_v40, 16  ;;  %v1273_v43 = vshll.u32 %v1201_v40, 16  ;;  %v7121_v26 = vld [vmem:[%s8628_s2 + $0x30] sm:$0xff]  }
 0x179   : > { %v1258_v45 = vrot.slane %v1256_v32, 4  ;;  %v1261_v46 = vrot.slane %v1259_v34, 5  ;;  %v1249_v48 = vrot.slane %v1248_v29, 4  ;;  %v1253_v56 = vrot.slane %v1251_v41, 5  ;;  %v7671_v58 = vld [vmem:[#allocation2 + $0x24] sm:$0x1] }
 0x17a   : > { %6314 = vmatmul.mubr.msk.bf16.vlgmr.msra.gmra.mrb[12].mxu0 %vm1323_vm11, %v5618_v5  ;;  %v1272_v54 = vrot.slane %v1270_v19, 4  ;;  %v5635_v57 = vrot.slane %v1484_v18, 9  ;;  %v1275_v59 = vrot.slane %v1273_v43, 5  ;;  %v1267_v62 = vrot.slane %v1265_v4, 5  ;;  %v1486_v25 = vld [vmem:[#allocation2 + $0x18] sm:$0xe] }
 0x17b   : > { %v1262_v51 = vor.u32 %v1261_v46, %v1258_v45  ;;  %6317 = vmatprep.mubr.msk.bf16.mxu0 %vm7228_vm0, %v7227_v1  ;;  %6326 = vmatpush3.bf16.msra.mxu0 %v7585_v36  ;;  %v1254_v7 = vsel %vm7346_vm3, %v1249_v48, %v1253_v56  ;;  %v1510_v9 = vrot.slane %v7628_v49, 5  ;;  %v1279_v36 = vshll.u32 %v7671_v58, 16  ;;  %v7120_v49 = vld [vmem:[%s8628_s2 + $0x28] sm:$0xff]   ;;  %v1485_v32 = vld [vmem:[#allocation2 + $0x10] sm:$0xe]  ;;  %v7123_v4 = vld [vmem:[%s8628_s2 + $0x38] sm:$0xff]  }
 0x17c   : > { %v1202_v60 = vld [vmem:[#allocation2 + $0x28] sm:$0xf]  ;;  %v7674_v63 = vld [vmem:[#allocation2 + $0x2c] sm:$0x1]  ;;  %6327 = vmatprep.subr.bf16.mxu0 %v7227_v1  ;;  %v1276_v0 = vor.u32 %v1275_v59, %v1272_v54  ;;  %v1507_v20 = vsel %vm7686_vm14, %v5634_v38, %v1506_v53  ;;  %v5637_v37 = vrot.slane %v1486_v25, 9  ;;  %v1518_v39 = vrot.slane %v7652_v28, 5 }
 0x17d   : > { %v1263_v61 = vrot.slane %v1262_v51, 4  ;;  %v5628_v17 = vcombine.low %v1201_v40, %v1202_v60  ;;  %v1284_v2 = vshrl.u32 %v1202_v60, 16  ;;  %v1287_v6 = vshll.u32 %v1202_v60, 16  ;;  %v1488_v5 = vld [vmem:[#allocation2 + $0x28] sm:$0xe] }
 0x17e   : > { %v1293_v14 = vshll.u32 %v7674_v63, 16  ;;  %v1277_v15 = vrot.slane %v1276_v0, 4  ;;  %v1281_v21 = vrot.slane %v1279_v36, 5  ;;  %v5636_v40 = vrot.slane %v1485_v32, 9  ;;  %v1487_v46 = vld [vmem:[#allocation2 + $0x20] sm:$0xe] }
 0x17f   : > { %v1268_v8 = vsel %vm7346_vm3, %v1263_v61, %v1267_v62  ;;  %6338 = vmatmul.mubr.msk.bf16.vlgmr.msra.gmra.mrb[0].mxu1 %vm1323_vm11, %v5628_v17  ;;  %v1286_v12 = vrot.slane %v1284_v2, 4  ;;  %v1289_v13 = vrot.slane %v1287_v6, 5  ;;  %6328 = vmatpush3.bf16.msra.mxu0 %v7593_v35  ;;  %v1511_v35 = vsel %vm7686_vm14, %v5635_v57, %v1510_v9  ;;  %v1738_v56 = vld [vmem:[#allocation2 + $0x10] sm:$0xf]  ;;  %v7127_v61 = vld [vmem:[#allocation2 + $0x18] ss:$8 sps:$4 sm:$0xff]  }
 0x180   : > { %v5619_v10 = vcombine.low %v1254_v7, %v1268_v8  ;;  %6342 = vmatpush3.bf16.msra.mxu1 %v7119_v55  ;;  %6345 = vmatprep.mubr.msk.bf16.mxu1 %vm7228_vm0, %v7227_v1  ;;  %v1295_v24 = vrot.slane %v1293_v14, 5  ;;  %v5644_v29 = vcombine.low %v1507_v20, %v1511_v35  ;;  %v1282_v30 = vsel %vm7346_vm3, %v1277_v15, %v1281_v21  ;;  %v7125_v55 = vld [vmem:[#allocation2 + $0x8] ss:$8 sps:$4 sm:$0xff]   ;;  %v1742_v17 = vld [vmem:[#allocation2 + $0x20] sm:$0xf] }
 0x181   : > { %6343 = vmatprep.subr.bf16.mxu1 %v7227_v1  ;;  %v1290_v16 = vor.u32 %v1289_v13, %v1286_v12  ;;  %6453 = vmatprep.subr.bf16.mxu0 %v7227_v1  ;;  %v1514_v41 = vrot.slane %v7645_v23, 5  ;;  %v1519_v28 = vsel %vm7686_vm14, %v5637_v37, %v1518_v39  ;;  %v5639_v18 = vrot.slane %v1488_v5, 9  ;;  %v7771_v6 = vld [vmem:[#allocation2 + $0x14] sm:$0x1]  ;;  %v1740_v7 = vld [vmem:[#allocation2 + $0x18] sm:$0xf] }
 0x182   : > { %6318 = vmatmul.mubr.msk.bf16.gmra.mrb[16].mxu0 %vm1323_vm11, %v5619_v10  ;;  %v1526_v19 = vrot.slane %v7674_v63, 5  ;;  %v5626_v38 = vcombine.low %v7599_v47, %v7620_v42  ;;  %v5638_v43 = vrot.slane %v1487_v46, 9  ;;  %v1522_v48 = vrot.slane %v7671_v58, 5  ;;  %v7126_v42 = vld [vmem:[%s8628_s2 + $0x40] sm:$0xff]   ;;  %v7773_v8 = vld [vmem:[#allocation2 + $0xc] sm:$0x1] }
 0x183   : > { %6321 = vmatprep.mubr.msk.bf16.mxu0 %vm7228_vm0, %v7227_v1  ;;  %v1291_v22 = vrot.slane %v1290_v16, 4  ;;  %v1515_v45 = vsel %vm7686_vm14, %v5636_v40, %v1514_v41  ;;  %v5627_v47 = vcombine.low %v7631_v52, %v7650_v27  ;;  %v7128_v52 = vld [vmem:[%s8628_s2 + $0x48] sm:$0xff]   ;;  %v1763_v57 = vshrl.u32 %v1738_v56, 16  ;;  %v7784_v41 = vld [vmem:[#allocation2 + $0x1c] sm:$0x1]  ;;  %v7130_v5 = vld [vmem:[%s8628_s2 + $0x50] sm:$0xff]  }
 0x184   : > { %6344 = vmatpush3.bf16.msra.mxu1 %v7120_v49  ;;  %v5645_v23 = vcombine.low %v1515_v45, %v1519_v28  ;;  %v1527_v51 = vsel %vm7686_vm14, %v5639_v18, %v1526_v19  ;;  %v1523_v53 = vsel %vm7686_vm14, %v5638_v43, %v1522_v48  ;;  %v7763_v27 = vld [vmem:[#allocation2 + $0x8] sm:$0xf]  ;;  %v1766_v58 = vshll.u32 %v1738_v56, 16  ;;  %v5379_v11 = vld [vmem:[%s8631_s5] sm:$0x1] }
 0x185   : > { %6357 = vmatprep.subr.bf16.mxu1 %v7227_v1  ;;  %v1296_v31 = vsel %vm7346_vm3, %v1291_v22, %v1295_v24  ;;  %v5646_v54 = vcombine.low %v1523_v53, %v1527_v51  ;;  %v1749_v59 = vshrl.u32 %v7763_v27, 16  ;;  %v1752_v60 = vshll.u32 %v7763_v27, 16  ;;  %v7129_v15 = vld [vmem:[#allocation2 + $0x28] ss:$8 sps:$4 sm:$0xff]  }
 0x186   : > { %v5620_v34 = vcombine.low %v1282_v30, %v1296_v31  ;;  %v1765_v62 = vrot.slane %v1763_v57, 4  ;;  %v1768_v63 = vrot.slane %v1766_v58, 5  ;;  %v1791_v36 = vshrl.u32 %v1742_v17, 16  ;;  %v1746_v22 = vld [vmem:[#allocation2 + $0x30] sm:$0xf] }
 0x187   : > { %6346 = vmatmul.mubr.msk.bf16.vlgmr.msra.gmra.mrb[4].mxu1 %vm1323_vm11, %v5644_v29  ;;  %v1751_v0 = vrot.slane %v1749_v59, 4  ;;  %v1754_v2 = vrot.slane %v1752_v60, 5  ;;  %v1794_v10 = vshll.u32 %v1742_v17, 16  ;;  %v1772_v13 = vshll.u32 %v7771_v6, 16  ;;  %v1744_v32 = vld [vmem:[#allocation2 + $0x28] sm:$0xf] }
 0x188   : > { %6358 = vmatpush3.bf16.msra.mxu1 %v7121_v26  ;;  %6349 = vmatprep.mubr.msk.bf16.mxu1 %vm7228_vm0, %v7227_v1  ;;  %v1769_v9 = vor.u32 %v1768_v63, %v1765_v62  ;;  %v1777_v14 = vshrl.u32 %v1740_v7, 16  ;;  %v1780_v49 = vshll.u32 %v1740_v7, 16  ;;  %v1758_v16 = vshll.u32 %v7773_v8, 16  ;;  %v7780_v26 = vld [vmem:[#allocation2 + $0x24] sm:$0x1] }
 0x189   : > { %6359 = vmatprep.subr.bf16.mxu1 %v7227_v1  ;;  %v1755_v12 = vor.u32 %v1754_v2, %v1751_v0  ;;  %v1793_v35 = vrot.slane %v1791_v36, 4  ;;  %v1796_v21 = vrot.slane %v1794_v10, 5  ;;  %v1774_v25 = vrot.slane %v1772_v13, 5  ;;  %v1745_v58 = vld [vmem:[#allocation2 + $0x2c] sm:$0x1] }
 0x18a   : > { %6322 = vmatmul.mubr.msk.bf16.gmra.mrb[20].mxu0 %vm1323_vm11, %v5620_v34  ;;  %v1770_v20 = vrot.slane %v1769_v9, 4  ;;  %v1779_v29 = vrot.slane %v1777_v14, 4  ;;  %v1782_v30 = vrot.slane %v1780_v49, 5  ;;  %v1760_v31 = vrot.slane %v1758_v16, 5  ;;  %v1931_v36 = vld [vmem:[#allocation2 + $0x10] sm:$0xe] }
 0x18b   : > { %6329 = vmatprep.mubr.msk.bf16.mxu0 %vm7228_vm0, %v7227_v1  ;;  %v1756_v24 = vrot.slane %v1755_v12, 4  ;;  %v1797_v37 = vor.u32 %v1796_v21, %v1793_v35  ;;  %v1819_v39 = vshrl.u32 %v1746_v22, 16  ;;  %v1822_v40 = vshll.u32 %v1746_v22, 16  ;;  %v1930_v13 = vld [vmem:[#allocation2 + $0x8] sm:$0xe]  ;;  %v7132_v22 = vld [vmem:[%s8628_s2 + $0x60] sm:$0xff]  }
 0x18c   : > { %6360 = vmatpush3.bf16.msra.mxu1 %v7123_v4  ;;  %v1775_v34 = vsel %vm7346_vm3, %v1770_v20, %v1774_v25  ;;  %v1800_v4 = vshll.u32 %v7780_v26, 16  ;;  %v1783_v45 = vor.u32 %v1782_v30, %v1779_v29  ;;  %v1808_v46 = vshll.u32 %v1744_v32, 16  ;;  %v1933_v35 = vld [vmem:[#allocation2 + $0x20] sm:$0xe] }
 0x18d   : > { %6373 = vmatprep.subr.bf16.mxu1 %v7227_v1  ;;  %v1761_v28 = vsel %vm7346_vm3, %v1756_v24, %v1760_v31  ;;  %v1786_v19 = vshll.u32 %v7784_v41, 16  ;;  %v1821_v43 = vrot.slane %v1819_v39, 4  ;;  %v1824_v48 = vrot.slane %v1822_v40, 5  ;;  %v1932_v24 = vld [vmem:[#allocation2 + $0x18] sm:$0xe]  ;;  %v7133_v31 = vld [vmem:[%s8628_s2 + $0x68] sm:$0xff]  }
 0x18e   : > { %v5668_v18 = vcombine.low %v1761_v28, %v1775_v34  ;;  %v1784_v51 = vrot.slane %v1783_v45, 4  ;;  %v1802_v53 = vrot.slane %v1800_v4, 5  ;;  %v1814_v63 = vshll.u32 %v1745_v58, 16  ;;  %v1935_v34 = vld [vmem:[#allocation2 + $0x30] sm:$0xe] }
 0x18f   : > { %6350 = vmatmul.mubr.msk.bf16.gmra.mrb[8].mxu1 %vm1323_vm11, %v5645_v23  ;;  %v1805_v23 = vshrl.u32 %v1744_v32, 16  ;;  %v1788_v56 = vrot.slane %v1786_v19, 5  ;;  %v1825_v57 = vor.u32 %v1824_v48, %v1821_v43  ;;  %v5677_v14 = vrot.slane %v1931_v36, 9  ;;  %v1934_v39 = vld [vmem:[#allocation2 + $0x28] sm:$0xe] }
 0x190   : > { %6353 = vmatprep.mubr.msk.bf16.mxu1 %vm7228_vm0, %v7227_v1  ;;  %v1816_v7 = vrot.slane %v1814_v63, 5  ;;  %v1954_v49 = vrot.slane %v7771_v6, 5  ;;  %v1950_v16 = vrot.slane %v7773_v8, 5  ;;  %v5679_v25 = vrot.slane %v1933_v35, 9  ;;  %v2183_v19 = vld [vmem:[#allocation2 + $0x18] sm:$0xf] }
 0x191   : > { %v1789_v59 = vsel %vm7346_vm3, %v1784_v51, %v1788_v56  ;;  %v1826_v17 = vrot.slane %v1825_v57, 4  ;;  %v1962_v29 = vrot.slane %v7780_v26, 5  ;;  %v5678_v8 = vrot.slane %v1932_v24, 9  ;;  %v2181_v43 = vld [vmem:[#allocation2 + $0x10] sm:$0xf] }
 0x192   : > { %6330 = vmatmul.mubr.msk.bf16.vlgmr.msra.gmra.mrb[12].mxu0 %vm1323_vm11, %v5626_v38  ;;  %v1798_v38 = vrot.slane %v1797_v37, 4  ;;  %v1955_v20 = vsel %vm7686_vm14, %v5677_v14, %v1954_v49  ;;  %v1958_v30 = vrot.slane %v7784_v41, 5  ;;  %v5681_v40 = vrot.slane %v1935_v34, 9  ;;  %v2187_v56 = vld [vmem:[#allocation2 + $0x28] sm:$0xf]  ;;  %v7139_v34 = vld [vmem:[%s8628_s2 + $0x80] sm:$0xff]  }
 0x193   : > { %6333 = vmatprep.mubr.msk.bf16.mxu0 %vm7228_vm0, %v7227_v1  ;;  %v1963_v32 = vsel %vm7686_vm14, %v5679_v25, %v1962_v29  ;;  %v5680_v4 = vrot.slane %v1934_v39, 9  ;;  %v1966_v28 = vrot.slane %v1745_v58, 5  ;;  %v2208_v48 = vshrl.u32 %v2183_v19, 16  ;;  %v7862_v58 = vld [vmem:[#allocation2 + $0x1c] sm:$0x1] }
 0x194   : > { %v1959_v26 = vsel %vm7686_vm14, %v5678_v8, %v1958_v30  ;;  %v2211_v51 = vshll.u32 %v2183_v19, 16  ;;  %v2239_v63 = vshll.u32 %v2187_v56, 16  ;;  %v2191_v14 = vld [vmem:[#allocation2 + $0x38] sm:$0xf]  ;;  %v2189_v49 = vld [vmem:[#allocation2 + $0x30] sm:$0xf] }
 0x195   : > { %v5687_v37 = vcombine.low %v1959_v26, %v1963_v32  ;;  %v1967_v45 = vsel %vm7686_vm14, %v5680_v4, %v1966_v28  ;;  %v2267_v24 = vshll.u32 %v2191_v14, 16  ;;  %v2250_v8 = vshrl.u32 %v2189_v49, 16  ;;  %v2190_v19 = vld [vmem:[#allocation2 + $0x34] sm:$0x1] }
 0x196   : > { %v2253_v30 = vshll.u32 %v2189_v49, 16  ;;  %v2377_v49 = vld [vmem:[#allocation2 + $0x20] sm:$0xe]  ;;  %vm5380_vm15 = vcmp.gt.f32.partialorder %v5379_v11, 0.5 }
 0x197   : > { %6354 = vmatmul.mubr.msk.bf16.gmra.mrb[0].mxu1 %vm1323_vm11, %v5646_v54  ;;  %v7131_v54 = vld [vmem:[%s8628_s2 + $0x58] sm:$0xff]  }
 0x198   : > { %6361 = vmatprep.mubr.msk.bf16.mxu1 %vm7228_vm0, %v7227_v1 }
 0x19a   : > { %6334 = vmatmul.mubr.msk.bf16.gmra.mrb[16].mxu0 %vm1323_vm11, %v5627_v47  ;;  %v1807_v47 = vrot.slane %v1805_v23, 4 }
 0x19b   : > { %6457 = vmatprep.mubr.msk.bf16.mxu0 %vm7228_vm0, %v7227_v1 }
 0x19f   : > { %6362 = vmatmul.mubr.msk.bf16.vlgmr.msra.gmra.mrb[4].mxu1 %vm1323_vm11, %v7125_v55  ;;  %v1747_v55 = vld [vmem:[#allocation2 + $0x34] sm:$0x1] }
 0x1a0   : > { %6374 = vmatpush3.bf16.msra.mxu1 %v7126_v42  ;;  %6365 = vmatprep.mubr.msk.bf16.mxu1 %vm7228_vm0, %v7227_v1  ;;  %v1810_v42 = vrot.slane %v1808_v46, 5  ;;  %v1970_v41 = vrot.slane %v1747_v55, 5  ;;  %v7135_v46 = vld [vmem:[%s8628_s2 + $0x70] sm:$0xff]  }
 0x1a1   : > { %6375 = vmatprep.subr.bf16.mxu1 %v7227_v1 }
 0x1a2   : > { %v1811_v60 = vor.u32 %v1810_v42, %v1807_v47  ;;  %v7136_v47 = vld [vmem:[#allocation2 + $0x20] ss:$8 sps:$4 sm:$0xff]   ;;  %v2210_v42 = vrot.slane %v2208_v48, 4 }
 0x1a4   : > { %6376 = vmatpush3.bf16.msra.mxu1 %v7128_v52  ;;  %v1803_v52 = vsel %vm7346_vm3, %v1798_v38, %v1802_v53  ;;  %v1812_v0 = vrot.slane %v1811_v60, 4  ;;  %v7137_v38 = vld [vmem:[%s8628_s2 + $0x78] sm:$0xff]   ;;  %v2194_v53 = vshrl.u32 %v2181_v43, 16  ;;  %v7864_v60 = vld [vmem:[#allocation2 + $0x14] sm:$0x1] }
 0x1a5   : > { %6389 = vmatprep.subr.bf16.mxu1 %v7227_v1  ;;  %v5669_v62 = vcombine.low %v1789_v59, %v1803_v52  ;;  %v2185_v59 = vld [vmem:[#allocation2 + $0x20] sm:$0xf]  ;;  %v2203_v36 = vshll.u32 %v7864_v60, 16 }
 0x1a6   : > { %v1817_v10 = vsel %vm7346_vm3, %v1812_v0, %v1816_v7  ;;  %v2196_v52 = vrot.slane %v2194_v53, 4  ;;  %v2217_v0 = vshll.u32 %v7862_v58, 16  ;;  %v2225_v7 = vshll.u32 %v2185_v59, 16 }
 0x1a7   : > { %6366 = vmatmul.mubr.msk.bf16.gmra.mrb[8].mxu1 %vm1323_vm11, %v7127_v61  ;;  %v1828_v61 = vshll.u32 %v1747_v55, 16  ;;  %v2213_v55 = vrot.slane %v2211_v51, 5 }
 0x1a8   : > { %6369 = vmatprep.mubr.msk.bf16.mxu1 %vm7228_vm0, %v7227_v1  ;;  %v2227_v35 = vrot.slane %v2225_v7, 5  ;;  %v2399_v7 = vrot.slane %v7862_v58, 5 }
 0x1a9   : > { %v1830_v2 = vrot.slane %v1828_v61, 5  ;;  %v2214_v61 = vor.u32 %v2213_v55, %v2210_v42  ;;  %v2259_v42 = vshll.u32 %v2190_v19, 16 }
 0x1ab   : > { %v1831_v9 = vsel %vm7346_vm3, %v1826_v17, %v1830_v2  ;;  %v2222_v2 = vshrl.u32 %v2185_v59, 16  ;;  %v2261_v59 = vrot.slane %v2259_v42, 5 }
 0x1ac   : > { %v5670_v12 = vcombine.low %v1817_v10, %v1831_v9  ;;  %v7138_v9 = vld [vmem:[#allocation2 + $0x30] ss:$8 sps:$4 sm:$0xff]   ;;  %v2215_v10 = vrot.slane %v2214_v61, 4 }
 0x1af   : > { %6370 = vmatmul.mubr.msk.bf16.gmra.mrb[0].mxu1 %vm1323_vm11, %v7129_v15  ;;  %v5676_v15 = vrot.slane %v1930_v13, 9  ;;  %v2241_v13 = vrot.slane %v2239_v63, 5  ;;  %v2376_v63 = vld [vmem:[#allocation2 + $0x18] sm:$0xe] }
 0x1b0   : > { %6377 = vmatprep.mubr.msk.bf16.mxu1 %vm7228_vm0, %v7227_v1 }
 0x1b1   : > { %v1951_v21 = vsel %vm7686_vm14, %v5676_v15, %v1950_v16  ;;  %v2219_v16 = vrot.slane %v2217_v0, 5  ;;  %v2375_v0 = vld [vmem:[#allocation2 + $0x10] sm:$0xe] }
 0x1b2   : > { %v5686_v6 = vcombine.low %v1951_v21, %v1955_v20  ;;  %v2224_v20 = vrot.slane %v2222_v2, 4  ;;  %v2205_v21 = vrot.slane %v2203_v36, 5  ;;  %v5719_v2 = vrot.slane %v2376_v63, 9 }
 0x1b3   : > { %v2220_v25 = vsel %vm7346_vm3, %v2215_v10, %v2219_v16  ;;  %v2395_v36 = vrot.slane %v7864_v60, 5  ;;  %v5720_v16 = vrot.slane %v2377_v49, 9 }
 0x1b4   : > { %v2228_v26 = vor.u32 %v2227_v35, %v2224_v20  ;;  %v2400_v10 = vsel %vm7686_vm14, %v5719_v2, %v2399_v7  ;;  %v2379_v35 = vld [vmem:[#allocation2 + $0x30] sm:$0xe] }
 0x1b7   : > { %6378 = vmatmul.mubr.msk.bf16.vlgmr.msra.gmra.mrb[4].mxu1 %vm1323_vm11, %v5668_v18  ;;  %v7134_v18 = vld [vmem:[#allocation2 + $0x10] ss:$8 sps:$4 sm:$0xff]  }
 0x1b8   : > { %6390 = vmatpush3.bf16.msra.mxu1 %v7130_v5  ;;  %6381 = vmatprep.mubr.msk.bf16.mxu1 %vm7228_vm0, %v7227_v1  ;;  %v1971_v5 = vsel %vm7686_vm14, %v5681_v40, %v1970_v41  ;;  %v2269_v41 = vrot.slane %v2267_v24, 5 }
 0x1b9   : > { %6391 = vmatprep.subr.bf16.mxu1 %v7227_v1  ;;  %v5688_v23 = vcombine.low %v1967_v45, %v1971_v5  ;;  %v2252_v5 = vrot.slane %v2250_v8, 4  ;;  %v2255_v45 = vrot.slane %v2253_v30, 5 }
 0x1bb   : > { %v2256_v53 = vor.u32 %v2255_v45, %v2252_v5 }
 0x1bc   : > { %6392 = vmatpush3.bf16.msra.mxu1 %v7131_v54  ;;  %v2197_v54 = vshll.u32 %v2181_v43, 16 }
 0x1bd   : > { %6405 = vmatprep.subr.bf16.mxu1 %v7227_v1 }
 0x1be   : > { %v2199_v57 = vrot.slane %v2197_v54, 5 }
 0x1bf   : > { %6382 = vmatmul.mubr.msk.bf16.gmra.mrb[8].mxu1 %vm1323_vm11, %v5669_v62  ;;  %v2236_v62 = vshrl.u32 %v2187_v56, 16  ;;  %v2257_v56 = vrot.slane %v2256_v53, 4 }
 0x1c0   : > { %6385 = vmatprep.mubr.msk.bf16.mxu1 %vm7228_vm0, %v7227_v1  ;;  %v2200_v17 = vor.u32 %v2199_v57, %v2196_v52 }
 0x1c1   : > { %v2262_v61 = vsel %vm7346_vm3, %v2257_v56, %v2261_v59 }
 0x1c2   : > { %v2201_v15 = vrot.slane %v2200_v17, 4 }
 0x1c4   : > { %v2206_v32 = vsel %vm7346_vm3, %v2201_v15, %v2205_v21  ;;  %v2380_v21 = vld [vmem:[#allocation2 + $0x38] sm:$0xe] }
 0x1c5   : > { %v5710_v39 = vcombine.low %v2206_v32, %v2220_v25  ;;  %v5722_v25 = vrot.slane %v2379_v35, 9 }
 0x1c7   : > { %6386 = vmatmul.mubr.msk.bf16.gmra.mrb[0].mxu1 %vm1323_vm11, %v5670_v12  ;;  %v2238_v12 = vrot.slane %v2236_v62, 4 }
 0x1c8   : > { %6393 = vmatprep.mubr.msk.bf16.mxu1 %vm7228_vm0, %v7227_v1 }
 0x1c9   : > { %v2242_v29 = vor.u32 %v2241_v13, %v2238_v12  ;;  %v2378_v12 = vld [vmem:[#allocation2 + $0x28] sm:$0xe] }
 0x1ca   : > { %v5721_v15 = vrot.slane %v2378_v12, 9 }
 0x1cb   : > { %v2243_v28 = vrot.slane %v2242_v29, 4  ;;  %v2411_v29 = vrot.slane %v2190_v19, 5  ;;  %v7142_v19 = vld [vmem:[%s8629_s3 + $0x18] sm:$0xff]  }
 0x1cd   : > { %v2412_v30 = vsel %vm7686_vm14, %v5722_v25, %v2411_v29 }
 0x1cf   : > { %6394 = vmatmul.mubr.msk.bf16.vlgmr.msra.gmra.mrb[4].mxu1 %vm1323_vm11, %v5686_v6  ;;  %v2264_v6 = vshrl.u32 %v2191_v14, 16 }
 0x1d0   : > { %6406 = vmatpush3.bf16.msra.mxu1 %v7132_v22  ;;  %6397 = vmatprep.mubr.msk.bf16.mxu1 %vm7228_vm0, %v7227_v1  ;;  %v7871_v22 = vld [vmem:[#allocation2 + $0x2c] sm:$0x1] }
 0x1d1   : > { %6407 = vmatprep.subr.bf16.mxu1 %v7227_v1  ;;  %v2266_v40 = vrot.slane %v2264_v6, 4  ;;  %v2407_v58 = vrot.slane %v7871_v22, 5 }
 0x1d3   : > { %v2270_v43 = vor.u32 %v2269_v41, %v2266_v40  ;;  %v2408_v20 = vsel %vm7686_vm14, %v5721_v15, %v2407_v58  ;;  %v2601_v15 = vld [vmem:[#allocation2 + $0xc] sm:$0x1] }
 0x1d4   : > { %6408 = vmatpush3.bf16.msra.mxu1 %v7133_v31  ;;  %v7875_v31 = vld [vmem:[#allocation2 + $0x24] sm:$0x1] }
 0x1d5   : > { %6421 = vmatprep.subr.bf16.mxu1 %v7227_v1  ;;  %v2231_v4 = vshll.u32 %v7875_v31, 16  ;;  %v2271_v52 = vrot.slane %v2270_v43, 4  ;;  %v2403_v60 = vrot.slane %v7875_v31, 5 }
 0x1d7   : > { %6398 = vmatmul.mubr.msk.bf16.gmra.mrb[8].mxu1 %vm1323_vm11, %v5687_v37  ;;  %v2245_v37 = vshll.u32 %v7871_v22, 16  ;;  %v2233_v48 = vrot.slane %v2231_v4, 5  ;;  %v2404_v6 = vsel %vm7686_vm14, %v5720_v16, %v2403_v60  ;;  %v5723_v22 = vrot.slane %v2380_v21, 9  ;;  %v2604_v21 = vld [vmem:[#allocation2 + $0x10] sm:$0xf] }
 0x1d8   : > { %6401 = vmatprep.mubr.msk.bf16.mxu1 %vm7228_vm0, %v7227_v1  ;;  %v5729_v24 = vcombine.low %v2404_v6, %v2408_v20  ;;  %v2607_v6 = vld [vmem:[#allocation2 + $0x14] sm:$0x1] }
 0x1df   : > { %6402 = vmatmul.mubr.msk.bf16.gmra.mrb[0].mxu1 %vm1323_vm11, %v5688_v23  ;;  %v2229_v23 = vrot.slane %v2228_v26, 4 }
 0x1e0   : > { %6409 = vmatprep.mubr.msk.bf16.mxu1 %vm7228_vm0, %v7227_v1 }
 0x1e7   : > { %6410 = vmatmul.mubr.msk.bf16.vlgmr.msra.gmra.mrb[4].mxu1 %vm1323_vm11, %v7134_v18  ;;  %v7140_v18 = vld [vmem:[%s8628_s2 + $0x88] sm:$0xff]  }
 0x1e8   : > { %6422 = vmatpush3.bf16.msra.mxu1 %v7135_v46  ;;  %6413 = vmatprep.mubr.msk.bf16.mxu1 %vm7228_vm0, %v7227_v1  ;;  %v2247_v46 = vrot.slane %v2245_v37, 5 }
 0x1e9   : > { %6423 = vmatprep.subr.bf16.mxu1 %v7227_v1 }
 0x1ea   : > { %v2248_v51 = vsel %vm7346_vm3, %v2243_v28, %v2247_v46 }
 0x1ec   : > { %6424 = vmatpush3.bf16.msra.mxu1 %v7137_v38  ;;  %v2192_v38 = vld [vmem:[#allocation2 + $0x3c] sm:$0x1] }
 0x1ed   : > { %6437 = vmatprep.subr.bf16.mxu1 %v7227_v1  ;;  %v2273_v54 = vshll.u32 %v2192_v38, 16  ;;  %v2415_v8 = vrot.slane %v2192_v38, 5 }
 0x1ef   : > { %6414 = vmatmul.mubr.msk.bf16.gmra.mrb[8].mxu1 %vm1323_vm11, %v7136_v47  ;;  %v2234_v47 = vsel %vm7346_vm3, %v2229_v23, %v2233_v48  ;;  %v2275_v57 = vrot.slane %v2273_v54, 5  ;;  %v2416_v31 = vsel %vm7686_vm14, %v5723_v22, %v2415_v8 }
 0x1f0   : > { %6417 = vmatprep.mubr.msk.bf16.mxu1 %vm7228_vm0, %v7227_v1  ;;  %v5711_v55 = vcombine.low %v2234_v47, %v2248_v51  ;;  %v5730_v32 = vcombine.low %v2412_v30, %v2416_v31 }
 0x1f1   : > { %v2276_v62 = vsel %vm7346_vm3, %v2271_v52, %v2275_v57  ;;  %v7943_v57 = vld [vmem:[#allocation2] sm:$0xf] }
 0x1f2   : > { %v5712_v17 = vcombine.low %v2262_v61, %v2276_v62 }
 0x1f7   : > { %6418 = vmatmul.mubr.msk.bf16.gmra.mrb[0].mxu1 %vm1323_vm11, %v7138_v9  ;;  %v5718_v9 = vrot.slane %v2375_v0, 9 }
 0x1f8   : > { %6425 = vmatprep.mubr.msk.bf16.mxu1 %vm7228_vm0, %v7227_v1 }
 0x1f9   : > { %v2396_v13 = vsel %vm7686_vm14, %v5718_v9, %v2395_v36  ;;  %v2651_v9 = vshrl.u32 %v7943_v57, 16  ;;  %v2654_v36 = vshll.u32 %v7943_v57, 16 }
 0x1fa   : > { %v5728_v14 = vcombine.low %v2396_v13, %v2400_v10 }
 0x1fb   : > { %v2653_v8 = vrot.slane %v2651_v9, 4  ;;  %v2656_v30 = vrot.slane %v2654_v36, 5 }
 0x1ff   : > { %6426 = vmatmul.mubr.msk.bf16.vlgmr.msra.gmra.mrb[4].mxu1 %vm1323_vm11, %v5710_v39 }
 0x200   : > { %6438 = vmatpush3.bf16.msra.mxu1 %v7139_v34  ;;  %6429 = vmatprep.mubr.msk.bf16.mxu1 %vm7228_vm0, %v7227_v1 }
 0x201   : > { %6439 = vmatprep.subr.bf16.mxu1 %v7227_v1 }
 0x204   : > { %6440 = vmatpush3.bf16.msra.mxu1 %v7140_v18  ;;  %v7141_v18 = vld [vmem:[%s8629_s3 + $0x10] sm:$0xff]  }
 0x205   : > { %6597 = vmatprep.subr.bf16.mxu1 %v7227_v1  ;;  %6454 = vmatpush3.bf16.msra.mxu0 %v7141_v18 }
 0x206   : > { %6455 = vmatprep.subr.bf16.mxu0 %v7227_v1 }
 0x207   : > { %6430 = vmatmul.mubr.msk.bf16.gmra.mrb[8].mxu1 %vm1323_vm11, %v5711_v55 }
 0x208   : > { %6433 = vmatprep.mubr.msk.bf16.mxu1 %vm7228_vm0, %v7227_v1 }
 0x209   : > { %6456 = vmatpush3.bf16.msra.mxu0 %v7142_v19 }
 0x20a   : > { %6469 = vmatprep.subr.bf16.mxu0 %v7227_v1 }
 0x20f   : > { %6434 = vmatmul.mubr.msk.bf16.gmra.mrb[0].mxu1 %vm1323_vm11, %v5712_v17 }
 0x210   : > { %6441 = vmatprep.mubr.msk.bf16.mxu1 %vm7228_vm0, %v7227_v1 }
 0x217   : > { %6442 = vmatmul.mubr.msk.bf16.vlgmr.msra.gmra.mrb[4].mxu1 %vm1323_vm11, %v5728_v14 }
 0x218   : > { %6445 = vmatprep.mubr.msk.bf16.mxu1 %vm7228_vm0, %v7227_v1 }
 0x21f   : > { %6446 = vmatmul.mubr.msk.bf16.gmra.mrb[8].mxu1 %vm1323_vm11, %v5729_v24 }
 0x220   : > { %6449 = vmatprep.mubr.msk.bf16.mxu1 %vm7228_vm0, %v7227_v1 }
 0x227   : > { %6450 = vmatmul.mubr.msk.bf16.gmra.mrb[0].mxu1 %vm1323_vm11, %v5730_v32 }
 0x228   : > { %6601 = vmatprep.mubr.msk.bf16.mxu1 %vm7228_vm0, %v7227_v1 }
 0x25d   : > { %v7931_v34 = vpop.f32.mrb[20].mxu0 }
 0x25e   : > { %v6323_v26 = vpop.f32.mrb[21].mxu0 }
 0x25f   : > { %v7933_v37 = vpop.f32.mrb[22].mxu0  ;;  %v7956_v26 = vld [vmem:[#allocation2 + $0x4] sm:$0x1] }
 0x260   : > { %v6324_v39 = vpop.f32.mrb[23].mxu0 }
 0x265   : > { %v1460_v40 = vpop.f32.mrb[12].mxu0 }
 0x266   : > { %v6331_v41 = vpop.f32.mrb[13].mxu0 }
 0x267   : > { %v1463_v4 = vpop.f32.mrb[14].mxu0  ;;  %v2660_v41 = vshll.u32 %v7956_v26, 16 }
 0x268   : > { %v6332_v28 = vpop.f32.mrb[15].mxu0 }
 0x26d   : > { %v1468_v5 = vpop.f32.mrb[16].mxu0 }
 0x26e   : > { %v6335_v45 = vpop.f32.mrb[17].mxu0 }
 0x26f   : > { %v1471_v23 = vpop.f32.mrb[18].mxu0 }
 0x270   : > { %v6336_v46 = vpop.f32.mrb[19].mxu0 }
 0x2ea   : > { %v2486_v38 = vpop.f32.mrb[4].mxu1 }
 0x2eb   : > { %v6745_v43 = vadd.f32 %v2486_v38, %v1460_v40  ;;  %v6443_v48 = vpop.f32.mrb[5].mxu1  ;;  %v2657_v38 = vor.u32 %v2656_v30, %v2653_v8 }
 0x2ec   : > { %v2489_v51 = vpop.f32.mrb[6].mxu1 }
 0x2ed   : > { %v2515_v53 = vmax.f32 %v6745_v43, 0.0  ;;  %v6746_v54 = vadd.f32 %v2489_v51, %v1463_v4  ;;  %v6444_v47 = vpop.f32.mrb[7].mxu1  ;;  %v2613_v51 = vld [vmem:[#allocation2 + $0x1c] sm:$0x1] }
 0x2ee   : > { %v2616_v47 = vld [vmem:[#allocation2 + $0x20] sm:$0xf] }
 0x2ef   : > { %v6006_v42 = vpack.c.bf16 %v2515_v53, %v2515_v53  ;;  %v2516_v55 = vmax.f32 %v6746_v54, 0.0 }
 0x2f1   : > { %v2540_v56 = vshrl.u32 %v6006_v42, 16  ;;  %v6007_v52 = vpack.c.bf16 %v2516_v55, %v2516_v55  ;;  %v2543_v62 = vshll.u32 %v6006_v42, 16 }
 0x2f2   : > { %v2494_v59 = vpop.f32.mrb[8].mxu1 }
 0x2f3   : > { %v2542_v61 = vrot.slane %v2540_v56, 7  ;;  %v2548_v63 = vshrl.u32 %v6007_v52, 16  ;;  %v6747_v17 = vadd.f32 %v2494_v59, %v1468_v5  ;;  %v6447_v0 = vpop.f32.mrb[9].mxu1  ;;  %v2551_v2 = vshll.u32 %v6007_v52, 16 }
 0x2f4   : > { %v2497_v7 = vpop.f32.mrb[10].mxu1  ;;  %v7963_v56 = vrot.slane %v2660_v41, 5  ;;  %v2631_v41 = vld [vmem:[#allocation2 + $0x34] sm:$0x1] }
 0x2f5   : > { %v2545_v10 = vor.u32 %v2543_v62, %v2542_v61  ;;  %v2546_v12 = vrot.slane %v2542_v61, 4  ;;  %v2550_v13 = vrot.slane %v2548_v63, 7  ;;  %v2517_v14 = vmax.f32 %v6747_v17, 0.0  ;;  %v6448_v49 = vpop.f32.mrb[11].mxu1  ;;  %v2619_v62 = vld [vmem:[#allocation2 + $0x24] sm:$0x1] }
 0x2f6   : > { %v6748_v58 = vadd.f32 %v2497_v7, %v1471_v23  ;;  %v2610_v23 = vld [vmem:[#allocation2 + $0x18] sm:$0xf] }
 0x2f7   : > { %v2599_v16 = vsel %vm7603_vm10, %v2545_v10, %v7763_v27  ;;  %v2602_v60 = vsel %vm7419_vm7, %v2546_v12, %v2601_v15  ;;  %v2553_v20 = vor.u32 %v2551_v2, %v2550_v13  ;;  %v2554_v35 = vrot.slane %v2550_v13, 4 }
 0x2f8   : > { %2600 = vst [vmem:[#allocation2 + $0x8] sm:$0xf] %v2599_v16  ;;  %2603 = vst [vmem:[#allocation2 + $0xc] sm:$0x1] %v2602_v60  ;;  %v6008_v24 = vpack.c.bf16 %v2517_v14, %v2517_v14  ;;  %v2518_v25 = vmax.f32 %v6748_v58, 0.0  ;;  %v2658_v10 = vrot.slane %v2657_v38, 4 }
 0x2f9   : > { %v2605_v29 = vsel %vm7603_vm10, %v2553_v20, %v2604_v21  ;;  %v2608_v22 = vsel %vm7419_vm7, %v2554_v35, %v2607_v6  ;;  %v2622_v6 = vld [vmem:[#allocation2 + $0x28] sm:$0xf] }
 0x2fa   : > { %2609 = vst [vmem:[#allocation2 + $0x14] sm:$0x1] %v2608_v22  ;;  %2606 = vst [vmem:[#allocation2 + $0x10] sm:$0xf] %v2605_v29  ;;  %v2556_v27 = vshrl.u32 %v6008_v24, 16  ;;  %v6009_v31 = vpack.c.bf16 %v2518_v25, %v2518_v25  ;;  %v2502_v32 = vpop.f32.mrb[0].mxu1 }
 0x2fb   : > { %v6749_v39 = vadd.f32 %v2502_v32, %v7931_v34  ;;  %v6451_v40 = vpop.f32.mrb[1].mxu1  ;;  %v2559_v28 = vshll.u32 %v6008_v24, 16  ;;  %v2625_v29 = vld [vmem:[#allocation2 + $0x2c] sm:$0x1]  ;;  %v2628_v22 = vld [vmem:[#allocation2 + $0x30] sm:$0xf] }
 0x2fc   : > { %v2558_v4 = vrot.slane %v2556_v27, 7  ;;  %v2564_v5 = vshrl.u32 %v6009_v31, 16  ;;  %v2505_v45 = vpop.f32.mrb[2].mxu1  ;;  %v2567_v54 = vshll.u32 %v6009_v31, 16 }
 0x2fd   : > { %v2519_v46 = vmax.f32 %v6749_v39, 0.0  ;;  %v6750_v18 = vadd.f32 %v2505_v45, %v7933_v37  ;;  %v6452_v19 = vpop.f32.mrb[3].mxu1 }
 0x2fe   : > { %v2561_v43 = vor.u32 %v2559_v28, %v2558_v4  ;;  %v2562_v48 = vrot.slane %v2558_v4, 4  ;;  %v2566_v53 = vrot.slane %v2564_v5, 7  ;;  %v2663_v28 = vsel %vm7346_vm3, %v2658_v10, %v7963_v56 }
 0x2ff   : > { %v6010_v34 = vpack.c.bf16 %v2519_v46, %v2519_v46  ;;  %v2520_v42 = vmax.f32 %v6750_v18, 0.0  ;;  %v7961_v55 = vld [vmem:[#allocation2 + $0x8] sm:$0xf]  ;;  %v7969_v0 = vld [vmem:[#allocation2 + $0xc] sm:$0x1] }
 0x300   : > { %v2611_v52 = vsel %vm7603_vm10, %v2561_v43, %v2610_v23  ;;  %v2614_v37 = vsel %vm7419_vm7, %v2562_v48, %v2613_v51  ;;  %v2569_v59 = vor.u32 %v2567_v54, %v2566_v53  ;;  %v2570_v61 = vrot.slane %v2566_v53, 4  ;;  %v7143_v53 = vld [vmem:[%s8629_s3] sm:$0xff]  }
 0x301   : > { %2615 = vst [vmem:[#allocation2 + $0x1c] sm:$0x1] %v2614_v37  ;;  %2612 = vst [vmem:[#allocation2 + $0x18] sm:$0xf] %v2611_v52  ;;  %v2572_v63 = vshrl.u32 %v6010_v34, 16  ;;  %v6011_v17 = vpack.c.bf16 %v2520_v42, %v2520_v42  ;;  %v2665_v2 = vshrl.u32 %v7961_v55, 16 }
 0x302   : > { %v7972_v7 = vld [vmem:[#allocation2 + $0x10] sm:$0xf]  ;;  %v2617_v9 = vsel %vm7603_vm10, %v2569_v59, %v2616_v47  ;;  %v2620_v36 = vsel %vm7419_vm7, %v2570_v61, %v2619_v62  ;;  %v2668_v12 = vshll.u32 %v7961_v55, 16  ;;  %v2575_v14 = vshll.u32 %v6010_v34, 16  ;;  %v7986_v4 = vld [vmem:[#allocation2 + $0x14] sm:$0x1] }
 0x303   : > { %2621 = vst [vmem:[#allocation2 + $0x24] sm:$0x1] %v2620_v36  ;;  %2618 = vst [vmem:[#allocation2 + $0x20] sm:$0xf] %v2617_v9  ;;  %v2574_v13 = vrot.slane %v2572_v63, 7  ;;  %v2580_v49 = vshrl.u32 %v6011_v17, 16 }
 0x304   : > { %v2667_v15 = vrot.slane %v2665_v2, 4  ;;  %v2670_v58 = vrot.slane %v2668_v12, 5  ;;  %v2674_v16 = vshll.u32 %v7969_v0, 16  ;;  %v2679_v60 = vshrl.u32 %v7972_v7, 16  ;;  %v7144_v2 = vld [vmem:[%s8629_s3 + $0x8] sm:$0xff]  }
 0x305   : > { %v2682_v20 = vshll.u32 %v7972_v7, 16  ;;  %v2577_v35 = vor.u32 %v2575_v14, %v2574_v13  ;;  %v2578_v21 = vrot.slane %v2574_v13, 4  ;;  %v2582_v24 = vrot.slane %v2580_v49, 7 }
 0x306   : > { %v2583_v25 = vshll.u32 %v6011_v17, 16  ;;  %v2671_v8 = vor.u32 %v2670_v58, %v2667_v15  ;;  %v2681_v30 = vrot.slane %v2679_v60, 4  ;;  %v2676_v45 = vrot.slane %v2674_v16, 5 }
 0x307   : > { %v2684_v27 = vrot.slane %v2682_v20, 5  ;;  %v2623_v31 = vsel %vm7603_vm10, %v2577_v35, %v2622_v6  ;;  %v2626_v32 = vsel %vm7419_vm7, %v2578_v21, %v2625_v29  ;;  %v2586_v40 = vrot.slane %v2582_v24, 4 }
 0x308   : > { %v2585_v39 = vor.u32 %v2583_v25, %v2582_v24  ;;  %2627 = vst [vmem:[#allocation2 + $0x2c] sm:$0x1] %v2626_v32  ;;  %2624 = vst [vmem:[#allocation2 + $0x28] sm:$0xf] %v2623_v31  ;;  %v2672_v5 = vrot.slane %v2671_v8, 4  ;;  %v2688_v54 = vshll.u32 %v7986_v4, 16 }
 0x309   : > { %v7991_v23 = vld [vmem:[#allocation2 + $0x18] sm:$0xf]  ;;  %v7993_v46 = vld [vmem:[#allocation2 + $0x1c] sm:$0x1]  ;;  %v2685_v18 = vor.u32 %v2684_v27, %v2681_v30  ;;  %v2632_v38 = vsel %vm7419_vm7, %v2586_v40, %v2631_v41  ;;  %v5754_v40 = vcombine.low %v7943_v57, %v7961_v55  ;;  %v7148_v41 = vld [vmem:[%s8629_s3 + $0x28] sm:$0xff]  }
 0x30a   : > { %v2629_v19 = vsel %vm7603_vm10, %v2585_v39, %v2628_v22  ;;  %v2693_v43 = vshrl.u32 %v7991_v23, 16  ;;  %v2696_v48 = vshll.u32 %v7991_v23, 16  ;;  %2633 = vst [vmem:[#allocation2 + $0x34] sm:$0x1] %v2632_v38  ;;  %v2677_v51 = vsel %vm7346_vm3, %v2672_v5, %v2676_v45  ;;  %v8008_v34 = vld [vmem:[#allocation2 + $0x20] sm:$0xf] }
 0x30b   : > { %2630 = vst [vmem:[#allocation2 + $0x30] sm:$0xf] %v2629_v19  ;;  %v2702_v47 = vshll.u32 %v7993_v46, 16  ;;  %v5746_v42 = vcombine.low %v2663_v28, %v2677_v51  ;;  %v2707_v37 = vshrl.u32 %v8008_v34, 16  ;;  %v2710_v59 = vshll.u32 %v8008_v34, 16  ;;  %v7146_v39 = vld [vmem:[%s8629_s3 + $0x20] sm:$0xff]  }
 0x30c   : > { %v2695_v56 = vrot.slane %v2693_v43, 4  ;;  %v2698_v52 = vrot.slane %v2696_v48, 5  ;;  %v2686_v61 = vrot.slane %v2685_v18, 4  ;;  %v2690_v17 = vrot.slane %v2688_v54, 5  ;;  %v8018_v9 = vld [vmem:[#allocation2 + $0x24] sm:$0x1] }
 0x30d   : > { %6458 = vmatmul.mubr.msk.bf16.vlgmr.msra.gmra.mrb[24].mxu0 %vm1323_vm11, %v5746_v42  ;;  %v2709_v63 = vrot.slane %v2707_v37, 4  ;;  %v2712_v36 = vrot.slane %v2710_v59, 5  ;;  %v2704_v12 = vrot.slane %v2702_v47, 5  ;;  %v2716_v20 = vshll.u32 %v8018_v9, 16  ;;  %v2919_v57 = vld [vmem:[#allocation2] sm:$0xe] }
 0x30e   : > { %v2699_v62 = vor.u32 %v2698_v52, %v2695_v56  ;;  %6470 = vmatpush3.bf16.msra.mxu0 %v7143_v53  ;;  %6461 = vmatprep.mubr.msk.bf16.mxu0 %vm7228_vm0, %v7227_v1  ;;  %v2691_v16 = vsel %vm7346_vm3, %v2686_v61, %v2690_v17  ;;  %v5755_v28 = vcombine.low %v7972_v7, %v7991_v23  ;;  %v2920_v55 = vld [vmem:[#allocation2 + $0x8] sm:$0xe]  ;;  %v5762_v45 = vrot.slane %v2919_v57, 9  ;;  %v2922_v43 = vld [vmem:[#allocation2 + $0x18] sm:$0xe]  ;;  %v7150_v48 = vld [vmem:[%s8629_s3 + $0x30] sm:$0xff]  }
 0x30f   : > { %6471 = vmatprep.subr.bf16.mxu0 %v7227_v1  ;;  %v2639_v13 = vld [vmem:[#allocation2 + $0x28] sm:$0xf]  ;;  %v8021_v14 = vld [vmem:[#allocation2 + $0x2c] sm:$0x1]  ;;  %v2713_v49 = vor.u32 %v2712_v36, %v2709_v63  ;;  %v2718_v22 = vrot.slane %v2716_v20, 5  ;;  %v2939_v18 = vrot.slane %v7956_v26, 5 }
 0x310   : > { %v2700_v10 = vrot.slane %v2699_v62, 4  ;;  %v2721_v15 = vshrl.u32 %v2639_v13, 16  ;;  %v2724_v58 = vshll.u32 %v2639_v13, 16  ;;  %v2730_v24 = vshll.u32 %v8021_v14, 16  ;;  %v2921_v51 = vld [vmem:[#allocation2 + $0x10] sm:$0xe] }
 0x311   : > { %v2714_v25 = vrot.slane %v2713_v49, 4  ;;  %v5756_v5 = vcombine.low %v8008_v34, %v2639_v13  ;;  %v5763_v19 = vrot.slane %v2920_v55, 9  ;;  %v2943_v38 = vrot.slane %v7969_v0, 5  ;;  %v7151_v34 = vld [vmem:[%s8629_s3 + $0x38] sm:$0xff]   ;;  %v2924_v56 = vld [vmem:[#allocation2 + $0x28] sm:$0xe] }
 0x312   : > { %v2705_v60 = vsel %vm7346_vm3, %v2700_v10, %v2704_v12  ;;  %6472 = vmatpush3.bf16.msra.mxu0 %v7144_v2  ;;  %v2723_v21 = vrot.slane %v2721_v15, 4  ;;  %v2726_v6 = vrot.slane %v2724_v58, 5  ;;  %v2732_v30 = vrot.slane %v2730_v24, 5  ;;  %v2923_v37 = vld [vmem:[#allocation2 + $0x20] sm:$0xe]  ;;  %v7155_v12 = vld [vmem:[%s8629_s3 + $0x48] sm:$0xff]  }
 0x313   : > { %v5747_v35 = vcombine.low %v2691_v16, %v2705_v60  ;;  %6485 = vmatprep.subr.bf16.mxu0 %v7227_v1  ;;  %v2719_v27 = vsel %vm7346_vm3, %v2714_v25, %v2718_v22  ;;  %v2940_v7 = vsel %vm7686_vm14, %v5762_v45, %v2939_v18  ;;  %v2944_v23 = vsel %vm7686_vm14, %v5763_v19, %v2943_v38  ;;  %v7153_v36 = vld [vmem:[%s8629_s3 + $0x40] sm:$0xff]   ;;  %v7152_v10 = vld [vmem:[#allocation2 + $0x8] ss:$8 sps:$4 sm:$0xff]   ;;  %v8115_v24 = vld [vmem:[#allocation2 + $0x14] sm:$0x1] }
 0x314   : > { %v2727_v29 = vor.u32 %v2726_v6, %v2723_v21  ;;  %v5772_v26 = vcombine.low %v2940_v7, %v2944_v23  ;;  %v5765_v53 = vrot.slane %v2922_v43, 9  ;;  %v2951_v0 = vrot.slane %v7993_v46, 5  ;;  %v8107_v13 = vld [vmem:[#allocation2 + $0x8] sm:$0xf]  ;;  %v7154_v16 = vld [vmem:[#allocation2 + $0x18] ss:$8 sps:$4 sm:$0xff]  }
 0x315   : > { %6462 = vmatmul.mubr.msk.bf16.gmra.mrb[28].mxu0 %vm1323_vm11, %v5747_v35  ;;  %v5764_v54 = vrot.slane %v2921_v51, 9  ;;  %v2947_v47 = vrot.slane %v7986_v4, 5  ;;  %v5767_v59 = vrot.slane %v2924_v56, 9  ;;  %v2959_v4 = vrot.slane %v8021_v14, 5  ;;  %v3175_v35 = vld [vmem:[#allocation2 + $0x20] sm:$0xf] }
 0x316   : > { %6465 = vmatprep.mubr.msk.bf16.mxu0 %vm7228_vm0, %v7227_v1  ;;  %v2728_v8 = vrot.slane %v2727_v29, 4  ;;  %v2952_v42 = vsel %vm7686_vm14, %v5765_v53, %v2951_v0  ;;  %v5766_v61 = vrot.slane %v2923_v37, 9  ;;  %v2955_v62 = vrot.slane %v8018_v9, 5  ;;  %v3171_v9 = vld [vmem:[#allocation2 + $0x10] sm:$0xf] }
 0x317   : > { %v2948_v46 = vsel %vm7686_vm14, %v5764_v54, %v2947_v47  ;;  %v2960_v63 = vsel %vm7686_vm14, %v5767_v59, %v2959_v4  ;;  %v3196_v14 = vshrl.u32 %v3171_v9, 16  ;;  %v3199_v49 = vshll.u32 %v3171_v9, 16  ;;  %v3173_v25 = vld [vmem:[#allocation2 + $0x18] sm:$0xf]  ;;  %v8117_v29 = vld [vmem:[#allocation2 + $0xc] sm:$0x1] }
 0x318   : > { %v2733_v31 = vsel %vm7346_vm3, %v2728_v8, %v2732_v30  ;;  %v5773_v52 = vcombine.low %v2948_v46, %v2952_v42  ;;  %v2956_v17 = vsel %vm7686_vm14, %v5766_v61, %v2955_v62  ;;  %v3182_v15 = vshrl.u32 %v8107_v13, 16  ;;  %v8124_v19 = vld [vmem:[#allocation2 + $0x24] sm:$0x1]  ;;  %v3177_v43 = vld [vmem:[#allocation2 + $0x28] sm:$0xf] }
 0x319   : > { %v5748_v32 = vcombine.low %v2719_v27, %v2733_v31  ;;  %v5774_v2 = vcombine.low %v2956_v17, %v2960_v63  ;;  %v3185_v58 = vshll.u32 %v8107_v13, 16  ;;  %v3198_v60 = vrot.slane %v3196_v14, 4  ;;  %v8128_v0 = vld [vmem:[#allocation2 + $0x1c] sm:$0x1] }
 0x31a   : > { %v3201_v20 = vrot.slane %v3199_v49, 5  ;;  %v3184_v21 = vrot.slane %v3182_v15, 4  ;;  %v3224_v8 = vshrl.u32 %v3175_v35, 16  ;;  %v3227_v30 = vshll.u32 %v3175_v35, 16  ;;  %v7158_v17 = vld [vmem:[%s8629_s3 + $0x58] sm:$0xff]  }
 0x31b   : > { %v3187_v6 = vrot.slane %v3185_v58, 5  ;;  %v3205_v31 = vshll.u32 %v8115_v24, 16  ;;  %v3233_v54 = vshll.u32 %v8124_v19, 16  ;;  %v3238_v56 = vshrl.u32 %v3177_v43, 16  ;;  %v3178_v49 = vld [vmem:[#allocation2 + $0x2c] sm:$0x1] }
 0x31c   : > { %v3202_v22 = vor.u32 %v3201_v20, %v3198_v60  ;;  %v3226_v57 = vrot.slane %v3224_v8, 4  ;;  %v3229_v55 = vrot.slane %v3227_v30, 5  ;;  %v3241_v46 = vshll.u32 %v3177_v43, 16  ;;  %v3364_v8 = vld [vmem:[#allocation2 + $0x10] sm:$0xe] }
 0x31d   : > { %6466 = vmatmul.mubr.msk.bf16.gmra.mrb[32].mxu0 %vm1323_vm11, %v5748_v32  ;;  %v3188_v27 = vor.u32 %v3187_v6, %v3184_v21  ;;  %v3210_v32 = vshrl.u32 %v3173_v25, 16  ;;  %v3207_v18 = vrot.slane %v3205_v31, 5  ;;  %v3219_v37 = vshll.u32 %v8128_v0, 16  ;;  %v3363_v31 = vld [vmem:[#allocation2 + $0x8] sm:$0xe] }
 0x31e   : > { %6473 = vmatprep.mubr.msk.bf16.mxu0 %vm7228_vm0, %v7227_v1  ;;  %v3235_v63 = vrot.slane %v3233_v54, 5  ;;  %v3247_v20 = vshll.u32 %v3178_v49, 16 }
 0x31f   : > { %v3189_v45 = vrot.slane %v3188_v27, 4  ;;  %v3212_v38 = vrot.slane %v3210_v32, 4  ;;  %v3221_v9 = vrot.slane %v3219_v37, 5  ;;  %v5805_v32 = vrot.slane %v3364_v8, 9  ;;  %v3615_v37 = vld [vmem:[#allocation2 + $0x18] sm:$0xf] }
 0x325   : > { %6474 = vmatmul.mubr.msk.bf16.vlgmr.msra.gmra.mrb[24].mxu0 %vm1323_vm11, %v5754_v40  ;;  %v7156_v40 = vld [vmem:[#allocation2 + $0x28] ss:$8 sps:$4 sm:$0xff]  }
 0x326   : > { %6486 = vmatpush3.bf16.msra.mxu0 %v7146_v39  ;;  %6477 = vmatprep.mubr.msk.bf16.mxu0 %vm7228_vm0, %v7227_v1  ;;  %v3213_v39 = vshll.u32 %v3173_v25, 16  ;;  %v3249_v25 = vrot.slane %v3247_v20, 5 }
 0x327   : > { %6487 = vmatprep.subr.bf16.mxu0 %v7227_v1 }
 0x328   : > { %v3215_v7 = vrot.slane %v3213_v39, 5  ;;  %v3387_v39 = vrot.slane %v8115_v24, 5 }
 0x32a   : > { %6488 = vmatpush3.bf16.msra.mxu0 %v7148_v41  ;;  %v3191_v41 = vshll.u32 %v8117_v29, 16  ;;  %v3216_v42 = vor.u32 %v3215_v7, %v3212_v38  ;;  %v3395_v38 = vrot.slane %v8124_v19, 5  ;;  %v3391_v7 = vrot.slane %v8128_v0, 5 }
 0x32b   : > { %6501 = vmatprep.subr.bf16.mxu0 %v7227_v1 }
 0x32c   : > { %v3193_v23 = vrot.slane %v3191_v41, 5  ;;  %v3217_v62 = vrot.slane %v3216_v42, 4  ;;  %v3383_v41 = vrot.slane %v8117_v29, 5 }
 0x32d   : > { %6478 = vmatmul.mubr.msk.bf16.gmra.mrb[28].mxu0 %vm1323_vm11, %v5755_v28  ;;  %v3203_v28 = vrot.slane %v3202_v22, 4 }
 0x32e   : > { %6481 = vmatprep.mubr.msk.bf16.mxu0 %vm7228_vm0, %v7227_v1  ;;  %v3194_v47 = vsel %vm7346_vm3, %v3189_v45, %v3193_v23  ;;  %v3222_v15 = vsel %vm7346_vm3, %v3217_v62, %v3221_v9  ;;  %v3365_v45 = vld [vmem:[#allocation2 + $0x18] sm:$0xe]  ;;  %v7160_v23 = vld [vmem:[%s8629_s3 + $0x68] sm:$0xff]   ;;  %v3643_v62 = vshll.u32 %v3615_v37, 16 }
 0x32f   : > { %v5806_v29 = vrot.slane %v3365_v45, 9  ;;  %v3619_v9 = vld [vmem:[#allocation2 + $0x28] sm:$0xf] }
 0x330   : > { %v3671_v20 = vshll.u32 %v3619_v9, 16 }
 0x331   : > { %v3392_v19 = vsel %vm7686_vm14, %v5806_v29, %v3391_v7 }
 0x335   : > { %6482 = vmatmul.mubr.msk.bf16.gmra.mrb[32].mxu0 %vm1323_vm11, %v5756_v5  ;;  %v3179_v5 = vld [vmem:[#allocation2 + $0x30] sm:$0xf] }
 0x336   : > { %6489 = vmatprep.mubr.msk.bf16.mxu0 %vm7228_vm0, %v7227_v1  ;;  %v3252_v51 = vshrl.u32 %v3179_v5, 16  ;;  %v3255_v53 = vshll.u32 %v3179_v5, 16  ;;  %v7159_v5 = vld [vmem:[%s8629_s3 + $0x60] sm:$0xff]  }
 0x338   : > { %v3254_v4 = vrot.slane %v3252_v51, 4  ;;  %v3257_v61 = vrot.slane %v3255_v53, 5  ;;  %v3367_v51 = vld [vmem:[#allocation2 + $0x28] sm:$0xe] }
 0x339   : > { %v5808_v54 = vrot.slane %v3367_v51, 9 }
 0x33a   : > { %v3258_v14 = vor.u32 %v3257_v61, %v3254_v4  ;;  %v3613_v4 = vld [vmem:[#allocation2 + $0x10] sm:$0xf]  ;;  %v3640_v61 = vshrl.u32 %v3615_v37, 16  ;;  %v3622_v37 = vld [vmem:[#allocation2 + $0x34] sm:$0x1] }
 0x33c   : > { %v3259_v35 = vrot.slane %v3258_v14, 4 }
 0x33d   : > { %6490 = vmatmul.mubr.msk.bf16.vlgmr.msra.gmra.mrb[24].mxu0 %vm1323_vm11, %v5772_v26  ;;  %v3230_v26 = vor.u32 %v3229_v55, %v3226_v57  ;;  %v3366_v57 = vld [vmem:[#allocation2 + $0x20] sm:$0xe] }
 0x33e   : > { %6502 = vmatpush3.bf16.msra.mxu0 %v7150_v48  ;;  %6493 = vmatprep.mubr.msk.bf16.mxu0 %vm7228_vm0, %v7227_v1  ;;  %v3208_v48 = vsel %vm7346_vm3, %v3203_v28, %v3207_v18  ;;  %v3388_v28 = vsel %vm7686_vm14, %v5805_v32, %v3387_v39  ;;  %v5807_v18 = vrot.slane %v3366_v57, 9  ;;  %v3623_v32 = vld [vmem:[#allocation2 + $0x38] sm:$0xf]  ;;  %v3621_v39 = vld [vmem:[#allocation2 + $0x30] sm:$0xf] }
 0x33f   : > { %6503 = vmatprep.subr.bf16.mxu0 %v7227_v1  ;;  %v3231_v59 = vrot.slane %v3230_v26, 4  ;;  %v3699_v45 = vshll.u32 %v3623_v32, 16  ;;  %v3682_v29 = vshrl.u32 %v3621_v39, 16  ;;  %v3685_v7 = vshll.u32 %v3621_v39, 16  ;;  %v3809_v39 = vld [vmem:[#allocation2 + $0x20] sm:$0xe] }
 0x340   : > { %v3396_v43 = vsel %vm7686_vm14, %v5807_v18, %v3395_v38 }
 0x341   : > { %v5815_v26 = vcombine.low %v3392_v19, %v3396_v43 }
 0x342   : > { %6504 = vmatpush3.bf16.msra.mxu0 %v7151_v34  ;;  %v7157_v34 = vld [vmem:[%s8629_s3 + $0x50] sm:$0xff]  }
 0x343   : > { %6517 = vmatprep.subr.bf16.mxu0 %v7227_v1 }
 0x345   : > { %6494 = vmatmul.mubr.msk.bf16.gmra.mrb[28].mxu0 %vm1323_vm11, %v5773_v52  ;;  %v5796_v52 = vcombine.low %v3194_v47, %v3208_v48  ;;  %v3368_v48 = vld [vmem:[#allocation2 + $0x30] sm:$0xe]  ;;  %v3399_v47 = vrot.slane %v3178_v49, 5  ;;  %v8206_v49 = vld [vmem:[#allocation2 + $0x1c] sm:$0x1] }
 0x346   : > { %6497 = vmatprep.mubr.msk.bf16.mxu0 %vm7228_vm0, %v7227_v1  ;;  %v5809_v53 = vrot.slane %v3368_v48, 9  ;;  %v7166_v48 = vld [vmem:[%s8629_s3 + $0x80] sm:$0xff]  }
 0x347   : > { %v3400_v42 = vsel %vm7686_vm14, %v5808_v54, %v3399_v47 }
 0x34d   : > { %6498 = vmatmul.mubr.msk.bf16.gmra.mrb[32].mxu0 %vm1323_vm11, %v5774_v2  ;;  %v3240_v2 = vrot.slane %v3238_v56, 4 }
 0x34e   : > { %6505 = vmatprep.mubr.msk.bf16.mxu0 %vm7228_vm0, %v7227_v1 }
 0x355   : > { %6506 = vmatmul.mubr.msk.bf16.vlgmr.msra.gmra.mrb[24].mxu0 %vm1323_vm11, %v7152_v10  ;;  %v3180_v10 = vld [vmem:[#allocation2 + $0x34] sm:$0x1] }
 0x356   : > { %6518 = vmatpush3.bf16.msra.mxu0 %v7153_v36  ;;  %6509 = vmatprep.mubr.msk.bf16.mxu0 %vm7228_vm0, %v7227_v1  ;;  %v3243_v36 = vrot.slane %v3241_v46, 5  ;;  %v3403_v0 = vrot.slane %v3180_v10, 5  ;;  %v7162_v46 = vld [vmem:[%s8629_s3 + $0x70] sm:$0xff]  }
 0x357   : > { %6519 = vmatprep.subr.bf16.mxu0 %v7227_v1 }
 0x358   : > { %v3244_v58 = vor.u32 %v3243_v36, %v3240_v2  ;;  %v7163_v2 = vld [vmem:[#allocation2 + $0x20] ss:$8 sps:$4 sm:$0xff]   ;;  %v3642_v36 = vrot.slane %v3640_v61, 4 }
 0x35a   : > { %6520 = vmatpush3.bf16.msra.mxu0 %v7155_v12  ;;  %v3236_v12 = vsel %vm7346_vm3, %v3231_v59, %v3235_v63  ;;  %v3245_v21 = vrot.slane %v3244_v58, 4  ;;  %v7164_v59 = vld [vmem:[%s8629_s3 + $0x78] sm:$0xff]   ;;  %v3626_v63 = vshrl.u32 %v3613_v4, 16  ;;  %v8208_v58 = vld [vmem:[#allocation2 + $0x14] sm:$0x1] }
 0x35b   : > { %6533 = vmatprep.subr.bf16.mxu0 %v7227_v1  ;;  %v5797_v60 = vcombine.low %v3222_v15, %v3236_v12  ;;  %v3617_v15 = vld [vmem:[#allocation2 + $0x20] sm:$0xf]  ;;  %v3635_v8 = vshll.u32 %v8208_v58, 16 }
 0x35c   : > { %v3250_v30 = vsel %vm7346_vm3, %v3245_v21, %v3249_v25  ;;  %v3628_v12 = vrot.slane %v3626_v63, 4  ;;  %v3649_v21 = vshll.u32 %v8206_v49, 16  ;;  %v3657_v25 = vshll.u32 %v3617_v15, 16 }
 0x35d   : > { %6510 = vmatmul.mubr.msk.bf16.gmra.mrb[28].mxu0 %vm1323_vm11, %v7154_v16  ;;  %v3261_v16 = vshll.u32 %v3180_v10, 16  ;;  %v3645_v10 = vrot.slane %v3643_v62, 5 }
 0x35e   : > { %6513 = vmatprep.mubr.msk.bf16.mxu0 %vm7228_vm0, %v7227_v1  ;;  %v3659_v57 = vrot.slane %v3657_v25, 5  ;;  %v3831_v25 = vrot.slane %v8206_v49, 5 }
 0x35f   : > { %v3263_v6 = vrot.slane %v3261_v16, 5  ;;  %v3646_v16 = vor.u32 %v3645_v10, %v3642_v36  ;;  %v3691_v36 = vshll.u32 %v3622_v37, 16 }
 0x361   : > { %v3264_v22 = vsel %vm7346_vm3, %v3259_v35, %v3263_v6  ;;  %v3654_v6 = vshrl.u32 %v3617_v15, 16  ;;  %v3693_v15 = vrot.slane %v3691_v36, 5 }
 0x362   : > { %v5798_v27 = vcombine.low %v3250_v30, %v3264_v22  ;;  %v7165_v22 = vld [vmem:[#allocation2 + $0x30] ss:$8 sps:$4 sm:$0xff]   ;;  %v3647_v30 = vrot.slane %v3646_v16, 4 }
 0x365   : > { %6514 = vmatmul.mubr.msk.bf16.gmra.mrb[32].mxu0 %vm1323_vm11, %v7156_v40  ;;  %v5804_v40 = vrot.slane %v3363_v31, 9  ;;  %v3673_v31 = vrot.slane %v3671_v20, 5  ;;  %v3808_v20 = vld [vmem:[#allocation2 + $0x18] sm:$0xe] }
 0x366   : > { %6521 = vmatprep.mubr.msk.bf16.mxu0 %vm7228_vm0, %v7227_v1 }
 0x367   : > { %v3384_v55 = vsel %vm7686_vm14, %v5804_v40, %v3383_v41  ;;  %v3651_v41 = vrot.slane %v3649_v21, 5  ;;  %v3807_v21 = vld [vmem:[#allocation2 + $0x10] sm:$0xe] }
 0x368   : > { %v5814_v24 = vcombine.low %v3384_v55, %v3388_v28  ;;  %v3656_v28 = vrot.slane %v3654_v6, 4  ;;  %v3637_v55 = vrot.slane %v3635_v8, 5  ;;  %v5847_v6 = vrot.slane %v3808_v20, 9 }
 0x369   : > { %v3652_v18 = vsel %vm7346_vm3, %v3647_v30, %v3651_v41  ;;  %v3827_v8 = vrot.slane %v8208_v58, 5  ;;  %v5848_v41 = vrot.slane %v3809_v39, 9  ;;  %v8293_v39 = vld [vmem:[#allocation2 + $0x4] sm:$0x1] }
 0x36a   : > { %v3660_v19 = vor.u32 %v3659_v57, %v3656_v28  ;;  %v3832_v30 = vsel %vm7686_vm14, %v5847_v6, %v3831_v25  ;;  %v3811_v57 = vld [vmem:[#allocation2 + $0x30] sm:$0xe]  ;;  %v4039_v6 = vld [vmem:[#allocation2 + $0x14] sm:$0x1] }
 0x36d   : > { %6522 = vmatmul.mubr.msk.bf16.vlgmr.msra.gmra.mrb[24].mxu0 %vm1323_vm11, %v5796_v52  ;;  %v7161_v52 = vld [vmem:[#allocation2 + $0x10] ss:$8 sps:$4 sm:$0xff]  }
 0x36e   : > { %6534 = vmatpush3.bf16.msra.mxu0 %v7157_v34  ;;  %6525 = vmatprep.mubr.msk.bf16.mxu0 %vm7228_vm0, %v7227_v1  ;;  %v3404_v34 = vsel %vm7686_vm14, %v5809_v53, %v3403_v0  ;;  %v3701_v0 = vrot.slane %v3699_v45, 5 }
 0x36f   : > { %6535 = vmatprep.subr.bf16.mxu0 %v7227_v1  ;;  %v5816_v56 = vcombine.low %v3400_v42, %v3404_v34  ;;  %v3684_v34 = vrot.slane %v3682_v29, 4  ;;  %v3687_v42 = vrot.slane %v3685_v7, 5 }
 0x371   : > { %v3688_v63 = vor.u32 %v3687_v42, %v3684_v34 }
 0x372   : > { %6536 = vmatpush3.bf16.msra.mxu0 %v7158_v17  ;;  %v3629_v17 = vshll.u32 %v3613_v4, 16 }
 0x373   : > { %6549 = vmatprep.subr.bf16.mxu0 %v7227_v1 }
 0x374   : > { %v3631_v14 = vrot.slane %v3629_v17, 5 }
 0x375   : > { %6526 = vmatmul.mubr.msk.bf16.gmra.mrb[28].mxu0 %vm1323_vm11, %v5797_v60  ;;  %v3668_v60 = vshrl.u32 %v3619_v9, 16  ;;  %v3689_v9 = vrot.slane %v3688_v63, 4 }
 0x376   : > { %6529 = vmatprep.mubr.msk.bf16.mxu0 %vm7228_vm0, %v7227_v1  ;;  %v3632_v35 = vor.u32 %v3631_v14, %v3628_v12 }
 0x377   : > { %v3694_v16 = vsel %vm7346_vm3, %v3689_v9, %v3693_v15 }
 0x378   : > { %v3633_v40 = vrot.slane %v3632_v35, 4 }
 0x37a   : > { %v3638_v43 = vsel %vm7346_vm3, %v3633_v40, %v3637_v55  ;;  %v3812_v55 = vld [vmem:[#allocation2 + $0x38] sm:$0xe] }
 0x37b   : > { %v5838_v51 = vcombine.low %v3638_v43, %v3652_v18  ;;  %v5850_v18 = vrot.slane %v3811_v57, 9  ;;  %v4042_v57 = vld [vmem:[#allocation2 + $0x18] sm:$0xf] }
 0x37d   : > { %6530 = vmatmul.mubr.msk.bf16.gmra.mrb[32].mxu0 %vm1323_vm11, %v5798_v27  ;;  %v3670_v27 = vrot.slane %v3668_v60, 4 }
 0x37e   : > { %6537 = vmatprep.mubr.msk.bf16.mxu0 %vm7228_vm0, %v7227_v1 }
 0x37f   : > { %v3674_v38 = vor.u32 %v3673_v31, %v3670_v27  ;;  %v3810_v27 = vld [vmem:[#allocation2 + $0x28] sm:$0xe] }
 0x380   : > { %v5849_v40 = vrot.slane %v3810_v27, 9 }
 0x381   : > { %v3675_v47 = vrot.slane %v3674_v38, 4  ;;  %v3843_v38 = vrot.slane %v3622_v37, 5 }
 0x383   : > { %v3844_v7 = vsel %vm7686_vm14, %v5850_v18, %v3843_v38 }
 0x385   : > { %6538 = vmatmul.mubr.msk.bf16.vlgmr.msra.gmra.mrb[24].mxu0 %vm1323_vm11, %v5814_v24  ;;  %v3696_v24 = vshrl.u32 %v3623_v32, 16 }
 0x386   : > { %6550 = vmatpush3.bf16.msra.mxu0 %v7159_v5  ;;  %6541 = vmatprep.mubr.msk.bf16.mxu0 %vm7228_vm0, %v7227_v1  ;;  %v8215_v5 = vld [vmem:[#allocation2 + $0x2c] sm:$0x1] }
 0x387   : > { %6551 = vmatprep.subr.bf16.mxu0 %v7227_v1  ;;  %v3698_v53 = vrot.slane %v3696_v24, 4  ;;  %v3839_v49 = vrot.slane %v8215_v5, 5 }
 0x389   : > { %v3702_v4 = vor.u32 %v3701_v0, %v3698_v53  ;;  %v3840_v28 = vsel %vm7686_vm14, %v5849_v40, %v3839_v49  ;;  %v4092_v40 = vshll.u32 %v8293_v39, 16 }
 0x38a   : > { %6552 = vmatpush3.bf16.msra.mxu0 %v7160_v23  ;;  %v8219_v23 = vld [vmem:[#allocation2 + $0x24] sm:$0x1] }
 0x38b   : > { %6565 = vmatprep.subr.bf16.mxu0 %v7227_v1  ;;  %v3663_v54 = vshll.u32 %v8219_v23, 16  ;;  %v3703_v12 = vrot.slane %v3702_v4, 4  ;;  %v3835_v58 = vrot.slane %v8219_v23, 5 }
 0x38d   : > { %6542 = vmatmul.mubr.msk.bf16.gmra.mrb[28].mxu0 %vm1323_vm11, %v5815_v26  ;;  %v3677_v26 = vshll.u32 %v8215_v5, 16  ;;  %v3665_v61 = vrot.slane %v3663_v54, 5  ;;  %v3836_v24 = vsel %vm7686_vm14, %v5848_v41, %v3835_v58  ;;  %v5851_v5 = vrot.slane %v3812_v55, 9 }
 0x38e   : > { %6545 = vmatprep.mubr.msk.bf16.mxu0 %vm7228_vm0, %v7227_v1  ;;  %v5857_v45 = vcombine.low %v3836_v24, %v3840_v28 }
 0x395   : > { %6546 = vmatmul.mubr.msk.bf16.gmra.mrb[32].mxu0 %vm1323_vm11, %v5816_v56  ;;  %v3661_v56 = vrot.slane %v3660_v19, 4  ;;  %v7169_v19 = vld [vmem:[%s8630_s4 + $0x18] sm:$0xff]  }
 0x396   : > { %6553 = vmatprep.mubr.msk.bf16.mxu0 %vm7228_vm0, %v7227_v1 }
 0x39d   : > { %6554 = vmatmul.mubr.msk.bf16.vlgmr.msra.gmra.mrb[24].mxu0 %vm1323_vm11, %v7161_v52  ;;  %v7167_v52 = vld [vmem:[%s8629_s3 + $0x88] sm:$0xff]  }
 0x39e   : > { %6566 = vmatpush3.bf16.msra.mxu0 %v7162_v46  ;;  %6557 = vmatprep.mubr.msk.bf16.mxu0 %vm7228_vm0, %v7227_v1  ;;  %v3679_v46 = vrot.slane %v3677_v26, 5 }
 0x39f   : > { %6567 = vmatprep.subr.bf16.mxu0 %v7227_v1 }
 0x3a0   : > { %v3680_v62 = vsel %vm7346_vm3, %v3675_v47, %v3679_v46  ;;  %v8280_v46 = vld [vmem:[#allocation2] sm:$0xf] }
 0x3a1   : > { %v4086_v63 = vshll.u32 %v8280_v46, 16 }
 0x3a2   : > { %6568 = vmatpush3.bf16.msra.mxu0 %v7164_v59  ;;  %v3624_v59 = vld [vmem:[#allocation2 + $0x3c] sm:$0x1] }
 0x3a3   : > { %6581 = vmatprep.subr.bf16.mxu0 %v7227_v1  ;;  %v3705_v17 = vshll.u32 %v3624_v59, 16  ;;  %v3847_v29 = vrot.slane %v3624_v59, 5 }
 0x3a5   : > { %6558 = vmatmul.mubr.msk.bf16.gmra.mrb[28].mxu0 %vm1323_vm11, %v7163_v2  ;;  %v3666_v2 = vsel %vm7346_vm3, %v3661_v56, %v3665_v61  ;;  %v3707_v14 = vrot.slane %v3705_v17, 5  ;;  %v3848_v23 = vsel %vm7686_vm14, %v5851_v5, %v3847_v29  ;;  %v4045_v5 = vld [vmem:[#allocation2 + $0x1c] sm:$0x1] }
 0x3a6   : > { %6561 = vmatprep.mubr.msk.bf16.mxu0 %vm7228_vm0, %v7227_v1  ;;  %v5839_v10 = vcombine.low %v3666_v2, %v3680_v62  ;;  %v5858_v43 = vcombine.low %v3844_v7, %v3848_v23  ;;  %v4083_v62 = vshrl.u32 %v8280_v46, 16 }
 0x3a7   : > { %v3708_v60 = vsel %vm7346_vm3, %v3703_v12, %v3707_v14  ;;  %v4033_v12 = vld [vmem:[#allocation2 + $0xc] sm:$0x1] }
 0x3a8   : > { %v5840_v35 = vcombine.low %v3694_v16, %v3708_v60  ;;  %v4085_v27 = vrot.slane %v4083_v62, 4 }
 0x3ad   : > { %6562 = vmatmul.mubr.msk.bf16.gmra.mrb[32].mxu0 %vm1323_vm11, %v7165_v22  ;;  %v5846_v22 = vrot.slane %v3807_v21, 9  ;;  %v4036_v21 = vld [vmem:[#allocation2 + $0x10] sm:$0xf] }
 0x3ae   : > { %6569 = vmatprep.mubr.msk.bf16.mxu0 %vm7228_vm0, %v7227_v1 }
 0x3af   : > { %v3828_v31 = vsel %vm7686_vm14, %v5846_v22, %v3827_v8 }
 0x3b0   : > { %v5856_v32 = vcombine.low %v3828_v31, %v3832_v30 }
 0x3b5   : > { %6570 = vmatmul.mubr.msk.bf16.vlgmr.msra.gmra.mrb[24].mxu0 %vm1323_vm11, %v5838_v51 }
 0x3b6   : > { %6582 = vmatpush3.bf16.msra.mxu0 %v7166_v48  ;;  %6573 = vmatprep.mubr.msk.bf16.mxu0 %vm7228_vm0, %v7227_v1  ;;  %v7168_v48 = vld [vmem:[%s8630_s4 + $0x10] sm:$0xff]  }
 0x3b7   : > { %6583 = vmatprep.subr.bf16.mxu0 %v7227_v1  ;;  %6598 = vmatpush3.bf16.msra.mxu1 %v7168_v48 }
 0x3b8   : > { %6599 = vmatprep.subr.bf16.mxu1 %v7227_v1 }
 0x3ba   : > { %6584 = vmatpush3.bf16.msra.mxu0 %v7167_v52 }
 0x3bb   : > { %6600 = vmatpush3.bf16.msra.mxu1 %v7169_v19 }
 0x3bc   : > { %6613 = vmatprep.subr.bf16.mxu1 %v7227_v1 }
 0x3bd   : > { %6574 = vmatmul.mubr.msk.bf16.gmra.mrb[28].mxu0 %vm1323_vm11, %v5839_v10 }
 0x3be   : > { %6577 = vmatprep.mubr.msk.bf16.mxu0 %vm7228_vm0, %v7227_v1 }
 0x3c5   : > { %6578 = vmatmul.mubr.msk.bf16.gmra.mrb[32].mxu0 %vm1323_vm11, %v5840_v35 }
 0x3c6   : > { %6585 = vmatprep.mubr.msk.bf16.mxu0 %vm7228_vm0, %v7227_v1 }
 0x3cd   : > { %6586 = vmatmul.mubr.msk.bf16.vlgmr.msra.gmra.mrb[24].mxu0 %vm1323_vm11, %v5856_v32 }
 0x3ce   : > { %6589 = vmatprep.mubr.msk.bf16.mxu0 %vm7228_vm0, %v7227_v1 }
 0x3d5   : > { %6590 = vmatmul.mubr.msk.bf16.gmra.mrb[28].mxu0 %vm1323_vm11, %v5857_v45 }
 0x3d6   : > { %6593 = vmatprep.mubr.msk.bf16.mxu0 %vm7228_vm0, %v7227_v1 }
 0x3dd   : > { %6594 = vmatmul.mubr.msk.bf16.gmra.mrb[32].mxu0 %vm1323_vm11, %v5858_v43  ;;  %v4048_v43 = vld [vmem:[#allocation2 + $0x20] sm:$0xf] }
 0x4a0   : > { %v3918_v26 = vpop.f32.mrb[24].mxu0 }
 0x4a1   : > { %v3947_v51 = vmax.f32 %v3918_v26, 0.0  ;;  %v6587_v53 = vpop.f32.mrb[25].mxu0 }
 0x4a2   : > { %v3921_v0 = vpop.f32.mrb[26].mxu0  ;;  %v8298_v53 = vrot.slane %v4092_v40, 5 }
 0x4a3   : > { %v6012_v54 = vpack.c.bf16 %v3947_v51, %v3947_v51  ;;  %v3948_v47 = vmax.f32 %v3921_v0, 0.0  ;;  %v6588_v34 = vpop.f32.mrb[27].mxu0 }
 0x4a5   : > { %v3972_v42 = vshrl.u32 %v6012_v54, 16  ;;  %v6013_v56 = vpack.c.bf16 %v3948_v47, %v3948_v47  ;;  %v3975_v37 = vshll.u32 %v6012_v54, 16 }
 0x4a7   : > { %v3974_v52 = vrot.slane %v3972_v42, 7  ;;  %v3980_v59 = vshrl.u32 %v6013_v56, 16  ;;  %v3983_v4 = vshll.u32 %v6013_v56, 16  ;;  %v4051_v42 = vld [vmem:[#allocation2 + $0x24] sm:$0x1] }
 0x4a8   : > { %v3926_v61 = vpop.f32.mrb[28].mxu0 }
 0x4a9   : > { %v3977_v17 = vor.u32 %v3975_v37, %v3974_v52  ;;  %v3978_v2 = vrot.slane %v3974_v52, 4  ;;  %v3982_v36 = vrot.slane %v3980_v59, 7  ;;  %v3949_v10 = vmax.f32 %v3926_v61, 0.0  ;;  %v6591_v9 = vpop.f32.mrb[29].mxu0 }
 0x4aa   : > { %v3929_v14 = vpop.f32.mrb[30].mxu0 }
 0x4ab   : > { %v4031_v15 = vsel %vm7603_vm10, %v3977_v17, %v8107_v13  ;;  %v4034_v16 = vsel %vm7419_vm7, %v3978_v2, %v4033_v12  ;;  %v3985_v60 = vor.u32 %v3983_v4, %v3982_v36  ;;  %v3986_v20 = vrot.slane %v3982_v36, 4  ;;  %v6592_v35 = vpop.f32.mrb[31].mxu0 }
 0x4ac   : > { %4032 = vst [vmem:[#allocation2 + $0x8] sm:$0xf] %v4031_v15  ;;  %4035 = vst [vmem:[#allocation2 + $0xc] sm:$0x1] %v4034_v16  ;;  %v6014_v25 = vpack.c.bf16 %v3949_v10, %v3949_v10  ;;  %v3950_v22 = vmax.f32 %v3929_v14, 0.0  ;;  %v4088_v13 = vrot.slane %v4086_v63, 5 }
 0x4ad   : > { %v4037_v8 = vsel %vm7603_vm10, %v3985_v60, %v4036_v21  ;;  %v4040_v30 = vsel %vm7419_vm7, %v3986_v20, %v4039_v6  ;;  %v4054_v35 = vld [vmem:[#allocation2 + $0x28] sm:$0xf] }
 0x4ae   : > { %4041 = vst [vmem:[#allocation2 + $0x14] sm:$0x1] %v4040_v30  ;;  %4038 = vst [vmem:[#allocation2 + $0x10] sm:$0xf] %v4037_v8  ;;  %v3988_v31 = vshrl.u32 %v6014_v25, 16  ;;  %v6015_v32 = vpack.c.bf16 %v3950_v22, %v3950_v22  ;;  %v3991_v41 = vshll.u32 %v6014_v25, 16  ;;  %v4089_v45 = vor.u32 %v4088_v13, %v4085_v27 }
 0x4af   : > { %v4057_v25 = vld [vmem:[#allocation2 + $0x2c] sm:$0x1]  ;;  %v4060_v22 = vld [vmem:[#allocation2 + $0x30] sm:$0xf] }
 0x4b0   : > { %v3990_v49 = vrot.slane %v3988_v31, 7  ;;  %v3996_v58 = vshrl.u32 %v6015_v32, 16  ;;  %v3934_v28 = vpop.f32.mrb[32].mxu0  ;;  %v3999_v7 = vshll.u32 %v6015_v32, 16  ;;  %v4090_v63 = vrot.slane %v4089_v45, 4 }
 0x4b1   : > { %v3951_v55 = vmax.f32 %v3934_v28, 0.0  ;;  %v6595_v24 = vpop.f32.mrb[33].mxu0 }
 0x4b2   : > { %v3993_v18 = vor.u32 %v3991_v41, %v3990_v49  ;;  %v3994_v38 = vrot.slane %v3990_v49, 4  ;;  %v3998_v29 = vrot.slane %v3996_v58, 7  ;;  %v3937_v23 = vpop.f32.mrb[34].mxu0  ;;  %v4063_v49 = vld [vmem:[#allocation2 + $0x34] sm:$0x1]  ;;  %v4095_v58 = vsel %vm7346_vm3, %v4090_v63, %v8298_v53 }
 0x4b3   : > { %v6016_v48 = vpack.c.bf16 %v3951_v55, %v3951_v55  ;;  %v3952_v19 = vmax.f32 %v3937_v23, 0.0  ;;  %v6596_v26 = vpop.f32.mrb[35].mxu0  ;;  %v8296_v51 = vld [vmem:[#allocation2 + $0x8] sm:$0xf]  ;;  %v8304_v37 = vld [vmem:[#allocation2 + $0xc] sm:$0x1] }
 0x4b4   : > { %v4043_v0 = vsel %vm7603_vm10, %v3993_v18, %v4042_v57  ;;  %v4046_v54 = vsel %vm7419_vm7, %v3994_v38, %v4045_v5  ;;  %v4001_v47 = vor.u32 %v3999_v7, %v3998_v29  ;;  %v4002_v34 = vrot.slane %v3998_v29, 4  ;;  %v7170_v23 = vld [vmem:[%s8630_s4] sm:$0xff]  }
 0x4b5   : > { %4047 = vst [vmem:[#allocation2 + $0x1c] sm:$0x1] %v4046_v54  ;;  %4044 = vst [vmem:[#allocation2 + $0x18] sm:$0xf] %v4043_v0  ;;  %v4004_v56 = vshrl.u32 %v6016_v48, 16  ;;  %v6017_v52 = vpack.c.bf16 %v3952_v19, %v3952_v19  ;;  %v4097_v59 = vshrl.u32 %v8296_v51, 16 }
 0x4b6   : > { %v8307_v4 = vld [vmem:[#allocation2 + $0x10] sm:$0xf]  ;;  %v4049_v61 = vsel %vm7603_vm10, %v4001_v47, %v4048_v43  ;;  %v4052_v62 = vsel %vm7419_vm7, %v4002_v34, %v4051_v42  ;;  %v4100_v17 = vshll.u32 %v8296_v51, 16  ;;  %v4007_v36 = vshll.u32 %v6016_v48, 16  ;;  %v8321_v41 = vld [vmem:[#allocation2 + $0x14] sm:$0x1] }
 0x4b7   : > { %4053 = vst [vmem:[#allocation2 + $0x24] sm:$0x1] %v4052_v62  ;;  %4050 = vst [vmem:[#allocation2 + $0x20] sm:$0xf] %v4049_v61  ;;  %v4006_v2 = vrot.slane %v4004_v56, 7  ;;  %v4012_v10 = vshrl.u32 %v6017_v52, 16 }
 0x4b8   : > { %v4099_v9 = vrot.slane %v4097_v59, 4  ;;  %v4102_v12 = vrot.slane %v4100_v17, 5  ;;  %v4106_v14 = vshll.u32 %v8304_v37, 16  ;;  %v4111_v15 = vshrl.u32 %v8307_v4, 16  ;;  %v7171_v56 = vld [vmem:[%s8630_s4 + $0x8] sm:$0xff]  }
 0x4b9   : > { %v4114_v16 = vshll.u32 %v8307_v4, 16  ;;  %v4009_v60 = vor.u32 %v4007_v36, %v4006_v2  ;;  %v4010_v20 = vrot.slane %v4006_v2, 4  ;;  %v4014_v21 = vrot.slane %v4012_v10, 7 }
 0x4ba   : > { %v4015_v6 = vshll.u32 %v6017_v52, 16  ;;  %v4103_v8 = vor.u32 %v4102_v12, %v4099_v9  ;;  %v4113_v30 = vrot.slane %v4111_v15, 4  ;;  %v4108_v57 = vrot.slane %v4106_v14, 5 }
 0x4bb   : > { %v4116_v27 = vrot.slane %v4114_v16, 5  ;;  %v4055_v13 = vsel %vm7603_vm10, %v4009_v60, %v4054_v35  ;;  %v4058_v31 = vsel %vm7419_vm7, %v4010_v20, %v4057_v25  ;;  %v4018_v40 = vrot.slane %v4014_v21, 4 }
 0x4bc   : > { %v4017_v32 = vor.u32 %v4015_v6, %v4014_v21  ;;  %4059 = vst [vmem:[#allocation2 + $0x2c] sm:$0x1] %v4058_v31  ;;  %4056 = vst [vmem:[#allocation2 + $0x28] sm:$0xf] %v4055_v13  ;;  %v4104_v28 = vrot.slane %v4103_v8, 4  ;;  %v4120_v43 = vshll.u32 %v8321_v41, 16  ;;  %v5882_v31 = vcombine.low %v8280_v46, %v8296_v51 }
 0x4bd   : > { %v8326_v55 = vld [vmem:[#allocation2 + $0x18] sm:$0xf]  ;;  %v8328_v24 = vld [vmem:[#allocation2 + $0x1c] sm:$0x1]  ;;  %v4117_v45 = vor.u32 %v4116_v27, %v4113_v30  ;;  %v4064_v38 = vsel %vm7419_vm7, %v4018_v40, %v4063_v49  ;;  %v7173_v13 = vld [vmem:[%s8630_s4 + $0x20] sm:$0xff]  }
 0x4be   : > { %v4061_v18 = vsel %vm7603_vm10, %v4017_v32, %v4060_v22  ;;  %v4125_v5 = vshrl.u32 %v8326_v55, 16  ;;  %v4128_v29 = vshll.u32 %v8326_v55, 16  ;;  %4065 = vst [vmem:[#allocation2 + $0x34] sm:$0x1] %v4064_v38  ;;  %v4109_v7 = vsel %vm7346_vm3, %v4104_v28, %v4108_v57  ;;  %v8343_v48 = vld [vmem:[#allocation2 + $0x20] sm:$0xf] }
 0x4bf   : > { %4062 = vst [vmem:[#allocation2 + $0x30] sm:$0xf] %v4061_v18  ;;  %v4134_v50 = vshll.u32 %v8328_v24, 16  ;;  %v5874_v33 = vcombine.low %v4095_v58, %v4109_v7  ;;  %v4139_v53 = vshrl.u32 %v8343_v48, 16  ;;  %v4142_v0 = vshll.u32 %v8343_v48, 16  ;;  %v7175_v32 = vld [vmem:[%s8630_s4 + $0x28] sm:$0xff]  }
 0x4c0   : > { %v4127_v19 = vrot.slane %v4125_v5, 4  ;;  %v4130_v26 = vrot.slane %v4128_v29, 5  ;;  %v4118_v54 = vrot.slane %v4117_v45, 4  ;;  %v4122_v42 = vrot.slane %v4120_v43, 5  ;;  %v8353_v52 = vld [vmem:[#allocation2 + $0x24] sm:$0x1] }
 0x4c1   : > { %6602 = vmatmul.mubr.msk.bf16.vlgmr.msra.gmra.mrb[12].mxu1 %vm1323_vm11, %v5874_v33  ;;  %v4141_v34 = vrot.slane %v4139_v53, 4  ;;  %v4144_v59 = vrot.slane %v4142_v0, 5  ;;  %v4136_v62 = vrot.slane %v4134_v50, 5  ;;  %v4148_v14 = vshll.u32 %v8353_v52, 16  ;;  %v4351_v46 = vld [vmem:[#allocation2] sm:$0xe] }
 0x4c2   : > { %v4131_v47 = vor.u32 %v4130_v26, %v4127_v19  ;;  %6614 = vmatpush3.bf16.msra.mxu1 %v7170_v23  ;;  %6605 = vmatprep.mubr.msk.bf16.mxu1 %vm7228_vm0, %v7227_v1  ;;  %v4123_v9 = vsel %vm7346_vm3, %v4118_v54, %v4122_v42  ;;  %v5883_v40 = vcombine.low %v8307_v4, %v8326_v55  ;;  %v4352_v51 = vld [vmem:[#allocation2 + $0x8] sm:$0xe]  ;;  %v5890_v58 = vrot.slane %v4351_v46, 9  ;;  %v4354_v18 = vld [vmem:[#allocation2 + $0x18] sm:$0xe]  ;;  %v7177_v38 = vld [vmem:[%s8630_s4 + $0x30] sm:$0xff]  }
 0x4c3   : > { %6615 = vmatprep.subr.bf16.mxu1 %v7227_v1  ;;  %v4071_v63 = vld [vmem:[#allocation2 + $0x28] sm:$0xf]  ;;  %v8356_v17 = vld [vmem:[#allocation2 + $0x2c] sm:$0x1]  ;;  %v4145_v2 = vor.u32 %v4144_v59, %v4141_v34  ;;  %v4150_v6 = vrot.slane %v4148_v14, 5  ;;  %v4371_v28 = vrot.slane %v8293_v39, 5 }
 0x4c4   : > { %v4132_v61 = vrot.slane %v4131_v47, 4  ;;  %v4153_v36 = vshrl.u32 %v4071_v63, 16  ;;  %v4156_v10 = vshll.u32 %v4071_v63, 16  ;;  %v4162_v20 = vshll.u32 %v8356_v17, 16  ;;  %v4353_v5 = vld [vmem:[#allocation2 + $0x10] sm:$0xe] }
 0x4c5   : > { %v4146_v35 = vrot.slane %v4145_v2, 4  ;;  %v5884_v49 = vcombine.low %v8343_v48, %v4071_v63  ;;  %v5891_v57 = vrot.slane %v4352_v51, 9  ;;  %v4375_v45 = vrot.slane %v8304_v37, 5  ;;  %v7178_v43 = vld [vmem:[%s8630_s4 + $0x38] sm:$0xff]   ;;  %v4356_v48 = vld [vmem:[#allocation2 + $0x28] sm:$0xe] }
 0x4c6   : > { %v4137_v12 = vsel %vm7346_vm3, %v4132_v61, %v4136_v62  ;;  %6616 = vmatpush3.bf16.msra.mxu1 %v7171_v56  ;;  %v4155_v16 = vrot.slane %v4153_v36, 4  ;;  %v4158_v60 = vrot.slane %v4156_v10, 5  ;;  %v4164_v22 = vrot.slane %v4162_v20, 5  ;;  %v4355_v19 = vld [vmem:[#allocation2 + $0x20] sm:$0xe]  ;;  %v7182_v59 = vld [vmem:[%s8630_s4 + $0x48] sm:$0xff]  }
 0x4c7   : > { %v5875_v15 = vcombine.low %v4123_v9, %v4137_v12  ;;  %6629 = vmatprep.subr.bf16.mxu1 %v7227_v1  ;;  %v4151_v8 = vsel %vm7346_vm3, %v4146_v35, %v4150_v6  ;;  %v4372_v4 = vsel %vm7686_vm14, %v5890_v58, %v4371_v28  ;;  %v4376_v55 = vsel %vm7686_vm14, %v5891_v57, %v4375_v45  ;;  %v7180_v42 = vld [vmem:[%s8630_s4 + $0x40] sm:$0xff]   ;;  %v7179_v56 = vld [vmem:[#allocation2 + $0x8] ss:$8 sps:$4 sm:$0xff]   ;;  %v8448_v20 = vld [vmem:[#allocation2 + $0xc] sm:$0x1] }
 0x4c8   : > { %v4159_v21 = vor.u32 %v4158_v60, %v4155_v16  ;;  %v5900_v39 = vcombine.low %v4372_v4, %v4376_v55  ;;  %v5893_v29 = vrot.slane %v4354_v18, 9  ;;  %v4383_v37 = vrot.slane %v8328_v24, 5  ;;  %v4601_v61 = vld [vmem:[#allocation2 + $0x8] sm:$0xf]  ;;  %v7181_v36 = vld [vmem:[#allocation2 + $0x18] ss:$8 sps:$4 sm:$0xff]  }
 0x4c9   : > { %6606 = vmatmul.mubr.msk.bf16.gmra.mrb[16].mxu1 %vm1323_vm11, %v5875_v15  ;;  %v5892_v7 = vrot.slane %v4353_v5, 9  ;;  %v4379_v23 = vrot.slane %v8321_v41, 5  ;;  %v5895_v26 = vrot.slane %v4356_v48, 9  ;;  %v4391_v41 = vrot.slane %v8356_v17, 5  ;;  %v4607_v12 = vld [vmem:[#allocation2 + $0x20] sm:$0xf] }
 0x4ca   : > { %6609 = vmatprep.mubr.msk.bf16.mxu1 %vm7228_vm0, %v7227_v1  ;;  %v4160_v25 = vrot.slane %v4159_v21, 4  ;;  %v4384_v50 = vsel %vm7686_vm14, %v5893_v29, %v4383_v37  ;;  %v5894_v53 = vrot.slane %v4355_v19, 9  ;;  %v4387_v0 = vrot.slane %v8353_v52, 5  ;;  %v4603_v52 = vld [vmem:[#allocation2 + $0x10] sm:$0xf] }
 0x4cb   : > { %v4380_v24 = vsel %vm7686_vm14, %v5892_v7, %v4379_v23  ;;  %v4392_v54 = vsel %vm7686_vm14, %v5895_v26, %v4391_v41  ;;  %v4628_v62 = vshrl.u32 %v4603_v52, 16  ;;  %v4631_v63 = vshll.u32 %v4603_v52, 16  ;;  %v8446_v16 = vld [vmem:[#allocation2 + $0x14] sm:$0x1]  ;;  %v4605_v60 = vld [vmem:[#allocation2 + $0x18] sm:$0xf] }
 0x4cc   : > { %v4165_v30 = vsel %vm7346_vm3, %v4160_v25, %v4164_v22  ;;  %v5901_v33 = vcombine.low %v4380_v24, %v4384_v50  ;;  %v4388_v47 = vsel %vm7686_vm14, %v5894_v53, %v4387_v0  ;;  %v4614_v17 = vshrl.u32 %v4601_v61, 16  ;;  %v4611_v46 = vld [vmem:[#allocation2 + $0x30] sm:$0xf]  ;;  %v8455_v58 = vld [vmem:[#allocation2 + $0x24] sm:$0x1]  ;;  %v7185_v0 = vld [vmem:[%s8630_s4 + $0x58] sm:$0xff]  }
 0x4cd   : > { %v5876_v27 = vcombine.low %v4151_v8, %v4165_v30  ;;  %v5902_v34 = vcombine.low %v4388_v47, %v4392_v54  ;;  %v4617_v2 = vshll.u32 %v4601_v61, 16  ;;  %v4630_v10 = vrot.slane %v4628_v62, 4  ;;  %v4609_v4 = vld [vmem:[#allocation2 + $0x28] sm:$0xf]  ;;  %v8459_v5 = vld [vmem:[#allocation2 + $0x1c] sm:$0x1] }
 0x4ce   : > { %v4633_v9 = vrot.slane %v4631_v63, 5  ;;  %v4616_v14 = vrot.slane %v4614_v17, 4  ;;  %v4656_v21 = vshrl.u32 %v4607_v12, 16  ;;  %v4659_v6 = vshll.u32 %v4607_v12, 16  ;;  %v7184_v7 = vld [vmem:[%s8630_s4 + $0x50] sm:$0xff]  }
 0x4cf   : > { %v4619_v15 = vrot.slane %v4617_v2, 5  ;;  %v4637_v22 = vshll.u32 %v8446_v16, 16  ;;  %v4642_v8 = vshrl.u32 %v4605_v60, 16  ;;  %v4645_v30 = vshll.u32 %v4605_v60, 16 }
 0x4d0   : > { %v4634_v35 = vor.u32 %v4633_v9, %v4630_v10  ;;  %v4665_v29 = vshll.u32 %v8455_v58, 16  ;;  %v4673_v50 = vshll.u32 %v4609_v4, 16  ;;  %v4651_v24 = vshll.u32 %v8459_v5, 16 }
 0x4d1   : > { %6610 = vmatmul.mubr.msk.bf16.gmra.mrb[20].mxu1 %vm1323_vm11, %v5876_v27  ;;  %v4620_v25 = vor.u32 %v4619_v15, %v4616_v14  ;;  %v7183_v27 = vld [vmem:[#allocation2 + $0x28] ss:$8 sps:$4 sm:$0xff]   ;;  %v4644_v28 = vrot.slane %v4642_v8, 4  ;;  %v4647_v57 = vrot.slane %v4645_v30, 5  ;;  %v4815_v8 = vrot.slane %v8448_v20, 5 }
 0x4d2   : > { %6617 = vmatprep.mubr.msk.bf16.mxu1 %vm7228_vm0, %v7227_v1  ;;  %v4667_v53 = vrot.slane %v4665_v29, 5  ;;  %v4675_v47 = vrot.slane %v4673_v50, 5  ;;  %v4796_v15 = vld [vmem:[#allocation2 + $0x10] sm:$0xe]  ;;  %v7191_v50 = vld [vmem:[%s8630_s4 + $0x78] sm:$0xff]  }
 0x4d3   : > { %v4621_v51 = vrot.slane %v4620_v25, 4  ;;  %v4648_v23 = vor.u32 %v4647_v57, %v4644_v28  ;;  %v4819_v25 = vrot.slane %v8446_v16, 5  ;;  %v4800_v57 = vld [vmem:[#allocation2 + $0x30] sm:$0xe] }
 0x4d5   : > { %v4649_v41 = vrot.slane %v4648_v23, 4  ;;  %v7188_v23 = vld [vmem:[#allocation2 + $0x10] ss:$8 sps:$4 sm:$0xff]  }
 0x4d9   : > { %6618 = vmatmul.mubr.msk.bf16.vlgmr.msra.gmra.mrb[12].mxu1 %vm1323_vm11, %v5882_v31  ;;  %v4635_v31 = vrot.slane %v4634_v35, 4 }
 0x4da   : > { %6630 = vmatpush3.bf16.msra.mxu1 %v7173_v13  ;;  %6621 = vmatprep.mubr.msk.bf16.mxu1 %vm7228_vm0, %v7227_v1  ;;  %v4623_v13 = vshll.u32 %v8448_v20, 16 }
 0x4db   : > { %6631 = vmatprep.subr.bf16.mxu1 %v7227_v1 }
 0x4dc   : > { %v4625_v45 = vrot.slane %v4623_v13, 5 }
 0x4de   : > { %6632 = vmatpush3.bf16.msra.mxu1 %v7175_v32  ;;  %v4658_v32 = vrot.slane %v4656_v21, 4  ;;  %v4626_v37 = vsel %vm7346_vm3, %v4621_v51, %v4625_v45  ;;  %v4795_v21 = vld [vmem:[#allocation2 + $0x8] sm:$0xe]  ;;  %v4823_v51 = vrot.slane %v8459_v5, 5 }
 0x4df   : > { %6645 = vmatprep.subr.bf16.mxu1 %v7227_v1 }
 0x4e1   : > { %6622 = vmatmul.mubr.msk.bf16.gmra.mrb[16].mxu1 %vm1323_vm11, %v5883_v40  ;;  %v4661_v40 = vrot.slane %v4659_v6, 5  ;;  %v5933_v6 = vrot.slane %v4796_v15, 9 }
 0x4e2   : > { %6625 = vmatprep.mubr.msk.bf16.mxu1 %vm7228_vm0, %v7227_v1 }
 0x4e3   : > { %v4662_v18 = vor.u32 %v4661_v40, %v4658_v32  ;;  %v4820_v30 = vsel %vm7686_vm14, %v5933_v6, %v4819_v25  ;;  %v4797_v32 = vld [vmem:[#allocation2 + $0x18] sm:$0xe] }
 0x4e4   : > { %v5934_v20 = vrot.slane %v4797_v32, 9 }
 0x4e9   : > { %6626 = vmatmul.mubr.msk.bf16.gmra.mrb[20].mxu1 %vm1323_vm11, %v5884_v49  ;;  %v4639_v49 = vrot.slane %v4637_v22, 5  ;;  %v5932_v22 = vrot.slane %v4795_v21, 9 }
 0x4ea   : > { %6633 = vmatprep.mubr.msk.bf16.mxu1 %vm7228_vm0, %v7227_v1 }
 0x4eb   : > { %v4640_v55 = vsel %vm7346_vm3, %v4635_v31, %v4639_v49  ;;  %v4816_v13 = vsel %vm7686_vm14, %v5932_v22, %v4815_v8  ;;  %v7186_v31 = vld [vmem:[%s8630_s4 + $0x60] sm:$0xff]   ;;  %v7187_v49 = vld [vmem:[%s8630_s4 + $0x68] sm:$0xff]  }
 0x4ec   : > { %v5924_v48 = vcombine.low %v4626_v37, %v4640_v55  ;;  %v5942_v16 = vcombine.low %v4816_v13, %v4820_v30  ;;  %v5937_v55 = vrot.slane %v4800_v57, 9  ;;  %v8546_v30 = vld [vmem:[#allocation2 + $0x2c] sm:$0x1] }
 0x4f1   : > { %6634 = vmatmul.mubr.msk.bf16.vlgmr.msra.gmra.mrb[12].mxu1 %vm1323_vm11, %v5900_v39  ;;  %v4687_v39 = vshll.u32 %v4611_v46, 16 }
 0x4f2   : > { %6646 = vmatpush3.bf16.msra.mxu1 %v7177_v38  ;;  %6637 = vmatprep.mubr.msk.bf16.mxu1 %vm7228_vm0, %v7227_v1  ;;  %v4684_v38 = vshrl.u32 %v4611_v46, 16  ;;  %v4827_v46 = vrot.slane %v8455_v58, 5  ;;  %v4824_v58 = vsel %vm7686_vm14, %v5934_v20, %v4823_v51  ;;  %v7193_v51 = vld [vmem:[%s8630_s4 + $0x80] sm:$0xff]  }
 0x4f3   : > { %6647 = vmatprep.subr.bf16.mxu1 %v7227_v1  ;;  %v4689_v26 = vrot.slane %v4687_v39, 5 }
 0x4f4   : > { %v4686_v19 = vrot.slane %v4684_v38, 4 }
 0x4f6   : > { %6648 = vmatpush3.bf16.msra.mxu1 %v7178_v43  ;;  %v4670_v43 = vshrl.u32 %v4609_v4, 16  ;;  %v4690_v52 = vor.u32 %v4689_v26, %v4686_v19  ;;  %v4799_v4 = vld [vmem:[#allocation2 + $0x28] sm:$0xe] }
 0x4f7   : > { %6661 = vmatprep.subr.bf16.mxu1 %v7227_v1  ;;  %v5936_v38 = vrot.slane %v4799_v4, 9 }
 0x4f8   : > { %v4672_v54 = vrot.slane %v4670_v43, 4  ;;  %v5047_v43 = vld [vmem:[#allocation2 + $0x18] sm:$0xf] }
 0x4f9   : > { %6638 = vmatmul.mubr.msk.bf16.gmra.mrb[16].mxu1 %vm1323_vm11, %v5901_v33  ;;  %v4663_v33 = vrot.slane %v4662_v18, 4 }
 0x4fa   : > { %6641 = vmatprep.mubr.msk.bf16.mxu1 %vm7228_vm0, %v7227_v1  ;;  %v4676_v62 = vor.u32 %v4675_v47, %v4672_v54  ;;  %v5051_v54 = vld [vmem:[#allocation2 + $0x28] sm:$0xf] }
 0x4fc   : > { %v4677_v10 = vrot.slane %v4676_v62, 4  ;;  %v5103_v62 = vshll.u32 %v5051_v54, 16 }
 0x4fe   : > { %v5105_v15 = vrot.slane %v5103_v62, 5 }
 0x501   : > { %6642 = vmatmul.mubr.msk.bf16.gmra.mrb[20].mxu1 %vm1323_vm11, %v5902_v34  ;;  %v4612_v34 = vld [vmem:[#allocation2 + $0x34] sm:$0x1] }
 0x502   : > { %6649 = vmatprep.mubr.msk.bf16.mxu1 %vm7228_vm0, %v7227_v1  ;;  %v4693_v63 = vshll.u32 %v4612_v34, 16  ;;  %v4835_v18 = vrot.slane %v4612_v34, 5 }
 0x504   : > { %v4695_v9 = vrot.slane %v4693_v63, 5  ;;  %v4836_v5 = vsel %vm7686_vm14, %v5937_v55, %v4835_v18 }
 0x509   : > { %6650 = vmatmul.mubr.msk.bf16.vlgmr.msra.gmra.mrb[12].mxu1 %vm1323_vm11, %v7179_v56  ;;  %v4668_v56 = vsel %vm7346_vm3, %v4663_v33, %v4667_v53  ;;  %v5075_v33 = vshll.u32 %v5047_v43, 16 }
 0x50a   : > { %6662 = vmatpush3.bf16.msra.mxu1 %v7180_v42  ;;  %6653 = vmatprep.mubr.msk.bf16.mxu1 %vm7228_vm0, %v7227_v1  ;;  %v4653_v42 = vrot.slane %v4651_v24, 5  ;;  %v5072_v24 = vshrl.u32 %v5047_v43, 16 }
 0x50b   : > { %6663 = vmatprep.subr.bf16.mxu1 %v7227_v1 }
 0x50c   : > { %v4654_v61 = vsel %vm7346_vm3, %v4649_v41, %v4653_v42  ;;  %v7190_v41 = vld [vmem:[#allocation2 + $0x20] ss:$8 sps:$4 sm:$0xff]   ;;  %v5074_v53 = vrot.slane %v5072_v24, 4  ;;  %v8537_v42 = vld [vmem:[#allocation2 + $0x1c] sm:$0x1] }
 0x50d   : > { %v5925_v17 = vcombine.low %v4654_v61, %v4668_v56  ;;  %v5049_v56 = vld [vmem:[#allocation2 + $0x20] sm:$0xf]  ;;  %v5100_v61 = vshrl.u32 %v5051_v54, 16 }
 0x50e   : > { %6664 = vmatpush3.bf16.msra.mxu1 %v7182_v59  ;;  %v4610_v59 = vld [vmem:[#allocation2 + $0x2c] sm:$0x1] }
 0x50f   : > { %6677 = vmatprep.subr.bf16.mxu1 %v7227_v1  ;;  %v4679_v2 = vshll.u32 %v4610_v59, 16  ;;  %v4831_v39 = vrot.slane %v4610_v59, 5 }
 0x511   : > { %6654 = vmatmul.mubr.msk.bf16.gmra.mrb[16].mxu1 %vm1323_vm11, %v7181_v36  ;;  %v4691_v36 = vrot.slane %v4690_v52, 4  ;;  %v4681_v12 = vrot.slane %v4679_v2, 5  ;;  %v4832_v29 = vsel %vm7686_vm14, %v5936_v38, %v4831_v39  ;;  %v8539_v52 = vld [vmem:[#allocation2 + $0x14] sm:$0x1]  ;;  %v5086_v2 = vshrl.u32 %v5049_v56, 16 }
 0x512   : > { %6657 = vmatprep.mubr.msk.bf16.mxu1 %vm7228_vm0, %v7227_v1  ;;  %v5944_v37 = vcombine.low %v4832_v29, %v4836_v5  ;;  %v7194_v29 = vld [vmem:[%s8630_s4 + $0x88] sm:$0xff]  }
 0x513   : > { %v4696_v14 = vsel %vm7346_vm3, %v4691_v36, %v4695_v9  ;;  %v4682_v60 = vsel %vm7346_vm3, %v4677_v10, %v4681_v12  ;;  %v5089_v36 = vshll.u32 %v5049_v56, 16  ;;  %v7192_v10 = vld [vmem:[#allocation2 + $0x30] ss:$8 sps:$4 sm:$0xff]   ;;  %v5067_v9 = vshll.u32 %v8539_v52, 16 }
 0x514   : > { %v5926_v35 = vcombine.low %v4682_v60, %v4696_v14  ;;  %v5102_v14 = vrot.slane %v5100_v61, 4  ;;  %v5055_v60 = vld [vmem:[#allocation2 + $0x38] sm:$0xf]  ;;  %v5088_v25 = vrot.slane %v5086_v2, 4  ;;  %v5239_v61 = vld [vmem:[#allocation2 + $0x10] sm:$0xe] }
 0x515   : > { %v5091_v22 = vrot.slane %v5089_v36, 5  ;;  %v5069_v8 = vrot.slane %v5067_v9, 5  ;;  %v5131_v13 = vshll.u32 %v5055_v60, 16  ;;  %v5240_v56 = vld [vmem:[#allocation2 + $0x18] sm:$0xe]  ;;  %v5259_v2 = vrot.slane %v8539_v52, 5 }
 0x516   : > { %v5975_v62 = vrot.slane %v5240_v56, 9 }
 0x519   : > { %6658 = vmatmul.mubr.msk.bf16.gmra.mrb[20].mxu1 %vm1323_vm11, %v7183_v27  ;;  %v4798_v27 = vld [vmem:[#allocation2 + $0x20] sm:$0xe] }
 0x51a   : > { %6665 = vmatprep.mubr.msk.bf16.mxu1 %vm7228_vm0, %v7227_v1  ;;  %v5935_v40 = vrot.slane %v4798_v27, 9  ;;  %v5128_v27 = vshrl.u32 %v5055_v60, 16 }
 0x51c   : > { %v4828_v28 = vsel %vm7686_vm14, %v5935_v40, %v4827_v46  ;;  %v8550_v46 = vld [vmem:[#allocation2 + $0x24] sm:$0x1] }
 0x51d   : > { %v5943_v45 = vcombine.low %v4824_v58, %v4828_v28  ;;  %v5109_v28 = vshll.u32 %v8546_v30, 16  ;;  %v5130_v58 = vrot.slane %v5128_v27, 4  ;;  %v5095_v4 = vshll.u32 %v8550_v46, 16 }
 0x51e   : > { %v5267_v52 = vrot.slane %v8550_v46, 5 }
 0x51f   : > { %v5111_v5 = vrot.slane %v5109_v28, 5  ;;  %v5097_v43 = vrot.slane %v5095_v4, 5  ;;  %v5418_v28 = vlaneseq }
 0x521   : > { %6666 = vmatmul.mubr.msk.bf16.vlgmr.msra.gmra.mrb[12].mxu1 %vm1323_vm11, %v5924_v48  ;;  %v5045_v48 = vld [vmem:[#allocation2 + $0x10] sm:$0xf] }
 0x522   : > { %6678 = vmatpush3.bf16.msra.mxu1 %v7184_v7  ;;  %6669 = vmatprep.mubr.msk.bf16.mxu1 %vm7228_vm0, %v7227_v1  ;;  %v7189_v7 = vld [vmem:[%s8630_s4 + $0x70] sm:$0xff]   ;;  %v5058_v19 = vshrl.u32 %v5045_v48, 16  ;;  %v5061_v26 = vshll.u32 %v5045_v48, 16 }
 0x523   : > { %6679 = vmatprep.subr.bf16.mxu1 %v7227_v1 }
 0x524   : > { %v5060_v47 = vrot.slane %v5058_v19, 4  ;;  %v5063_v34 = vrot.slane %v5061_v26, 5 }
 0x526   : > { %6680 = vmatpush3.bf16.msra.mxu1 %v7185_v0  ;;  %v5077_v0 = vrot.slane %v5075_v33, 5  ;;  %v5064_v63 = vor.u32 %v5063_v34, %v5060_v47 }
 0x527   : > { %6693 = vmatprep.subr.bf16.mxu1 %v7227_v1 }
 0x528   : > { %v5078_v59 = vor.u32 %v5077_v0, %v5074_v53  ;;  %v5065_v21 = vrot.slane %v5064_v63, 4  ;;  %v5263_v63 = vrot.slane %v8537_v42, 5 }
 0x529   : > { %6670 = vmatmul.mubr.msk.bf16.gmra.mrb[16].mxu1 %vm1323_vm11, %v5925_v17  ;;  %v5081_v17 = vshll.u32 %v8537_v42, 16  ;;  %v5271_v42 = vrot.slane %v8546_v30, 5 }
 0x52a   : > { %6673 = vmatprep.mubr.msk.bf16.mxu1 %vm7228_vm0, %v7227_v1  ;;  %v5079_v12 = vrot.slane %v5078_v59, 4  ;;  %v5070_v20 = vsel %vm7346_vm3, %v5065_v21, %v5069_v8  ;;  %v5264_v36 = vsel %vm7686_vm14, %v5975_v62, %v5263_v63  ;;  %v5244_v21 = vld [vmem:[#allocation2 + $0x38] sm:$0xe] }
 0x52b   : > { %v5083_v6 = vrot.slane %v5081_v17, 5  ;;  %v5974_v17 = vrot.slane %v5239_v61, 9  ;;  %v5979_v30 = vrot.slane %v5244_v21, 9 }
 0x52d   : > { %v5260_v44 = vsel %vm7686_vm14, %v5974_v17, %v5259_v2 }
 0x52e   : > { %v5984_v9 = vcombine.low %v5260_v44, %v5264_v36 }
 0x531   : > { %6674 = vmatmul.mubr.msk.bf16.gmra.mrb[20].mxu1 %vm1323_vm11, %v5926_v35  ;;  %v5053_v35 = vld [vmem:[#allocation2 + $0x30] sm:$0xf] }
 0x532   : > { %6681 = vmatprep.mubr.msk.bf16.mxu1 %vm7228_vm0, %v7227_v1  ;;  %v5114_v32 = vshrl.u32 %v5053_v35, 16  ;;  %v5117_v40 = vshll.u32 %v5053_v35, 16  ;;  %v5243_v35 = vld [vmem:[#allocation2 + $0x30] sm:$0xe] }
 0x534   : > { %v5116_v18 = vrot.slane %v5114_v32, 4  ;;  %v5119_v38 = vrot.slane %v5117_v40, 5 }
 0x536   : > { %v5120_v48 = vor.u32 %v5119_v38, %v5116_v18  ;;  %v5419_v18 = vshrl.u32 %v5418_v28, 7 }
 0x539   : > { %6682 = vmatmul.mubr.msk.bf16.vlgmr.msra.gmra.mrb[12].mxu1 %vm1323_vm11, %v5942_v16  ;;  %v5106_v16 = vor.u32 %v5105_v15, %v5102_v14 }
 0x53a   : > { %6694 = vmatpush3.bf16.msra.mxu1 %v7186_v31  ;;  %6685 = vmatprep.mubr.msk.bf16.mxu1 %vm7228_vm0, %v7227_v1  ;;  %v5084_v31 = vsel %vm7346_vm3, %v5079_v12, %v5083_v6  ;;  %v5241_v12 = vld [vmem:[#allocation2 + $0x20] sm:$0xe] }
 0x53b   : > { %6695 = vmatprep.subr.bf16.mxu1 %v7227_v1  ;;  %v5966_v57 = vcombine.low %v5070_v20, %v5084_v31  ;;  %v5107_v55 = vrot.slane %v5106_v16, 4  ;;  %v5976_v15 = vrot.slane %v5241_v12, 9 }
 0x53d   : > { %v5268_v6 = vsel %vm7686_vm14, %v5976_v15, %v5267_v52 }
 0x53e   : > { %6696 = vmatpush3.bf16.msra.mxu1 %v7187_v49  ;;  %v5092_v49 = vor.u32 %v5091_v22, %v5088_v25  ;;  %v5978_v22 = vrot.slane %v5243_v35, 9 }
 0x53f   : > { %6709 = vmatprep.subr.bf16.mxu1 %v7227_v1 }
 0x540   : > { %v5093_v39 = vrot.slane %v5092_v49, 4 }
 0x541   : > { %6686 = vmatmul.mubr.msk.bf16.gmra.mrb[16].mxu1 %vm1323_vm11, %v5943_v45  ;;  %v5133_v45 = vrot.slane %v5131_v13, 5 }
 0x542   : > { %6689 = vmatprep.mubr.msk.bf16.mxu1 %vm7228_vm0, %v7227_v1  ;;  %v5098_v33 = vsel %vm7346_vm3, %v5093_v39, %v5097_v43 }
 0x549   : > { %6690 = vmatmul.mubr.msk.bf16.gmra.mrb[20].mxu1 %vm1323_vm11, %v5944_v37  ;;  %v5054_v37 = vld [vmem:[#allocation2 + $0x34] sm:$0x1] }
 0x54a   : > { %6697 = vmatprep.mubr.msk.bf16.mxu1 %vm7228_vm0, %v7227_v1  ;;  %v5123_v19 = vshll.u32 %v5054_v37, 16  ;;  %v5275_v8 = vrot.slane %v5054_v37, 5 }
 0x54c   : > { %v5125_v54 = vrot.slane %v5123_v19, 5  ;;  %v5276_v13 = vsel %vm7686_vm14, %v5978_v22, %v5275_v8 }
 0x551   : > { %6698 = vmatmul.mubr.msk.bf16.vlgmr.msra.gmra.mrb[12].mxu1 %vm1323_vm11, %v7188_v23  ;;  %v5134_v23 = vor.u32 %v5133_v45, %v5130_v58 }
 0x552   : > { %6710 = vmatpush3.bf16.msra.mxu1 %v7189_v7  ;;  %6701 = vmatprep.mubr.msk.bf16.mxu1 %vm7228_vm0, %v7227_v1  ;;  %v5056_v7 = vld [vmem:[#allocation2 + $0x3c] sm:$0x1] }
 0x553   : > { %6711 = vmatprep.subr.bf16.mxu1 %v7227_v1  ;;  %v5137_v24 = vshll.u32 %v5056_v7, 16  ;;  %v5135_v53 = vrot.slane %v5134_v23, 4  ;;  %v5279_v27 = vrot.slane %v5056_v7, 5  ;;  %v5417_v23 = vsel %vm5380_vm15, 1, %v7229_v3 }
 0x555   : > { %v5139_v0 = vrot.slane %v5137_v24, 5  ;;  %v5280_v31 = vsel %vm7686_vm14, %v5979_v30, %v5279_v27 }
 0x556   : > { %6712 = vmatpush3.bf16.msra.mxu1 %v7191_v50  ;;  %v5112_v50 = vsel %vm7346_vm3, %v5107_v55, %v5111_v5  ;;  %v5986_v16 = vcombine.low %v5276_v13, %v5280_v31 }
 0x557   : > { %6725 = vmatprep.subr.bf16.mxu1 %v7227_v1  ;;  %v5967_v26 = vcombine.low %v5098_v33, %v5112_v50  ;;  %v5140_v34 = vsel %vm7346_vm3, %v5135_v53, %v5139_v0 }
 0x559   : > { %6702 = vmatmul.mubr.msk.bf16.gmra.mrb[16].mxu1 %vm1323_vm11, %v7190_v41  ;;  %v5121_v41 = vrot.slane %v5120_v48, 4 }
 0x55a   : > { %6705 = vmatprep.mubr.msk.bf16.mxu1 %vm7228_vm0, %v7227_v1 }
 0x55b   : > { %v5126_v47 = vsel %vm7346_vm3, %v5121_v41, %v5125_v54 }
 0x55c   : > { %v5968_v59 = vcombine.low %v5126_v47, %v5140_v34 }
 0x561   : > { %6706 = vmatmul.mubr.msk.bf16.gmra.mrb[20].mxu1 %vm1323_vm11, %v7192_v10  ;;  %v5242_v10 = vld [vmem:[#allocation2 + $0x28] sm:$0xe] }
 0x562   : > { %6713 = vmatprep.mubr.msk.bf16.mxu1 %vm7228_vm0, %v7227_v1  ;;  %v5977_v14 = vrot.slane %v5242_v10, 9 }
 0x564   : > { %v5272_v60 = vsel %vm7686_vm14, %v5977_v14, %v5271_v42 }
 0x565   : > { %v5985_v25 = vcombine.low %v5268_v6, %v5272_v60 }
 0x569   : > { %6714 = vmatmul.mubr.msk.bf16.vlgmr.msra.gmra.mrb[12].mxu1 %vm1323_vm11, %v5966_v57 }
 0x56a   : > { %6726 = vmatpush3.bf16.msra.mxu1 %v7193_v51  ;;  %6717 = vmatprep.mubr.msk.bf16.mxu1 %vm7228_vm0, %v7227_v1 }
 0x56b   : > { %6727 = vmatprep.subr.bf16.mxu1 %v7227_v1 }
 0x56e   : > { %6728 = vmatpush3.bf16.msra.mxu1 %v7194_v29  ;;  %v5420_v29 = vsub.s32 0, %v5419_v18 }
 0x570   : > { %v5421_v19 = vrot.slane %v5417_v23, %v5420_v29 }
 0x571   : > { %6718 = vmatmul.mubr.msk.bf16.gmra.mrb[16].mxu1 %vm1323_vm11, %v5967_v26 }
 0x572   : > { %6721 = vmatprep.mubr.msk.bf16.mxu1 %vm7228_vm0, %v7227_v1 }
 0x579   : > { %6722 = vmatmul.mubr.msk.bf16.gmra.mrb[20].mxu1 %vm1323_vm11, %v5968_v59 }
 0x57a   : > { %6729 = vmatprep.mubr.msk.bf16.mxu1 %vm7228_vm0, %v7227_v1 }
 0x581   : > { %6730 = vmatmul.mubr.msk.bf16.vlgmr.msra.gmra.mrb[12].mxu1 %vm1323_vm11, %v5984_v9 }
 0x582   : > { %6733 = vmatprep.mubr.msk.bf16.mxu1 %vm7228_vm0, %v7227_v1 }
 0x589   : > { %6734 = vmatmul.mubr.msk.bf16.gmra.mrb[16].mxu1 %vm1323_vm11, %v5985_v25 }
 0x58a   : > { %6737 = vmatprep.mubr.msk.bf16.mxu1 %vm7228_vm0, %v7227_v1  ;;  %vm5422_vm0 = vcmp.eq.s32.totalorder %v5421_v19, 1 }
 0x591   : > { %6738 = vmatmul.mubr.msk.bf16.gmra.mrb[20].mxu1 %vm1323_vm11, %v5986_v16 }
 0x654   : > { %v5350_v32 = vpop.f32.mrb[12].mxu1 }
 0x655   : > { %v5992_v40 = vmul.f32 -1.442695, %v5350_v32  ;;  %v6731_v46 = vpop.f32.mrb[13].mxu1 }
 0x656   : > { %v5353_v20 = vpop.f32.mrb[14].mxu1 }
 0x657   : > { %7195 = vpow2.f32 %v5992_v40  ;;  %v5993_v51 = vmul.f32 -1.442695, %v5353_v20  ;;  %v6732_v49 = vpop.f32.mrb[15].mxu1 }
 0x659   : > { %7197 = vpow2.f32 %v5993_v51 }
 0x65c   : > { %v5358_v57 = vpop.f32.mrb[16].mxu1 }
 0x65d   : > { %v5994_v1 = vmul.f32 -1.442695, %v5358_v57  ;;  %v6735_v58 = vpop.f32.mrb[17].mxu1 }
 0x65e   : > { %v5361_v45 = vpop.f32.mrb[18].mxu1 }
 0x65f   : > { %7199 = vpow2.f32 %v5994_v1  ;;  %v5995_v4 = vmul.f32 -1.442695, %v5361_v45  ;;  %v6736_v55 = vpop.f32.mrb[19].mxu1 }
 0x661   : > { %v7196_v38 = vpop.eup %7195  ;;  %7201 = vpow2.f32 %v5995_v4 }
 0x662   : > { %v5399_v39 = vadd.f32 1.0, %v7196_v38 }
 0x663   : > { %v7198_v5 = vpop.eup %7197 }
 0x664   : > { %7203 = vrcp.f32 %v5399_v39  ;;  %v5400_v37 = vadd.f32 1.0, %v7198_v5  ;;  %v5366_v7 = vpop.f32.mrb[20].mxu1 }
 0x665   : > { %v5996_v43 = vmul.f32 -1.442695, %v5366_v7  ;;  %v6739_v50 = vpop.f32.mrb[21].mxu1 }
 0x666   : > { %7205 = vrcp.f32 %v5400_v37  ;;  %v5369_v48 = vpop.f32.mrb[22].mxu1 }
 0x667   : > { %7207 = vpow2.f32 %v5996_v43  ;;  %v5997_v24 = vmul.f32 -1.442695, %v5369_v48  ;;  %v6740_v33 = vpop.f32.mrb[23].mxu1 }
 0x669   : > { %v7200_v26 = vpop.eup %7199  ;;  %7209 = vpow2.f32 %v5997_v24 }
 0x66a   : > { %v5401_v41 = vadd.f32 1.0, %v7200_v26 }
 0x66b   : > { %v7202_v53 = vpop.eup %7201 }
 0x66c   : > { %7211 = vrcp.f32 %v5401_v41  ;;  %v5402_v0 = vadd.f32 1.0, %v7202_v53 }
 0x66e   : > { %v7204_v3 = vpop.eup %7203  ;;  %7213 = vrcp.f32 %v5402_v0 }
 0x66f   : > { %v5423_v54 = vsel %vm5422_vm0, %v7204_v3, %v5350_v32 }
 0x670   : > { %v7206_v47 = vpop.eup %7205  ;;  %5430 = vst.msk [vmem:[%s251_s29] sm:$0xff] %vm5429_vm1, %v5423_v54 }
 0x671   : > { %v7208_v34 = vpop.eup %7207  ;;  %v5424_v56 = vsel %vm5422_vm0, %v7206_v47, %v5353_v20 }
 0x672   : > { %5431 = vst.msk [vmem:[%s251_s29 + $0x8] sm:$0xff] %vm5429_vm1, %v5424_v56  ;;  %v5403_v59 = vadd.f32 1.0, %v7208_v34 }
 0x673   : > { %v7210_v61 = vpop.eup %7209 }
 0x674   : > { %7215 = vrcp.f32 %v5403_v59  ;;  %v5404_v62 = vadd.f32 1.0, %v7210_v61 }
 0x676   : > { %v7212_v63 = vpop.eup %7211  ;;  %7217 = vrcp.f32 %v5404_v62 }
 0x677   : > { %v5425_v17 = vsel %vm5422_vm0, %v7212_v63, %v5358_v57 }
 0x678   : > { %v7214_v2 = vpop.eup %7213  ;;  %5432 = vst.msk [vmem:[%s251_s29 + $0x10] sm:$0xff] %vm5429_vm1, %v5425_v17 }
 0x679   : > { %v5426_v36 = vsel %vm5422_vm0, %v7214_v2, %v5361_v45 }
 0x67a   : > { %5433 = vst.msk [vmem:[%s251_s29 + $0x18] sm:$0xff] %vm5429_vm1, %v5426_v36 }
 0x67e   : > { %v7216_v10 = vpop.eup %7215 }
 0x67f   : > { %v5427_v44 = vsel %vm5422_vm0, %v7216_v10, %v5366_v7 }
 0x680   : > { %v7218_v9 = vpop.eup %7217  ;;  %5434 = vst.msk [vmem:[%s251_s29 + $0x20] sm:$0xff] %vm5429_vm1, %v5427_v44 }
 0x681   : > { %v5428_v12 = vsel %vm5422_vm0, %v7218_v9, %v5369_v48 }
 0x682   : > { %5435 = vst.msk [vmem:[%s251_s29 + $0x28] sm:$0xff] %vm5429_vm1, %v5428_v12 }
 0x683 PF: > { %s16_s21 = sadd.s32 1, %s7225_s21  }
 0x684   : > { %p13_p4 = scmp.ge.s32.totalorder %s16_s21, 4  }
 0x686   :  { %15 = sbr.rel (!%p13_p4) target bundleno = 1 (0x1), region = 105 }

</bundles_post_ra>
